<compile_context>
chip_gen: v6e
topology: v6e:2x2x1
jax: 0.10.0
libtpu: 0.0.40
codegen_flags: <defaults>
</compile_context>

<pallas_src>
import math

import jax
import jax.numpy as jnp
from jax import lax
from jax.experimental import pallas as pl
from jax.experimental.pallas import tpu as pltpu

# Model hyper-parameters from the PyTorch module
D_K = D_V = 64
D_MODEL = 64
N_HEADS = 4
D_FF = 64
LN_EPS = 1e-5
HD = N_HEADS * D_K          # 256


def _layernorm(x):
    # PyTorch nn.LayerNorm(d_model) default: affine weight=1, bias=0, biased var
    mu = jnp.mean(x, axis=-1, keepdims=True)
    var = jnp.mean(jnp.square(x - mu), axis=-1, keepdims=True)
    return (x - mu) * lax.rsqrt(var + LN_EPS)


def decoder_layer_kernel(dec_ref, enc_ref, dpad_ref, epad_ref,
                         wqkv1_ref, fc1_ref, wq2_ref, wkv2_ref, fc2_ref,
                         wff1_ref, wff2_ref,
                         out_ref, self_attn_ref, enc_attn_ref):
    BB, T, D = dec_ref.shape
    S = enc_ref.shape[1]
    scale = jnp.float32(1.0 / math.sqrt(D_K))

    x = dec_ref[...].reshape(BB * T, D)        # all decoder rows of the block
    enc = enc_ref[...].reshape(BB * S, D)      # all encoder rows of the block

    # Masks (True == masked), built once and hoisted out of the head loops.
    # Causal mask generated in-kernel; only the tiny pad vectors are DMA'd.
    row = lax.broadcasted_iota(jnp.int32, (T, T), 0)
    col = lax.broadcasted_iota(jnp.int32, (T, T), 1)
    causal = col > row                                          # strict upper
    dpad = dpad_ref[...][:, 0, :] > 0.5                         # (BB, T)
    epad = epad_ref[...][:, 0, :] > 0.5                         # (BB, S)
    self_mask = jnp.logical_or(causal[None, :, :], dpad[:, None, :])  # (BB,T,T)
    cross_mask = jnp.broadcast_to(epad[:, None, :], (BB, T, S))       # (BB,T,S)

    def mha(q_flat, k_flat, v_flat, Lq, Lk, mask, fc_w, attn_ref, resid):
        """q_flat (BB*Lq, HD) pre-scaled by 1/sqrt(d_k); k/v_flat (BB*Lk, HD).
        mask (BB, Lq, Lk), True == masked.  Stores per-head probabilities into
        attn_ref[h] (head-major).  Returns LayerNorm(fc(ctx) + resid)."""
        q3 = q_flat.reshape(BB, Lq, HD)
        k3 = k_flat.reshape(BB, Lk, HD)
        v3 = v_flat.reshape(BB, Lk, HD)
        ctx_heads = []
        for h in range(N_HEADS):               # static unrolled (N_HEADS == 4)
            sl = slice(h * D_K, (h + 1) * D_K)
            scores = jnp.einsum("bqd,bkd->bqk", q3[..., sl], k3[..., sl],
                                preferred_element_type=jnp.float32)
            scores = jnp.where(mask, jnp.float32(-1e9), scores)
            scores = scores - jnp.max(scores, axis=-1, keepdims=True)
            p = jnp.exp(scores)
            # Exact normalization: the probabilities are returned to the caller.
            attn = p / jnp.sum(p, axis=-1, keepdims=True)
            attn_ref[h] = attn                  # contiguous head-major store
            ctx_heads.append(jnp.einsum("bqk,bkd->bqd", attn, v3[..., sl],
                                        preferred_element_type=jnp.float32))
        # Single (BB*Lq, 256) @ (256, 64) output projection: the K=256 head
        # accumulation happens inside the MXU instead of as VPU adds.
        ctx = jnp.concatenate(ctx_heads, axis=-1).reshape(BB * Lq, N_HEADS * D_V)
        proj = jnp.dot(ctx, fc_w, preferred_element_type=jnp.float32)
        # TODO(synk): nn.Dropout(p=0.2) omitted — inference (identity) semantics.
        return _layernorm(proj + resid)

    # ---- 1) masked decoder self-attention (fused Q|K|V projection) -----------
    qkv1 = jnp.dot(x, wqkv1_ref[...], preferred_element_type=jnp.float32)
    h1 = mha(qkv1[:, :HD] * scale, qkv1[:, HD:2 * HD], qkv1[:, 2 * HD:],
             T, T, self_mask, fc1_ref[...], self_attn_ref, x)

    # ---- 2) decoder-encoder cross attention (fused K|V projection) -----------
    q2 = jnp.dot(h1, wq2_ref[...], preferred_element_type=jnp.float32) * scale
    kv2 = jnp.dot(enc, wkv2_ref[...], preferred_element_type=jnp.float32)
    h2 = mha(q2, kv2[:, :HD], kv2[:, HD:], T, S, cross_mask,
             fc2_ref[...], enc_attn_ref, h1)

    # ---- 3) position-wise FFN + residual + LayerNorm --------------------------
    hid = jnp.maximum(
        jnp.dot(h2, wff1_ref[...], preferred_element_type=jnp.float32), 0.0)
    ffn = jnp.dot(hid, wff2_ref[...], preferred_element_type=jnp.float32)
    out_ref[...] = _layernorm(ffn + h2).reshape(BB, T, D)


def _default_grid_blocks(batch):
    # 1 grid step on single-TensorCore chips (v5e/v6e): a second step is purely
    # serial overhead there.  Split the batch in 2 "parallel" steps only where
    # a second TensorCore exists (v7x).
    try:
        kind = jax.devices()[0].device_kind.lower()
    except Exception:
        kind = ""
    two_tensorcores = ("v7" in kind) or ("7x" in kind)
    return 2 if (two_tensorcores and batch >= 2 and batch % 2 == 0) else 1


def decoder_layer(dec_inputs, enc_outputs, dec_key_pad, enc_key_pad, params,
                  *, grid_blocks=None):
    B, T, D = dec_inputs.shape
    S = enc_outputs.shape[1]
    if grid_blocks is None:
        grid_blocks = _default_grid_blocks(B)
    assert B % grid_blocks == 0
    BB = B // grid_blocks

    # key-padding rows as (B, 1, L) so block trailing dims equal full array dims
    dpad = dec_key_pad.astype(jnp.float32).reshape(B, 1, T)
    epad = enc_key_pad.astype(jnp.float32).reshape(B, 1, S)

    # Fused projection weights, packed once in the wrapper (lane-aligned slices
    # at 0/256/512 inside the kernel).
    wqkv1 = jnp.concatenate([params["wq1"], params["wk1"], params["wv1"]], axis=1)
    wkv2 = jnp.concatenate([params["wk2"], params["wv2"]], axis=1)

    w2d = lambda shape: pl.BlockSpec(shape, lambda i: (0, 0))
    in_specs = [
        pl.BlockSpec((BB, T, D), lambda i: (i, 0, 0)),    # dec_inputs
        pl.BlockSpec((BB, S, D), lambda i: (i, 0, 0)),    # enc_outputs
        pl.BlockSpec((BB, 1, T), lambda i: (i, 0, 0)),    # dec key-pad
        pl.BlockSpec((BB, 1, S), lambda i: (i, 0, 0)),    # enc key-pad
        w2d((D_MODEL, 3 * HD)),                           # wqkv1 (fused Q|K|V)
        w2d((N_HEADS * D_V, D_MODEL)),                    # fc1
        w2d((D_MODEL, HD)),                               # wq2
        w2d((D_MODEL, 2 * HD)),                           # wkv2 (fused K|V)
        w2d((N_HEADS * D_V, D_MODEL)),                    # fc2
        w2d((D_MODEL, D_FF)),                             # ffn W1
        w2d((D_FF, D_MODEL)),                             # ffn W2
    ]
    # Attention probs are produced head-major (H, B, T, Lk) so the kernel can
    # store each head with a single leading-index, offset-0 contiguous store;
    # the cheap (H,B,..)->(B,H,..) transpose is done in the wrapper.
    out_specs = (
        pl.BlockSpec((BB, T, D), lambda i: (i, 0, 0)),
        pl.BlockSpec((N_HEADS, BB, T, T), lambda i: (0, i, 0, 0)),
        pl.BlockSpec((N_HEADS, BB, T, S), lambda i: (0, i, 0, 0)),
    )
    out_shape = (
        jax.ShapeDtypeStruct((B, T, D), jnp.float32),
        jax.ShapeDtypeStruct((N_HEADS, B, T, T), jnp.float32),
        jax.ShapeDtypeStruct((N_HEADS, B, T, S), jnp.float32),
    )

    fn = pl.pallas_call(
        decoder_layer_kernel,
        out_shape=out_shape,
        grid_spec=pltpu.PrefetchScalarGridSpec(
            num_scalar_prefetch=0,
            grid=(grid_blocks,),
            in_specs=in_specs,
            out_specs=out_specs,
        ),
        # TODO(synk): on v7x verify the 2-step grid really shards across both
        # TensorCores (CORE_PARALLEL / core_map); "parallel" is the safe default.
        compiler_params=pltpu.CompilerParams(
            dimension_semantics=("parallel",)),
    )
    out, sa_hmaj, ea_hmaj = fn(
        dec_inputs, enc_outputs, dpad, epad,
        wqkv1, params["fc1"], params["wq2"], wkv2, params["fc2"],
        params["wff1"], params["wff2"])

    self_attn = sa_hmaj.transpose(1, 0, 2, 3)     # (B, H, T, T)
    enc_attn = ea_hmaj.transpose(1, 0, 2, 3)      # (B, H, T, S)
    return out, self_attn, enc_attn


# ------------------------- pure-JAX reference ------------------------------
def _ref_mha(q_in, kv_in, mask, wq, wk, wv, w_fc):
    B, Lq, D = q_in.shape
    Lk = kv_in.shape[1]
    Q = (q_in @ wq).reshape(B, Lq, N_HEADS, D_K).transpose(0, 2, 1, 3)
    K = (kv_in @ wk).reshape(B, Lk, N_HEADS, D_K).transpose(0, 2, 1, 3)
    V = (kv_in @ wv).reshape(B, Lk, N_HEADS, D_V).transpose(0, 2, 1, 3)
    scores = jnp.einsum("bhqd,bhkd->bhqk", Q, K) / math.sqrt(D_K)
    scores = jnp.where(mask[:, None], -1e9, scores)
    attn = jax.nn.softmax(scores, axis=-1)
    ctx = jnp.einsum("bhqk,bhkd->bhqd", attn, V)
    ctx = ctx.transpose(0, 2, 1, 3).reshape(B, Lq, N_HEADS * D_V)
    out = ctx @ w_fc
    return _layernorm(out + q_in), attn


def reference(dec_inputs, enc_outputs, dec_key_pad, enc_key_pad, p):
    B, T, _ = dec_inputs.shape
    S = enc_outputs.shape[1]
    causal = jnp.triu(jnp.ones((T, T), bool), k=1)
    self_mask = jnp.logical_or(causal[None], dec_key_pad[:, None, :] > 0.5)
    enc_mask = jnp.broadcast_to(enc_key_pad[:, None, :] > 0.5, (B, T, S))
    h1, a1 = _ref_mha(dec_inputs, dec_inputs, self_mask,
                      p["wq1"], p["wk1"], p["wv1"], p["fc1"])
    h2, a2 = _ref_mha(h1, enc_outputs, enc_mask,
                      p["wq2"], p["wk2"], p["wv2"], p["fc2"])
    ffn = jnp.maximum(h2 @ p["wff1"], 0.0) @ p["wff2"]
    return _layernorm(ffn + h2), a1, a2


if __name__ == "__main__":
    # f32 matmuls in the reference too (the kernel accumulates in f32).
    jax.config.update("jax_default_matmul_precision", "highest")

    B, T, S = 2, 8, 16
    key = jax.random.PRNGKey(0)
    keys = jax.random.split(key, 16)

    dec_inputs = jax.random.normal(keys[0], (B, T, D_MODEL), jnp.float32)
    enc_outputs = jax.random.normal(keys[1], (B, S, D_MODEL), jnp.float32)

    # key-padding indicators (1.0 == pad token id 0), as in get_attn_pad_mask
    dec_lens = jnp.array([T, T - 2])
    enc_lens = jnp.array([S, S - 3])
    dec_key_pad = (jnp.arange(T)[None, :] >= dec_lens[:, None]).astype(jnp.float32)
    enc_key_pad = (jnp.arange(S)[None, :] >= enc_lens[:, None]).astype(jnp.float32)

    sc = 0.05
    params = {
        "wq1": sc * jax.random.normal(keys[3], (D_MODEL, N_HEADS * D_K), jnp.float32),
        "wk1": sc * jax.random.normal(keys[4], (D_MODEL, N_HEADS * D_K), jnp.float32),
        "wv1": sc * jax.random.normal(keys[5], (D_MODEL, N_HEADS * D_V), jnp.float32),
        "fc1": sc * jax.random.normal(keys[6], (N_HEADS * D_V, D_MODEL), jnp.float32),
        "wq2": sc * jax.random.normal(keys[7], (D_MODEL, N_HEADS * D_K), jnp.float32),
        "wk2": sc * jax.random.normal(keys[8], (D_MODEL, N_HEADS * D_K), jnp.float32),
        "wv2": sc * jax.random.normal(keys[9], (D_MODEL, N_HEADS * D_V), jnp.float32),
        "fc2": sc * jax.random.normal(keys[10], (N_HEADS * D_V, D_MODEL), jnp.float32),
        "wff1": sc * jax.random.normal(keys[11], (D_MODEL, D_FF), jnp.float32),
        "wff2": sc * jax.random.normal(keys[12], (D_FF, D_MODEL), jnp.float32),
    }

    out, self_attn, enc_attn = decoder_layer(
        dec_inputs, enc_outputs, dec_key_pad, enc_key_pad, params)
    jax.block_until_ready((out, self_attn, enc_attn))

    ref_out, ref_a1, ref_a2 = reference(
        dec_inputs, enc_outputs, dec_key_pad, enc_key_pad, params)

    # Exact softmax normalization in-kernel -> tight tolerances.
    assert jnp.allclose(out, ref_out, atol=1e-3, rtol=1e-3), "dec_outputs mismatch"
    assert jnp.allclose(self_attn, ref_a1, atol=1e-3, rtol=1e-3), "self attn mismatch"
    assert jnp.allclose(enc_attn, ref_a2, atol=1e-3, rtol=1e-3), "enc attn mismatch"

    print("KERNEL_OK")
</pallas_src>

<mosaic_0001>
module attributes {stable_mosaic.version = 11 : i64} {
  func.func @decoder_layer_kernel(%arg0: i32, %arg1: memref<2x8x64xf32, #tpu.memory_space<vmem>>, %arg2: memref<2x16x64xf32, #tpu.memory_space<vmem>>, %arg3: memref<2x1x8xf32, #tpu.memory_space<vmem>>, %arg4: memref<2x1x16xf32, #tpu.memory_space<vmem>>, %arg5: memref<64x768xf32, #tpu.memory_space<vmem>>, %arg6: memref<256x64xf32, #tpu.memory_space<vmem>>, %arg7: memref<64x256xf32, #tpu.memory_space<vmem>>, %arg8: memref<64x512xf32, #tpu.memory_space<vmem>>, %arg9: memref<256x64xf32, #tpu.memory_space<vmem>>, %arg10: memref<64x64xf32, #tpu.memory_space<vmem>>, %arg11: memref<64x64xf32, #tpu.memory_space<vmem>>, %arg12: memref<2x8x64xf32, #tpu.memory_space<vmem>>, %arg13: memref<4x2x8x8xf32, #tpu.memory_space<vmem>>, %arg14: memref<4x2x8x16xf32, #tpu.memory_space<vmem>>) attributes {dimension_semantics = [#tpu.dimension_semantics<parallel>], iteration_bounds = array<i64: 1>, scalar_prefetch = 0 : i64, scratch_operands = 0 : i64, tpu.core_type = #tpu.core_type<tc>, window_params = [{transform_indices = @transform_0, window_bounds = array<i64: 2, 8, 64>}, {transform_indices = @transform_1, window_bounds = array<i64: 2, 16, 64>}, {transform_indices = @transform_2, window_bounds = array<i64: 2, 1, 8>}, {transform_indices = @transform_3, window_bounds = array<i64: 2, 1, 16>}, {pipeline_mode = #tpu.pipeline_mode<synchronous>, transform_indices = @transform_4, window_bounds = array<i64: 64, 768>}, {pipeline_mode = #tpu.pipeline_mode<synchronous>, transform_indices = @transform_5, window_bounds = array<i64: 256, 64>}, {pipeline_mode = #tpu.pipeline_mode<synchronous>, transform_indices = @transform_6, window_bounds = array<i64: 64, 256>}, {pipeline_mode = #tpu.pipeline_mode<synchronous>, transform_indices = @transform_7, window_bounds = array<i64: 64, 512>}, {pipeline_mode = #tpu.pipeline_mode<synchronous>, transform_indices = @transform_8, window_bounds = array<i64: 256, 64>}, {pipeline_mode = #tpu.pipeline_mode<synchronous>, transform_indices = @transform_9, window_bounds = array<i64: 64, 64>}, {pipeline_mode = #tpu.pipeline_mode<synchronous>, transform_indices = @transform_10, window_bounds = array<i64: 64, 64>}, {transform_indices = @transform_11, window_bounds = array<i64: 2, 8, 64>}, {transform_indices = @transform_12, window_bounds = array<i64: 4, 2, 8, 8>}, {transform_indices = @transform_13, window_bounds = array<i64: 4, 2, 8, 16>}]} {
    %c0 = arith.constant 0 : index
    %c0_0 = arith.constant 0 : index
    %c0_1 = arith.constant 0 : index
    %0 = vector.load %arg1[%c0, %c0_0, %c0_1] : memref<2x8x64xf32, #tpu.memory_space<vmem>>, vector<2x8x64xf32>
    %1 = vector.shape_cast %0 : vector<2x8x64xf32> to vector<16x64xf32>
    %c0_2 = arith.constant 0 : index
    %c0_3 = arith.constant 0 : index
    %c0_4 = arith.constant 0 : index
    %2 = vector.load %arg2[%c0_2, %c0_3, %c0_4] : memref<2x16x64xf32, #tpu.memory_space<vmem>>, vector<2x16x64xf32>
    %3 = vector.shape_cast %2 : vector<2x16x64xf32> to vector<32x64xf32>
    %4 = tpu.iota {dimensions = array<i32: 0>} : vector<8x8xi32>
    %5 = tpu.iota {dimensions = array<i32: 1>} : vector<8x8xi32>
    %6 = arith.cmpi sgt, %5, %4 : vector<8x8xi32>
    %c0_5 = arith.constant 0 : index
    %c0_6 = arith.constant 0 : index
    %c0_7 = arith.constant 0 : index
    %7 = vector.load %arg3[%c0_5, %c0_6, %c0_7] : memref<2x1x8xf32, #tpu.memory_space<vmem>>, vector<2x1x8xf32>
    %8 = vector.shape_cast %7 : vector<2x1x8xf32> to vector<2x8xf32>
    %cst = arith.constant 5.000000e-01 : f32
    %9 = vector.broadcast %cst : f32 to vector<2x8xf32>
    %10 = arith.cmpf ogt, %8, %9 : vector<2x8xf32>
    %c0_8 = arith.constant 0 : index
    %c0_9 = arith.constant 0 : index
    %c0_10 = arith.constant 0 : index
    %11 = vector.load %arg4[%c0_8, %c0_9, %c0_10] : memref<2x1x16xf32, #tpu.memory_space<vmem>>, vector<2x1x16xf32>
    %12 = vector.shape_cast %11 : vector<2x1x16xf32> to vector<2x16xf32>
    %cst_11 = arith.constant 5.000000e-01 : f32
    %13 = vector.broadcast %cst_11 : f32 to vector<2x16xf32>
    %14 = arith.cmpf ogt, %12, %13 : vector<2x16xf32>
    %15 = vector.shape_cast %6 : vector<8x8xi1> to vector<1x8x8xi1>
    %16 = vector.shape_cast %10 : vector<2x8xi1> to vector<2x1x8xi1>
    %17 = vector.broadcast %15 : vector<1x8x8xi1> to vector<2x8x8xi1>
    %18 = vector.broadcast %16 : vector<2x1x8xi1> to vector<2x8x8xi1>
    %19 = arith.ori %17, %18 : vector<2x8x8xi1>
    %20 = vector.shape_cast %14 : vector<2x16xi1> to vector<2x1x16xi1>
    %21 = vector.shape_cast %20 : vector<2x1x16xi1> to vector<2x1x16xi1>
    %22 = vector.broadcast %21 : vector<2x1x16xi1> to vector<2x8x16xi1>
    %c0_12 = arith.constant 0 : index
    %c0_13 = arith.constant 0 : index
    %23 = vector.load %arg5[%c0_12, %c0_13] : memref<64x768xf32, #tpu.memory_space<vmem>>, vector<64x768xf32>
    %cst_14 = arith.constant dense<0.000000e+00> : vector<16x768xf32>
    %24 = tpu.matmul %1, %23, %cst_14 {dimension_numbers = #tpu.dot_dimension_numbers<[1], [0], [0], [1], [0, 0, 1, 1], [], []>, precision = #tpu.contract_precision<fp32>} : vector<16x64xf32>, vector<64x768xf32>, vector<16x768xf32> -> vector<16x768xf32>
    %25 = vector.extract_strided_slice %24 {offsets = [0, 0], sizes = [16, 256], strides = [1, 1]} : vector<16x768xf32> to vector<16x256xf32>
    %cst_15 = arith.constant 1.250000e-01 : f32
    %26 = vector.broadcast %cst_15 : f32 to vector<16x256xf32>
    %27 = arith.mulf %25, %26 : vector<16x256xf32>
    %28 = vector.extract_strided_slice %24 {offsets = [0, 256], sizes = [16, 256], strides = [1, 1]} : vector<16x768xf32> to vector<16x256xf32>
    %29 = vector.extract_strided_slice %24 {offsets = [0, 512], sizes = [16, 256], strides = [1, 1]} : vector<16x768xf32> to vector<16x256xf32>
    %c0_16 = arith.constant 0 : index
    %c0_17 = arith.constant 0 : index
    %30 = vector.load %arg6[%c0_16, %c0_17] : memref<256x64xf32, #tpu.memory_space<vmem>>, vector<256x64xf32>
    %31 = vector.shape_cast %27 : vector<16x256xf32> to vector<2x8x256xf32>
    %32 = vector.shape_cast %28 : vector<16x256xf32> to vector<2x8x256xf32>
    %33 = vector.shape_cast %29 : vector<16x256xf32> to vector<2x8x256xf32>
    %34 = vector.extract_strided_slice %31 {offsets = [0, 0, 0], sizes = [2, 8, 64], strides = [1, 1, 1]} : vector<2x8x256xf32> to vector<2x8x64xf32>
    %35 = vector.extract_strided_slice %32 {offsets = [0, 0, 0], sizes = [2, 8, 64], strides = [1, 1, 1]} : vector<2x8x256xf32> to vector<2x8x64xf32>
    "tpu.trace_start"() <{level = 10 : i32, message = "bqd,bkd->bqk"}> : () -> ()
    %cst_18 = arith.constant dense<0.000000e+00> : vector<2x8x8xf32>
    %36 = tpu.matmul %34, %35, %cst_18 {dimension_numbers = #tpu.dot_dimension_numbers<[2], [2], [1], [1], [0, 0, 0, 1, 1, 1], [0], [0]>, precision = #tpu.contract_precision<fp32>} : vector<2x8x64xf32>, vector<2x8x64xf32>, vector<2x8x8xf32> -> vector<2x8x8xf32>
    %cst_19 = arith.constant -1.000000e+09 : f32
    "tpu.trace_stop"() : () -> ()
    %37 = vector.broadcast %cst_19 : f32 to vector<2x8x8xf32>
    %38 = arith.select %19, %37, %36 : vector<2x8x8xi1>, vector<2x8x8xf32>
    %cst_20 = arith.constant dense<0xFF800000> : vector<2x8xf32>
    %39 = vector.multi_reduction <maximumf>, %38, %cst_20 [2] : vector<2x8x8xf32> to vector<2x8xf32>
    %40 = vector.shape_cast %39 : vector<2x8xf32> to vector<2x8x1xf32>
    %41 = vector.broadcast %40 : vector<2x8x1xf32> to vector<2x8x8xf32>
    %42 = arith.subf %38, %41 : vector<2x8x8xf32>
    %43 = math.exp %42 : vector<2x8x8xf32>
    %cst_21 = arith.constant dense<0.000000e+00> : vector<2x8xf32>
    %44 = vector.multi_reduction <add>, %43, %cst_21 [2] : vector<2x8x8xf32> to vector<2x8xf32>
    %45 = vector.shape_cast %44 : vector<2x8xf32> to vector<2x8x1xf32>
    %46 = vector.broadcast %45 : vector<2x8x1xf32> to vector<2x8x8xf32>
    %47 = arith.divf %43, %46 : vector<2x8x8xf32>
    %c0_22 = arith.constant 0 : index
    %c0_23 = arith.constant 0 : index
    %c0_24 = arith.constant 0 : index
    %c0_25 = arith.constant 0 : index
    %48 = vector.load %arg13[%c0_22, %c0_23, %c0_24, %c0_25] : memref<4x2x8x8xf32, #tpu.memory_space<vmem>>, vector<1x2x8x8xf32>
    %49 = vector.shape_cast %48 : vector<1x2x8x8xf32> to vector<2x8x8xf32>
    %50 = vector.shape_cast %47 : vector<2x8x8xf32> to vector<1x2x8x8xf32>
    tpu.vector_store %arg13[%c0_22, %c0_23, %c0_24, %c0_25], %50 {strides = array<i32>} : memref<4x2x8x8xf32, #tpu.memory_space<vmem>>, vector<1x2x8x8xf32>,
    %51 = vector.extract_strided_slice %33 {offsets = [0, 0, 0], sizes = [2, 8, 64], strides = [1, 1, 1]} : vector<2x8x256xf32> to vector<2x8x64xf32>
    "tpu.trace_start"() <{level = 10 : i32, message = "bqk,bkd->bqd"}> : () -> ()
    %cst_26 = arith.constant dense<0.000000e+00> : vector<2x8x64xf32>
    %52 = tpu.matmul %47, %51, %cst_26 {dimension_numbers = #tpu.dot_dimension_numbers<[2], [1], [1], [2], [0, 0, 0, 1, 1, 2], [0], [0]>, precision = #tpu.contract_precision<fp32>} : vector<2x8x8xf32>, vector<2x8x64xf32>, vector<2x8x64xf32> -> vector<2x8x64xf32>
    "tpu.trace_stop"() : () -> ()
    %53 = vector.extract_strided_slice %31 {offsets = [0, 0, 64], sizes = [2, 8, 64], strides = [1, 1, 1]} : vector<2x8x256xf32> to vector<2x8x64xf32>
    %54 = vector.extract_strided_slice %32 {offsets = [0, 0, 64], sizes = [2, 8, 64], strides = [1, 1, 1]} : vector<2x8x256xf32> to vector<2x8x64xf32>
    "tpu.trace_start"() <{level = 10 : i32, message = "bqd,bkd->bqk"}> : () -> ()
    %cst_27 = arith.constant dense<0.000000e+00> : vector<2x8x8xf32>
    %55 = tpu.matmul %53, %54, %cst_27 {dimension_numbers = #tpu.dot_dimension_numbers<[2], [2], [1], [1], [0, 0, 0, 1, 1, 1], [0], [0]>, precision = #tpu.contract_precision<fp32>} : vector<2x8x64xf32>, vector<2x8x64xf32>, vector<2x8x8xf32> -> vector<2x8x8xf32>
    %cst_28 = arith.constant -1.000000e+09 : f32
    "tpu.trace_stop"() : () -> ()
    %56 = vector.broadcast %cst_28 : f32 to vector<2x8x8xf32>
    %57 = arith.select %19, %56, %55 : vector<2x8x8xi1>, vector<2x8x8xf32>
    %cst_29 = arith.constant dense<0xFF800000> : vector<2x8xf32>
    %58 = vector.multi_reduction <maximumf>, %57, %cst_29 [2] : vector<2x8x8xf32> to vector<2x8xf32>
    %59 = vector.shape_cast %58 : vector<2x8xf32> to vector<2x8x1xf32>
    %60 = vector.broadcast %59 : vector<2x8x1xf32> to vector<2x8x8xf32>
    %61 = arith.subf %57, %60 : vector<2x8x8xf32>
    %62 = math.exp %61 : vector<2x8x8xf32>
    %cst_30 = arith.constant dense<0.000000e+00> : vector<2x8xf32>
    %63 = vector.multi_reduction <add>, %62, %cst_30 [2] : vector<2x8x8xf32> to vector<2x8xf32>
    %64 = vector.shape_cast %63 : vector<2x8xf32> to vector<2x8x1xf32>
    %65 = vector.broadcast %64 : vector<2x8x1xf32> to vector<2x8x8xf32>
    %66 = arith.divf %62, %65 : vector<2x8x8xf32>
    %c1 = arith.constant 1 : index
    %c0_31 = arith.constant 0 : index
    %c0_32 = arith.constant 0 : index
    %c0_33 = arith.constant 0 : index
    %67 = vector.load %arg13[%c1, %c0_31, %c0_32, %c0_33] : memref<4x2x8x8xf32, #tpu.memory_space<vmem>>, vector<1x2x8x8xf32>
    %68 = vector.shape_cast %67 : vector<1x2x8x8xf32> to vector<2x8x8xf32>
    %69 = vector.shape_cast %66 : vector<2x8x8xf32> to vector<1x2x8x8xf32>
    tpu.vector_store %arg13[%c1, %c0_31, %c0_32, %c0_33], %69 {strides = array<i32>} : memref<4x2x8x8xf32, #tpu.memory_space<vmem>>, vector<1x2x8x8xf32>,
    %70 = vector.extract_strided_slice %33 {offsets = [0, 0, 64], sizes = [2, 8, 64], strides = [1, 1, 1]} : vector<2x8x256xf32> to vector<2x8x64xf32>
    "tpu.trace_start"() <{level = 10 : i32, message = "bqk,bkd->bqd"}> : () -> ()
    %cst_34 = arith.constant dense<0.000000e+00> : vector<2x8x64xf32>
    %71 = tpu.matmul %66, %70, %cst_34 {dimension_numbers = #tpu.dot_dimension_numbers<[2], [1], [1], [2], [0, 0, 0, 1, 1, 2], [0], [0]>, precision = #tpu.contract_precision<fp32>} : vector<2x8x8xf32>, vector<2x8x64xf32>, vector<2x8x64xf32> -> vector<2x8x64xf32>
    "tpu.trace_stop"() : () -> ()
    %72 = vector.extract_strided_slice %31 {offsets = [0, 0, 128], sizes = [2, 8, 64], strides = [1, 1, 1]} : vector<2x8x256xf32> to vector<2x8x64xf32>
    %73 = vector.extract_strided_slice %32 {offsets = [0, 0, 128], sizes = [2, 8, 64], strides = [1, 1, 1]} : vector<2x8x256xf32> to vector<2x8x64xf32>
    "tpu.trace_start"() <{level = 10 : i32, message = "bqd,bkd->bqk"}> : () -> ()
    %cst_35 = arith.constant dense<0.000000e+00> : vector<2x8x8xf32>
    %74 = tpu.matmul %72, %73, %cst_35 {dimension_numbers = #tpu.dot_dimension_numbers<[2], [2], [1], [1], [0, 0, 0, 1, 1, 1], [0], [0]>, precision = #tpu.contract_precision<fp32>} : vector<2x8x64xf32>, vector<2x8x64xf32>, vector<2x8x8xf32> -> vector<2x8x8xf32>
    %cst_36 = arith.constant -1.000000e+09 : f32
    "tpu.trace_stop"() : () -> ()
    %75 = vector.broadcast %cst_36 : f32 to vector<2x8x8xf32>
    %76 = arith.select %19, %75, %74 : vector<2x8x8xi1>, vector<2x8x8xf32>
    %cst_37 = arith.constant dense<0xFF800000> : vector<2x8xf32>
    %77 = vector.multi_reduction <maximumf>, %76, %cst_37 [2] : vector<2x8x8xf32> to vector<2x8xf32>
    %78 = vector.shape_cast %77 : vector<2x8xf32> to vector<2x8x1xf32>
    %79 = vector.broadcast %78 : vector<2x8x1xf32> to vector<2x8x8xf32>
    %80 = arith.subf %76, %79 : vector<2x8x8xf32>
    %81 = math.exp %80 : vector<2x8x8xf32>
    %cst_38 = arith.constant dense<0.000000e+00> : vector<2x8xf32>
    %82 = vector.multi_reduction <add>, %81, %cst_38 [2] : vector<2x8x8xf32> to vector<2x8xf32>
    %83 = vector.shape_cast %82 : vector<2x8xf32> to vector<2x8x1xf32>
    %84 = vector.broadcast %83 : vector<2x8x1xf32> to vector<2x8x8xf32>
    %85 = arith.divf %81, %84 : vector<2x8x8xf32>
    %c2 = arith.constant 2 : index
    %c0_39 = arith.constant 0 : index
    %c0_40 = arith.constant 0 : index
    %c0_41 = arith.constant 0 : index
    %86 = vector.load %arg13[%c2, %c0_39, %c0_40, %c0_41] : memref<4x2x8x8xf32, #tpu.memory_space<vmem>>, vector<1x2x8x8xf32>
    %87 = vector.shape_cast %86 : vector<1x2x8x8xf32> to vector<2x8x8xf32>
    %88 = vector.shape_cast %85 : vector<2x8x8xf32> to vector<1x2x8x8xf32>
    tpu.vector_store %arg13[%c2, %c0_39, %c0_40, %c0_41], %88 {strides = array<i32>} : memref<4x2x8x8xf32, #tpu.memory_space<vmem>>, vector<1x2x8x8xf32>,
    %89 = vector.extract_strided_slice %33 {offsets = [0, 0, 128], sizes = [2, 8, 64], strides = [1, 1, 1]} : vector<2x8x256xf32> to vector<2x8x64xf32>
    "tpu.trace_start"() <{level = 10 : i32, message = "bqk,bkd->bqd"}> : () -> ()
    %cst_42 = arith.constant dense<0.000000e+00> : vector<2x8x64xf32>
    %90 = tpu.matmul %85, %89, %cst_42 {dimension_numbers = #tpu.dot_dimension_numbers<[2], [1], [1], [2], [0, 0, 0, 1, 1, 2], [0], [0]>, precision = #tpu.contract_precision<fp32>} : vector<2x8x8xf32>, vector<2x8x64xf32>, vector<2x8x64xf32> -> vector<2x8x64xf32>
    "tpu.trace_stop"() : () -> ()
    %91 = vector.extract_strided_slice %31 {offsets = [0, 0, 192], sizes = [2, 8, 64], strides = [1, 1, 1]} : vector<2x8x256xf32> to vector<2x8x64xf32>
    %92 = vector.extract_strided_slice %32 {offsets = [0, 0, 192], sizes = [2, 8, 64], strides = [1, 1, 1]} : vector<2x8x256xf32> to vector<2x8x64xf32>
    "tpu.trace_start"() <{level = 10 : i32, message = "bqd,bkd->bqk"}> : () -> ()
    %cst_43 = arith.constant dense<0.000000e+00> : vector<2x8x8xf32>
    %93 = tpu.matmul %91, %92, %cst_43 {dimension_numbers = #tpu.dot_dimension_numbers<[2], [2], [1], [1], [0, 0, 0, 1, 1, 1], [0], [0]>, precision = #tpu.contract_precision<fp32>} : vector<2x8x64xf32>, vector<2x8x64xf32>, vector<2x8x8xf32> -> vector<2x8x8xf32>
    %cst_44 = arith.constant -1.000000e+09 : f32
    "tpu.trace_stop"() : () -> ()
    %94 = vector.broadcast %cst_44 : f32 to vector<2x8x8xf32>
    %95 = arith.select %19, %94, %93 : vector<2x8x8xi1>, vector<2x8x8xf32>
    %cst_45 = arith.constant dense<0xFF800000> : vector<2x8xf32>
    %96 = vector.multi_reduction <maximumf>, %95, %cst_45 [2] : vector<2x8x8xf32> to vector<2x8xf32>
    %97 = vector.shape_cast %96 : vector<2x8xf32> to vector<2x8x1xf32>
    %98 = vector.broadcast %97 : vector<2x8x1xf32> to vector<2x8x8xf32>
    %99 = arith.subf %95, %98 : vector<2x8x8xf32>
    %100 = math.exp %99 : vector<2x8x8xf32>
    %cst_46 = arith.constant dense<0.000000e+00> : vector<2x8xf32>
    %101 = vector.multi_reduction <add>, %100, %cst_46 [2] : vector<2x8x8xf32> to vector<2x8xf32>
    %102 = vector.shape_cast %101 : vector<2x8xf32> to vector<2x8x1xf32>
    %103 = vector.broadcast %102 : vector<2x8x1xf32> to vector<2x8x8xf32>
    %104 = arith.divf %100, %103 : vector<2x8x8xf32>
    %c3 = arith.constant 3 : index
    %c0_47 = arith.constant 0 : index
    %c0_48 = arith.constant 0 : index
    %c0_49 = arith.constant 0 : index
    %105 = vector.load %arg13[%c3, %c0_47, %c0_48, %c0_49] : memref<4x2x8x8xf32, #tpu.memory_space<vmem>>, vector<1x2x8x8xf32>
    %106 = vector.shape_cast %105 : vector<1x2x8x8xf32> to vector<2x8x8xf32>
    %107 = vector.shape_cast %104 : vector<2x8x8xf32> to vector<1x2x8x8xf32>
    tpu.vector_store %arg13[%c3, %c0_47, %c0_48, %c0_49], %107 {strides = array<i32>} : memref<4x2x8x8xf32, #tpu.memory_space<vmem>>, vector<1x2x8x8xf32>,
    %108 = vector.extract_strided_slice %33 {offsets = [0, 0, 192], sizes = [2, 8, 64], strides = [1, 1, 1]} : vector<2x8x256xf32> to vector<2x8x64xf32>
    "tpu.trace_start"() <{level = 10 : i32, message = "bqk,bkd->bqd"}> : () -> ()
    %cst_50 = arith.constant dense<0.000000e+00> : vector<2x8x64xf32>
    %109 = tpu.matmul %104, %108, %cst_50 {dimension_numbers = #tpu.dot_dimension_numbers<[2], [1], [1], [2], [0, 0, 0, 1, 1, 2], [0], [0]>, precision = #tpu.contract_precision<fp32>} : vector<2x8x8xf32>, vector<2x8x64xf32>, vector<2x8x64xf32> -> vector<2x8x64xf32>
    "tpu.trace_stop"() : () -> ()
    %110 = tpu.concatenate %52, %71, %90, %109 in 2 : vector<2x8x64xf32>, vector<2x8x64xf32>, vector<2x8x64xf32>, vector<2x8x64xf32> -> vector<2x8x256xf32>
    %111 = vector.shape_cast %110 : vector<2x8x256xf32> to vector<16x256xf32>
    %cst_51 = arith.constant dense<0.000000e+00> : vector<16x64xf32>
    %112 = tpu.matmul %111, %30, %cst_51 {dimension_numbers = #tpu.dot_dimension_numbers<[1], [0], [0], [1], [0, 0, 1, 1], [], []>, precision = #tpu.contract_precision<fp32>} : vector<16x256xf32>, vector<256x64xf32>, vector<16x64xf32> -> vector<16x64xf32>
    %113 = arith.addf %112, %1 : vector<16x64xf32>
    %cst_52 = arith.constant dense<0.000000e+00> : vector<16xf32>
    %114 = vector.multi_reduction <add>, %113, %cst_52 [1] : vector<16x64xf32> to vector<16xf32>
    %115 = vector.shape_cast %114 : vector<16xf32> to vector<16x1xf32>
    %cst_53 = arith.constant 6.400000e+01 : f32
    %116 = vector.broadcast %cst_53 : f32 to vector<16x1xf32>
    %117 = arith.divf %115, %116 : vector<16x1xf32>
    %118 = vector.broadcast %117 : vector<16x1xf32> to vector<16x64xf32>
    %119 = arith.subf %113, %118 : vector<16x64xf32>
    %120 = arith.mulf %119, %119 : vector<16x64xf32>
    %cst_54 = arith.constant dense<0.000000e+00> : vector<16xf32>
    %121 = vector.multi_reduction <add>, %120, %cst_54 [1] : vector<16x64xf32> to vector<16xf32>
    %122 = vector.shape_cast %121 : vector<16xf32> to vector<16x1xf32>
    %cst_55 = arith.constant 6.400000e+01 : f32
    %123 = vector.broadcast %cst_55 : f32 to vector<16x1xf32>
    %124 = arith.divf %122, %123 : vector<16x1xf32>
    %125 = vector.broadcast %117 : vector<16x1xf32> to vector<16x64xf32>
    %126 = arith.subf %113, %125 : vector<16x64xf32>
    %cst_56 = arith.constant 9.99999974E-6 : f32
    %127 = vector.broadcast %cst_56 : f32 to vector<16x1xf32>
    %128 = arith.addf %124, %127 : vector<16x1xf32>
    %129 = math.rsqrt %128 : vector<16x1xf32>
    %130 = vector.broadcast %129 : vector<16x1xf32> to vector<16x64xf32>
    %131 = arith.mulf %126, %130 : vector<16x64xf32>
    %c0_57 = arith.constant 0 : index
    %c0_58 = arith.constant 0 : index
    %132 = vector.load %arg7[%c0_57, %c0_58] : memref<64x256xf32, #tpu.memory_space<vmem>>, vector<64x256xf32>
    %cst_59 = arith.constant dense<0.000000e+00> : vector<16x256xf32>
    %133 = tpu.matmul %131, %132, %cst_59 {dimension_numbers = #tpu.dot_dimension_numbers<[1], [0], [0], [1], [0, 0, 1, 1], [], []>, precision = #tpu.contract_precision<fp32>} : vector<16x64xf32>, vector<64x256xf32>, vector<16x256xf32> -> vector<16x256xf32>
    %cst_60 = arith.constant 1.250000e-01 : f32
    %134 = vector.broadcast %cst_60 : f32 to vector<16x256xf32>
    %135 = arith.mulf %133, %134 : vector<16x256xf32>
    %c0_61 = arith.constant 0 : index
    %c0_62 = arith.constant 0 : index
    %136 = vector.load %arg8[%c0_61, %c0_62] : memref<64x512xf32, #tpu.memory_space<vmem>>, vector<64x512xf32>
    %cst_63 = arith.constant dense<0.000000e+00> : vector<32x512xf32>
    %137 = tpu.matmul %3, %136, %cst_63 {dimension_numbers = #tpu.dot_dimension_numbers<[1], [0], [0], [1], [0, 0, 1, 1], [], []>, precision = #tpu.contract_precision<fp32>} : vector<32x64xf32>, vector<64x512xf32>, vector<32x512xf32> -> vector<32x512xf32>
    %138 = vector.extract_strided_slice %137 {offsets = [0, 0], sizes = [32, 256], strides = [1, 1]} : vector<32x512xf32> to vector<32x256xf32>
    %139 = vector.extract_strided_slice %137 {offsets = [0, 256], sizes = [32, 256], strides = [1, 1]} : vector<32x512xf32> to vector<32x256xf32>
    %c0_64 = arith.constant 0 : index
    %c0_65 = arith.constant 0 : index
    %140 = vector.load %arg9[%c0_64, %c0_65] : memref<256x64xf32, #tpu.memory_space<vmem>>, vector<256x64xf32>
    %141 = vector.shape_cast %135 : vector<16x256xf32> to vector<2x8x256xf32>
    %142 = vector.shape_cast %138 : vector<32x256xf32> to vector<2x16x256xf32>
    %143 = vector.shape_cast %139 : vector<32x256xf32> to vector<2x16x256xf32>
    %144 = vector.extract_strided_slice %141 {offsets = [0, 0, 0], sizes = [2, 8, 64], strides = [1, 1, 1]} : vector<2x8x256xf32> to vector<2x8x64xf32>
    %145 = vector.extract_strided_slice %142 {offsets = [0, 0, 0], sizes = [2, 16, 64], strides = [1, 1, 1]} : vector<2x16x256xf32> to vector<2x16x64xf32>
    "tpu.trace_start"() <{level = 10 : i32, message = "bqd,bkd->bqk"}> : () -> ()
    %cst_66 = arith.constant dense<0.000000e+00> : vector<2x8x16xf32>
    %146 = tpu.matmul %144, %145, %cst_66 {dimension_numbers = #tpu.dot_dimension_numbers<[2], [2], [1], [1], [0, 0, 0, 1, 1, 1], [0], [0]>, precision = #tpu.contract_precision<fp32>} : vector<2x8x64xf32>, vector<2x16x64xf32>, vector<2x8x16xf32> -> vector<2x8x16xf32>
    %cst_67 = arith.constant -1.000000e+09 : f32
    "tpu.trace_stop"() : () -> ()
    %147 = vector.broadcast %cst_67 : f32 to vector<2x8x16xf32>
    %148 = arith.select %22, %147, %146 : vector<2x8x16xi1>, vector<2x8x16xf32>
    %cst_68 = arith.constant dense<0xFF800000> : vector<2x8xf32>
    %149 = vector.multi_reduction <maximumf>, %148, %cst_68 [2] : vector<2x8x16xf32> to vector<2x8xf32>
    %150 = vector.shape_cast %149 : vector<2x8xf32> to vector<2x8x1xf32>
    %151 = vector.broadcast %150 : vector<2x8x1xf32> to vector<2x8x16xf32>
    %152 = arith.subf %148, %151 : vector<2x8x16xf32>
    %153 = math.exp %152 : vector<2x8x16xf32>
    %cst_69 = arith.constant dense<0.000000e+00> : vector<2x8xf32>
    %154 = vector.multi_reduction <add>, %153, %cst_69 [2] : vector<2x8x16xf32> to vector<2x8xf32>
    %155 = vector.shape_cast %154 : vector<2x8xf32> to vector<2x8x1xf32>
    %156 = vector.broadcast %155 : vector<2x8x1xf32> to vector<2x8x16xf32>
    %157 = arith.divf %153, %156 : vector<2x8x16xf32>
    %c0_70 = arith.constant 0 : index
    %c0_71 = arith.constant 0 : index
    %c0_72 = arith.constant 0 : index
    %c0_73 = arith.constant 0 : index
    %158 = vector.load %arg14[%c0_70, %c0_71, %c0_72, %c0_73] : memref<4x2x8x16xf32, #tpu.memory_space<vmem>>, vector<1x2x8x16xf32>
    %159 = vector.shape_cast %158 : vector<1x2x8x16xf32> to vector<2x8x16xf32>
    %160 = vector.shape_cast %157 : vector<2x8x16xf32> to vector<1x2x8x16xf32>
    tpu.vector_store %arg14[%c0_70, %c0_71, %c0_72, %c0_73], %160 {strides = array<i32>} : memref<4x2x8x16xf32, #tpu.memory_space<vmem>>, vector<1x2x8x16xf32>,
    %161 = vector.extract_strided_slice %143 {offsets = [0, 0, 0], sizes = [2, 16, 64], strides = [1, 1, 1]} : vector<2x16x256xf32> to vector<2x16x64xf32>
    "tpu.trace_start"() <{level = 10 : i32, message = "bqk,bkd->bqd"}> : () -> ()
    %cst_74 = arith.constant dense<0.000000e+00> : vector<2x8x64xf32>
    %162 = tpu.matmul %157, %161, %cst_74 {dimension_numbers = #tpu.dot_dimension_numbers<[2], [1], [1], [2], [0, 0, 0, 1, 1, 2], [0], [0]>, precision = #tpu.contract_precision<fp32>} : vector<2x8x16xf32>, vector<2x16x64xf32>, vector<2x8x64xf32> -> vector<2x8x64xf32>
    "tpu.trace_stop"() : () -> ()
    %163 = vector.extract_strided_slice %141 {offsets = [0, 0, 64], sizes = [2, 8, 64], strides = [1, 1, 1]} : vector<2x8x256xf32> to vector<2x8x64xf32>
    %164 = vector.extract_strided_slice %142 {offsets = [0, 0, 64], sizes = [2, 16, 64], strides = [1, 1, 1]} : vector<2x16x256xf32> to vector<2x16x64xf32>
    "tpu.trace_start"() <{level = 10 : i32, message = "bqd,bkd->bqk"}> : () -> ()
    %cst_75 = arith.constant dense<0.000000e+00> : vector<2x8x16xf32>
    %165 = tpu.matmul %163, %164, %cst_75 {dimension_numbers = #tpu.dot_dimension_numbers<[2], [2], [1], [1], [0, 0, 0, 1, 1, 1], [0], [0]>, precision = #tpu.contract_precision<fp32>} : vector<2x8x64xf32>, vector<2x16x64xf32>, vector<2x8x16xf32> -> vector<2x8x16xf32>
    %cst_76 = arith.constant -1.000000e+09 : f32
    "tpu.trace_stop"() : () -> ()
    %166 = vector.broadcast %cst_76 : f32 to vector<2x8x16xf32>
    %167 = arith.select %22, %166, %165 : vector<2x8x16xi1>, vector<2x8x16xf32>
    %cst_77 = arith.constant dense<0xFF800000> : vector<2x8xf32>
    %168 = vector.multi_reduction <maximumf>, %167, %cst_77 [2] : vector<2x8x16xf32> to vector<2x8xf32>
    %169 = vector.shape_cast %168 : vector<2x8xf32> to vector<2x8x1xf32>
    %170 = vector.broadcast %169 : vector<2x8x1xf32> to vector<2x8x16xf32>
    %171 = arith.subf %167, %170 : vector<2x8x16xf32>
    %172 = math.exp %171 : vector<2x8x16xf32>
    %cst_78 = arith.constant dense<0.000000e+00> : vector<2x8xf32>
    %173 = vector.multi_reduction <add>, %172, %cst_78 [2] : vector<2x8x16xf32> to vector<2x8xf32>
    %174 = vector.shape_cast %173 : vector<2x8xf32> to vector<2x8x1xf32>
    %175 = vector.broadcast %174 : vector<2x8x1xf32> to vector<2x8x16xf32>
    %176 = arith.divf %172, %175 : vector<2x8x16xf32>
    %c1_79 = arith.constant 1 : index
    %c0_80 = arith.constant 0 : index
    %c0_81 = arith.constant 0 : index
    %c0_82 = arith.constant 0 : index
    %177 = vector.load %arg14[%c1_79, %c0_80, %c0_81, %c0_82] : memref<4x2x8x16xf32, #tpu.memory_space<vmem>>, vector<1x2x8x16xf32>
    %178 = vector.shape_cast %177 : vector<1x2x8x16xf32> to vector<2x8x16xf32>
    %179 = vector.shape_cast %176 : vector<2x8x16xf32> to vector<1x2x8x16xf32>
    tpu.vector_store %arg14[%c1_79, %c0_80, %c0_81, %c0_82], %179 {strides = array<i32>} : memref<4x2x8x16xf32, #tpu.memory_space<vmem>>, vector<1x2x8x16xf32>,
    %180 = vector.extract_strided_slice %143 {offsets = [0, 0, 64], sizes = [2, 16, 64], strides = [1, 1, 1]} : vector<2x16x256xf32> to vector<2x16x64xf32>
    "tpu.trace_start"() <{level = 10 : i32, message = "bqk,bkd->bqd"}> : () -> ()
    %cst_83 = arith.constant dense<0.000000e+00> : vector<2x8x64xf32>
    %181 = tpu.matmul %176, %180, %cst_83 {dimension_numbers = #tpu.dot_dimension_numbers<[2], [1], [1], [2], [0, 0, 0, 1, 1, 2], [0], [0]>, precision = #tpu.contract_precision<fp32>} : vector<2x8x16xf32>, vector<2x16x64xf32>, vector<2x8x64xf32> -> vector<2x8x64xf32>
    "tpu.trace_stop"() : () -> ()
    %182 = vector.extract_strided_slice %141 {offsets = [0, 0, 128], sizes = [2, 8, 64], strides = [1, 1, 1]} : vector<2x8x256xf32> to vector<2x8x64xf32>
    %183 = vector.extract_strided_slice %142 {offsets = [0, 0, 128], sizes = [2, 16, 64], strides = [1, 1, 1]} : vector<2x16x256xf32> to vector<2x16x64xf32>
    "tpu.trace_start"() <{level = 10 : i32, message = "bqd,bkd->bqk"}> : () -> ()
    %cst_84 = arith.constant dense<0.000000e+00> : vector<2x8x16xf32>
    %184 = tpu.matmul %182, %183, %cst_84 {dimension_numbers = #tpu.dot_dimension_numbers<[2], [2], [1], [1], [0, 0, 0, 1, 1, 1], [0], [0]>, precision = #tpu.contract_precision<fp32>} : vector<2x8x64xf32>, vector<2x16x64xf32>, vector<2x8x16xf32> -> vector<2x8x16xf32>
    %cst_85 = arith.constant -1.000000e+09 : f32
    "tpu.trace_stop"() : () -> ()
    %185 = vector.broadcast %cst_85 : f32 to vector<2x8x16xf32>
    %186 = arith.select %22, %185, %184 : vector<2x8x16xi1>, vector<2x8x16xf32>
    %cst_86 = arith.constant dense<0xFF800000> : vector<2x8xf32>
    %187 = vector.multi_reduction <maximumf>, %186, %cst_86 [2] : vector<2x8x16xf32> to vector<2x8xf32>
    %188 = vector.shape_cast %187 : vector<2x8xf32> to vector<2x8x1xf32>
    %189 = vector.broadcast %188 : vector<2x8x1xf32> to vector<2x8x16xf32>
    %190 = arith.subf %186, %189 : vector<2x8x16xf32>
    %191 = math.exp %190 : vector<2x8x16xf32>
    %cst_87 = arith.constant dense<0.000000e+00> : vector<2x8xf32>
    %192 = vector.multi_reduction <add>, %191, %cst_87 [2] : vector<2x8x16xf32> to vector<2x8xf32>
    %193 = vector.shape_cast %192 : vector<2x8xf32> to vector<2x8x1xf32>
    %194 = vector.broadcast %193 : vector<2x8x1xf32> to vector<2x8x16xf32>
    %195 = arith.divf %191, %194 : vector<2x8x16xf32>
    %c2_88 = arith.constant 2 : index
    %c0_89 = arith.constant 0 : index
    %c0_90 = arith.constant 0 : index
    %c0_91 = arith.constant 0 : index
    %196 = vector.load %arg14[%c2_88, %c0_89, %c0_90, %c0_91] : memref<4x2x8x16xf32, #tpu.memory_space<vmem>>, vector<1x2x8x16xf32>
    %197 = vector.shape_cast %196 : vector<1x2x8x16xf32> to vector<2x8x16xf32>
    %198 = vector.shape_cast %195 : vector<2x8x16xf32> to vector<1x2x8x16xf32>
    tpu.vector_store %arg14[%c2_88, %c0_89, %c0_90, %c0_91], %198 {strides = array<i32>} : memref<4x2x8x16xf32, #tpu.memory_space<vmem>>, vector<1x2x8x16xf32>,
    %199 = vector.extract_strided_slice %143 {offsets = [0, 0, 128], sizes = [2, 16, 64], strides = [1, 1, 1]} : vector<2x16x256xf32> to vector<2x16x64xf32>
    "tpu.trace_start"() <{level = 10 : i32, message = "bqk,bkd->bqd"}> : () -> ()
    %cst_92 = arith.constant dense<0.000000e+00> : vector<2x8x64xf32>
    %200 = tpu.matmul %195, %199, %cst_92 {dimension_numbers = #tpu.dot_dimension_numbers<[2], [1], [1], [2], [0, 0, 0, 1, 1, 2], [0], [0]>, precision = #tpu.contract_precision<fp32>} : vector<2x8x16xf32>, vector<2x16x64xf32>, vector<2x8x64xf32> -> vector<2x8x64xf32>
    "tpu.trace_stop"() : () -> ()
    %201 = vector.extract_strided_slice %141 {offsets = [0, 0, 192], sizes = [2, 8, 64], strides = [1, 1, 1]} : vector<2x8x256xf32> to vector<2x8x64xf32>
    %202 = vector.extract_strided_slice %142 {offsets = [0, 0, 192], sizes = [2, 16, 64], strides = [1, 1, 1]} : vector<2x16x256xf32> to vector<2x16x64xf32>
    "tpu.trace_start"() <{level = 10 : i32, message = "bqd,bkd->bqk"}> : () -> ()
    %cst_93 = arith.constant dense<0.000000e+00> : vector<2x8x16xf32>
    %203 = tpu.matmul %201, %202, %cst_93 {dimension_numbers = #tpu.dot_dimension_numbers<[2], [2], [1], [1], [0, 0, 0, 1, 1, 1], [0], [0]>, precision = #tpu.contract_precision<fp32>} : vector<2x8x64xf32>, vector<2x16x64xf32>, vector<2x8x16xf32> -> vector<2x8x16xf32>
    %cst_94 = arith.constant -1.000000e+09 : f32
    "tpu.trace_stop"() : () -> ()
    %204 = vector.broadcast %cst_94 : f32 to vector<2x8x16xf32>
    %205 = arith.select %22, %204, %203 : vector<2x8x16xi1>, vector<2x8x16xf32>
    %cst_95 = arith.constant dense<0xFF800000> : vector<2x8xf32>
    %206 = vector.multi_reduction <maximumf>, %205, %cst_95 [2] : vector<2x8x16xf32> to vector<2x8xf32>
    %207 = vector.shape_cast %206 : vector<2x8xf32> to vector<2x8x1xf32>
    %208 = vector.broadcast %207 : vector<2x8x1xf32> to vector<2x8x16xf32>
    %209 = arith.subf %205, %208 : vector<2x8x16xf32>
    %210 = math.exp %209 : vector<2x8x16xf32>
    %cst_96 = arith.constant dense<0.000000e+00> : vector<2x8xf32>
    %211 = vector.multi_reduction <add>, %210, %cst_96 [2] : vector<2x8x16xf32> to vector<2x8xf32>
    %212 = vector.shape_cast %211 : vector<2x8xf32> to vector<2x8x1xf32>
    %213 = vector.broadcast %212 : vector<2x8x1xf32> to vector<2x8x16xf32>
    %214 = arith.divf %210, %213 : vector<2x8x16xf32>
    %c3_97 = arith.constant 3 : index
    %c0_98 = arith.constant 0 : index
    %c0_99 = arith.constant 0 : index
    %c0_100 = arith.constant 0 : index
    %215 = vector.load %arg14[%c3_97, %c0_98, %c0_99, %c0_100] : memref<4x2x8x16xf32, #tpu.memory_space<vmem>>, vector<1x2x8x16xf32>
    %216 = vector.shape_cast %215 : vector<1x2x8x16xf32> to vector<2x8x16xf32>
    %217 = vector.shape_cast %214 : vector<2x8x16xf32> to vector<1x2x8x16xf32>
    tpu.vector_store %arg14[%c3_97, %c0_98, %c0_99, %c0_100], %217 {strides = array<i32>} : memref<4x2x8x16xf32, #tpu.memory_space<vmem>>, vector<1x2x8x16xf32>,
    %218 = vector.extract_strided_slice %143 {offsets = [0, 0, 192], sizes = [2, 16, 64], strides = [1, 1, 1]} : vector<2x16x256xf32> to vector<2x16x64xf32>
    "tpu.trace_start"() <{level = 10 : i32, message = "bqk,bkd->bqd"}> : () -> ()
    %cst_101 = arith.constant dense<0.000000e+00> : vector<2x8x64xf32>
    %219 = tpu.matmul %214, %218, %cst_101 {dimension_numbers = #tpu.dot_dimension_numbers<[2], [1], [1], [2], [0, 0, 0, 1, 1, 2], [0], [0]>, precision = #tpu.contract_precision<fp32>} : vector<2x8x16xf32>, vector<2x16x64xf32>, vector<2x8x64xf32> -> vector<2x8x64xf32>
    "tpu.trace_stop"() : () -> ()
    %220 = tpu.concatenate %162, %181, %200, %219 in 2 : vector<2x8x64xf32>, vector<2x8x64xf32>, vector<2x8x64xf32>, vector<2x8x64xf32> -> vector<2x8x256xf32>
    %221 = vector.shape_cast %220 : vector<2x8x256xf32> to vector<16x256xf32>
    %cst_102 = arith.constant dense<0.000000e+00> : vector<16x64xf32>
    %222 = tpu.matmul %221, %140, %cst_102 {dimension_numbers = #tpu.dot_dimension_numbers<[1], [0], [0], [1], [0, 0, 1, 1], [], []>, precision = #tpu.contract_precision<fp32>} : vector<16x256xf32>, vector<256x64xf32>, vector<16x64xf32> -> vector<16x64xf32>
    %223 = arith.addf %222, %131 : vector<16x64xf32>
    %cst_103 = arith.constant dense<0.000000e+00> : vector<16xf32>
    %224 = vector.multi_reduction <add>, %223, %cst_103 [1] : vector<16x64xf32> to vector<16xf32>
    %225 = vector.shape_cast %224 : vector<16xf32> to vector<16x1xf32>
    %cst_104 = arith.constant 6.400000e+01 : f32
    %226 = vector.broadcast %cst_104 : f32 to vector<16x1xf32>
    %227 = arith.divf %225, %226 : vector<16x1xf32>
    %228 = vector.broadcast %227 : vector<16x1xf32> to vector<16x64xf32>
    %229 = arith.subf %223, %228 : vector<16x64xf32>
    %230 = arith.mulf %229, %229 : vector<16x64xf32>
    %cst_105 = arith.constant dense<0.000000e+00> : vector<16xf32>
    %231 = vector.multi_reduction <add>, %230, %cst_105 [1] : vector<16x64xf32> to vector<16xf32>
    %232 = vector.shape_cast %231 : vector<16xf32> to vector<16x1xf32>
    %cst_106 = arith.constant 6.400000e+01 : f32
    %233 = vector.broadcast %cst_106 : f32 to vector<16x1xf32>
    %234 = arith.divf %232, %233 : vector<16x1xf32>
    %235 = vector.broadcast %227 : vector<16x1xf32> to vector<16x64xf32>
    %236 = arith.subf %223, %235 : vector<16x64xf32>
    %cst_107 = arith.constant 9.99999974E-6 : f32
    %237 = vector.broadcast %cst_107 : f32 to vector<16x1xf32>
    %238 = arith.addf %234, %237 : vector<16x1xf32>
    %239 = math.rsqrt %238 : vector<16x1xf32>
    %240 = vector.broadcast %239 : vector<16x1xf32> to vector<16x64xf32>
    %241 = arith.mulf %236, %240 : vector<16x64xf32>
    %c0_108 = arith.constant 0 : index
    %c0_109 = arith.constant 0 : index
    %242 = vector.load %arg10[%c0_108, %c0_109] : memref<64x64xf32, #tpu.memory_space<vmem>>, vector<64x64xf32>
    %cst_110 = arith.constant dense<0.000000e+00> : vector<16x64xf32>
    %243 = tpu.matmul %241, %242, %cst_110 {dimension_numbers = #tpu.dot_dimension_numbers<[1], [0], [0], [1], [0, 0, 1, 1], [], []>, precision = #tpu.contract_precision<fp32>} : vector<16x64xf32>, vector<64x64xf32>, vector<16x64xf32> -> vector<16x64xf32>
    %cst_111 = arith.constant 0.000000e+00 : f32
    %244 = vector.broadcast %cst_111 : f32 to vector<16x64xf32>
    %245 = arith.maximumf %243, %244 : vector<16x64xf32>
    %c0_112 = arith.constant 0 : index
    %c0_113 = arith.constant 0 : index
    %246 = vector.load %arg11[%c0_112, %c0_113] : memref<64x64xf32, #tpu.memory_space<vmem>>, vector<64x64xf32>
    %cst_114 = arith.constant dense<0.000000e+00> : vector<16x64xf32>
    %247 = tpu.matmul %245, %246, %cst_114 {dimension_numbers = #tpu.dot_dimension_numbers<[1], [0], [0], [1], [0, 0, 1, 1], [], []>, precision = #tpu.contract_precision<fp32>} : vector<16x64xf32>, vector<64x64xf32>, vector<16x64xf32> -> vector<16x64xf32>
    %248 = arith.addf %247, %241 : vector<16x64xf32>
    %cst_115 = arith.constant dense<0.000000e+00> : vector<16xf32>
    %249 = vector.multi_reduction <add>, %248, %cst_115 [1] : vector<16x64xf32> to vector<16xf32>
    %250 = vector.shape_cast %249 : vector<16xf32> to vector<16x1xf32>
    %cst_116 = arith.constant 6.400000e+01 : f32
    %251 = vector.broadcast %cst_116 : f32 to vector<16x1xf32>
    %252 = arith.divf %250, %251 : vector<16x1xf32>
    %253 = vector.broadcast %252 : vector<16x1xf32> to vector<16x64xf32>
    %254 = arith.subf %248, %253 : vector<16x64xf32>
    %255 = arith.mulf %254, %254 : vector<16x64xf32>
    %cst_117 = arith.constant dense<0.000000e+00> : vector<16xf32>
    %256 = vector.multi_reduction <add>, %255, %cst_117 [1] : vector<16x64xf32> to vector<16xf32>
    %257 = vector.shape_cast %256 : vector<16xf32> to vector<16x1xf32>
    %cst_118 = arith.constant 6.400000e+01 : f32
    %258 = vector.broadcast %cst_118 : f32 to vector<16x1xf32>
    %259 = arith.divf %257, %258 : vector<16x1xf32>
    %260 = vector.broadcast %252 : vector<16x1xf32> to vector<16x64xf32>
    %261 = arith.subf %248, %260 : vector<16x64xf32>
    %cst_119 = arith.constant 9.99999974E-6 : f32
    %262 = vector.broadcast %cst_119 : f32 to vector<16x1xf32>
    %263 = arith.addf %259, %262 : vector<16x1xf32>
    %264 = math.rsqrt %263 : vector<16x1xf32>
    %265 = vector.broadcast %264 : vector<16x1xf32> to vector<16x64xf32>
    %266 = arith.mulf %261, %265 : vector<16x64xf32>
    %267 = vector.shape_cast %266 : vector<16x64xf32> to vector<2x8x64xf32>
    %c0_120 = arith.constant 0 : index
    %c0_121 = arith.constant 0 : index
    %c0_122 = arith.constant 0 : index
    %268 = vector.load %arg12[%c0_120, %c0_121, %c0_122] : memref<2x8x64xf32, #tpu.memory_space<vmem>>, vector<2x8x64xf32>
    tpu.vector_store %arg12[%c0_120, %c0_121, %c0_122], %267 {strides = array<i32>} : memref<2x8x64xf32, #tpu.memory_space<vmem>>, vector<2x8x64xf32>,
    return
  }
  func.func @transform_0(%arg0: i32) -> (i32, i32, i32) {
    %c0_i32 = arith.constant 0 : i32
    %c0_i32_0 = arith.constant 0 : i32
    %c0_i32_1 = arith.constant 0 : i32
    return %arg0, %c0_i32, %c0_i32_0 : i32, i32, i32
  }
  func.func @transform_1(%arg0: i32) -> (i32, i32, i32) {
    %c0_i32 = arith.constant 0 : i32
    %c0_i32_0 = arith.constant 0 : i32
    %c0_i32_1 = arith.constant 0 : i32
    return %arg0, %c0_i32, %c0_i32_0 : i32, i32, i32
  }
  func.func @transform_2(%arg0: i32) -> (i32, i32, i32) {
    %c0_i32 = arith.constant 0 : i32
    %c0_i32_0 = arith.constant 0 : i32
    %c0_i32_1 = arith.constant 0 : i32
    return %arg0, %c0_i32, %c0_i32_0 : i32, i32, i32
  }
  func.func @transform_3(%arg0: i32) -> (i32, i32, i32) {
    %c0_i32 = arith.constant 0 : i32
    %c0_i32_0 = arith.constant 0 : i32
    %c0_i32_1 = arith.constant 0 : i32
    return %arg0, %c0_i32, %c0_i32_0 : i32, i32, i32
  }
  func.func @transform_4(%arg0: i32) -> (i32, i32) {
    %c0_i32 = arith.constant 0 : i32
    %c0_i32_0 = arith.constant 0 : i32
    %c0_i32_1 = arith.constant 0 : i32
    return %c0_i32, %c0_i32_0 : i32, i32
  }
  func.func @transform_5(%arg0: i32) -> (i32, i32) {
    %c0_i32 = arith.constant 0 : i32
    %c0_i32_0 = arith.constant 0 : i32
    %c0_i32_1 = arith.constant 0 : i32
    return %c0_i32, %c0_i32_0 : i32, i32
  }
  func.func @transform_6(%arg0: i32) -> (i32, i32) {
    %c0_i32 = arith.constant 0 : i32
    %c0_i32_0 = arith.constant 0 : i32
    %c0_i32_1 = arith.constant 0 : i32
    return %c0_i32, %c0_i32_0 : i32, i32
  }
  func.func @transform_7(%arg0: i32) -> (i32, i32) {
    %c0_i32 = arith.constant 0 : i32
    %c0_i32_0 = arith.constant 0 : i32
    %c0_i32_1 = arith.constant 0 : i32
    return %c0_i32, %c0_i32_0 : i32, i32
  }
  func.func @transform_8(%arg0: i32) -> (i32, i32) {
    %c0_i32 = arith.constant 0 : i32
    %c0_i32_0 = arith.constant 0 : i32
    %c0_i32_1 = arith.constant 0 : i32
    return %c0_i32, %c0_i32_0 : i32, i32
  }
  func.func @transform_9(%arg0: i32) -> (i32, i32) {
    %c0_i32 = arith.constant 0 : i32
    %c0_i32_0 = arith.constant 0 : i32
    %c0_i32_1 = arith.constant 0 : i32
    return %c0_i32, %c0_i32_0 : i32, i32
  }
  func.func @transform_10(%arg0: i32) -> (i32, i32) {
    %c0_i32 = arith.constant 0 : i32
    %c0_i32_0 = arith.constant 0 : i32
    %c0_i32_1 = arith.constant 0 : i32
    return %c0_i32, %c0_i32_0 : i32, i32
  }
  func.func @transform_11(%arg0: i32) -> (i32, i32, i32) {
    %c0_i32 = arith.constant 0 : i32
    %c0_i32_0 = arith.constant 0 : i32
    %c0_i32_1 = arith.constant 0 : i32
    return %arg0, %c0_i32, %c0_i32_0 : i32, i32, i32
  }
  func.func @transform_12(%arg0: i32) -> (i32, i32, i32, i32) {
    %c0_i32 = arith.constant 0 : i32
    %c0_i32_0 = arith.constant 0 : i32
    %c0_i32_1 = arith.constant 0 : i32
    %c0_i32_2 = arith.constant 0 : i32
    return %c0_i32, %arg0, %c0_i32_0, %c0_i32_1 : i32, i32, i32, i32
  }
  func.func @transform_13(%arg0: i32) -> (i32, i32, i32, i32) {
    %c0_i32 = arith.constant 0 : i32
    %c0_i32_0 = arith.constant 0 : i32
    %c0_i32_1 = arith.constant 0 : i32
    %c0_i32_2 = arith.constant 0 : i32
    return %c0_i32, %arg0, %c0_i32_0, %c0_i32_1 : i32, i32, i32, i32
  }
}

</mosaic_0001>

<bundles_post_ra>
// kernel: tpu_custom_call.1
= control target key start
LH: loop header
LB: loop body
LE: loop exit
PB: predicated region body
PF: predicated region fallthrough
CT: control target
= control target key end

     0   :  { %19 = vsyncpa [#allocation3], 0  ;;  %s31415_s0 = inlined_call_operand.hbm [shape: f32[2,8,64], index: 0, kind: input, shape index: {}]   ;;  %s31416_s1 = inlined_call_operand.hbm [shape: f32[2,16,64], index: 1, kind: input, shape index: {}]   ;;  %s31417_s2 = inlined_call_operand.hbm [shape: f32[2,1,8], index: 2, kind: input, shape index: {}]   ;;  %s31418_s3 = inlined_call_operand.hbm [shape: f32[2,1,16], index: 3, kind: input, shape index: {}]   ;;  %s31419_s4 = inlined_call_operand.vmem [shape: f32[64,768], index: 4, kind: input, shape index: {}]   ;;  %s31420_s5 = inlined_call_operand.vmem [shape: f32[256,64], index: 5, kind: input, shape index: {}]   ;;  %s31421_s6 = inlined_call_operand.vmem [shape: f32[64,256], index: 6, kind: input, shape index: {}]   ;;  %s31422_s7 = inlined_call_operand.vmem [shape: f32[64,512], index: 7, kind: input, shape index: {}]   ;;  %s31423_s8 = inlined_call_operand.vmem [shape: f32[256,64], index: 8, kind: input, shape index: {}]   ;;  %s31424_s9 = inlined_call_operand.hbm [shape: f32[64,64], index: 9, kind: input, shape index: {}]   ;;  %s31425_s10 = inlined_call_operand.hbm [shape: f32[64,64], index: 10, kind: input, shape index: {}]   ;;  %s31426_s11 = inlined_call_operand.hbm [shape: f32[2,8,64], index: 11, kind: output, shape index: {0}]   ;;  %s31427_s12 = inlined_call_operand.hbm [shape: f32[4,2,8,8], index: 12, kind: output, shape index: {1}]   ;;  %s31428_s13 = inlined_call_operand.hbm [shape: f32[4,2,8,16], index: 13, kind: output, shape index: {2}]  }
   0x1   :  { %20 = vsyncpa [#allocation6], 0 }
   0x2   :  { %21 = vsyncpa [#allocation9], 0 }
   0x3   :  { %22 = vsyncpa [#allocation12], 0 }
   0x4   :  { %23 = vsyncpa [#allocation4], 0 }
   0x5   :  { %24 = vsyncpa [#allocation15], 0  ;;  %s25590_s25 = smov [#allocation5]  }
   0x6   :  { %s42_s26 = sshll.u32 %s25590_s25, 4  ;;  %s43_s26 = int_to_ptr.vmem [resolvable:$true] %s42_s26 }
   0x7   :  { %s25406_s27 = scalar_lea.vmem %s43_s26, 512  ;;  %p25411_p1 = scmp.lt.s32.totalorder %s43_s26, %s43_s26 }
   0x8   :  { %p25407_p0 = scmp.ne.s32.totalorder %s43_s26, %s25406_s27  ;;  %p25412_p2 = scmp.lt.s32.totalorder %s25406_s27, %s25406_s27 }
   0xa   :  { %p25413_p3 = por %p25412_p2, %p25411_p1 }
   0xc   :  { %p25414_p4 = pnand %p25413_p3, %p25407_p0 }
   0xe   :  { %25417 = shalt.err (!%p25414_p4)
}
   0xf   :  { %s25591_s28 = smov 128   ;;  %s25592_s29 = smov 8  }
  0x10   :  { %48 = dma.hbm_to_vmem [thread:$0]  %s31416_s1, 512, %s43_s26, [#allocation6], %s25591_s28, %s25591_s28, %s25592_s29  }
  0x11   :  { %s25593_s15 = smov [#allocation8]   ;;  %s25594_s17 = smov [#allocation2]  }
  0x12   :  { %s66_s16 = sshll.u32 %s25593_s15, 4  ;;  %s30_s18 = sshll.u32 %s25594_s17, 4  ;;  %s67_s16 = int_to_ptr.vmem [resolvable:$true] %s66_s16  ;;  %s31_s18 = int_to_ptr.vmem [resolvable:$true] %s30_s18 }
  0x13   :  { %s25426_s19 = scalar_lea.vmem %s67_s16, 32  ;;  %p25431_p6 = scmp.lt.s32.totalorder %s67_s16, %s67_s16 }
  0x14   :  { %p25427_p5 = scmp.ne.s32.totalorder %s67_s16, %s25426_s19  ;;  %p25432_p7 = scmp.lt.s32.totalorder %s25426_s19, %s25426_s19 }
  0x16   :  { %p25433_p8 = por %p25432_p7, %p25431_p6 }
  0x18   :  { %p25434_p9 = pnand %p25433_p8, %p25427_p5 }
  0x1a   :  { %25437 = shalt.err (!%p25434_p9)
}
  0x1b   :  { %s25595_s20 = smov 16   ;;  %s25596_s21 = smov 1  }
  0x1c   :  { %72 = dma.hbm_to_vmem [thread:$0]  %s31418_s3, 32, %s67_s16, [#allocation9], %s25595_s20, %s25595_s20, %s25596_s21  }
  0x1d   :  { %s25446_s1 = scalar_lea.vmem %s31_s18, 256  ;;  %p25451_p11 = scmp.lt.s32.totalorder %s31_s18, %s31_s18 }
  0x1e   :  { %p25447_p10 = scmp.ne.s32.totalorder %s31_s18, %s25446_s1  ;;  %p25452_p12 = scmp.lt.s32.totalorder %s25446_s1, %s25446_s1 }
  0x20   :  { %p25453_p13 = por %p25452_p12, %p25451_p11 }
  0x22   :  { %p25454_p0 = pnand %p25453_p13, %p25447_p10 }
  0x24   :  { %25457 = shalt.err (!%p25454_p0)
}
  0x25   :  { %36 = dma.hbm_to_vmem [thread:$0]  %s31415_s0, 256, %s31_s18, [#allocation3], %s25591_s28, %s25591_s28, %s25592_s29  }
  0x26   :  { %s25597_s26 = smov [#allocation7]   ;;  %s25598_s30 = smov [#allocation10]  }
  0x27   :  { %s54_s27 = sshll.u32 %s25597_s26, 4  ;;  %s88_s3 = sshll.u32 %s25598_s30, 4  ;;  %s55_s27 = int_to_ptr.vmem [resolvable:$true] %s54_s27  ;;  %s89_s3 = int_to_ptr.vmem [resolvable:$true] %s88_s3 }
  0x28   :  { %s25466_s14 = scalar_lea.vmem %s55_s27, 32  ;;  %p25471_p2 = scmp.lt.s32.totalorder %s55_s27, %s55_s27 }
  0x29   :  { %p25467_p1 = scmp.ne.s32.totalorder %s55_s27, %s25466_s14  ;;  %p25472_p3 = scmp.lt.s32.totalorder %s25466_s14, %s25466_s14 }
  0x2b   :  { %p25473_p4 = por %p25472_p3, %p25471_p2 }
  0x2d   :  { %p25474_p5 = pnand %p25473_p4, %p25467_p1 }
  0x2f   :  { %25477 = shalt.err (!%p25474_p5)
}
  0x30   :  { %60 = dma.hbm_to_vmem [thread:$0]  %s31417_s2, 32, %s55_s27, [#allocation6], %s25595_s20, %s25595_s20, %s25596_s21  }
  0x31   :  { %s25486_s17 = scalar_lea.vmem %s89_s3, 1024  ;;  %p25491_p7 = scmp.lt.s32.totalorder %s89_s3, %s89_s3 }
  0x32   :  { %p25487_p6 = scmp.ne.s32.totalorder %s89_s3, %s25486_s17  ;;  %p25492_p8 = scmp.lt.s32.totalorder %s25486_s17, %s25486_s17 }
  0x34   :  { %p25493_p9 = por %p25492_p8, %p25491_p7 }
  0x36   :  { %p25494_p10 = pnand %p25493_p9, %p25487_p6 }
  0x38   :  { %25497 = shalt.err (!%p25494_p10)
}
  0x39   :  { %94 = dma.hbm_to_vmem [thread:$0]  %s31424_s9, 1024, %s89_s3, [#allocation9], %s25591_s28, %s25591_s28, %s25592_s29  }
  0x3a   :  { %s25599_s19 = smov [#allocation11]  }
  0x3b   :  { %s100_s22 = sshll.u32 %s25599_s19, 4  ;;  %s101_s22 = int_to_ptr.vmem [resolvable:$true] %s100_s22 }
  0x3c   :  { %s25506_s23 = scalar_lea.vmem %s101_s22, 1024  ;;  %p25511_p12 = scmp.lt.s32.totalorder %s101_s22, %s101_s22 }
  0x3d   :  { %p25507_p11 = scmp.ne.s32.totalorder %s101_s22, %s25506_s23  ;;  %p25512_p13 = scmp.lt.s32.totalorder %s25506_s23, %s25506_s23 }
  0x3f   :  { %p25513_p0 = por %p25512_p13, %p25511_p12 }
  0x41   :  { %p25514_p1 = pnand %p25513_p0, %p25507_p11 }
  0x43   :  { %25517 = shalt.err (!%p25514_p1)
}
  0x44   :  { %106 = dma.hbm_to_vmem [thread:$0]  %s31425_s10, 1024, %s101_s22, [#allocation12], %s25591_s28, %s25591_s28, %s25592_s29  }
  0x45   :  { %25578 = dma.done.wait [#allocation3], 256  }
  0x46   :  { %25579 = vsyncadd [#allocation3], 4294967040 }
  0x47   :  { %25580 = dma.done.wait [#allocation6], 544  }
  0x48   :  { %25581 = vsyncadd [#allocation6], 4294966752 }
  0x49   :  { %25582 = dma.done.wait [#allocation9], 1056  }
  0x4a   :  { %25583 = vsyncadd [#allocation9], 4294966240 }
  0x4b   :  { %25584 = dma.done.wait [#allocation12], 1024  }
  0x4c   :  { %25585 = vsyncadd [#allocation12], 4294966272  ;;  %v31441_v0 = vmov 0.0   ;;  %v215_v1 = vld [vmem:[%s31419_s4 + $0x158] sm:$0xff]  ;;  %v214_v2 = vld [vmem:[%s31419_s4 + $0x150] sm:$0xff]  ;;  %vm220_vm0 = vcmask 523264  }
  0x4d   :  { %307 = vmatprep.mubr.f32.mxu0 %v31441_v0  ;;  %474 = vmatprep.mubr.f32.mxu1 %v31441_v0  ;;  %v209_v3 = vld [vmem:[%s31419_s4 + $0x128] sm:$0xff]  ;;  %v25718_v4 = vand.u32 4294901760, %v215_v1  ;;  %v25720_v5 = vand.u32 4294901760, %v214_v2  ;;  %v208_v7 = vld [vmem:[%s31419_s4 + $0x120] sm:$0xff]  ;;  %v203_v8 = vld [vmem:[%s31419_s4 + $0xf8] sm:$0xff]  ;;  %vm25601_vm1 = vmmov 0  }
  0x4e   :  { %v25722_v6 = vand.u32 4294901760, %v209_v3  ;;  %v202_v9 = vld [vmem:[%s31419_s4 + $0xf0] sm:$0xff]  ;;  %v25733_v10 = vand.u32 4294901760, %v208_v7  ;;  %v25735_v11 = vand.u32 4294901760, %v203_v8  ;;  %v197_v13 = vld [vmem:[%s31419_s4 + $0xc8] sm:$0xff]  ;;  %v196_v14 = vld [vmem:[%s31419_s4 + $0xc0] sm:$0xff] }
  0x4f   :  { %v25737_v12 = vand.u32 4294901760, %v202_v9  ;;  %v191_v15 = vld [vmem:[%s31419_s4 + $0x98] sm:$0xff]  ;;  %244 = vmatprep.subr.mxu0 %v25718_v4  ;;  %v25749_v16 = vand.u32 4294901760, %v197_v13  ;;  %v25751_v17 = vand.u32 4294901760, %v196_v14  ;;  %v25756_v19 = vsub.f32 %v215_v1, %v25718_v4  ;;  %v190_v20 = vld [vmem:[%s31419_s4 + $0x90] sm:$0xff]  ;;  %v25764_v21 = vld [vmem:[%s31419_s4 + $0x68] sm:$0xff] }
  0x50   :  { %v25753_v18 = vand.u32 4294901760, %v191_v15  ;;  %v25769_v22 = vld [vmem:[%s31419_s4 + $0x60] sm:$0xff]  ;;  %246 = vmatpush1.msra.mxu0 %v25720_v5  ;;  %v25772_v23 = vand.u32 4294901760, %v190_v20  ;;  %v25775_v24 = vsub.f32 %v214_v2, %v25720_v5  ;;  %v25778_v25 = vand.u32 4294901760, %v25764_v21  ;;  %v25786_v27 = vld [vmem:[%s31419_s4 + $0x38] sm:$0xff]  ;;  %v25791_v28 = vld [vmem:[%s31419_s4 + $0x30] sm:$0xff] }
  0x51   :  { %v25781_v26 = vsub.f32 %v209_v3, %v25722_v6  ;;  %v25796_v29 = vld [vmem:[%s31419_s4 + $0x8] sm:$0xff]  ;;  %248 = vmatprep.subr.mxu0 %v25722_v6  ;;  %v348_v30 = vand.u32 4294901760, %v25756_v19  ;;  %v25801_v31 = vand.u32 4294901760, %v25769_v22  ;;  %v25804_v32 = vsub.f32 %v208_v7, %v25733_v10  ;;  %v25821_v38 = vld [vmem:[%s31419_s4] sm:$0xff] }
  0x52   :  { %v25807_v33 = vand.u32 4294901760, %v25786_v27  ;;  %250 = vmatpush1.msra.mxu0 %v25733_v10  ;;  %v354_v34 = vand.u32 4294901760, %v25775_v24  ;;  %v25813_v36 = vsub.f32 %v203_v8, %v25735_v11  ;;  %v25816_v37 = vand.u32 4294901760, %v25791_v28  ;;  %v125_v51 = vld [vmem:[#allocation2] sm:$0xff]  ;;  %v126_v1 = vld [vmem:[#allocation2 + $0x8] sm:$0xff] }
  0x53   :  { %v360_v35 = vand.u32 4294901760, %v25781_v26  ;;  %252 = vmatprep.subr.mxu0 %v25735_v11  ;;  %v349_v39 = vsub.f32 %v25756_v19, %v348_v30  ;;  %v366_v40 = vand.u32 4294901760, %v25804_v32  ;;  %v25829_v41 = vsub.f32 %v202_v9, %v25737_v12 }
  0x54   :  { %v25832_v42 = vand.u32 4294901760, %v25796_v29  ;;  %254 = vmatpush1.msra.mxu0 %v25737_v12  ;;  %v355_v43 = vsub.f32 %v25775_v24, %v354_v34  ;;  %v372_v45 = vand.u32 4294901760, %v25813_v36  ;;  %v25843_v46 = vsub.f32 %v197_v13, %v25749_v16 }
  0x55   :  { %v361_v44 = vsub.f32 %v25781_v26, %v360_v35  ;;  %256 = vmatprep.subr.mxu0 %v25749_v16  ;;  %v350_v47 = vand.u32 4294901760, %v349_v39  ;;  %v367_v48 = vsub.f32 %v25804_v32, %v366_v40  ;;  %v378_v49 = vand.u32 4294901760, %v25829_v41 }
  0x56   :  { %v25851_v50 = vand.u32 4294901760, %v25821_v38  ;;  %258 = vmatpush1.msra.mxu0 %v25751_v17  ;;  %v356_v52 = vand.u32 4294901760, %v355_v43  ;;  %v373_v54 = vsub.f32 %v25813_v36, %v372_v45  ;;  %v384_v55 = vand.u32 4294901760, %v25843_v46 }
  0x57   :  { %v362_v53 = vand.u32 4294901760, %v361_v44  ;;  %260 = vmatprep.subr.mxu0 %v25753_v18  ;;  %351 = vmatprep.subr.mxu1 %v350_v47  ;;  %v368_v56 = vand.u32 4294901760, %v367_v48  ;;  %v379_v57 = vsub.f32 %v25829_v41, %v378_v49  ;;  %v25863_v58 = vsub.f32 %v196_v14, %v25751_v17 }
  0x58   :  { %v25866_v59 = vsub.f32 %v191_v15, %v25753_v18  ;;  %262 = vmatpush1.msra.mxu0 %v25772_v23  ;;  %357 = vmatpush1.msra.mxu1 %v356_v52  ;;  %v374_v60 = vand.u32 4294901760, %v373_v54  ;;  %v385_v61 = vsub.f32 %v25843_v46, %v384_v55  ;;  %v222_v62 = vsel %vm220_vm0, %v125_v51, 0 }
  0x59   :  { %v25874_v63 = vsub.f32 %v190_v20, %v25772_v23  ;;  %264 = vmatprep.subr.mxu0 %v25778_v25  ;;  %363 = vmatprep.subr.mxu1 %v362_v53  ;;  %v380_v2 = vand.u32 4294901760, %v379_v57  ;;  %v390_v3 = vand.u32 4294901760, %v25863_v58  ;;  %v25879_v8 = vand.u32 4294901760, %v222_v62 }
  0x5a   :  { %v396_v7 = vand.u32 4294901760, %v25866_v59  ;;  %266 = vmatpush1.msra.mxu0 %v25801_v31  ;;  %369 = vmatpush1.msra.mxu1 %v368_v56  ;;  %v386_v9 = vand.u32 4294901760, %v385_v61  ;;  %v25885_v14 = vsub.f32 %v25764_v21, %v25778_v25  ;;  %v25889_v15 = vsub.f32 %v25769_v22, %v25801_v31 }
  0x5b   :  { %v402_v13 = vand.u32 4294901760, %v25874_v63  ;;  %268 = vmatprep.subr.mxu0 %v25807_v33  ;;  %375 = vmatprep.subr.mxu1 %v374_v60  ;;  %v391_v20 = vsub.f32 %v25863_v58, %v390_v3  ;;  %v25899_v43 = vsub.f32 %v222_v62, %v25879_v8  ;;  %v225_v21 = vsel %vm220_vm0, %v126_v1, 0 }
  0x5c   :  { %v397_v39 = vsub.f32 %v25866_v59, %v396_v7  ;;  %270 = vmatpush1.msra.mxu0 %v25816_v37  ;;  %381 = vmatpush1.msra.mxu1 %v380_v2  ;;  %v408_v44 = vand.u32 4294901760, %v25885_v14  ;;  %v414_v47 = vand.u32 4294901760, %v25889_v15  ;;  %v25910_v48 = vsub.f32 %v25786_v27, %v25807_v33 }
  0x5d   :  { %v403_v22 = vsub.f32 %v25874_v63, %v402_v13  ;;  %272 = vmatprep.subr.mxu0 %v25832_v42  ;;  %387 = vmatprep.subr.mxu1 %v386_v9  ;;  %v392_v51 = vand.u32 4294901760, %v391_v20  ;;  %v25914_v53 = vand.u32 4294901760, %v25899_v43  ;;  %v25918_v54 = vsub.f32 %v25791_v28, %v25816_v37 }
  0x5e   :  { %v398_v52 = vand.u32 4294901760, %v397_v39  ;;  %274 = vmatpush1.msra.mxu0 %v25851_v50  ;;  %v409_v27 = vsub.f32 %v25885_v14, %v408_v44  ;;  %v415_v57 = vsub.f32 %v25889_v15, %v414_v47  ;;  %v420_v60 = vand.u32 4294901760, %v25910_v48 }
  0x5f   :  { %v404_v56 = vand.u32 4294901760, %v403_v22  ;;  %393 = vmatpush1.msra.mxu1 %v392_v51  ;;  %507 = vmatprep.subr.mxu0 %v25756_v19  ;;  %v311_v28 = vsub.f32 %v25899_v43, %v25914_v53  ;;  %v426_v61 = vand.u32 4294901760, %v25918_v54  ;;  %v25934_v62 = vsub.f32 %v25796_v29, %v25832_v42  ;;  %v216_v19 = vld [vmem:[%s31419_s4 + $0x160] sm:$0xff] }
  0x60   :  { %v25938_v1 = vsub.f32 %v25821_v38, %v25851_v50  ;;  %399 = vmatprep.subr.mxu1 %v398_v52  ;;  %v410_v2 = vand.u32 4294901760, %v409_v27  ;;  %v416_v9 = vand.u32 4294901760, %v415_v57  ;;  %v421_v20 = vsub.f32 %v25910_v48, %v420_v60 }
  0x61   :  { %v25943_v39 = vand.u32 4294901760, %v225_v21  ;;  %v25945_v22 = vand.u32 4294901760, %v311_v28  ;;  %405 = vmatpush1.msra.mxu1 %v404_v56  ;;  %v427_v29 = vsub.f32 %v25918_v54, %v426_v61  ;;  %v432_v51 = vand.u32 4294901760, %v25934_v62 }
  0x62   :  { %v438_v38 = vand.u32 4294901760, %v25938_v1  ;;  %411 = vmatprep.subr.mxu1 %v410_v2  ;;  %v422_v52 = vand.u32 4294901760, %v421_v20  ;;  %vm3257_vm7 = vcmask 64512   ;;  %vm13980_vm12 = vcmask 130048  }
  0x63   :  { %v25953_v27 = vsub.f32 %v225_v21, %v25943_v39  ;;  %313 = vmatmul.mubr.f32.vlgmr.msra.gmra.mxu0 %v25945_v22  ;;  %417 = vmatpush1.msra.mxu1 %v416_v9  ;;  %v428_v57 = vand.u32 4294901760, %v427_v29  ;;  %v433_v56 = vsub.f32 %v25934_v62, %v432_v51 }
  0x64   :  { %v439_v28 = vsub.f32 %v25938_v1, %v438_v38  ;;  %510 = vmatpush1.msra.mxu0 %v25775_v24  ;;  %423 = vmatprep.subr.mxu1 %v422_v52  ;;  %v217_v24 = vld [vmem:[%s31419_s4 + $0x168] sm:$0xff] }
  0x65   :  { %v25964_v2 = vand.u32 4294901760, %v25953_v27  ;;  %513 = vmatprep.subr.mxu0 %v25781_v26  ;;  %429 = vmatpush1.msra.mxu1 %v428_v57  ;;  %v434_v21 = vand.u32 4294901760, %v433_v56  ;;  %v26033_v26 = vand.u32 4294901760, %v216_v19 }
  0x66   :  { %v440_v9 = vand.u32 4294901760, %v439_v28  ;;  %516 = vmatpush1.msra.mxu0 %v25804_v32  ;;  %318 = vmatprep.mubr.f32.mxu0 %v31441_v0  ;;  %v26041_v32 = vand.u32 4294901760, %v217_v24  ;;  %v174_v28 = vld [vmem:[%s31419_s4 + $0x10] sm:$0xff] }
  0x67   :  { %519 = vmatprep.subr.mxu0 %v25813_v36  ;;  %435 = vmatprep.subr.mxu1 %v434_v21  ;;  %v322_v20 = vsub.f32 %v25953_v27, %v25964_v2  ;;  %v26061_v36 = vsub.f32 %v216_v19, %v26033_v26 }
  0x68   :  { %522 = vmatpush1.msra.mxu0 %v25829_v41  ;;  %441 = vmatpush1.msra.mxu1 %v440_v9  ;;  %v26075_v41 = vsub.f32 %v217_v24, %v26041_v32 }
  0x69   :  { %525 = vmatprep.subr.mxu0 %v25843_v46  ;;  %476 = vmatmul.mubr.f32.vlgmr.msra.gmra.mxu1 %v25879_v8  ;;  %v25979_v29 = vand.u32 4294901760, %v322_v20 }
  0x6a   :  { %528 = vmatpush1.msra.mxu0 %v25863_v58  ;;  %619 = vmatprep.subr.mxu1 %v25718_v4 }
  0x6b   :  { %531 = vmatprep.subr.mxu0 %v25866_v59  ;;  %621 = vmatpush1.msra.mxu1 %v25720_v5  ;;  %v1050_v59 = vand.u32 4294901760, %v26061_v36 }
  0x6c   :  { %534 = vmatpush1.msra.mxu0 %v25874_v63  ;;  %623 = vmatprep.subr.mxu1 %v25722_v6 }
  0x6d   :  { %537 = vmatprep.subr.mxu0 %v25885_v14  ;;  %625 = vmatpush1.msra.mxu1 %v25733_v10 }
  0x6e   :  { %540 = vmatpush1.msra.mxu0 %v25889_v15  ;;  %627 = vmatprep.subr.mxu1 %v25735_v11 }
  0x6f   :  { %324 = vmatmul.mubr.f32.gmra.mxu0 %v25979_v29  ;;  %543 = vmatprep.subr.mxu0 %v25910_v48  ;;  %v181_v48 = vld [vmem:[%s31419_s4 + $0x48] sm:$0xff] }
  0x70   :  { %546 = vmatpush1.msra.mxu0 %v25918_v54  ;;  %629 = vmatpush1.msra.mxu1 %v25737_v12  ;;  %v26178_v57 = vand.u32 4294901760, %v181_v48 }
  0x71   :  { %549 = vmatprep.subr.mxu0 %v25934_v62  ;;  %631 = vmatprep.subr.mxu1 %v25749_v16  ;;  %v180_v62 = vld [vmem:[%s31419_s4 + $0x40] sm:$0xff] }
  0x72   :  { %552 = vmatpush1.msra.mxu0 %v25938_v1  ;;  %585 = vmatprep.mubr.f32.mxu0 %v31441_v0  ;;  %v26189_v9 = vand.u32 4294901760, %v180_v62 }
  0x73   :  { %633 = vmatpush1.msra.mxu1 %v25751_v17  ;;  %481 = vmatprep.mubr.f32.mxu1 %v31441_v0 }
  0x74   :  { %588 = vmatmul.mubr.f32.vlgmr.msra.gmra.mxu0 %v25899_v43  ;;  %635 = vmatprep.subr.mxu1 %v25753_v18 }
  0x75   :  { %720 = vmatprep.subr.mxu0 %v348_v30  ;;  %483 = vmatmul.mubr.f32.gmra.mxu1 %v25943_v39  ;;  %v211_v30 = vld [vmem:[%s31419_s4 + $0x138] sm:$0xff] }
  0x76   :  { %637 = vmatpush1.msra.mxu1 %v25772_v23  ;;  %724 = vmatpush1.msra.mxu0 %v354_v34  ;;  %v210_v34 = vld [vmem:[%s31419_s4 + $0x130] sm:$0xff] }
  0x77   :  { %639 = vmatprep.subr.mxu1 %v25778_v25  ;;  %728 = vmatprep.subr.mxu0 %v360_v35  ;;  %v26052_v35 = vand.u32 4294901760, %v211_v30 }
  0x78   :  { %593 = vmatprep.mubr.f32.mxu0 %v31441_v0  ;;  %641 = vmatpush1.msra.mxu1 %v25801_v31 }
  0x79   :  { %732 = vmatpush1.msra.mxu0 %v366_v40  ;;  %643 = vmatprep.subr.mxu1 %v25807_v33  ;;  %v199_v40 = vld [vmem:[%s31419_s4 + $0xd8] sm:$0xff] }
  0x7a   :  { %596 = vmatmul.mubr.f32.gmra.mxu0 %v25953_v27  ;;  %736 = vmatprep.subr.mxu0 %v372_v45  ;;  %v26101_v58 = vand.u32 4294901760, %v199_v40 }
  0x7b   :  { %645 = vmatpush1.msra.mxu1 %v25816_v37  ;;  %740 = vmatpush1.msra.mxu0 %v378_v49  ;;  %v193_v49 = vld [vmem:[%s31419_s4 + $0xa8] sm:$0xff] }
  0x7c   :  { %647 = vmatprep.subr.mxu1 %v25832_v42  ;;  %744 = vmatprep.subr.mxu0 %v384_v55  ;;  %v26093_v55 = vsub.f32 %v211_v30, %v26052_v35  ;;  %v26144_v54 = vsub.f32 %v199_v40, %v26101_v58 }
  0x7d   :  { %649 = vmatpush1.msra.mxu1 %v25851_v50  ;;  %682 = vmatprep.mubr.f32.mxu1 %v31441_v0 }
  0x7e   :  { %748 = vmatpush1.msra.mxu0 %v390_v3  ;;  %686 = vmatmul.mubr.f32.vlgmr.msra.gmra.mxu1 %v25914_v53  ;;  %v26115_v3 = vand.u32 4294901760, %v193_v49  ;;  %v31432_v20 = vand.u32 4294901760, %v26144_v54 }
  0x7f   :  { %752 = vmatprep.subr.mxu0 %v396_v7  ;;  %845 = vmatprep.subr.mxu1 %v25718_v4  ;;  %v205_v4 = vld [vmem:[%s31419_s4 + $0x108] sm:$0xff]  ;;  %v187_v7 = vld [vmem:[%s31419_s4 + $0x78] sm:$0xff] }
  0x80   :  { %756 = vmatpush1.msra.mxu0 %v402_v13  ;;  %847 = vmatpush1.msra.mxu1 %v25720_v5  ;;  %v26063_v5 = vand.u32 4294901760, %v210_v34  ;;  %v26079_v45 = vand.u32 4294901760, %v205_v4 }
  0x81   :  { %760 = vmatprep.subr.mxu0 %v408_v44  ;;  %849 = vmatprep.subr.mxu1 %v25722_v6  ;;  %v204_v6 = vld [vmem:[%s31419_s4 + $0x100] sm:$0xff]  ;;  %v186_v44 = vld [vmem:[%s31419_s4 + $0x70] sm:$0xff] }
  0x82   :  { %691 = vmatprep.mubr.f32.mxu1 %v31441_v0  ;;  %764 = vmatpush1.msra.mxu0 %v414_v47  ;;  %v26087_v46 = vand.u32 4294901760, %v204_v6  ;;  %v26121_v13 = vsub.f32 %v205_v4, %v26079_v45 }
  0x83   :  { %851 = vmatpush1.msra.mxu1 %v25733_v10  ;;  %768 = vmatprep.subr.mxu0 %v420_v60  ;;  %v198_v10 = vld [vmem:[%s31419_s4 + $0xd0] sm:$0xff] }
  0x84   :  { %695 = vmatmul.mubr.f32.gmra.mxu1 %v25964_v2  ;;  %853 = vmatprep.subr.mxu1 %v25735_v11  ;;  %v26099_v11 = vsub.f32 %v210_v34, %v26063_v5  ;;  %v26110_v63 = vand.u32 4294901760, %v198_v10  ;;  %v26126_v14 = vsub.f32 %v204_v6, %v26087_v46  ;;  %v1068_v1 = vand.u32 4294901760, %v26121_v13 }
  0x85   :  { %772 = vmatpush1.msra.mxu0 %v426_v61  ;;  %855 = vmatpush1.msra.mxu1 %v25737_v12  ;;  %v192_v12 = vld [vmem:[%s31419_s4 + $0xa0] sm:$0xff]  ;;  %v26154_v61 = vand.u32 4294901760, %v187_v7  ;;  %v26208_v6 = vand.u32 4294901760, %v174_v28 }
  0x86   :  { %776 = vmatprep.subr.mxu0 %v432_v51  ;;  %857 = vmatprep.subr.mxu1 %v25749_v16  ;;  %v1044_v16 = vand.u32 4294901760, %v26075_v41  ;;  %v26128_v15 = vand.u32 4294901760, %v192_v12  ;;  %v1062_v47 = vand.u32 4294901760, %v26099_v11  ;;  %v175_v51 = vld [vmem:[%s31419_s4 + $0x18] sm:$0xff]  ;;  %v1074_v56 = vand.u32 4294901760, %v26126_v14 }
  0x87   :  { %780 = vmatpush1.msra.mxu0 %v438_v38  ;;  %813 = vmatprep.mubr.f32.mxu0 %v31441_v0  ;;  %v26168_v38 = vsub.f32 %v193_v49, %v26115_v3  ;;  %v26194_v24 = vand.u32 4294901760, %v175_v51  ;;  %v26198_v34 = vsub.f32 %v187_v7, %v26154_v61  ;;  %v26217_v49 = vsub.f32 %v181_v48, %v26178_v57 }
  0x88   :  { %859 = vmatpush1.msra.mxu1 %v25751_v17  ;;  %815 = vmatmul.mubr.f32.vlgmr.msra.gmra.mxu0 %v25879_v8  ;;  %v1056_v17 = vand.u32 4294901760, %v26093_v55  ;;  %v1045_v60 = vsub.f32 %v26075_v41, %v1044_v16  ;;  %v26173_v52 = vsub.f32 %v192_v12, %v26128_v15  ;;  %v1063_v21 = vsub.f32 %v26099_v11, %v1062_v47 }
  0x89   :  { %861 = vmatprep.subr.mxu1 %v25753_v18  ;;  %940 = vmatprep.subr.mxu0 %v26041_v32  ;;  %v1051_v18 = vsub.f32 %v26061_v36, %v1050_v59  ;;  %v31430_v40 = vand.u32 4294901760, %v26168_v38  ;;  %v26222_v12 = vsub.f32 %v180_v62, %v26189_v9  ;;  %v1104_v48 = vand.u32 4294901760, %v26198_v34 }
  0x8a   :  { %863 = vmatpush1.msra.mxu1 %v25772_v23  ;;  %942 = vmatpush1.msra.mxu0 %v26033_v26  ;;  %v26149_v23 = vsub.f32 %v198_v10, %v26110_v63  ;;  %v1046_v19 = vand.u32 4294901760, %v1045_v60  ;;  %v31431_v7 = vand.u32 4294901760, %v26173_v52  ;;  %v26234_v60 = vsub.f32 %v175_v51, %v26194_v24 }
  0x8b   :  { %865 = vmatprep.subr.mxu1 %v25778_v25  ;;  %944 = vmatprep.subr.mxu0 %v26052_v35  ;;  %v26161_v25 = vand.u32 4294901760, %v186_v44  ;;  %v31433_v51 = vand.u32 4294901760, %v26217_v49 }
  0x8c   :  { %820 = vmatprep.mubr.f32.mxu0 %v31441_v0  ;;  %867 = vmatpush1.msra.mxu1 %v25801_v31  ;;  %v1057_v31 = vsub.f32 %v26093_v55, %v1056_v17  ;;  %v31429_v30 = vand.u32 4294901760, %v26149_v23 }
  0x8d   :  { %946 = vmatpush1.msra.mxu0 %v26063_v5  ;;  %869 = vmatprep.subr.mxu1 %v25807_v33  ;;  %v1052_v33 = vand.u32 4294901760, %v1051_v18  ;;  %v26203_v4 = vsub.f32 %v186_v44, %v26161_v25  ;;  %v1064_v44 = vand.u32 4294901760, %v1063_v21  ;;  %v1093_v21 = vsub.f32 %v26168_v38, %v31430_v40 }
  0x8e   :  { %822 = vmatmul.mubr.f32.gmra.mxu0 %v25943_v39  ;;  %948 = vmatprep.subr.mxu0 %v26079_v45  ;;  %v1058_v10 = vand.u32 4294901760, %v1057_v31  ;;  %v1087_v18 = vsub.f32 %v26149_v23, %v31429_v30  ;;  %v26238_v31 = vsub.f32 %v174_v28, %v26208_v6  ;;  %v1099_v28 = vsub.f32 %v26173_v52, %v31431_v7 }
  0x8f   :  { %871 = vmatpush1.msra.mxu1 %v25816_v37  ;;  %950 = vmatpush1.msra.mxu0 %v26087_v46  ;;  %v1069_v37 = vsub.f32 %v26121_v13, %v1068_v1 }
  0x90   :  { %873 = vmatprep.subr.mxu1 %v25832_v42  ;;  %952 = vmatprep.subr.mxu0 %v26101_v58  ;;  %v1075_v42 = vsub.f32 %v26126_v14, %v1074_v56  ;;  %v1088_v40 = vand.u32 4294901760, %v1087_v18  ;;  %v1100_v18 = vand.u32 4294901760, %v1099_v28 }
  0x91   :  { %875 = vmatpush1.msra.mxu1 %v25851_v50  ;;  %908 = vmatprep.mubr.f32.mxu1 %v31441_v0  ;;  %v1081_v50 = vsub.f32 %v26144_v54, %v31432_v20  ;;  %v1070_v62 = vand.u32 4294901760, %v1069_v37  ;;  %v1122_v37 = vand.u32 4294901760, %v26222_v12  ;;  %v1134_v20 = vand.u32 4294901760, %v26238_v31 }
  0x92   :  { %954 = vmatpush1.msra.mxu0 %v26110_v63  ;;  %910 = vmatmul.mubr.f32.vlgmr.msra.gmra.mxu1 %v25879_v8  ;;  %v1076_v30 = vand.u32 4294901760, %v1075_v42  ;;  %v1128_v42 = vand.u32 4294901760, %v26234_v60 }
  0x93   :  { %956 = vmatprep.subr.mxu0 %v26115_v3  ;;  %1047 = vmatprep.subr.mxu1 %v1046_v19  ;;  %v1110_v19 = vand.u32 4294901760, %v26203_v4 }
  0x94   :  { %958 = vmatpush1.msra.mxu0 %v26128_v15  ;;  %1053 = vmatpush1.msra.mxu1 %v1052_v33  ;;  %v1082_v33 = vand.u32 4294901760, %v1081_v50  ;;  %v1094_v50 = vand.u32 4294901760, %v1093_v21 }
  0x95   :  { %960 = vmatprep.subr.mxu0 %v26154_v61  ;;  %1059 = vmatprep.subr.mxu1 %v1058_v10  ;;  %v1105_v10 = vsub.f32 %v26198_v34, %v1104_v48  ;;  %v1111_v7 = vsub.f32 %v26203_v4, %v1110_v19 }
  0x96   :  { %915 = vmatprep.mubr.f32.mxu1 %v31441_v0  ;;  %962 = vmatpush1.msra.mxu0 %v26161_v25 }
  0x97   :  { %1065 = vmatpush1.msra.mxu1 %v1064_v44  ;;  %964 = vmatprep.subr.mxu0 %v26178_v57  ;;  %v1117_v44 = vsub.f32 %v26217_v49, %v31433_v51  ;;  %v1106_v21 = vand.u32 4294901760, %v1105_v10  ;;  %v1112_v51 = vand.u32 4294901760, %v1111_v7 }
  0x98   :  { %917 = vmatmul.mubr.f32.gmra.mxu1 %v25943_v39  ;;  %1071 = vmatprep.subr.mxu1 %v1070_v62  ;;  %v1123_v62 = vsub.f32 %v26222_v12, %v1122_v37 }
  0x99   :  { %966 = vmatpush1.msra.mxu0 %v26189_v9  ;;  %1077 = vmatpush1.msra.mxu1 %v1076_v30  ;;  %v1129_v30 = vsub.f32 %v26234_v60, %v1128_v42  ;;  %v1118_v28 = vand.u32 4294901760, %v1117_v44 }
  0x9a   :  { %968 = vmatprep.subr.mxu0 %v26194_v24  ;;  %1083 = vmatprep.subr.mxu1 %v1082_v33  ;;  %v1135_v33 = vsub.f32 %v26238_v31, %v1134_v20 }
  0x9b   :  { %970 = vmatpush1.msra.mxu0 %v26208_v6  ;;  %1089 = vmatpush1.msra.mxu1 %v1088_v40  ;;  %v1124_v40 = vand.u32 4294901760, %v1123_v62  ;;  %v1130_v10 = vand.u32 4294901760, %v1129_v30  ;;  %v188_v30 = vld [vmem:[%s31419_s4 + $0x80] sm:$0xff] }
  0x9c   :  { %1003 = vmatprep.mubr.f32.mxu0 %v31441_v0  ;;  %1095 = vmatprep.subr.mxu1 %v1094_v50  ;;  %v1136_v7 = vand.u32 4294901760, %v1135_v33  ;;  %v201_v50 = vld [vmem:[%s31419_s4 + $0xe8] sm:$0xff] }
  0x9d   :  { %1203 = vmatprep.subr.mxu0 %v26075_v41  ;;  %1009 = vmatmul.mubr.f32.vlgmr.msra.gmra.mxu0 %v25945_v22  ;;  %v219_v41 = vld [vmem:[%s31419_s4 + $0x178] sm:$0xff]  ;;  %v26400_v44 = vand.u32 4294901760, %v201_v50 }
  0x9e   :  { %1101 = vmatpush1.msra.mxu1 %v1100_v18  ;;  %1206 = vmatpush1.msra.mxu0 %v26061_v36  ;;  %v218_v36 = vld [vmem:[%s31419_s4 + $0x170] sm:$0xff]  ;;  %v195_v18 = vld [vmem:[%s31419_s4 + $0xb8] sm:$0xff] }
  0x9f   :  { %1107 = vmatprep.subr.mxu1 %v1106_v21  ;;  %1209 = vmatprep.subr.mxu0 %v26093_v55  ;;  %v26337_v55 = vand.u32 4294901760, %v219_v41  ;;  %v26422_v21 = vand.u32 4294901760, %v195_v18 }
  0xa0   :  { %1113 = vmatpush1.msra.mxu1 %v1112_v51  ;;  %1212 = vmatpush1.msra.mxu0 %v26099_v11  ;;  %v31640_v11 = vand.u32 4294901760, %v26144_v54 }
  0xa1   :  { %1119 = vmatprep.subr.mxu1 %v1118_v28  ;;  %1215 = vmatprep.subr.mxu0 %v26121_v13  ;;  %v212_v13 = vld [vmem:[%s31419_s4 + $0x140] sm:$0xff] }
  0xa2   :  { %1125 = vmatpush1.msra.mxu1 %v1124_v40  ;;  %1218 = vmatpush1.msra.mxu0 %v26126_v14  ;;  %v31641_v14 = vand.u32 4294901760, %v26149_v23 }
  0xa3   :  { %1131 = vmatprep.subr.mxu1 %v1130_v10  ;;  %1221 = vmatprep.subr.mxu0 %v26144_v54  ;;  %v26361_v54 = vsub.f32 %v219_v41, %v26337_v55  ;;  %v183_v10 = vld [vmem:[%s31419_s4 + $0x58] sm:$0xff] }
  0xa4   :  { %1137 = vmatpush1.msra.mxu1 %v1136_v7  ;;  %1170 = vmatprep.mubr.f32.mxu1 %v31441_v0  ;;  %v182_v7 = vld [vmem:[%s31419_s4 + $0x50] sm:$0xff] }
  0xa5   :  { %1224 = vmatpush1.msra.mxu0 %v26149_v23  ;;  %1172 = vmatmul.mubr.f32.vlgmr.msra.gmra.mxu1 %v25879_v8  ;;  %v206_v23 = vld [vmem:[%s31419_s4 + $0x110] sm:$0xff] }
  0xa6   :  { %1227 = vmatprep.subr.mxu0 %v26168_v38  ;;  %1315 = vmatprep.subr.mxu1 %v26041_v32 }
  0xa7   :  { %1230 = vmatpush1.msra.mxu0 %v26173_v52  ;;  %1317 = vmatpush1.msra.mxu1 %v26033_v26 }
  0xa8   :  { %1233 = vmatprep.subr.mxu0 %v26198_v34  ;;  %1319 = vmatprep.subr.mxu1 %v26052_v35  ;;  %v1740_v34 = vand.u32 4294901760, %v26361_v54 }
  0xa9   :  { %1014 = vmatprep.mubr.f32.mxu0 %v31441_v0  ;;  %1236 = vmatpush1.msra.mxu0 %v26203_v4  ;;  %v194_v4 = vld [vmem:[%s31419_s4 + $0xb0] sm:$0xff] }
  0xaa   :  { %1321 = vmatpush1.msra.mxu1 %v26063_v5  ;;  %1020 = vmatmul.mubr.f32.gmra.mxu0 %v25979_v29 }
  0xab   :  { %1239 = vmatprep.subr.mxu0 %v26217_v49  ;;  %1323 = vmatprep.subr.mxu1 %v26079_v45 }
  0xac   :  { %1242 = vmatpush1.msra.mxu0 %v26222_v12  ;;  %1325 = vmatpush1.msra.mxu1 %v26087_v46  ;;  %v26436_v12 = vand.u32 4294901760, %v194_v4 }
  0xad   :  { %1245 = vmatprep.subr.mxu0 %v26234_v60  ;;  %1327 = vmatprep.subr.mxu1 %v26101_v58  ;;  %v26446_v60 = vsub.f32 %v201_v50, %v26400_v44 }
  0xae   :  { %1248 = vmatpush1.msra.mxu0 %v26238_v31  ;;  %1281 = vmatprep.mubr.f32.mxu0 %v31441_v0  ;;  %v26477_v41 = vsub.f32 %v194_v4, %v26436_v12 }
  0xaf   :  { %1329 = vmatpush1.msra.mxu1 %v26110_v63  ;;  %1177 = vmatprep.mubr.f32.mxu1 %v31441_v0 }
  0xb0   :  { %1284 = vmatmul.mubr.f32.vlgmr.msra.gmra.mxu0 %v25899_v43  ;;  %1331 = vmatprep.subr.mxu1 %v26115_v3 }
  0xb1   :  { %1416 = vmatprep.subr.mxu0 %v1044_v16  ;;  %1179 = vmatmul.mubr.f32.gmra.mxu1 %v25943_v39  ;;  %v26347_v16 = vand.u32 4294901760, %v218_v36 }
  0xb2   :  { %1333 = vmatpush1.msra.mxu1 %v26128_v15  ;;  %1420 = vmatpush1.msra.mxu0 %v1050_v59  ;;  %v213_v59 = vld [vmem:[%s31419_s4 + $0x148] sm:$0xff] }
  0xb3   :  { %1335 = vmatprep.subr.mxu1 %v26154_v61  ;;  %1424 = vmatprep.subr.mxu0 %v1056_v17  ;;  %v31642_v17 = vand.u32 4294901760, %v26168_v38  ;;  %v26372_v38 = vand.u32 4294901760, %v212_v13 }
  0xb4   :  { %1289 = vmatprep.mubr.f32.mxu0 %v31441_v0  ;;  %1337 = vmatpush1.msra.mxu1 %v26161_v25 }
  0xb5   :  { %1428 = vmatpush1.msra.mxu0 %v1062_v47  ;;  %1339 = vmatprep.subr.mxu1 %v26178_v57  ;;  %v26358_v47 = vand.u32 4294901760, %v213_v59 }
  0xb6   :  { %1292 = vmatmul.mubr.f32.gmra.mxu0 %v25953_v27  ;;  %1432 = vmatprep.subr.mxu0 %v1068_v1  ;;  %v207_v1 = vld [vmem:[%s31419_s4 + $0x118] sm:$0xff] }
  0xb7   :  { %1341 = vmatpush1.msra.mxu1 %v26189_v9  ;;  %1436 = vmatpush1.msra.mxu0 %v1074_v56  ;;  %v31643_v56 = vand.u32 4294901760, %v26173_v52  ;;  %v26380_v51 = vand.u32 4294901760, %v207_v1  ;;  %v26391_v52 = vand.u32 4294901760, %v206_v23 }
  0xb8   :  { %1343 = vmatprep.subr.mxu1 %v26194_v24  ;;  %1440 = vmatprep.subr.mxu0 %v31640_v11  ;;  %v26481_v11 = vand.u32 4294901760, %v182_v7 }
  0xb9   :  { %1345 = vmatpush1.msra.mxu1 %v26208_v6  ;;  %1378 = vmatprep.mubr.f32.mxu1 %v31441_v0  ;;  %v26420_v62 = vsub.f32 %v207_v1, %v26380_v51 }
  0xba   :  { %1444 = vmatpush1.msra.mxu0 %v31641_v14  ;;  %1382 = vmatmul.mubr.f32.vlgmr.msra.gmra.mxu1 %v25914_v53 }
  0xbb   :  { %1448 = vmatprep.subr.mxu0 %v31642_v17  ;;  %1541 = vmatprep.subr.mxu1 %v26041_v32  ;;  %v26378_v32 = vsub.f32 %v218_v36, %v26347_v16  ;;  %v1764_v40 = vand.u32 4294901760, %v26420_v62  ;;  %v26479_v36 = vand.u32 4294901760, %v183_v10  ;;  %v177_v17 = vld [vmem:[%s31419_s4 + $0x28] sm:$0xff] }
  0xbc   :  { %1452 = vmatpush1.msra.mxu0 %v31643_v56  ;;  %1543 = vmatpush1.msra.mxu1 %v26033_v26  ;;  %v200_v26 = vld [vmem:[%s31419_s4 + $0xe0] sm:$0xff]  ;;  %v26507_v50 = vand.u32 4294901760, %v177_v17 }
  0xbd   :  { %1456 = vmatprep.subr.mxu0 %v1104_v48  ;;  %1545 = vmatprep.subr.mxu1 %v26052_v35  ;;  %v31644_v35 = vand.u32 4294901760, %v26217_v49  ;;  %v26398_v48 = vsub.f32 %v213_v59, %v26358_v47  ;;  %v26413_v49 = vand.u32 4294901760, %v200_v26 }
  0xbe   :  { %1387 = vmatprep.mubr.f32.mxu1 %v31441_v0  ;;  %1460 = vmatpush1.msra.mxu0 %v1110_v19  ;;  %v1746_v19 = vand.u32 4294901760, %v26378_v32 }
  0xbf   :  { %1547 = vmatpush1.msra.mxu1 %v26063_v5  ;;  %1464 = vmatprep.subr.mxu0 %v31644_v35  ;;  %v26411_v5 = vsub.f32 %v212_v13, %v26372_v38  ;;  %v1752_v33 = vand.u32 4294901760, %v26398_v48  ;;  %v31434_v13 = vand.u32 4294901760, %v26446_v60  ;;  %v26516_v35 = vsub.f32 %v183_v10, %v26479_v36 }
  0xc0   :  { %1391 = vmatmul.mubr.f32.gmra.mxu1 %v25964_v2  ;;  %1549 = vmatprep.subr.mxu1 %v26079_v45  ;;  %v189_v45 = vld [vmem:[%s31419_s4 + $0x88] sm:$0xff]  ;;  %v1747_v28 = vsub.f32 %v26378_v32, %v1746_v19  ;;  %v26536_v10 = vsub.f32 %v177_v17, %v26507_v50 }
  0xc1   :  { %1468 = vmatpush1.msra.mxu0 %v1122_v37  ;;  %1551 = vmatpush1.msra.mxu1 %v26087_v46  ;;  %v26434_v46 = vsub.f32 %v206_v23, %v26391_v52  ;;  %v1741_v37 = vsub.f32 %v26361_v54, %v1740_v34  ;;  %v1758_v31 = vand.u32 4294901760, %v26411_v5 }
  0xc2   :  { %1472 = vmatprep.subr.mxu0 %v1128_v42  ;;  %1553 = vmatprep.subr.mxu1 %v26101_v58  ;;  %v26448_v58 = vand.u32 4294901760, %v189_v45  ;;  %v26456_v42 = vand.u32 4294901760, %v188_v30  ;;  %v1748_v4 = vand.u32 4294901760, %v1747_v28 }
  0xc3   :  { %1476 = vmatpush1.msra.mxu0 %v1134_v20  ;;  %1509 = vmatprep.mubr.f32.mxu0 %v31441_v0  ;;  %v26454_v20 = vsub.f32 %v200_v26, %v26413_v49  ;;  %v1742_v59 = vand.u32 4294901760, %v1741_v37  ;;  %v1759_v1 = vsub.f32 %v26411_v5, %v1758_v31 }
  0xc4   :  { %1555 = vmatpush1.msra.mxu1 %v26110_v63  ;;  %1511 = vmatmul.mubr.f32.vlgmr.msra.gmra.mxu0 %v25879_v8  ;;  %v26465_v63 = vsub.f32 %v195_v18, %v26422_v21  ;;  %v26490_v14 = vsub.f32 %v189_v45, %v26448_v58  ;;  %v26505_v56 = vsub.f32 %v188_v30, %v26456_v42  ;;  %v1794_v45 = vand.u32 4294901760, %v26477_v41 }
  0xc5   :  { %1557 = vmatprep.subr.mxu1 %v26115_v3  ;;  %1516 = vmatprep.mubr.f32.mxu0 %v31441_v0  ;;  %v31435_v3 = vand.u32 4294901760, %v26434_v46  ;;  %v31436_v23 = vand.u32 4294901760, %v26454_v20  ;;  %v26527_v30 = vsub.f32 %v182_v7, %v26481_v11  ;;  %v1760_v7 = vand.u32 4294901760, %v1759_v1 }
  0xc6   :  { %1559 = vmatpush1.msra.mxu1 %v26128_v15  ;;  %1604 = vmatprep.mubr.f32.mxu1 %v31441_v0  ;;  %v1753_v15 = vsub.f32 %v26398_v48, %v1752_v33  ;;  %v31437_v26 = vand.u32 4294901760, %v26465_v63  ;;  %v31438_v28 = vand.u32 4294901760, %v26490_v14 }
  0xc7   :  { %1561 = vmatprep.subr.mxu1 %v26154_v61  ;;  %1636 = vmatprep.subr.mxu0 %v26337_v55  ;;  %v176_v61 = vld [vmem:[%s31419_s4 + $0x20] sm:$0xff]  ;;  %s25603_s4 = smov 64  }
  0xc8   :  { %1563 = vmatpush1.msra.mxu1 %v26161_v25  ;;  %1518 = vmatmul.mubr.f32.gmra.mxu0 %v25943_v39  ;;  %v1765_v25 = vsub.f32 %v26420_v62, %v1764_v40  ;;  %v26518_v18 = vand.u32 4294901760, %v176_v61  ;;  %v1754_v37 = vand.u32 4294901760, %v1753_v15  ;;  %v31439_v15 = vand.u32 4294901760, %v26505_v56 }
  0xc9   :  { %1565 = vmatprep.subr.mxu1 %v26178_v57  ;;  %1638 = vmatpush1.msra.mxu0 %v26347_v16  ;;  %v1771_v57 = vsub.f32 %v26434_v46, %v31435_v3  ;;  %v1789_v17 = vsub.f32 %v26465_v63, %v31437_v26  ;;  %v1812_v3 = vand.u32 4294901760, %v26516_v35  ;;  %v1801_v26 = vsub.f32 %v26490_v14, %v31438_v28 }
  0xca   :  { %1567 = vmatpush1.msra.mxu1 %v26189_v9  ;;  %1640 = vmatprep.subr.mxu0 %v26358_v47  ;;  %v1777_v9 = vsub.f32 %v26446_v60, %v31434_v13  ;;  %v1766_v13 = vand.u32 4294901760, %v1765_v25 }
  0xcb   :  { %1569 = vmatprep.subr.mxu1 %v26194_v24  ;;  %1642 = vmatpush1.msra.mxu0 %v26372_v38  ;;  %v1783_v24 = vsub.f32 %v26454_v20, %v31436_v23  ;;  %v1772_v1 = vand.u32 4294901760, %v1771_v57  ;;  %v1795_v23 = vsub.f32 %v26477_v41, %v1794_v45  ;;  %v1807_v57 = vsub.f32 %v26505_v56, %v31439_v15 }
  0xcc   :  { %1571 = vmatpush1.msra.mxu1 %v26208_v6  ;;  %1644 = vmatprep.subr.mxu0 %v26380_v51  ;;  %v26550_v6 = vsub.f32 %v176_v61, %v26518_v18  ;;  %v1778_v25 = vand.u32 4294901760, %v1777_v9  ;;  %v1824_v61 = vand.u32 4294901760, %v26536_v10  ;;  %v1813_v9 = vsub.f32 %v26516_v35, %v1812_v3 }
  0xcd   :  { %1606 = vmatmul.mubr.f32.vlgmr.msra.gmra.mxu1 %v25879_v8  ;;  %1743 = vmatprep.subr.mxu1 %v1742_v59  ;;  %v1818_v59 = vand.u32 4294901760, %v26527_v30  ;;  %v1802_v15 = vand.u32 4294901760, %v1801_v26 }
  0xce   :  { %1611 = vmatprep.mubr.f32.mxu1 %v31441_v0  ;;  %1749 = vmatpush1.msra.mxu1 %v1748_v4  ;;  %v1784_v4 = vand.u32 4294901760, %v1783_v24  ;;  %v1830_v28 = vand.u32 4294901760, %v26550_v6 }
  0xcf   :  { %1755 = vmatprep.subr.mxu1 %v1754_v37  ;;  %1646 = vmatpush1.msra.mxu0 %v26391_v52  ;;  %v1790_v37 = vand.u32 4294901760, %v1789_v17  ;;  %v1819_v24 = vsub.f32 %v26527_v30, %v1818_v59  ;;  %v1808_v17 = vand.u32 4294901760, %v1807_v57 }
  0xd0   :  { %1761 = vmatpush1.msra.mxu1 %v1760_v7  ;;  %1648 = vmatprep.subr.mxu0 %v26400_v44  ;;  %v1796_v7 = vand.u32 4294901760, %v1795_v23  ;;  %v1814_v23 = vand.u32 4294901760, %v1813_v9 }
  0xd1   :  { %1613 = vmatmul.mubr.f32.gmra.mxu1 %v25943_v39  ;;  %1767 = vmatprep.subr.mxu1 %v1766_v13  ;;  %v1825_v13 = vsub.f32 %v26536_v10, %v1824_v61  ;;  %v1820_v26 = vand.u32 4294901760, %v1819_v24 }
  0xd2   :  { %1650 = vmatpush1.msra.mxu0 %v26413_v49  ;;  %1773 = vmatpush1.msra.mxu1 %v1772_v1  ;;  %v1831_v1 = vsub.f32 %v26550_v6, %v1830_v28 }
  0xd3   :  { %1652 = vmatprep.subr.mxu0 %v26422_v21  ;;  %1779 = vmatprep.subr.mxu1 %v1778_v25  ;;  %v1826_v25 = vand.u32 4294901760, %v1825_v13 }
  0xd4   :  { %1654 = vmatpush1.msra.mxu0 %v26436_v12  ;;  %1785 = vmatpush1.msra.mxu1 %v1784_v4  ;;  %v1832_v4 = vand.u32 4294901760, %v1831_v1 }
  0xd5   :  { %1656 = vmatprep.subr.mxu0 %v26448_v58  ;;  %1791 = vmatprep.subr.mxu1 %v1790_v37 }
  0xd6   :  { %1658 = vmatpush1.msra.mxu0 %v26456_v42  ;;  %1797 = vmatpush1.msra.mxu1 %v1796_v7 }
  0xd7   :  { %1660 = vmatprep.subr.mxu0 %v26479_v36  ;;  %1803 = vmatprep.subr.mxu1 %v1802_v15 }
  0xd8   :  { %1662 = vmatpush1.msra.mxu0 %v26481_v11  ;;  %1809 = vmatpush1.msra.mxu1 %v1808_v17 }
  0xd9   :  { %1664 = vmatprep.subr.mxu0 %v26507_v50  ;;  %1815 = vmatprep.subr.mxu1 %v1814_v23 }
  0xda   :  { %1666 = vmatpush1.msra.mxu0 %v26518_v18  ;;  %1821 = vmatpush1.msra.mxu1 %v1820_v26 }
  0xdb   :  { %1699 = vmatprep.mubr.f32.mxu0 %v31441_v0  ;;  %1827 = vmatprep.subr.mxu1 %v1826_v25 }
  0xdc   :  { %1899 = vmatprep.subr.mxu0 %v26361_v54  ;;  %1705 = vmatmul.mubr.f32.vlgmr.msra.gmra.mxu0 %v25945_v22  ;;  %v31646_v22 = vand.u32 4294901760, %v26446_v60 }
  0xdd   :  { %1833 = vmatpush1.msra.mxu1 %v1832_v4  ;;  %1902 = vmatpush1.msra.mxu0 %v26378_v32 }
  0xde   :  { %1866 = vmatprep.mubr.f32.mxu1 %v31441_v0  ;;  %1905 = vmatprep.subr.mxu0 %v26398_v48 }
  0xdf   :  { %2011 = vmatprep.subr.mxu1 %v26337_v55  ;;  %1868 = vmatmul.mubr.f32.vlgmr.msra.gmra.mxu1 %v25879_v8 }
  0xe0   :  { %1908 = vmatpush1.msra.mxu0 %v26411_v5  ;;  %2013 = vmatpush1.msra.mxu1 %v26347_v16 }
  0xe1   :  { %1911 = vmatprep.subr.mxu0 %v26420_v62  ;;  %2015 = vmatprep.subr.mxu1 %v26358_v47 }
  0xe2   :  { %1914 = vmatpush1.msra.mxu0 %v26434_v46  ;;  %2017 = vmatpush1.msra.mxu1 %v26372_v38 }
  0xe3   :  { %1917 = vmatprep.subr.mxu0 %v26446_v60  ;;  %2019 = vmatprep.subr.mxu1 %v26380_v51 }
  0xe4   :  { %1920 = vmatpush1.msra.mxu0 %v26454_v20  ;;  %2021 = vmatpush1.msra.mxu1 %v26391_v52 }
  0xe5   :  { %1923 = vmatprep.subr.mxu0 %v26465_v63  ;;  %2023 = vmatprep.subr.mxu1 %v26400_v44 }
  0xe6   :  { %1926 = vmatpush1.msra.mxu0 %v26477_v41  ;;  %2025 = vmatpush1.msra.mxu1 %v26413_v49 }
  0xe7   :  { %1929 = vmatprep.subr.mxu0 %v26490_v14  ;;  %2027 = vmatprep.subr.mxu1 %v26422_v21 }
  0xe8   :  { %1932 = vmatpush1.msra.mxu0 %v26505_v56  ;;  %2029 = vmatpush1.msra.mxu1 %v26436_v12 }
  0xe9   :  { %1710 = vmatprep.mubr.f32.mxu0 %v31441_v0  ;;  %1935 = vmatprep.subr.mxu0 %v26516_v35 }
  0xea   :  { %2031 = vmatprep.subr.mxu1 %v26448_v58  ;;  %1716 = vmatmul.mubr.f32.gmra.mxu0 %v25979_v29  ;;  %v31648_v29 = vand.u32 4294901760, %v26465_v63 }
  0xeb   :  { %1938 = vmatpush1.msra.mxu0 %v26527_v30  ;;  %2033 = vmatpush1.msra.mxu1 %v26456_v42 }
  0xec   :  { %1873 = vmatprep.mubr.f32.mxu1 %v31441_v0  ;;  %1941 = vmatprep.subr.mxu0 %v26536_v10 }
  0xed   :  { %2035 = vmatprep.subr.mxu1 %v26479_v36  ;;  %1875 = vmatmul.mubr.f32.gmra.mxu1 %v25943_v39 }
  0xee   :  { %1944 = vmatpush1.msra.mxu0 %v26550_v6  ;;  %2037 = vmatpush1.msra.mxu1 %v26481_v11 }
  0xef   :  { %1977 = vmatprep.mubr.f32.mxu0 %v31441_v0  ;;  %2039 = vmatprep.subr.mxu1 %v26507_v50 }
  0xf0   :  { %2112 = vmatprep.subr.mxu0 %v1740_v34  ;;  %1980 = vmatmul.mubr.f32.vlgmr.msra.gmra.mxu0 %v25899_v43  ;;  %v31645_v43 = vand.u32 4294901760, %v26434_v46 }
  0xf1   :  { %2041 = vmatpush1.msra.mxu1 %v26518_v18  ;;  %2116 = vmatpush1.msra.mxu0 %v1746_v19 }
  0xf2   :  { %2074 = vmatprep.mubr.f32.mxu1 %v31441_v0  ;;  %2120 = vmatprep.subr.mxu0 %v1752_v33 }
  0xf3   :  { %2237 = vmatprep.subr.mxu1 %v26337_v55  ;;  %2078 = vmatmul.mubr.f32.vlgmr.msra.gmra.mxu1 %v25914_v53  ;;  %v31647_v53 = vand.u32 4294901760, %v26454_v20  ;;  %v31649_v55 = vand.u32 4294901760, %v26490_v14 }
  0xf4   :  { %2124 = vmatpush1.msra.mxu0 %v1758_v31  ;;  %2239 = vmatpush1.msra.mxu1 %v26347_v16  ;;  %v31650_v16 = vand.u32 4294901760, %v26505_v56 }
  0xf5   :  { %2128 = vmatprep.subr.mxu0 %v1764_v40  ;;  %2241 = vmatprep.subr.mxu1 %v26358_v47 }
  0xf6   :  { %2132 = vmatpush1.msra.mxu0 %v31645_v43  ;;  %2243 = vmatpush1.msra.mxu1 %v26372_v38 }
  0xf7   :  { %2136 = vmatprep.subr.mxu0 %v31646_v22  ;;  %2245 = vmatprep.subr.mxu1 %v26380_v51 }
  0xf8   :  { %2140 = vmatpush1.msra.mxu0 %v31647_v53  ;;  %2247 = vmatpush1.msra.mxu1 %v26391_v52 }
  0xf9   :  { %2144 = vmatprep.subr.mxu0 %v31648_v29  ;;  %2249 = vmatprep.subr.mxu1 %v26400_v44 }
  0xfa   :  { %2148 = vmatpush1.msra.mxu0 %v1794_v45  ;;  %2251 = vmatpush1.msra.mxu1 %v26413_v49 }
  0xfb   :  { %2152 = vmatprep.subr.mxu0 %v31649_v55  ;;  %2253 = vmatprep.subr.mxu1 %v26422_v21 }
  0xfc   :  { %1985 = vmatprep.mubr.f32.mxu0 %v31441_v0  ;;  %2156 = vmatpush1.msra.mxu0 %v31650_v16 }
  0xfd   :  { %2255 = vmatpush1.msra.mxu1 %v26436_v12  ;;  %1988 = vmatmul.mubr.f32.gmra.mxu0 %v25953_v27 }
  0xfe   :  { %2160 = vmatprep.subr.mxu0 %v1812_v3  ;;  %2257 = vmatprep.subr.mxu1 %v26448_v58 }
  0xff   :  { %2083 = vmatprep.mubr.f32.mxu1 %v31441_v0  ;;  %2164 = vmatpush1.msra.mxu0 %v1818_v59 }
 0x100   :  { %2259 = vmatpush1.msra.mxu1 %v26456_v42  ;;  %2168 = vmatprep.subr.mxu0 %v1824_v61 }
 0x101   :  { %2087 = vmatmul.mubr.f32.gmra.mxu1 %v25964_v2  ;;  %2261 = vmatprep.subr.mxu1 %v26479_v36 }
 0x102   :  { %2172 = vmatpush1.msra.mxu0 %v1830_v28  ;;  %2205 = vmatprep.mubr.f32.mxu0 %v31441_v0 }
 0x103   :  { %2263 = vmatpush1.msra.mxu1 %v26481_v11  ;;  %2207 = vmatmul.mubr.f32.vlgmr.msra.gmra.mxu0 %v25879_v8 }
 0x104   :  { %2265 = vmatprep.subr.mxu1 %v26507_v50  ;;  %2300 = vmatprep.mubr.f32.mxu1 %v31441_v0 }
 0x105   :  { %2267 = vmatpush1.msra.mxu1 %v26518_v18  ;;  %2212 = vmatprep.mubr.f32.mxu0 %v31441_v0 }
 0x106   :  { %2302 = vmatmul.mubr.f32.vlgmr.msra.gmra.mxu1 %v25879_v8  ;;  %23923 = vmatprep.subr.mxu0 %v31441_v0 }
 0x107   :  { %2214 = vmatmul.mubr.f32.gmra.mxu0 %v25943_v39  ;;  %2307 = vmatprep.mubr.f32.mxu1 %v31441_v0 }
 0x108   :  { %23928 = vmatprep.subr.mxu1 %v31441_v0  ;;  %23925 = vmatprep.mubr.msk.f32.mxu0 %vm25601_vm1, %v31441_v0 }
 0x10a   :  { %2309 = vmatmul.mubr.f32.gmra.mxu1 %v25943_v39 }
 0x10b   :  { %23930 = vmatprep.mubr.msk.f32.mxu1 %vm25601_vm1, %v31441_v0 }
 0x123   :  { %v314_v27 = vpop.f32.mrf.mxu0 }
 0x125   :  { %v26699_v2 = vpop.f32.mrf.mxu0 }
 0x129   :  { %v477_v54 = vpop.f32.mrf.mxu1 }
 0x12a   :  { %v478_v40 = vadd.f32 %v477_v54, %v314_v27 }
 0x12b   :  { %v26703_v32 = vpop.f32.mrf.mxu1 }
 0x12f   :  { %v325_v8 = vpop.f32.mrf.mxu0 }
 0x131   :  { %v26701_v47 = vpop.f32.mrf.mxu0 }
 0x134   :  { %v589_v38 = vpop.f32.mrf.mxu0 }
 0x135   :  { %v484_v51 = vpop.f32.mrf.mxu1  ;;  %v590_v3 = vadd.f32 %v589_v38, %v478_v40 }
 0x136   :  { %v26705_v52 = vpop.f32.mrf.mxu0  ;;  %v485_v45 = vadd.f32 %v484_v51, %v325_v8 }
 0x137   :  { %v26707_v39 = vpop.f32.mrf.mxu1 }
 0x13a   :  { %v597_v34 = vpop.f32.mrf.mxu0 }
 0x13b   :  { %v598_v15 = vadd.f32 %v597_v34, %v485_v45 }
 0x13c   :  { %v26709_v44 = vpop.f32.mrf.mxu0 }
 0x13e   :  { %v687_v48 = vpop.f32.mrf.mxu1 }
 0x13f   :  { %v688_v11 = vadd.f32 %v687_v48, %v590_v3 }
 0x140   :  { %v26711_v5 = vpop.f32.mrf.mxu1 }
 0x144   :  { %v696_v19 = vpop.f32.mrf.mxu1 }
 0x145   :  { %v697_v61 = vadd.f32 %v696_v19, %v598_v15 }
 0x146   :  { %v26715_v21 = vpop.f32.mrf.mxu1 }
 0x148   :  { %v816_v49 = vpop.f32.mrf.mxu0 }
 0x149   :  { %v817_v14 = vadd.f32 %v816_v49, %v688_v11 }
 0x14a   :  { %v26713_v62 = vpop.f32.mrf.mxu0 }
 0x14e   :  { %v823_v46 = vpop.f32.mrf.mxu0 }
 0x14f   :  { %v824_v37 = vadd.f32 %v823_v46, %v697_v61 }
 0x150   :  { %v26717_v33 = vpop.f32.mrf.mxu0 }
 0x152   :  { %v911_v12 = vpop.f32.mrf.mxu1 }
 0x153   :  { %v912_v35 = vadd.f32 %v911_v12, %v817_v14 }
 0x154   :  { %v26719_v60 = vpop.f32.mrf.mxu1 }
 0x155   :  { %v26731_v28 = vmul.f32 0.125, %v912_v35 }
 0x157   :  { %v2352_v57 = vsel %vm220_vm0, %v26731_v28, 0 }
 0x158   :  { %v918_v31 = vpop.f32.mrf.mxu1  ;;  %v26741_v24 = vand.u32 4294901760, %v2352_v57 }
 0x159   :  { %v919_v13 = vadd.f32 %v918_v31, %v824_v37 }
 0x15a   :  { %v26723_v63 = vpop.f32.mrf.mxu1  ;;  %v2424_v26 = vsub.f32 %v2352_v57, %v26741_v24 }
 0x15b   :  { %v26744_v43 = vmul.f32 0.125, %v919_v13 }
 0x15c   :  { %v2425_v55 = vand.u32 4294901760, %v2424_v26 }
 0x15d   :  { %v1010_v58 = vpop.f32.mrf.mxu0  ;;  %v2804_v8 = vsel %vm220_vm0, %v26744_v43, 0 }
 0x15e   :  { %v2426_v49 = vsub.f32 %v2424_v26, %v2425_v55  ;;  %v26756_v19 = vand.u32 4294901760, %v2804_v8 }
 0x15f   :  { %v26721_v20 = vpop.f32.mrf.mxu0 }
 0x160   :  { %v2427_v3 = vand.u32 4294901760, %v2426_v49 }
 0x165   :  { %v1173_v41 = vpop.f32.mrf.mxu1 }
 0x166   :  { %v1174_v23 = vadd.f32 %v1173_v41, %v1010_v58  ;;  %v2876_v41 = vsub.f32 %v2804_v8, %v26756_v19 }
 0x167   :  { %v26727_v56 = vpop.f32.mrf.mxu1 }
 0x16a   :  { %v1021_v42 = vpop.f32.mrf.mxu0 }
 0x16c   :  { %v26725_v36 = vpop.f32.mrf.mxu0 }
 0x170   :  { %v1285_v50 = vpop.f32.mrf.mxu0 }
 0x171   :  { %v1180_v18 = vpop.f32.mrf.mxu1  ;;  %v1286_v25 = vadd.f32 %v1285_v50, %v1174_v23 }
 0x172   :  { %v26729_v30 = vpop.f32.mrf.mxu0  ;;  %v1181_v4 = vadd.f32 %v1180_v18, %v1021_v42  ;;  %v2877_v18 = vand.u32 4294901760, %v2876_v41 }
 0x173   :  { %v26733_v10 = vpop.f32.mrf.mxu1 }
 0x176   :  { %v1293_v6 = vpop.f32.mrf.mxu0 }
 0x177   :  { %v1294_v16 = vadd.f32 %v1293_v6, %v1181_v4  ;;  %v2878_v6 = vsub.f32 %v2876_v41, %v2877_v18 }
 0x178   :  { %v26737_v9 = vpop.f32.mrf.mxu0 }
 0x179   :  { %v2879_v61 = vand.u32 4294901760, %v2878_v6 }
 0x17a   :  { %v1383_v59 = vpop.f32.mrf.mxu1 }
 0x17b   :  { %v1384_v53 = vadd.f32 %v1383_v59, %v1286_v25 }
 0x17c   :  { %v26739_v7 = vpop.f32.mrf.mxu1 }
 0x180   :  { %v1392_v1 = vpop.f32.mrf.mxu1 }
 0x181   :  { %v1393_v51 = vadd.f32 %v1392_v1, %v1294_v16 }
 0x182   :  { %v26748_v29 = vpop.f32.mrf.mxu1 }
 0x184   :  { %v1512_v17 = vpop.f32.mrf.mxu0 }
 0x185   :  { %v1513_v27 = vadd.f32 %v1512_v17, %v1384_v53 }
 0x186   :  { %v26746_v22 = vpop.f32.mrf.mxu0 }
 0x188   :  { %v1519_v54 = vpop.f32.mrf.mxu0 }
 0x189   :  { %v1520_v46 = vadd.f32 %v1519_v54, %v1393_v51 }
 0x18a   :  { %v26781_v37 = vpop.f32.mrf.mxu0 }
 0x18d   :  { %v1607_v38 = vpop.f32.mrf.mxu1 }
 0x18e   :  { %v26752_v34 = vadd.f32 %v1607_v38, %v1513_v27 }
 0x18f   :  { %v26754_v48 = vpop.f32.mrf.mxu1 }
 0x190   :  { %v2355_v12 = vsel %vm220_vm0, %v26752_v34, 0 }
 0x191   :  { %v2388_v58 = vand.u32 4294901760, %v2355_v12  ;;  %v1614_v31 = vpop.f32.mrf.mxu1 }
 0x192   :  { %v26760_v42 = vadd.f32 %v1614_v31, %v1520_v46 }
 0x193   :  { %v2465_v40 = vsub.f32 %v2355_v12, %v2388_v58  ;;  %23924 = vmatpush3.xpose.msra.mxu0 %v2388_v58  ;;  %v26783_v13 = vpop.f32.mrf.mxu1 }
 0x194   :  { %v2807_v11 = vsel %vm220_vm0, %v26760_v42, 0  ;;  %23933 = vmatprep.subr.mxu0 %v31441_v0 }
 0x195   :  { %v2466_v14 = vand.u32 4294901760, %v2465_v40  ;;  %v2840_v50 = vand.u32 4294901760, %v2807_v11 }
 0x196   :  { %23926 = vmatmul.mubr.f32.vlgmr.msra.gmra.mxu0 %v2427_v3 }
 0x197   :  { %23934 = vmatpush3.xpose.msra.mxu0 %v2465_v40  ;;  %23935 = vmatprep.mubr.msk.f32.mxu0 %vm25601_vm1, %v31441_v0  ;;  %v2467_v35 = vsub.f32 %v2465_v40, %v2466_v14  ;;  %v2917_v45 = vsub.f32 %v2807_v11, %v2840_v50 }
 0x198   :  { %23943 = vmatprep.subr.mxu0 %v31441_v0 }
 0x199   :  { %v2468_v15 = vand.u32 4294901760, %v2467_v35  ;;  %v2918_v59 = vand.u32 4294901760, %v2917_v45 }
 0x19a   :  { %23936 = vmatmul.mubr.f32.vlgmr.msra.gmra.mxu0 %v2424_v26 }
 0x19b   :  { %23929 = vmatpush3.xpose.msra.mxu1 %v2468_v15  ;;  %23944 = vmatpush3.xpose.msra.mxu0 %v2466_v14  ;;  %v2919_v57 = vsub.f32 %v2917_v45, %v2918_v59 }
 0x19c   :  { %23945 = vmatprep.mubr.msk.f32.mxu0 %vm25601_vm1, %v31441_v0  ;;  %23938 = vmatprep.subr.mxu1 %v31441_v0  ;;  %v1706_v23 = vpop.f32.mrf.mxu0 }
 0x19d   :  { %23953 = vmatprep.subr.mxu0 %v31441_v0  ;;  %v2920_v17 = vand.u32 4294901760, %v2919_v57 }
 0x19e   :  { %23931 = vmatmul.mubr.f32.vlgmr.msra.gmra.mxu1 %v26741_v24  ;;  %23946 = vmatmul.mubr.f32.vlgmr.msra.gmra.mxu0 %v26741_v24  ;;  %v26797_v26 = vpop.f32.mrf.mxu0 }
 0x19f   :  { %23939 = vmatpush3.xpose.msra.mxu1 %v2388_v58  ;;  %23954 = vmatpush3.xpose.msra.mxu0 %v2840_v50  ;;  %v1869_v1 = vpop.f32.mrf.mxu1 }
 0x1a0   :  { %23940 = vmatprep.mubr.msk.f32.mxu1 %vm25601_vm1, %v31441_v0  ;;  %23955 = vmatprep.mubr.msk.f32.mxu0 %vm25601_vm1, %v31441_v0  ;;  %v1870_v8 = vadd.f32 %v1869_v1, %v1706_v23 }
 0x1a1   :  { %23948 = vmatprep.subr.mxu1 %v31441_v0  ;;  %23963 = vmatprep.subr.mxu0 %v31441_v0  ;;  %v26799_v25 = vpop.f32.mrf.mxu1 }
 0x1a2   :  { %23941 = vmatmul.mubr.f32.vlgmr.msra.gmra.mxu1 %v2425_v55  ;;  %23956 = vmatmul.mubr.f32.vlgmr.msra.gmra.mxu0 %v2879_v61 }
 0x1a3   :  { %23949 = vmatpush3.xpose.msra.mxu1 %v2388_v58  ;;  %23964 = vmatpush3.xpose.msra.mxu0 %v2917_v45 }
 0x1a4   :  { %23950 = vmatprep.mubr.msk.f32.mxu1 %vm25601_vm1, %v31441_v0  ;;  %23965 = vmatprep.mubr.msk.f32.mxu0 %vm25601_vm1, %v31441_v0 }
 0x1a5   :  { %23958 = vmatprep.subr.mxu1 %v31441_v0  ;;  %23973 = vmatprep.subr.mxu0 %v31441_v0 }
 0x1a6   :  { %23951 = vmatmul.mubr.f32.vlgmr.msra.gmra.mxu1 %v26741_v24  ;;  %23966 = vmatmul.mubr.f32.vlgmr.msra.gmra.mxu0 %v2876_v41 }
 0x1a7   :  { %23959 = vmatpush3.xpose.msra.mxu1 %v2920_v17  ;;  %23974 = vmatpush3.xpose.msra.mxu0 %v2918_v59 }
 0x1a8   :  { %23960 = vmatprep.mubr.msk.f32.mxu1 %vm25601_vm1, %v31441_v0  ;;  %23975 = vmatprep.mubr.msk.f32.mxu0 %vm25601_vm1, %v31441_v0 }
 0x1a9   :  { %23968 = vmatprep.subr.mxu1 %v31441_v0  ;;  %23983 = vmatprep.subr.mxu0 %v31441_v0 }
 0x1aa   :  { %23961 = vmatmul.mubr.f32.vlgmr.msra.gmra.mxu1 %v26756_v19  ;;  %23976 = vmatmul.mubr.f32.vlgmr.msra.gmra.mxu0 %v26756_v19  ;;  %v1717_v24 = vpop.f32.mrf.mxu0 }
 0x1ab   :  { %23969 = vmatpush3.xpose.msra.mxu1 %v2840_v50  ;;  %23970 = vmatprep.mubr.msk.f32.mxu1 %vm25601_vm1, %v31441_v0 }
 0x1ac   :  { %23978 = vmatprep.subr.mxu1 %v31441_v0  ;;  %23985 = vmatprep.mubr.msk.f32.mxu0 %vm25601_vm1, %v31441_v0  ;;  %v26812_v55 = vpop.f32.mrf.mxu0 }
 0x1ad   :  { %v1876_v4 = vpop.f32.mrf.mxu1 }
 0x1ae   :  { %23971 = vmatmul.mubr.f32.vlgmr.msra.gmra.mxu1 %v2877_v18  ;;  %v1877_v53 = vadd.f32 %v1876_v4, %v1717_v24  ;;  %v131_v24 = vlaneseq }
 0x1af   :  { %23979 = vmatpush3.xpose.msra.mxu1 %v2840_v50  ;;  %23980 = vmatprep.mubr.msk.f32.mxu1 %vm25601_vm1, %v31441_v0  ;;  %v26817_v16 = vpop.f32.mrf.mxu1 }
 0x1b0   :  { %23988 = vmatprep.subr.mxu1 %v31441_v0  ;;  %v1981_v27 = vpop.f32.mrf.mxu0 }
 0x1b1   :  { %v1982_v51 = vadd.f32 %v1981_v27, %v1870_v8  ;;  %v136_v27 = vld [vmem:[#allocation7] sm:$0x1]  ;;  %v132_v8 = vshrl.u32 %v131_v24, 7 }
 0x1b2   :  { %23981 = vmatmul.mubr.f32.vlgmr.msra.gmra.mxu1 %v26756_v19  ;;  %v26819_v54 = vpop.f32.mrf.mxu0  ;;  %vm138_vm2 = vcmp.gt.f32.partialorder %v136_v27, 0.5 }
 0x1b3   :  { %23990 = vmatprep.mubr.msk.f32.mxu1 %vm25601_vm1, %v31441_v0  ;;  %v2079_v38 = vpop.f32.mrf.mxu1 }
 0x1b4   :  { %v2080_v31 = vadd.f32 %v2079_v38, %v1982_v51 }
 0x1b5   :  { %v26821_v46 = vpop.f32.mrf.mxu1 }
 0x1bd   :  { %v1989_v49 = vpop.f32.mrf.mxu0 }
 0x1be   :  { %v1990_v12 = vadd.f32 %v1989_v49, %v1877_v53  ;;  %v26851_v49 = vsub.s32 0, %v132_v8 }
 0x1bf   :  { %v26823_v58 = vpop.f32.mrf.mxu0 }
 0x1c0   :  { %31651 = vst [vmem:[#allocation23_spill] sm:$0xff] %v26823_v58  ;;  %31654 = vst [vmem:[#allocation26_spill] sm:$0xff] %v26851_v49 }
 0x1c1   :  { %v2088_v40 = vpop.f32.mrf.mxu1 }
 0x1c2   :  { %v2089_v19 = vadd.f32 %v2088_v40, %v1990_v12  ;;  %v31443_v40 = vmov 0  }
 0x1c3   :  { %v26825_v3 = vpop.f32.mrf.mxu1  ;;  %v2208_v41 = vpop.f32.mrf.mxu0 }
 0x1c4   :  { %31652 = vst [vmem:[#allocation24_spill] sm:$0xff] %v26825_v3  ;;  %v2209_v11 = vadd.f32 %v2208_v41, %v2080_v31 }
 0x1c5   :  { %v26827_v14 = vpop.f32.mrf.mxu0 }
 0x1c6   :  { %v2303_v50 = vpop.f32.mrf.mxu1 }
 0x1c7   :  { %v26829_v35 = vadd.f32 %v2303_v50, %v2209_v11  ;;  %v2215_v18 = vpop.f32.mrf.mxu0 }
 0x1c8   :  { %v26831_v45 = vpop.f32.mrf.mxu1  ;;  %v2216_v15 = vadd.f32 %v2215_v18, %v2089_v19  ;;  %v146_v19 = vsel %vm138_vm2, 1, %v31443_v40  ;;  %v134_v18 = vand.u32 127, %v131_v24 }
 0x1c9   :  { %v26834_v6 = vand.u32 4294901760, %v26829_v35  ;;  %v26849_v4 = vpop.f32.mrf.mxu0 }
 0x1ca   :  { %v2310_v59 = vpop.f32.mrf.mxu1  ;;  %31653 = vst [vmem:[#allocation25_spill] sm:$0xff] %v26849_v4  ;;  %vm135_vm3 = vcmp.gt.s32.totalorder %v134_v18, %v132_v8 }
 0x1cb   :  { %v26838_v61 = vsub.f32 %v26829_v35, %v26834_v6  ;;  %23984 = vmatpush3.msra.mxu0 %v26834_v6  ;;  %v26841_v57 = vadd.f32 %v2310_v59, %v2216_v15  ;;  %v151_v15 = vrot.slane %v146_v19, %v26851_v49 }
 0x1cc   :  { %23993 = vmatprep.subr.mxu0 %v31441_v0  ;;  %v26853_v12 = vpop.f32.mrf.mxu1 }
 0x1cd   :  { %v31440_v17 = vand.u32 4294901760, %v26838_v61  ;;  %31655 = vst [vmem:[#allocation27_spill] sm:$0xff] %v26853_v12  ;;  %vm156_vm4 = vcmp.eq.s32.totalorder %v151_v15, 1 }
 0x1ce   :  { %vm26858_vm6 = vmor %vm135_vm3, %vm156_vm4 }
 0x1cf   :  { %v3395_v23 = vsub.f32 %v26838_v61, %v31440_v17  ;;  %v137_v17 = vld [vmem:[#allocation7 + $0x1] sm:$0x1] }
 0x1d0   :  { %vm139_vm5 = vcmp.gt.f32.partialorder %v137_v17, 0.5 }
 0x1d1   :  { %v3396_v1 = vand.u32 4294901760, %v3395_v23 }
 0x1d3   :  { %23989 = vmatpush3.msra.mxu1 %v3396_v1 }
 0x1d4   :  { %23998 = vmatprep.subr.mxu1 %v31441_v0 }
 0x256   :  { %v2429_v53 = vpop.f32.mrf.mxu0 }
 0x258   :  { %v23927_v38 = vpop.f32.mrf.mxu0 }
 0x25a   :  { %v2579_v51 = vpop.f32.mrf.mxu0 }
 0x25c   :  { %v23937_v31 = vpop.f32.mrf.mxu0 }
 0x25e   :  { %v2505_v41 = vpop.f32.mrf.mxu1  ;;  %v2727_v11 = vpop.f32.mrf.mxu0 }
 0x25f   :  { %v2506_v50 = vadd.f32 %v2505_v41, %v2429_v53  ;;  %v31658_v41 = vmov 0  }
 0x260   :  { %v23932_v59 = vpop.f32.mrf.mxu1  ;;  %v23947_v23 = vpop.f32.mrf.mxu0 }
 0x261   :  { %v2580_v1 = vadd.f32 %v2579_v51, %v2506_v50  ;;  %v147_v50 = vsel %vm139_vm5, 1, %v31658_v41 }
 0x262   :  { %v2653_v38 = vpop.f32.mrf.mxu1  ;;  %v2881_v27 = vpop.f32.mrf.mxu0 }
 0x263   :  { %v2654_v0 = vadd.f32 %v2653_v38, %v2580_v1 }
 0x264   :  { %v23942_v12 = vpop.f32.mrf.mxu1  ;;  %v23957_v31 = vpop.f32.mrf.mxu0 }
 0x265   :  { %v2728_v4 = vadd.f32 %v2727_v11, %v2654_v0  ;;  %v155_v11 = vrot.slane %v147_v50, %v26851_v49 }
 0x266   :  { %v2799_v40 = vpop.f32.mrf.mxu1  ;;  %v3031_v3 = vpop.f32.mrf.mxu0 }
 0x267   :  { %v2800_v53 = vadd.f32 %v2799_v40, %v2728_v4  ;;  %vm157_vm8 = vcmp.eq.s32.totalorder %v155_v11, 1 }
 0x268   :  { %v23952_v51 = vpop.f32.mrf.mxu1  ;;  %v23967_v19 = vpop.f32.mrf.mxu0  ;;  %vm26868_vm9 = vmor %vm135_vm3, %vm157_vm8 }
 0x269   :  { %v3255_v15 = vsel %vm26858_vm6, -1e+09, %v2800_v53 }
 0x26a   :  { %v2957_v12 = vpop.f32.mrf.mxu1  ;;  %v3179_v59 = vpop.f32.mrf.mxu0  ;;  %v3258_v0 = vsel %vm3257_vm7, %v3255_v15, -inf }
 0x26b   :  { %v2958_v17 = vadd.f32 %v2957_v12, %v2881_v27  ;;  %3259 = vmax.xlane.f32.xlu0 %v3258_v0 }
 0x26c   :  { %v23962_v23 = vpop.f32.mrf.mxu1  ;;  %v23977_v1 = vpop.f32.mrf.mxu0 }
 0x26d   :  { %v3032_v38 = vadd.f32 %v3031_v3, %v2958_v17 }
 0x26e   :  { %v3105_v4 = vpop.f32.mrf.mxu1 }
 0x26f   :  { %v3106_v40 = vadd.f32 %v3105_v4, %v3032_v38 }
 0x270   :  { %v23972_v31 = vpop.f32.mrf.mxu1 }
 0x271   :  { %v3180_v51 = vadd.f32 %v3179_v59, %v3106_v40 }
 0x272   :  { %v3251_v19 = vpop.f32.mrf.mxu1 }
 0x273   :  { %v3252_v41 = vadd.f32 %v3251_v19, %v3180_v51  ;;  %v31661_v19 = vmov 0.0  }
 0x274   :  { %v23982_v58 = vpop.f32.mrf.mxu1 }
 0x275   :  { %v3256_v27 = vsel %vm26868_vm9, -1e+09, %v3252_v41 }
 0x276   :  { %v3261_v50 = vsel %vm3257_vm7, %v3256_v27, -inf }
 0x277   :  { %3262 = vmax.xlane.f32.xlu0 %v3261_v50 }
 0x28d   :  { %4182 = vrot.lane.b32.xlu0 %v26752_v34, %s25603_s4 }
 0x2f4   :  { %v3260_v3 = vpop.xlane.xlu0 %3259 }
 0x2f5   :  { %v3264_v12 = vsub.f32 %v3255_v15, %v3260_v3  ;;  %v3765_v15 = vand.u32 4294901760, %v26841_v57 }
 0x2f7   :  { %v3266_v59 = vmul.f32 1.442695, %v3264_v12  ;;  %v26887_v38 = vsub.f32 %v26841_v57, %v3765_v15 }
 0x2f9   :  { %25320 = vpow2.f32 %v3266_v59  ;;  %v3843_v31 = vand.u32 4294901760, %v26887_v38 }
 0x2fb   :  { %v3844_v12 = vsub.f32 %v26887_v38, %v3843_v31 }
 0x300   :  { %v3263_v8 = vpop.xlane.xlu0 %3262 }
 0x301   :  { %v3265_v18 = vsub.f32 %v3256_v27, %v3263_v8 }
 0x303   :  { %v3268_v0 = vmul.f32 1.442695, %v3265_v18 }
 0x304   :  { %v4183_v40 = vpop.permute.xlu0 %4182 }
 0x305   :  { %25322 = vpow2.f32 %v3268_v0 }
 0x306   :  { %v25321_v17 = vpop.eup %25320 }
 0x307   :  { %v3270_v58 = vsel %vm3257_vm7, %v25321_v17, 0.0 }
 0x308   :  { %3271 = vadd.xlane.f32.xlu1 %v3270_v58 }
 0x312   :  { %v25323_v41 = vpop.eup %25322 }
 0x313   :  { %v3273_v11 = vsel %vm3257_vm7, %v25323_v41, 0.0 }
 0x314   :  { %3274 = vadd.xlane.f32.xlu1 %v3273_v11 }
 0x325   :  { %4180 = vrot.lane.b32.xlu1 %v26731_v28, %s25603_s4 }
 0x329   :  { %4636 = vrot.lane.b32.xlu1 %v26760_v42, %s25603_s4 }
 0x32d   :  { %4634 = vrot.lane.b32.xlu1 %v26744_v43, %s25603_s4  ;;  %v4186_v43 = vsel %vm220_vm0, %v4183_v40, 0  ;;  %v31662_v40 = vand.u32 4294901760, %v26838_v61 }
 0x32e   :  { %v26897_v50 = vand.u32 4294901760, %v4186_v43 }
 0x330   :  { %v26907_v0 = vsub.f32 %v4186_v43, %v26897_v50 }
 0x391   :  { %v3272_v34 = vpop.xlane.xlu1 %3271 }
 0x392   :  { %25324 = vrcp.f32 %v3272_v34 }
 0x39d   :  { %v3275_v23 = vpop.xlane.xlu1 %3274 }
 0x39e   :  { %25326 = vrcp.f32 %v3275_v23  ;;  %v4297_v23 = vand.u32 4294901760, %v26907_v0 }
 0x39f   :  { %v25325_v1 = vpop.eup %25324 }
 0x3a0   :  { %v3277_v4 = vmul.f32 %v25325_v1, %v25321_v17  ;;  %v3845_v17 = vand.u32 4294901760, %v3844_v12 }
 0x3a1   :  { %v4181_v3 = vpop.permute.xlu1 %4180 }
 0x3a2   :  { %3280 = vst.msk [vmem:[#allocation14] sm:$0xff] %vm3257_vm7, %v3277_v4  ;;  %v3283_v28 = vsel %vm3257_vm7, %v3277_v4, 0 }
 0x3a3   :  { %v3351_v42 = vand.u32 4294901760, %v3283_v28 }
 0x3a5   :  { %v3352_v51 = vsub.f32 %v3283_v28, %v3351_v42  ;;  %23991 = vmatmul.mubr.f32.vlgmr.msra.gmra.mxu1 %v3351_v42  ;;  %v4637_v11 = vpop.permute.xlu1 %4636 }
 0x3a6   :  { %23999 = vmatpush3.msra.mxu1 %v26834_v6  ;;  %24000 = vmatprep.mubr.msk.f32.mxu1 %vm25601_vm1, %v31661_v19  ;;  %v4640_v1 = vsel %vm220_vm0, %v4637_v11, 0 }
 0x3a7   :  { %24008 = vmatprep.subr.mxu1 %v31661_v19  ;;  %v3353_v27 = vand.u32 4294901760, %v3352_v51 }
 0x3a9   :  { %24001 = vmatmul.mubr.f32.vlgmr.msra.gmra.mxu1 %v3353_v27  ;;  %v3354_v59 = vsub.f32 %v3352_v51, %v3353_v27  ;;  %v4298_v27 = vsub.f32 %v26907_v0, %v4297_v23 }
 0x3aa   :  { %24009 = vmatpush3.msra.mxu1 %v26834_v6  ;;  %24010 = vmatprep.mubr.msk.f32.mxu1 %vm25601_vm1, %v31661_v19 }
 0x3ab   :  { %v25327_v8 = vpop.eup %25326  ;;  %24018 = vmatprep.subr.mxu1 %v31661_v19  ;;  %v3355_v18 = vand.u32 4294901760, %v3354_v59  ;;  %v4299_v59 = vand.u32 4294901760, %v4298_v27 }
 0x3ac   :  { %v3279_v58 = vmul.f32 %v25327_v8, %v25323_v41  ;;  %v4184_v41 = vsel %vm220_vm0, %v4181_v3, 0  ;;  %v26931_v3 = vand.u32 4294901760, %v4640_v1 }
 0x3ad   :  { %23986 = vmatmul.mubr.f32.vlgmr.msra.gmra.mxu0 %v3355_v18  ;;  %24011 = vmatmul.mubr.f32.vlgmr.msra.gmra.mxu1 %v3351_v42  ;;  %v26923_v28 = vand.u32 4294901760, %v4184_v41 }
 0x3ae   :  { %23994 = vmatpush3.msra.mxu0 %v26838_v61  ;;  %24019 = vmatpush3.msra.mxu1 %v3845_v17  ;;  %3281 = vst.msk [vmem:[#allocation14 + $0x8] sm:$0xff] %vm3257_vm7, %v3279_v58  ;;  %v3732_v6 = vsel %vm3257_vm7, %v3279_v58, 0  ;;  %v26941_v8 = vsub.f32 %v4640_v1, %v26931_v3 }
 0x3af   :  { %23995 = vmatprep.mubr.msk.f32.mxu0 %vm25601_vm1, %v31661_v19  ;;  %24003 = vmatprep.subr.mxu0 %v31661_v19  ;;  %v3800_v34 = vand.u32 4294901760, %v3732_v6 }
 0x3b0   :  { %24020 = vmatprep.mubr.msk.f32.mxu1 %vm25601_vm1, %v31661_v19  ;;  %24028 = vmatprep.subr.mxu1 %v31661_v19  ;;  %v4751_v18 = vand.u32 4294901760, %v26941_v8 }
 0x3b1   :  { %23996 = vmatmul.mubr.f32.vlgmr.msra.gmra.mxu0 %v3352_v51  ;;  %v3801_v4 = vsub.f32 %v3732_v6, %v3800_v34  ;;  %24021 = vmatmul.mubr.f32.vlgmr.msra.gmra.mxu1 %v3800_v34  ;;  %v4255_v51 = vsub.f32 %v4184_v41, %v26923_v28 }
 0x3b2   :  { %24004 = vmatpush3.msra.mxu0 %v31662_v40  ;;  %24029 = vmatpush3.msra.mxu1 %v3765_v15  ;;  %v4752_v6 = vsub.f32 %v26941_v8, %v4751_v18 }
 0x3b3   :  { %24005 = vmatprep.mubr.msk.f32.mxu0 %vm25601_vm1, %v31661_v19  ;;  %24013 = vmatprep.subr.mxu0 %v31661_v19  ;;  %v3802_v43 = vand.u32 4294901760, %v3801_v4 }
 0x3b4   :  { %24030 = vmatprep.mubr.msk.f32.mxu1 %vm25601_vm1, %v31661_v19  ;;  %24038 = vmatprep.subr.mxu1 %v31661_v19  ;;  %v4753_v41 = vand.u32 4294901760, %v4752_v6 }
 0x3b5   :  { %24006 = vmatmul.mubr.f32.vlgmr.msra.gmra.mxu0 %v3351_v42  ;;  %24031 = vmatmul.mubr.f32.vlgmr.msra.gmra.mxu1 %v3802_v43  ;;  %v3803_v61 = vsub.f32 %v3801_v4, %v3802_v43  ;;  %v4635_v42 = vpop.permute.xlu1 %4634 }
 0x3b6   :  { %24014 = vmatpush3.msra.mxu0 %v3765_v15  ;;  %24039 = vmatpush3.msra.mxu1 %v3765_v15  ;;  %v4256_v15 = vand.u32 4294901760, %v4255_v51  ;;  %v4638_v17 = vsel %vm220_vm0, %v4635_v42, 0 }
 0x3b7   :  { %24015 = vmatprep.mubr.msk.f32.mxu0 %vm25601_vm1, %v31661_v19  ;;  %24023 = vmatprep.subr.mxu0 %v31661_v19  ;;  %v3804_v12 = vand.u32 4294901760, %v3803_v61  ;;  %v4708_v11 = vand.u32 4294901760, %v4638_v17 }
 0x3b8   :  { %24040 = vmatprep.mubr.msk.f32.mxu1 %vm25601_vm1, %v31661_v19  ;;  %24048 = vmatprep.subr.mxu1 %v31661_v19  ;;  %v4257_v58 = vsub.f32 %v4255_v51, %v4256_v15 }
 0x3b9   :  { %24016 = vmatmul.mubr.f32.vlgmr.msra.gmra.mxu0 %v3804_v12  ;;  %24041 = vmatmul.mubr.f32.vlgmr.msra.gmra.mxu1 %v3800_v34 }
 0x3ba   :  { %24024 = vmatpush3.msra.mxu0 %v26887_v38  ;;  %24049 = vmatpush3.xpose.msra.mxu1 %v4299_v59  ;;  %v4258_v38 = vand.u32 4294901760, %v4257_v58 }
 0x3bb   :  { %24025 = vmatprep.mubr.msk.f32.mxu0 %vm25601_vm1, %v31661_v19  ;;  %24033 = vmatprep.subr.mxu0 %v31661_v19 }
 0x3bc   :  { %24050 = vmatprep.mubr.msk.f32.mxu1 %vm25601_vm1, %v31661_v19  ;;  %24058 = vmatprep.subr.mxu1 %v31661_v19 }
 0x3bd   :  { %24026 = vmatmul.mubr.f32.vlgmr.msra.gmra.mxu0 %v3801_v4  ;;  %24051 = vmatmul.mubr.f32.vlgmr.msra.gmra.mxu1 %v26923_v28 }
 0x3be   :  { %24034 = vmatpush3.msra.mxu0 %v3843_v31  ;;  %24059 = vmatpush3.xpose.msra.mxu1 %v26897_v50  ;;  %v4709_v31 = vsub.f32 %v4638_v17, %v4708_v11 }
 0x3bf   :  { %24035 = vmatprep.mubr.msk.f32.mxu0 %vm25601_vm1, %v31661_v19  ;;  %24043 = vmatprep.subr.mxu0 %v31661_v19 }
 0x3c0   :  { %24060 = vmatprep.mubr.msk.f32.mxu1 %vm25601_vm1, %v31661_v19  ;;  %24068 = vmatprep.subr.mxu1 %v31661_v19 }
 0x3c1   :  { %24036 = vmatmul.mubr.f32.vlgmr.msra.gmra.mxu0 %v3800_v34  ;;  %24061 = vmatmul.mubr.f32.vlgmr.msra.gmra.mxu1 %v4256_v15 }
 0x3c2   :  { %24044 = vmatpush3.xpose.msra.mxu0 %v26897_v50  ;;  %24069 = vmatpush3.xpose.msra.mxu1 %v26897_v50  ;;  %v4710_v50 = vand.u32 4294901760, %v4709_v31 }
 0x3c3   :  { %24045 = vmatprep.mubr.msk.f32.mxu0 %vm25601_vm1, %v31661_v19  ;;  %24053 = vmatprep.subr.mxu0 %v31661_v19 }
 0x3c4   :  { %24070 = vmatprep.mubr.msk.f32.mxu1 %vm25601_vm1, %v31661_v19  ;;  %24078 = vmatprep.subr.mxu1 %v31661_v19  ;;  %v4711_v34 = vsub.f32 %v4709_v31, %v4710_v50 }
 0x3c5   :  { %24046 = vmatmul.mubr.f32.vlgmr.msra.gmra.mxu0 %v4258_v38  ;;  %24071 = vmatmul.mubr.f32.vlgmr.msra.gmra.mxu1 %v26923_v28 }
 0x3c6   :  { %24054 = vmatpush3.xpose.msra.mxu0 %v26907_v0  ;;  %24079 = vmatpush3.xpose.msra.mxu1 %v4753_v41  ;;  %v4712_v0 = vand.u32 4294901760, %v4711_v34 }
 0x3c7   :  { %24055 = vmatprep.mubr.msk.f32.mxu0 %vm25601_vm1, %v31661_v19  ;;  %24063 = vmatprep.subr.mxu0 %v31661_v19 }
 0x3c8   :  { %24080 = vmatprep.mubr.msk.f32.mxu1 %vm25601_vm1, %v31661_v19  ;;  %24088 = vmatprep.subr.mxu1 %v31661_v19 }
 0x3c9   :  { %24056 = vmatmul.mubr.f32.vlgmr.msra.gmra.mxu0 %v4255_v51  ;;  %24081 = vmatmul.mubr.f32.vlgmr.msra.gmra.mxu1 %v4708_v11 }
 0x3ca   :  { %24064 = vmatpush3.xpose.msra.mxu0 %v4297_v23  ;;  %24089 = vmatpush3.xpose.msra.mxu1 %v26931_v3 }
 0x3cb   :  { %24065 = vmatprep.mubr.msk.f32.mxu0 %vm25601_vm1, %v31661_v19  ;;  %24073 = vmatprep.subr.mxu0 %v31661_v19 }
 0x3cc   :  { %24090 = vmatprep.mubr.msk.f32.mxu1 %vm25601_vm1, %v31661_v19  ;;  %24098 = vmatprep.subr.mxu1 %v31661_v19 }
 0x3cd   :  { %24066 = vmatmul.mubr.f32.vlgmr.msra.gmra.mxu0 %v26923_v28  ;;  %24091 = vmatmul.mubr.f32.vlgmr.msra.gmra.mxu1 %v4710_v50 }
 0x3ce   :  { %24074 = vmatpush3.xpose.msra.mxu0 %v26931_v3  ;;  %24099 = vmatpush3.xpose.msra.mxu1 %v26931_v3 }
 0x3cf   :  { %24075 = vmatprep.mubr.msk.f32.mxu0 %vm25601_vm1, %v31661_v19  ;;  %24083 = vmatprep.subr.mxu0 %v31661_v19 }
 0x3d0   :  { %24100 = vmatprep.mubr.msk.f32.mxu1 %vm25601_vm1, %v31661_v19  ;;  %24108 = vmatprep.subr.mxu1 %v31661_v19 }
 0x3d1   :  { %24076 = vmatmul.mubr.f32.vlgmr.msra.gmra.mxu0 %v4712_v0  ;;  %24101 = vmatmul.mubr.f32.vlgmr.msra.gmra.mxu1 %v4708_v11 }
 0x3d2   :  { %24084 = vmatpush3.xpose.msra.mxu0 %v26941_v8  ;;  %24085 = vmatprep.mubr.msk.f32.mxu0 %vm25601_vm1, %v31661_v19 }
 0x3d3   :  { %24093 = vmatprep.subr.mxu0 %v31661_v19  ;;  %24110 = vmatprep.mubr.msk.f32.mxu1 %vm25601_vm1, %v31661_v19 }
 0x3d5   :  { %24086 = vmatmul.mubr.f32.vlgmr.msra.gmra.mxu0 %v4709_v31 }
 0x3d6   :  { %24094 = vmatpush3.xpose.msra.mxu0 %v4751_v18  ;;  %24095 = vmatprep.mubr.msk.f32.mxu0 %vm25601_vm1, %v31661_v19 }
 0x3d7   :  { %24103 = vmatprep.subr.mxu0 %v31661_v19 }
 0x3d9   :  { %24096 = vmatmul.mubr.f32.vlgmr.msra.gmra.mxu0 %v4708_v11 }
 0x3da   :  { %24105 = vmatprep.mubr.msk.f32.mxu0 %vm25601_vm1, %v31661_v19 }
 0x465   :  { %v3433_v23 = vpop.f32.mrf.mxu1 }
 0x467   :  { %v23992_v1 = vpop.f32.mrf.mxu1 }
 0x469   :  { %v3581_v4 = vpop.f32.mrf.mxu1 }
 0x46b   :  { %v24002_v40 = vpop.f32.mrf.mxu1 }
 0x46d   :  { %v3357_v28 = vpop.f32.mrf.mxu0  ;;  %v3727_v43 = vpop.f32.mrf.mxu1 }
 0x46e   :  { %v3434_v27 = vadd.f32 %v3433_v23, %v3357_v28 }
 0x46f   :  { %v23987_v3 = vpop.f32.mrf.mxu0  ;;  %v24012_v61 = vpop.f32.mrf.mxu1 }
 0x471   :  { %v3507_v51 = vpop.f32.mrf.mxu0  ;;  %v3882_v12 = vpop.f32.mrf.mxu1 }
 0x472   :  { %v3508_v59 = vadd.f32 %v3507_v51, %v3434_v27 }
 0x473   :  { %v23997_v8 = vpop.f32.mrf.mxu0  ;;  %v24022_v42 = vpop.f32.mrf.mxu1 }
 0x474   :  { %v3582_v15 = vadd.f32 %v3581_v4, %v3508_v59 }
 0x475   :  { %v3655_v18 = vpop.f32.mrf.mxu0  ;;  %v4030_v17 = vpop.f32.mrf.mxu1 }
 0x476   :  { %v3656_v58 = vadd.f32 %v3655_v18, %v3582_v15 }
 0x477   :  { %v24007_v11 = vpop.f32.mrf.mxu0  ;;  %v24032_v6 = vpop.f32.mrf.mxu1 }
 0x478   :  { %v27011_v38 = vadd.f32 %v3727_v43, %v3656_v58 }
 0x479   :  { %v3806_v31 = vpop.f32.mrf.mxu0  ;;  %v4176_v41 = vpop.f32.mrf.mxu1 }
 0x47a   :  { %v3883_v50 = vadd.f32 %v3882_v12, %v3806_v31 }
 0x47b   :  { %v24017_v34 = vpop.f32.mrf.mxu0  ;;  %v24042_v0 = vpop.f32.mrf.mxu1 }
 0x47d   :  { %v3956_v23 = vpop.f32.mrf.mxu0  ;;  %v4336_v1 = vpop.f32.mrf.mxu1 }
 0x47e   :  { %v3957_v40 = vadd.f32 %v3956_v23, %v3883_v50 }
 0x47f   :  { %v24027_v28 = vpop.f32.mrf.mxu0  ;;  %v24052_v27 = vpop.f32.mrf.mxu1 }
 0x480   :  { %v4031_v3 = vadd.f32 %v4030_v17, %v3957_v40 }
 0x481   :  { %v4104_v61 = vpop.f32.mrf.mxu0  ;;  %v4484_v4 = vpop.f32.mrf.mxu1 }
 0x482   :  { %v4105_v51 = vadd.f32 %v4104_v61, %v4031_v3 }
 0x483   :  { %v24037_v59 = vpop.f32.mrf.mxu0  ;;  %v24062_v8 = vpop.f32.mrf.mxu1 }
 0x484   :  { %v27013_v42 = vadd.f32 %v4176_v41, %v4105_v51 }
 0x485   :  { %v4260_v43 = vpop.f32.mrf.mxu0  ;;  %v4630_v15 = vpop.f32.mrf.mxu1 }
 0x486   :  { %v4337_v12 = vadd.f32 %v4336_v1, %v4260_v43 }
 0x487   :  { %v24047_v18 = vpop.f32.mrf.mxu0  ;;  %v24072_v58 = vpop.f32.mrf.mxu1 }
 0x489   :  { %v4410_v11 = vpop.f32.mrf.mxu0  ;;  %v4790_v6 = vpop.f32.mrf.mxu1 }
 0x48a   :  { %v4411_v31 = vadd.f32 %v4410_v11, %v4337_v12 }
 0x48b   :  { %v24057_v34 = vpop.f32.mrf.mxu0  ;;  %v24082_v50 = vpop.f32.mrf.mxu1 }
 0x48c   :  { %v4485_v0 = vadd.f32 %v4484_v4, %v4411_v31 }
 0x48d   :  { %v4558_v23 = vpop.f32.mrf.mxu0  ;;  %v4938_v17 = vpop.f32.mrf.mxu1 }
 0x48e   :  { %v4559_v40 = vadd.f32 %v4558_v23, %v4485_v0 }
 0x48f   :  { %v24067_v28 = vpop.f32.mrf.mxu0  ;;  %v24092_v27 = vpop.f32.mrf.mxu1 }
 0x490   :  { %v4631_v3 = vadd.f32 %v4630_v15, %v4559_v40 }
 0x491   :  { %v4714_v61 = vpop.f32.mrf.mxu0  ;;  %v5084_v41 = vpop.f32.mrf.mxu1 }
 0x492   :  { %v5088_v51 = vsel %vm26858_vm6, -1e+09, %v4631_v3  ;;  %v4791_v43 = vadd.f32 %v4790_v6, %v4714_v61 }
 0x493   :  { %v24077_v59 = vpop.f32.mrf.mxu0  ;;  %v24102_v8 = vpop.f32.mrf.mxu1  ;;  %v5090_v1 = vsel %vm3257_vm7, %v5088_v51, -inf }
 0x494   :  { %5091 = vmax.xlane.f32.xlu0 %v5090_v1  ;;  %v480_v1 = vadd.f32 %v26703_v32, %v26699_v2 }
 0x495   :  { %v4864_v18 = vpop.f32.mrf.mxu0 }
 0x496   :  { %v4865_v58 = vadd.f32 %v4864_v18, %v4791_v43 }
 0x497   :  { %v24087_v4 = vpop.f32.mrf.mxu0 }
 0x498   :  { %v4939_v12 = vadd.f32 %v4938_v17, %v4865_v58  ;;  %v592_v58 = vadd.f32 %v26705_v52, %v480_v1  ;;  %v1176_v4 = vadd.f32 %v26727_v56, %v26721_v20 }
 0x499   :  { %v5012_v11 = vpop.f32.mrf.mxu0 }
 0x49a   :  { %v5013_v31 = vadd.f32 %v5012_v11, %v4939_v12 }
 0x49b   :  { %v24097_v34 = vpop.f32.mrf.mxu0 }
 0x49c   :  { %v5085_v50 = vadd.f32 %v5084_v41, %v5013_v31  ;;  %v690_v34 = vadd.f32 %v26711_v5, %v592_v58 }
 0x49e   :  { %v5089_v15 = vsel %vm26868_vm9, -1e+09, %v5085_v50  ;;  %v1288_v50 = vadd.f32 %v26729_v30, %v1176_v4  ;;  %v819_v20 = vadd.f32 %v26713_v62, %v690_v34 }
 0x49f   :  { %v5093_v0 = vsel %vm3257_vm7, %v5089_v15, -inf }
 0x4a0   :  { %5094 = vmax.xlane.f32.xlu1 %v5093_v0  ;;  %v1386_v56 = vadd.f32 %v26739_v7, %v1288_v50 }
 0x4a2   :  { %v1515_v5 = vadd.f32 %v26746_v22, %v1386_v56 }
 0x4b1   :  { %5569 = vrot.lane.b32.xlu1 %v26841_v57, %s25603_s4 }
 0x51d   :  { %v5092_v23 = vpop.xlane.xlu0 %5091 }
 0x51e   :  { %v5096_v6 = vsub.f32 %v5088_v51, %v5092_v23  ;;  %v914_v23 = vadd.f32 %v26719_v60, %v819_v20  ;;  %v1183_v60 = vadd.f32 %v26733_v10, %v26725_v36 }
 0x520   :  { %v5098_v40 = vmul.f32 1.442695, %v5096_v6 }
 0x522   :  { %25328 = vpow2.f32 %v5098_v40 }
 0x529   :  { %v5095_v28 = vpop.xlane.xlu1 %5094 }
 0x52a   :  { %v5097_v27 = vsub.f32 %v5089_v15, %v5095_v28  ;;  %v487_v28 = vadd.f32 %v26707_v39, %v26701_v47 }
 0x52c   :  { %v5100_v17 = vmul.f32 1.442695, %v5097_v27  ;;  %v27052_v27 = vadd.f32 %v26754_v48, %v1515_v5  ;;  %v600_v47 = vadd.f32 %v26709_v44, %v487_v28 }
 0x52d   :  { %v5570_v12 = vpop.permute.xlu1 %5569 }
 0x52e   :  { %25330 = vpow2.f32 %v5100_v17  ;;  %v27038_v32 = vand.u32 4294901760, %v5570_v12  ;;  %v6025_v39 = vsel %vm220_vm0, %v27052_v27, 0  ;;  %v699_v10 = vadd.f32 %v26715_v21, %v600_v47 }
 0x52f   :  { %v25329_v3 = vpop.eup %25328 }
 0x530   :  { %v5102_v61 = vsel %vm3257_vm7, %v25329_v3, 0.0  ;;  %v27047_v30 = vsub.f32 %v5570_v12, %v27038_v32 }
 0x531   :  { %5103 = vadd.xlane.f32.xlu0 %v5102_v61 }
 0x532   :  { %v5684_v61 = vand.u32 4294901760, %v27047_v30 }
 0x53b   :  { %v25331_v41 = vpop.eup %25330 }
 0x53c   :  { %v5105_v59 = vsel %vm3257_vm7, %v25331_v41, 0.0 }
 0x53d   :  { %5106 = vadd.xlane.f32.xlu0 %v5105_v59  ;;  %v27077_v59 = vand.u32 4294901760, %v6025_v39 }
 0x553   :  { %5116 = vrot.lane.b32.xlu0 %v26829_v35, %s25603_s4 }
 0x5ba   :  { %v5104_v57 = vpop.xlane.xlu0 %5103 }
 0x5bb   :  { %25332 = vrcp.f32 %v5104_v57  ;;  %v5685_v57 = vsub.f32 %v27047_v30, %v5684_v61 }
 0x5bd   :  { %v5686_v58 = vand.u32 4294901760, %v5685_v57 }
 0x5c6   :  { %v5107_v51 = vpop.xlane.xlu0 %5106 }
 0x5c7   :  { %25334 = vrcp.f32 %v5107_v51  ;;  %v826_v51 = vadd.f32 %v26717_v33, %v699_v10  ;;  %v27096_v33 = vsub.f32 %v6025_v39, %v27077_v59 }
 0x5c8   :  { %v25333_v8 = vpop.eup %25332 }
 0x5c9   :  { %v5109_v43 = vmul.f32 %v25333_v8, %v25329_v3  ;;  %v27054_v3 = vmul.f32 0.125, %v914_v23 }
 0x5ca   :  { %v5117_v18 = vpop.permute.xlu0 %5116 }
 0x5cb   :  { %5113 = vst.msk [vmem:[#allocation14 + $0x10] sm:$0xff] %vm3257_vm7, %v5109_v43  ;;  %v5153_v11 = vand.u32 4294901760, %v5117_v18  ;;  %v5120_v35 = vsel %vm3257_vm7, %v5109_v43, 0  ;;  %v6022_v44 = vsel %vm220_vm0, %v27054_v3, 0  ;;  %v921_v43 = vadd.f32 %v26723_v63, %v826_v51 }
 0x5cc   :  { %v27034_v31 = vand.u32 4294901760, %v5120_v35  ;;  %v27086_v8 = vand.u32 4294901760, %v6022_v44 }
 0x5cd   :  { %v5230_v2 = vsub.f32 %v5117_v18, %v5153_v11  ;;  %24104 = vmatpush3.msra.mxu0 %v5153_v11 }
 0x5ce   :  { %24113 = vmatprep.subr.mxu0 %v31661_v19  ;;  %v5189_v52 = vsub.f32 %v5120_v35, %v27034_v31 }
 0x5cf   :  { %v5231_v15 = vand.u32 4294901760, %v5230_v2 }
 0x5d0   :  { %v5190_v0 = vand.u32 4294901760, %v5189_v52 }
 0x5d1   :  { %v5232_v6 = vsub.f32 %v5230_v2, %v5231_v15 }
 0x5d2   :  { %v5191_v40 = vsub.f32 %v5189_v52, %v5190_v0 }
 0x5d3   :  { %v5233_v62 = vand.u32 4294901760, %v5232_v6 }
 0x5d4   :  { %v25335_v17 = vpop.eup %25334  ;;  %v5192_v7 = vand.u32 4294901760, %v5191_v40 }
 0x5d5   :  { %v5111_v22 = vmul.f32 %v25335_v17, %v25331_v41  ;;  %24109 = vmatpush3.msra.mxu1 %v5233_v62  ;;  %v1296_v41 = vadd.f32 %v26737_v9, %v1183_v60 }
 0x5d6   :  { %24106 = vmatmul.mubr.f32.vlgmr.msra.gmra.mxu0 %v5192_v7  ;;  %24111 = vmatmul.mubr.f32.vlgmr.msra.gmra.mxu1 %v27034_v31 }
 0x5d7   :  { %5114 = vst.msk [vmem:[#allocation14 + $0x18] sm:$0xff] %vm3257_vm7, %v5111_v22  ;;  %24114 = vmatpush3.msra.mxu0 %v5230_v2  ;;  %24118 = vmatprep.subr.mxu1 %v31661_v19  ;;  %v5573_v48 = vsel %vm3257_vm7, %v5111_v22, 0  ;;  %v1395_v9 = vadd.f32 %v26748_v29, %v1296_v41  ;;  %v1872_v29 = vadd.f32 %v26799_v25, %v26797_v26  ;;  %v27110_v25 = vmul.f32 0.125, %v921_v43 }
 0x5d8   :  { %24119 = vmatpush3.msra.mxu1 %v5153_v11  ;;  %24115 = vmatprep.mubr.msk.f32.mxu0 %vm25601_vm1, %v31661_v19  ;;  %v27068_v36 = vand.u32 4294901760, %v5573_v48 }
 0x5d9   :  { %24120 = vmatprep.mubr.msk.f32.mxu1 %vm25601_vm1, %v31661_v19  ;;  %24123 = vmatprep.subr.mxu0 %v31661_v19  ;;  %v1522_v18 = vadd.f32 %v26781_v37, %v1395_v9  ;;  %v6094_v37 = vsub.f32 %v6022_v44, %v27086_v8  ;;  %v1984_v12 = vadd.f32 %v26819_v54, %v1872_v29 }
 0x5da   :  { %24128 = vmatprep.subr.mxu1 %v31661_v19  ;;  %24116 = vmatmul.mubr.f32.vlgmr.msra.gmra.mxu0 %v5189_v52  ;;  %v5642_v21 = vsub.f32 %v5573_v48, %v27068_v36 }
 0x5db   :  { %24121 = vmatmul.mubr.f32.vlgmr.msra.gmra.mxu1 %v5190_v0  ;;  %24124 = vmatpush3.msra.mxu0 %v5231_v15  ;;  %v27103_v63 = vadd.f32 %v26783_v13, %v1522_v18  ;;  %v6136_v13 = vand.u32 4294901760, %v27096_v33  ;;  %v6095_v35 = vand.u32 4294901760, %v6094_v37  ;;  %v2082_v34 = vadd.f32 %v26821_v46, %v1984_v12 }
 0x5dc   :  { %24129 = vmatpush3.msra.mxu1 %v5153_v11  ;;  %24125 = vmatprep.mubr.msk.f32.mxu0 %vm25601_vm1, %v31661_v19  ;;  %v5643_v1 = vand.u32 4294901760, %v5642_v21 }
 0x5dd   :  { %24130 = vmatprep.mubr.msk.f32.mxu1 %vm25601_vm1, %v31661_v19  ;;  %24133 = vmatprep.subr.mxu0 %v31661_v19  ;;  %v6477_v11 = vsel %vm220_vm0, %v27103_v63, 0  ;;  %v6137_v50 = vsub.f32 %v27096_v33, %v6136_v13  ;;  %v6096_v52 = vsub.f32 %v6094_v37, %v6095_v35  ;;  %v2211_v20 = vadd.f32 %v26827_v14, %v2082_v34 }
 0x5de   :  { %24138 = vmatprep.subr.mxu1 %v31661_v19  ;;  %24126 = vmatmul.mubr.f32.vlgmr.msra.gmra.mxu0 %v27034_v31  ;;  %v5644_v4 = vsub.f32 %v5642_v21, %v5643_v1  ;;  %v27130_v54 = vand.u32 4294901760, %v6477_v11 }
 0x5df   :  { %24131 = vmatmul.mubr.f32.vlgmr.msra.gmra.mxu1 %v27034_v31  ;;  %24134 = vmatpush3.msra.mxu0 %v27038_v32  ;;  %v6474_v31 = vsel %vm220_vm0, %v27110_v25, 0  ;;  %v6138_v56 = vand.u32 4294901760, %v6137_v50  ;;  %v6097_v15 = vand.u32 4294901760, %v6096_v52  ;;  %v27158_v0 = vadd.f32 %v26831_v45, %v2211_v20 }
 0x5e0   :  { %24139 = vmatpush3.msra.mxu1 %v5686_v58  ;;  %24135 = vmatprep.mubr.msk.f32.mxu0 %vm25601_vm1, %v31661_v19  ;;  %v5645_v26 = vand.u32 4294901760, %v5644_v4  ;;  %v27137_v2 = vand.u32 4294901760, %v6474_v31  ;;  %v6587_v46 = vsub.f32 %v6477_v11, %v27130_v54 }
 0x5e1   :  { %24140 = vmatprep.mubr.msk.f32.mxu1 %vm25601_vm1, %v31661_v19  ;;  %24143 = vmatprep.subr.mxu0 %v31661_v19  ;;  %v27170_v45 = vand.u32 4294901760, %v27158_v0 }
 0x5e2   :  { %24148 = vmatprep.subr.mxu1 %v31661_v19  ;;  %24136 = vmatmul.mubr.f32.vlgmr.msra.gmra.mxu0 %v5645_v26  ;;  %v6588_v14 = vand.u32 4294901760, %v6587_v46 }
 0x5e3   :  { %24141 = vmatmul.mubr.f32.vlgmr.msra.gmra.mxu1 %v27068_v36  ;;  %24144 = vmatpush3.msra.mxu0 %v27047_v30  ;;  %v27181_v30 = vsub.f32 %v27158_v0, %v27170_v45 }
 0x5e4   :  { %24149 = vmatpush3.msra.mxu1 %v27038_v32  ;;  %24145 = vmatprep.mubr.msk.f32.mxu0 %vm25601_vm1, %v31661_v19  ;;  %v6589_v5 = vsub.f32 %v6587_v46, %v6588_v14 }
 0x5e5   :  { %24150 = vmatprep.mubr.msk.f32.mxu1 %vm25601_vm1, %v31661_v19  ;;  %24153 = vmatprep.subr.mxu0 %v31661_v19  ;;  %v7064_v62 = vand.u32 4294901760, %v27181_v30 }
 0x5e6   :  { %24158 = vmatprep.subr.mxu1 %v31661_v19  ;;  %24146 = vmatmul.mubr.f32.vlgmr.msra.gmra.mxu0 %v5642_v21  ;;  %v6590_v40 = vand.u32 4294901760, %v6589_v5 }
 0x5e7   :  { %24151 = vmatmul.mubr.f32.vlgmr.msra.gmra.mxu1 %v5643_v1  ;;  %24154 = vmatpush3.msra.mxu0 %v5684_v61  ;;  %v7065_v17 = vsub.f32 %v27181_v30, %v7064_v62 }
 0x5e8   :  { %24159 = vmatpush3.msra.mxu1 %v27038_v32  ;;  %24155 = vmatprep.mubr.msk.f32.mxu0 %vm25601_vm1, %v31661_v19  ;;  %v6546_v32 = vsub.f32 %v6474_v31, %v27137_v2 }
 0x5e9   :  { %24160 = vmatprep.mubr.msk.f32.mxu1 %vm25601_vm1, %v31661_v19  ;;  %24163 = vmatprep.subr.mxu0 %v31661_v19  ;;  %v7066_v7 = vand.u32 4294901760, %v7065_v17 }
 0x5ea   :  { %24168 = vmatprep.subr.mxu1 %v31661_v19  ;;  %24156 = vmatmul.mubr.f32.vlgmr.msra.gmra.mxu0 %v27068_v36  ;;  %v6547_v23 = vand.u32 4294901760, %v6546_v32 }
 0x5eb   :  { %24161 = vmatmul.mubr.f32.vlgmr.msra.gmra.mxu1 %v27068_v36  ;;  %24164 = vmatpush3.xpose.msra.mxu0 %v27077_v59 }
 0x5ec   :  { %24169 = vmatpush3.xpose.msra.mxu1 %v6138_v56  ;;  %24165 = vmatprep.mubr.msk.f32.mxu0 %vm25601_vm1, %v31661_v19  ;;  %v6548_v6 = vsub.f32 %v6546_v32, %v6547_v23 }
 0x5ed   :  { %24170 = vmatprep.mubr.msk.f32.mxu1 %vm25601_vm1, %v31661_v19  ;;  %24173 = vmatprep.subr.mxu0 %v31661_v19 }
 0x5ee   :  { %24178 = vmatprep.subr.mxu1 %v31661_v19  ;;  %24166 = vmatmul.mubr.f32.vlgmr.msra.gmra.mxu0 %v6097_v15  ;;  %v6549_v28 = vand.u32 4294901760, %v6548_v6 }
 0x5ef   :  { %24171 = vmatmul.mubr.f32.vlgmr.msra.gmra.mxu1 %v27086_v8  ;;  %24174 = vmatpush3.xpose.msra.mxu0 %v27096_v33 }
 0x5f0   :  { %24179 = vmatpush3.xpose.msra.mxu1 %v27077_v59  ;;  %24175 = vmatprep.mubr.msk.f32.mxu0 %vm25601_vm1, %v31661_v19 }
 0x5f1   :  { %24180 = vmatprep.mubr.msk.f32.mxu1 %vm25601_vm1, %v31661_v19  ;;  %24183 = vmatprep.subr.mxu0 %v31661_v19 }
 0x5f2   :  { %24188 = vmatprep.subr.mxu1 %v31661_v19  ;;  %24176 = vmatmul.mubr.f32.vlgmr.msra.gmra.mxu0 %v6094_v37 }
 0x5f3   :  { %24181 = vmatmul.mubr.f32.vlgmr.msra.gmra.mxu1 %v6095_v35  ;;  %24184 = vmatpush3.xpose.msra.mxu0 %v6136_v13 }
 0x5f4   :  { %24189 = vmatpush3.xpose.msra.mxu1 %v27077_v59  ;;  %24185 = vmatprep.mubr.msk.f32.mxu0 %vm25601_vm1, %v31661_v19 }
 0x5f5   :  { %24190 = vmatprep.mubr.msk.f32.mxu1 %vm25601_vm1, %v31661_v19  ;;  %24193 = vmatprep.subr.mxu0 %v31661_v19 }
 0x5f6   :  { %24198 = vmatprep.subr.mxu1 %v31661_v19  ;;  %24186 = vmatmul.mubr.f32.vlgmr.msra.gmra.mxu0 %v27086_v8 }
 0x5f7   :  { %24191 = vmatmul.mubr.f32.vlgmr.msra.gmra.mxu1 %v27086_v8  ;;  %24194 = vmatpush3.xpose.msra.mxu0 %v27130_v54 }
 0x5f8   :  { %24199 = vmatpush3.xpose.msra.mxu1 %v6590_v40  ;;  %24195 = vmatprep.mubr.msk.f32.mxu0 %vm25601_vm1, %v31661_v19 }
 0x5f9   :  { %24200 = vmatprep.mubr.msk.f32.mxu1 %vm25601_vm1, %v31661_v19  ;;  %24203 = vmatprep.subr.mxu0 %v31661_v19 }
 0x5fa   :  { %24208 = vmatprep.subr.mxu1 %v31661_v19  ;;  %24196 = vmatmul.mubr.f32.vlgmr.msra.gmra.mxu0 %v6549_v28 }
 0x5fb   :  { %24201 = vmatmul.mubr.f32.vlgmr.msra.gmra.mxu1 %v27137_v2  ;;  %24204 = vmatpush3.xpose.msra.mxu0 %v6587_v46 }
 0x5fc   :  { %24209 = vmatpush3.xpose.msra.mxu1 %v27130_v54  ;;  %24205 = vmatprep.mubr.msk.f32.mxu0 %vm25601_vm1, %v31661_v19 }
 0x5fd   :  { %24210 = vmatprep.mubr.msk.f32.mxu1 %vm25601_vm1, %v31661_v19  ;;  %24213 = vmatprep.subr.mxu0 %v31661_v19 }
 0x5fe   :  { %24218 = vmatprep.subr.mxu1 %v31661_v19  ;;  %24206 = vmatmul.mubr.f32.vlgmr.msra.gmra.mxu0 %v6546_v32 }
 0x5ff   :  { %24211 = vmatmul.mubr.f32.vlgmr.msra.gmra.mxu1 %v6547_v23  ;;  %24214 = vmatpush3.xpose.msra.mxu0 %v6588_v14 }
 0x600   :  { %24219 = vmatpush3.xpose.msra.mxu1 %v27130_v54  ;;  %24215 = vmatprep.mubr.msk.f32.mxu0 %vm25601_vm1, %v31661_v19 }
 0x601   :  { %24220 = vmatprep.mubr.msk.f32.mxu1 %vm25601_vm1, %v31661_v19  ;;  %24223 = vmatprep.subr.mxu0 %v31661_v19 }
 0x602   :  { %24228 = vmatprep.subr.mxu1 %v31661_v19  ;;  %24216 = vmatmul.mubr.f32.vlgmr.msra.gmra.mxu0 %v27137_v2 }
 0x603   :  { %24221 = vmatmul.mubr.f32.vlgmr.msra.gmra.mxu1 %v27137_v2  ;;  %24224 = vmatpush3.msra.mxu0 %v27170_v45 }
 0x604   :  { %24229 = vmatpush3.msra.mxu1 %v7066_v7  ;;  %24230 = vmatprep.mubr.msk.f32.mxu1 %vm25601_vm1, %v31661_v19 }
 0x605   :  { %24238 = vmatprep.subr.mxu1 %v31661_v19  ;;  %24225 = vmatprep.mubr.msk.f32.mxu0 %vm25601_vm1, %v31661_v19 }
 0x606   :  { %24233 = vmatprep.subr.mxu0 %v31661_v19 }
 0x696   :  { %v5194_v60 = vpop.f32.mrf.mxu0  ;;  %v5270_v22 = vpop.f32.mrf.mxu1 }
 0x697   :  { %v5271_v61 = vadd.f32 %v5270_v22, %v5194_v60 }
 0x698   :  { %v24107_v47 = vpop.f32.mrf.mxu0  ;;  %v24112_v39 = vpop.f32.mrf.mxu1 }
 0x69a   :  { %v5344_v48 = vpop.f32.mrf.mxu0 }
 0x69b   :  { %v5345_v36 = vadd.f32 %v5344_v48, %v5271_v61  ;;  %v5418_v10 = vpop.f32.mrf.mxu1 }
 0x69c   :  { %v24117_v44 = vpop.f32.mrf.mxu0 }
 0x69d   :  { %v5419_v41 = vadd.f32 %v5418_v10, %v5345_v36  ;;  %v24122_v59 = vpop.f32.mrf.mxu1 }
 0x69e   :  { %v5492_v57 = vpop.f32.mrf.mxu0 }
 0x69f   :  { %v5493_v21 = vadd.f32 %v5492_v57, %v5419_v41  ;;  %v5564_v51 = vpop.f32.mrf.mxu1 }
 0x6a0   :  { %v24127_v9 = vpop.f32.mrf.mxu0 }
 0x6a1   :  { %v27221_v8 = vadd.f32 %v5564_v51, %v5493_v21  ;;  %v24132_v1 = vpop.f32.mrf.mxu1 }
 0x6a2   :  { %v5647_v43 = vpop.f32.mrf.mxu0 }
 0x6a3   :  { %v5723_v18 = vpop.f32.mrf.mxu1 }
 0x6a4   :  { %v5724_v33 = vadd.f32 %v5723_v18, %v5647_v43  ;;  %v24137_v29 = vpop.f32.mrf.mxu0 }
 0x6a5   :  { %v24142_v58 = vpop.f32.mrf.mxu1 }
 0x6a6   :  { %v5797_v4 = vpop.f32.mrf.mxu0 }
 0x6a7   :  { %v5798_v37 = vadd.f32 %v5797_v4, %v5724_v33  ;;  %v5871_v26 = vpop.f32.mrf.mxu1 }
 0x6a8   :  { %v24147_v13 = vpop.f32.mrf.mxu0 }
 0x6a9   :  { %v5872_v12 = vadd.f32 %v5871_v26, %v5798_v37  ;;  %v24152_v11 = vpop.f32.mrf.mxu1 }
 0x6aa   :  { %v5945_v35 = vpop.f32.mrf.mxu0 }
 0x6ab   :  { %v5946_v31 = vadd.f32 %v5945_v35, %v5872_v12  ;;  %v6017_v54 = vpop.f32.mrf.mxu1 }
 0x6ac   :  { %v24157_v34 = vpop.f32.mrf.mxu0 }
 0x6ad   :  { %v27223_v50 = vadd.f32 %v6017_v54, %v5946_v31  ;;  %v24162_v2 = vpop.f32.mrf.mxu1 }
 0x6ae   :  { %v6099_v52 = vpop.f32.mrf.mxu0 }
 0x6af   :  { %v6175_v46 = vpop.f32.mrf.mxu1 }
 0x6b0   :  { %v24167_v20 = vpop.f32.mrf.mxu0  ;;  %v6176_v56 = vadd.f32 %v6175_v46, %v6099_v52 }
 0x6b1   :  { %v24172_v32 = vpop.f32.mrf.mxu1  ;;  %v1879_v20 = vadd.f32 %v26817_v16, %v26812_v55 }
 0x6b2   :  { %v6249_v15 = vpop.f32.mrf.mxu0 }
 0x6b3   :  { %v6250_v14 = vadd.f32 %v6249_v15, %v6176_v56  ;;  %v6323_v23 = vpop.f32.mrf.mxu1  ;;  %v31663_v56 = vld [vmem:[#allocation23_spill] sm:$0xff]  ;;  %v31664_v15 = vld [vmem:[#allocation24_spill] sm:$0xff] }
 0x6b4   :  { %v24177_v5 = vpop.f32.mrf.mxu0  ;;  %v1992_v32 = vadd.f32 %v31663_v56, %v1879_v20 }
 0x6b5   :  { %v6324_v6 = vadd.f32 %v6323_v23, %v6250_v14  ;;  %v24182_v40 = vpop.f32.mrf.mxu1  ;;  %v31665_v5 = vld [vmem:[#allocation25_spill] sm:$0xff] }
 0x6b6   :  { %v6397_v28 = vpop.f32.mrf.mxu0  ;;  %v2091_v14 = vadd.f32 %v31664_v15, %v1992_v32 }
 0x6b7   :  { %v6398_v17 = vadd.f32 %v6397_v28, %v6324_v6  ;;  %v6469_v7 = vpop.f32.mrf.mxu1  ;;  %v31666_v6 = vld [vmem:[#allocation27_spill] sm:$0xff] }
 0x6b8   :  { %v24187_v60 = vpop.f32.mrf.mxu0 }
 0x6b9   :  { %v6470_v22 = vadd.f32 %v6469_v7, %v6398_v17  ;;  %v24192_v61 = vpop.f32.mrf.mxu1 }
 0x6ba   :  { %v6551_v47 = vpop.f32.mrf.mxu0 }
 0x6bb   :  { %v6627_v39 = vpop.f32.mrf.mxu1  ;;  %v6925_v48 = vsel %vm26858_vm6, -1e+09, %v6470_v22 }
 0x6bc   :  { %v24197_v36 = vpop.f32.mrf.mxu0  ;;  %v6927_v10 = vsel %vm3257_vm7, %v6925_v48, -inf  ;;  %v6628_v44 = vadd.f32 %v6627_v39, %v6551_v47 }
 0x6bd   :  { %v24202_v41 = vpop.f32.mrf.mxu1  ;;  %6928 = vmax.xlane.f32.xlu1 %v6927_v10 }
 0x6be   :  { %v6701_v59 = vpop.f32.mrf.mxu0 }
 0x6bf   :  { %v6702_v57 = vadd.f32 %v6701_v59, %v6628_v44  ;;  %v6775_v21 = vpop.f32.mrf.mxu1 }
 0x6c0   :  { %v24207_v51 = vpop.f32.mrf.mxu0 }
 0x6c1   :  { %v6776_v9 = vadd.f32 %v6775_v21, %v6702_v57  ;;  %v24212_v1 = vpop.f32.mrf.mxu1 }
 0x6c2   :  { %v6849_v43 = vpop.f32.mrf.mxu0 }
 0x6c3   :  { %v6850_v18 = vadd.f32 %v6849_v43, %v6776_v9  ;;  %v6921_v33 = vpop.f32.mrf.mxu1 }
 0x6c4   :  { %v24217_v29 = vpop.f32.mrf.mxu0 }
 0x6c5   :  { %v6922_v58 = vadd.f32 %v6921_v33, %v6850_v18  ;;  %v24222_v4 = vpop.f32.mrf.mxu1 }
 0x6c7   :  { %v6926_v37 = vsel %vm26868_vm9, -1e+09, %v6922_v58 }
 0x6c8   :  { %v6930_v26 = vsel %vm3257_vm7, %v6926_v37, -inf }
 0x6c9   :  { %6931 = vmax.xlane.f32.xlu0 %v6930_v26 }
 0x746   :  { %v6929_v13 = vpop.xlane.xlu1 %6928 }
 0x747   :  { %v6933_v12 = vsub.f32 %v6925_v48, %v6929_v13 }
 0x749   :  { %v6935_v11 = vmul.f32 1.442695, %v6933_v12 }
 0x74b   :  { %25336 = vpow2.f32 %v6935_v11 }
 0x752   :  { %v6932_v35 = vpop.xlane.xlu0 %6931 }
 0x753   :  { %v6934_v31 = vsub.f32 %v6926_v37, %v6932_v35 }
 0x755   :  { %v6937_v54 = vmul.f32 1.442695, %v6934_v31 }
 0x757   :  { %25338 = vpow2.f32 %v6937_v54 }
 0x758   :  { %v25337_v34 = vpop.eup %25336 }
 0x759   :  { %v6939_v2 = vsel %vm3257_vm7, %v25337_v34, 0.0 }
 0x75a   :  { %6940 = vadd.xlane.f32.xlu0 %v6939_v2 }
 0x764   :  { %v25339_v52 = vpop.eup %25338 }
 0x765   :  { %v6942_v46 = vsel %vm3257_vm7, %v25339_v52, 0.0 }
 0x766   :  { %6943 = vadd.xlane.f32.xlu1 %v6942_v46 }
 0x770   :  { %7852 = vrot.lane.b32.xlu0 %v27052_v27, %s25603_s4  ;;  %v2218_v27 = vadd.f32 %v31665_v5, %v2091_v14 }
 0x772   :  { %v27247_v40 = vadd.f32 %v31666_v6, %v2218_v27 }
 0x777   :  { %7850 = vrot.lane.b32.xlu1 %v27054_v3, %s25603_s4  ;;  %v7435_v3 = vand.u32 4294901760, %v27247_v40 }
 0x77b   :  { %8306 = vrot.lane.b32.xlu1 %v27103_v63, %s25603_s4 }
 0x77f   :  { %8304 = vrot.lane.b32.xlu1 %v27110_v25, %s25603_s4  ;;  %v27251_v25 = vsub.f32 %v27247_v40, %v7435_v3 }
 0x781   :  { %v7513_v60 = vand.u32 4294901760, %v27251_v25 }
 0x783   :  { %v7514_v36 = vsub.f32 %v27251_v25, %v7513_v60 }
 0x785   :  { %v7515_v57 = vand.u32 4294901760, %v7514_v36 }
 0x7e3   :  { %v6941_v23 = vpop.xlane.xlu0 %6940 }
 0x7e4   :  { %25340 = vrcp.f32 %v6941_v23 }
 0x7e7   :  { %v7853_v16 = vpop.permute.xlu0 %7852 }
 0x7e8   :  { %v7856_v22 = vsel %vm220_vm0, %v7853_v16, 0 }
 0x7e9   :  { %v27261_v39 = vand.u32 4294901760, %v7856_v22 }
 0x7eb   :  { %v27271_v59 = vsub.f32 %v7856_v22, %v27261_v39 }
 0x7ed   :  { %v7967_v1 = vand.u32 4294901760, %v27271_v59 }
 0x7ef   :  { %v6944_v63 = vpop.xlane.xlu1 %6943  ;;  %v7968_v4 = vsub.f32 %v27271_v59, %v7967_v1 }
 0x7f0   :  { %25342 = vrcp.f32 %v6944_v63 }
 0x7f1   :  { %v25341_v28 = vpop.eup %25340  ;;  %v7969_v13 = vand.u32 4294901760, %v7968_v4 }
 0x7f2   :  { %v6946_v55 = vmul.f32 %v25341_v28, %v25337_v34 }
 0x7f3   :  { %v7851_v48 = vpop.permute.xlu1 %7850 }
 0x7f4   :  { %6950 = vst.msk [vmem:[#allocation14 + $0x20] sm:$0xff] %vm3257_vm7, %v6946_v55  ;;  %v6953_v17 = vsel %vm3257_vm7, %v6946_v55, 0  ;;  %v7854_v43 = vsel %vm220_vm0, %v7851_v48, 0 }
 0x7f5   :  { %v7021_v7 = vand.u32 4294901760, %v6953_v17  ;;  %v27287_v29 = vand.u32 4294901760, %v7854_v43 }
 0x7f7   :  { %v7022_v61 = vsub.f32 %v6953_v17, %v7021_v7  ;;  %24231 = vmatmul.mubr.f32.vlgmr.msra.gmra.mxu1 %v7021_v7  ;;  %v8307_v51 = vpop.permute.xlu1 %8306 }
 0x7f8   :  { %24239 = vmatpush3.msra.mxu1 %v27170_v45  ;;  %24240 = vmatprep.mubr.msk.f32.mxu1 %vm25601_vm1, %v31661_v19  ;;  %v8310_v18 = vsel %vm220_vm0, %v8307_v51, 0 }
 0x7f9   :  { %24248 = vmatprep.subr.mxu1 %v31661_v19  ;;  %v7023_v47 = vand.u32 4294901760, %v7022_v61  ;;  %v27295_v37 = vand.u32 4294901760, %v8310_v18 }
 0x7fb   :  { %24241 = vmatmul.mubr.f32.vlgmr.msra.gmra.mxu1 %v7023_v47  ;;  %v7024_v10 = vsub.f32 %v7022_v61, %v7023_v47  ;;  %v27305_v12 = vsub.f32 %v8310_v18, %v27295_v37  ;;  %v8305_v11 = vpop.permute.xlu1 %8304 }
 0x7fc   :  { %24249 = vmatpush3.msra.mxu1 %v27170_v45  ;;  %24250 = vmatprep.mubr.msk.f32.mxu1 %vm25601_vm1, %v31661_v19  ;;  %v8308_v54 = vsel %vm220_vm0, %v8305_v11, 0 }
 0x7fd   :  { %v25343_v44 = vpop.eup %25342  ;;  %24258 = vmatprep.subr.mxu1 %v31661_v19  ;;  %v7025_v41 = vand.u32 4294901760, %v7024_v10  ;;  %v8421_v31 = vand.u32 4294901760, %v27305_v12  ;;  %v8378_v2 = vand.u32 4294901760, %v8308_v54 }
 0x7fe   :  { %v6948_v21 = vmul.f32 %v25343_v44, %v25339_v52 }
 0x7ff   :  { %24226 = vmatmul.mubr.f32.vlgmr.msra.gmra.mxu0 %v7025_v41  ;;  %24251 = vmatmul.mubr.f32.vlgmr.msra.gmra.mxu1 %v7021_v7  ;;  %v8422_v52 = vsub.f32 %v27305_v12, %v8421_v31  ;;  %v8379_v20 = vsub.f32 %v8308_v54, %v8378_v2 }
 0x800   :  { %24234 = vmatpush3.msra.mxu0 %v27181_v30  ;;  %24259 = vmatpush3.msra.mxu1 %v7515_v57  ;;  %6951 = vst.msk [vmem:[#allocation14 + $0x28] sm:$0xff] %vm3257_vm7, %v6948_v21  ;;  %v7402_v45 = vsel %vm3257_vm7, %v6948_v21, 0 }
 0x801   :  { %24235 = vmatprep.mubr.msk.f32.mxu0 %vm25601_vm1, %v31661_v19  ;;  %24243 = vmatprep.subr.mxu0 %v31661_v19  ;;  %v7470_v9 = vand.u32 4294901760, %v7402_v45  ;;  %v8423_v56 = vand.u32 4294901760, %v8422_v52  ;;  %v8380_v32 = vand.u32 4294901760, %v8379_v20 }
 0x802   :  { %24260 = vmatprep.mubr.msk.f32.mxu1 %vm25601_vm1, %v31661_v19  ;;  %24268 = vmatprep.subr.mxu1 %v31661_v19 }
 0x803   :  { %24236 = vmatmul.mubr.f32.vlgmr.msra.gmra.mxu0 %v7022_v61  ;;  %v7471_v33 = vsub.f32 %v7402_v45, %v7470_v9  ;;  %24261 = vmatmul.mubr.f32.vlgmr.msra.gmra.mxu1 %v7470_v9  ;;  %v8381_v15 = vsub.f32 %v8379_v20, %v8380_v32 }
 0x804   :  { %24244 = vmatpush3.msra.mxu0 %v7064_v62  ;;  %24269 = vmatpush3.msra.mxu1 %v7435_v3  ;;  %v7925_v62 = vsub.f32 %v7854_v43, %v27287_v29 }
 0x805   :  { %24245 = vmatprep.mubr.msk.f32.mxu0 %vm25601_vm1, %v31661_v19  ;;  %24253 = vmatprep.subr.mxu0 %v31661_v19  ;;  %v7472_v58 = vand.u32 4294901760, %v7471_v33  ;;  %v8382_v14 = vand.u32 4294901760, %v8381_v15 }
 0x806   :  { %24270 = vmatprep.mubr.msk.f32.mxu1 %vm25601_vm1, %v31661_v19  ;;  %24278 = vmatprep.subr.mxu1 %v31661_v19  ;;  %v7926_v35 = vand.u32 4294901760, %v7925_v62 }
 0x807   :  { %24246 = vmatmul.mubr.f32.vlgmr.msra.gmra.mxu0 %v7021_v7  ;;  %24271 = vmatmul.mubr.f32.vlgmr.msra.gmra.mxu1 %v7472_v58  ;;  %v7473_v30 = vsub.f32 %v7471_v33, %v7472_v58 }
 0x808   :  { %24254 = vmatpush3.msra.mxu0 %v7435_v3  ;;  %24279 = vmatpush3.msra.mxu1 %v7435_v3  ;;  %v7927_v34 = vsub.f32 %v7925_v62, %v7926_v35 }
 0x809   :  { %24255 = vmatprep.mubr.msk.f32.mxu0 %vm25601_vm1, %v31661_v19  ;;  %24263 = vmatprep.subr.mxu0 %v31661_v19  ;;  %v7474_v26 = vand.u32 4294901760, %v7473_v30 }
 0x80a   :  { %24280 = vmatprep.mubr.msk.f32.mxu1 %vm25601_vm1, %v31661_v19  ;;  %24288 = vmatprep.subr.mxu1 %v31661_v19  ;;  %v7928_v46 = vand.u32 4294901760, %v7927_v34 }
 0x80b   :  { %24256 = vmatmul.mubr.f32.vlgmr.msra.gmra.mxu0 %v7474_v26  ;;  %24281 = vmatmul.mubr.f32.vlgmr.msra.gmra.mxu1 %v7470_v9 }
 0x80c   :  { %24264 = vmatpush3.msra.mxu0 %v27251_v25  ;;  %24289 = vmatpush3.xpose.msra.mxu1 %v7969_v13 }
 0x80d   :  { %24265 = vmatprep.mubr.msk.f32.mxu0 %vm25601_vm1, %v31661_v19  ;;  %24273 = vmatprep.subr.mxu0 %v31661_v19 }
 0x80e   :  { %24290 = vmatprep.mubr.msk.f32.mxu1 %vm25601_vm1, %v31661_v19  ;;  %24298 = vmatprep.subr.mxu1 %v31661_v19 }
 0x80f   :  { %24266 = vmatmul.mubr.f32.vlgmr.msra.gmra.mxu0 %v7471_v33  ;;  %24291 = vmatmul.mubr.f32.vlgmr.msra.gmra.mxu1 %v27287_v29 }
 0x810   :  { %24274 = vmatpush3.msra.mxu0 %v7513_v60  ;;  %24299 = vmatpush3.xpose.msra.mxu1 %v27261_v39 }
 0x811   :  { %24275 = vmatprep.mubr.msk.f32.mxu0 %vm25601_vm1, %v31661_v19  ;;  %24283 = vmatprep.subr.mxu0 %v31661_v19 }
 0x812   :  { %24300 = vmatprep.mubr.msk.f32.mxu1 %vm25601_vm1, %v31661_v19  ;;  %24308 = vmatprep.subr.mxu1 %v31661_v19 }
 0x813   :  { %24276 = vmatmul.mubr.f32.vlgmr.msra.gmra.mxu0 %v7470_v9  ;;  %24301 = vmatmul.mubr.f32.vlgmr.msra.gmra.mxu1 %v7926_v35 }
 0x814   :  { %24284 = vmatpush3.xpose.msra.mxu0 %v27261_v39  ;;  %24309 = vmatpush3.xpose.msra.mxu1 %v27261_v39 }
 0x815   :  { %24285 = vmatprep.mubr.msk.f32.mxu0 %vm25601_vm1, %v31661_v19  ;;  %24293 = vmatprep.subr.mxu0 %v31661_v19 }
 0x816   :  { %24310 = vmatprep.mubr.msk.f32.mxu1 %vm25601_vm1, %v31661_v19  ;;  %24318 = vmatprep.subr.mxu1 %v31661_v19 }
 0x817   :  { %24286 = vmatmul.mubr.f32.vlgmr.msra.gmra.mxu0 %v7928_v46  ;;  %24311 = vmatmul.mubr.f32.vlgmr.msra.gmra.mxu1 %v27287_v29 }
 0x818   :  { %24294 = vmatpush3.xpose.msra.mxu0 %v27271_v59  ;;  %24319 = vmatpush3.xpose.msra.mxu1 %v8423_v56 }
 0x819   :  { %24295 = vmatprep.mubr.msk.f32.mxu0 %vm25601_vm1, %v31661_v19  ;;  %24303 = vmatprep.subr.mxu0 %v31661_v19 }
 0x81a   :  { %24320 = vmatprep.mubr.msk.f32.mxu1 %vm25601_vm1, %v31661_v19  ;;  %24328 = vmatprep.subr.mxu1 %v31661_v19 }
 0x81b   :  { %24296 = vmatmul.mubr.f32.vlgmr.msra.gmra.mxu0 %v7925_v62  ;;  %24321 = vmatmul.mubr.f32.vlgmr.msra.gmra.mxu1 %v8378_v2 }
 0x81c   :  { %24304 = vmatpush3.xpose.msra.mxu0 %v7967_v1  ;;  %24329 = vmatpush3.xpose.msra.mxu1 %v27295_v37 }
 0x81d   :  { %24305 = vmatprep.mubr.msk.f32.mxu0 %vm25601_vm1, %v31661_v19  ;;  %24313 = vmatprep.subr.mxu0 %v31661_v19 }
 0x81e   :  { %24330 = vmatprep.mubr.msk.f32.mxu1 %vm25601_vm1, %v31661_v19  ;;  %24338 = vmatprep.subr.mxu1 %v31661_v19 }
 0x81f   :  { %24306 = vmatmul.mubr.f32.vlgmr.msra.gmra.mxu0 %v27287_v29  ;;  %24331 = vmatmul.mubr.f32.vlgmr.msra.gmra.mxu1 %v8380_v32 }
 0x820   :  { %24314 = vmatpush3.xpose.msra.mxu0 %v27295_v37  ;;  %24339 = vmatpush3.xpose.msra.mxu1 %v27295_v37 }
 0x821   :  { %24315 = vmatprep.mubr.msk.f32.mxu0 %vm25601_vm1, %v31661_v19  ;;  %24323 = vmatprep.subr.mxu0 %v31661_v19 }
 0x822   :  { %24340 = vmatprep.mubr.msk.f32.mxu1 %vm25601_vm1, %v31661_v19  ;;  %24348 = vmatprep.subr.mxu1 %v31661_v19 }
 0x823   :  { %24316 = vmatmul.mubr.f32.vlgmr.msra.gmra.mxu0 %v8382_v14  ;;  %24341 = vmatmul.mubr.f32.vlgmr.msra.gmra.mxu1 %v8378_v2 }
 0x824   :  { %24324 = vmatpush3.xpose.msra.mxu0 %v27305_v12  ;;  %24325 = vmatprep.mubr.msk.f32.mxu0 %vm25601_vm1, %v31661_v19 }
 0x825   :  { %24333 = vmatprep.subr.mxu0 %v31661_v19  ;;  %24350 = vmatprep.mubr.msk.f32.mxu1 %vm25601_vm1, %v31661_v19 }
 0x827   :  { %24326 = vmatmul.mubr.f32.vlgmr.msra.gmra.mxu0 %v8379_v20 }
 0x828   :  { %24334 = vmatpush3.xpose.msra.mxu0 %v8421_v31  ;;  %24335 = vmatprep.mubr.msk.f32.mxu0 %vm25601_vm1, %v31661_v19 }
 0x829   :  { %24343 = vmatprep.subr.mxu0 %v31661_v19 }
 0x82b   :  { %24336 = vmatmul.mubr.f32.vlgmr.msra.gmra.mxu0 %v8378_v2 }
 0x82c   :  { %24345 = vmatprep.mubr.msk.f32.mxu0 %vm25601_vm1, %v31661_v19 }
 0x8b7   :  { %v7103_v23 = vpop.f32.mrf.mxu1 }
 0x8b9   :  { %v24232_v5 = vpop.f32.mrf.mxu1 }
 0x8bb   :  { %v7251_v27 = vpop.f32.mrf.mxu1 }
 0x8bd   :  { %v24242_v6 = vpop.f32.mrf.mxu1 }
 0x8bf   :  { %v7027_v3 = vpop.f32.mrf.mxu0  ;;  %v7397_v63 = vpop.f32.mrf.mxu1 }
 0x8c0   :  { %v7104_v28 = vadd.f32 %v7103_v23, %v7027_v3 }
 0x8c1   :  { %v24227_v25 = vpop.f32.mrf.mxu0  ;;  %v24252_v55 = vpop.f32.mrf.mxu1 }
 0x8c3   :  { %v7177_v16 = vpop.f32.mrf.mxu0  ;;  %v7552_v17 = vpop.f32.mrf.mxu1 }
 0x8c4   :  { %v7178_v7 = vadd.f32 %v7177_v16, %v7104_v28 }
 0x8c5   :  { %v24237_v60 = vpop.f32.mrf.mxu0  ;;  %v24262_v22 = vpop.f32.mrf.mxu1 }
 0x8c6   :  { %v7252_v61 = vadd.f32 %v7251_v27, %v7178_v7 }
 0x8c7   :  { %v7325_v47 = vpop.f32.mrf.mxu0  ;;  %v7700_v39 = vpop.f32.mrf.mxu1 }
 0x8c8   :  { %v7326_v48 = vadd.f32 %v7325_v47, %v7252_v61 }
 0x8c9   :  { %v24247_v36 = vpop.f32.mrf.mxu0  ;;  %v24272_v10 = vpop.f32.mrf.mxu1 }
 0x8ca   :  { %v27375_v44 = vadd.f32 %v7397_v63, %v7326_v48 }
 0x8cb   :  { %v7476_v41 = vpop.f32.mrf.mxu0  ;;  %v7846_v59 = vpop.f32.mrf.mxu1 }
 0x8cc   :  { %v7553_v57 = vadd.f32 %v7552_v17, %v7476_v41 }
 0x8cd   :  { %v24257_v21 = vpop.f32.mrf.mxu0  ;;  %v24282_v51 = vpop.f32.mrf.mxu1 }
 0x8cf   :  { %v7626_v45 = vpop.f32.mrf.mxu0  ;;  %v8006_v9 = vpop.f32.mrf.mxu1 }
 0x8d0   :  { %v7627_v1 = vadd.f32 %v7626_v45, %v7553_v57 }
 0x8d1   :  { %v24267_v43 = vpop.f32.mrf.mxu0  ;;  %v24292_v18 = vpop.f32.mrf.mxu1 }
 0x8d2   :  { %v7701_v33 = vadd.f32 %v7700_v39, %v7627_v1 }
 0x8d3   :  { %v7774_v29 = vpop.f32.mrf.mxu0  ;;  %v8154_v58 = vpop.f32.mrf.mxu1 }
 0x8d4   :  { %v7775_v4 = vadd.f32 %v7774_v29, %v7701_v33 }
 0x8d5   :  { %v24277_v37 = vpop.f32.mrf.mxu0  ;;  %v24302_v30 = vpop.f32.mrf.mxu1 }
 0x8d6   :  { %v27377_v62 = vadd.f32 %v7846_v59, %v7775_v4 }
 0x8d7   :  { %v7930_v26 = vpop.f32.mrf.mxu0  ;;  %v8300_v13 = vpop.f32.mrf.mxu1 }
 0x8d8   :  { %v8007_v35 = vadd.f32 %v8006_v9, %v7930_v26 }
 0x8d9   :  { %v24287_v12 = vpop.f32.mrf.mxu0  ;;  %v24312_v11 = vpop.f32.mrf.mxu1 }
 0x8db   :  { %v8080_v31 = vpop.f32.mrf.mxu0  ;;  %v8460_v54 = vpop.f32.mrf.mxu1 }
 0x8dc   :  { %v8081_v34 = vadd.f32 %v8080_v31, %v8007_v35 }
 0x8dd   :  { %v24297_v2 = vpop.f32.mrf.mxu0  ;;  %v24322_v52 = vpop.f32.mrf.mxu1 }
 0x8de   :  { %v8155_v46 = vadd.f32 %v8154_v58, %v8081_v34 }
 0x8df   :  { %v8228_v20 = vpop.f32.mrf.mxu0  ;;  %v8608_v56 = vpop.f32.mrf.mxu1 }
 0x8e0   :  { %v8229_v32 = vadd.f32 %v8228_v20, %v8155_v46 }
 0x8e1   :  { %v24307_v15 = vpop.f32.mrf.mxu0  ;;  %v24332_v14 = vpop.f32.mrf.mxu1 }
 0x8e2   :  { %v8301_v23 = vadd.f32 %v8300_v13, %v8229_v32 }
 0x8e3   :  { %v8384_v5 = vpop.f32.mrf.mxu0  ;;  %v8754_v27 = vpop.f32.mrf.mxu1 }
 0x8e4   :  { %v8758_v6 = vsel %vm26858_vm6, -1e+09, %v8301_v23  ;;  %v8461_v25 = vadd.f32 %v8460_v54, %v8384_v5 }
 0x8e5   :  { %v24317_v3 = vpop.f32.mrf.mxu0  ;;  %v24342_v63 = vpop.f32.mrf.mxu1  ;;  %v8760_v28 = vsel %vm3257_vm7, %v8758_v6, -inf }
 0x8e6   :  { %8761 = vmax.xlane.f32.xlu0 %v8760_v28  ;;  %v2349_v3 = vld [vmem:[%s31420_s5 + $0xf0] sm:$0xff] }
 0x8e7   :  { %v8534_v55 = vpop.f32.mrf.mxu0 }
 0x8e8   :  { %v8535_v16 = vadd.f32 %v8534_v55, %v8461_v25  ;;  %v27438_v25 = vand.u32 4294901760, %v2349_v3  ;;  %v2333_v55 = vld [vmem:[%s31420_s5 + $0x70] sm:$0xff] }
 0x8e9   :  { %v24327_v17 = vpop.f32.mrf.mxu0 }
 0x8ea   :  { %v8609_v7 = vadd.f32 %v8608_v56, %v8535_v16  ;;  %v2348_v16 = vld [vmem:[%s31420_s5 + $0xe8] sm:$0xff] }
 0x8eb   :  { %v8682_v60 = vpop.f32.mrf.mxu0  ;;  %v2332_v17 = vld [vmem:[%s31420_s5 + $0x68] sm:$0xff] }
 0x8ec   :  { %v8683_v22 = vadd.f32 %v8682_v60, %v8609_v7  ;;  %v27449_v7 = vand.u32 4294901760, %v2333_v55  ;;  %v27451_v60 = vand.u32 4294901760, %v2348_v16 }
 0x8ed   :  { %v24337_v61 = vpop.f32.mrf.mxu0 }
 0x8ee   :  { %v8755_v47 = vadd.f32 %v8754_v27, %v8683_v22  ;;  %v2350_v27 = vld [vmem:[%s31420_s5 + $0xf8] sm:$0xff]  ;;  %v27453_v22 = vand.u32 4294901760, %v2332_v17  ;;  %v2347_v61 = vld [vmem:[%s31420_s5 + $0xe0] sm:$0xff] }
 0x8ef   :  { %v27434_v63 = vand.u32 4294901760, %v2350_v27 }
 0x8f0   :  { %v8759_v39 = vsel %vm26868_vm9, -1e+09, %v8755_v47  ;;  %v2331_v47 = vld [vmem:[%s31420_s5 + $0x60] sm:$0xff] }
 0x8f1   :  { %v8763_v24 = vsel %vm3257_vm7, %v8759_v39, -inf }
 0x8f2   :  { %8764 = vmax.xlane.f32.xlu1 %v8763_v24 }
 0x903   :  { %9239 = vrot.lane.b32.xlu1 %v27247_v40, %s25603_s4 }
 0x96f   :  { %v8762_v48 = vpop.xlane.xlu0 %8761 }
 0x970   :  { %v8766_v36 = vsub.f32 %v8758_v6, %v8762_v48  ;;  %v2334_v6 = vld [vmem:[%s31420_s5 + $0x78] sm:$0xff]  ;;  %v27468_v48 = vsub.f32 %v2349_v3, %v27438_v25 }
 0x971   :  { %v27436_v28 = vand.u32 4294901760, %v2334_v6 }
 0x972   :  { %v8768_v10 = vmul.f32 1.442695, %v8766_v36  ;;  %v27470_v36 = vand.u32 4294901760, %v2347_v61 }
 0x973   :  { %v27465_v24 = vsub.f32 %v2334_v6, %v27436_v28  ;;  %v2327_v6 = vld [vmem:[%s31420_s5 + $0x40] sm:$0xff] }
 0x974   :  { %25344 = vpow2.f32 %v8768_v10  ;;  %v27474_v10 = vsub.f32 %v2333_v55, %v27449_v7 }
 0x97b   :  { %v8765_v41 = vpop.xlane.xlu1 %8764 }
 0x97c   :  { %v8767_v59 = vsub.f32 %v8759_v39, %v8765_v41  ;;  %v27462_v39 = vsub.f32 %v2350_v27, %v27434_v63  ;;  %v27477_v41 = vsub.f32 %v2348_v16, %v27451_v60 }
 0x97e   :  { %v8770_v57 = vmul.f32 1.442695, %v8767_v59  ;;  %31667 = vst [vmem:[#allocation23_spill] sm:$0xff] %v27462_v39  ;;  %v27480_v59 = vsub.f32 %v2332_v17, %v27453_v22 }
 0x97f   :  { %v9240_v33 = vpop.permute.xlu1 %9239 }
 0x980   :  { %25346 = vpow2.f32 %v8770_v57  ;;  %v9276_v30 = vand.u32 4294901760, %v9240_v33  ;;  %v27482_v57 = vand.u32 4294901760, %v2331_v47 }
 0x981   :  { %v25345_v21 = vpop.eup %25344 }
 0x982   :  { %v8772_v51 = vsel %vm3257_vm7, %v25345_v21, 0.0  ;;  %v9353_v11 = vsub.f32 %v9240_v33, %v9276_v30 }
 0x983   :  { %8773 = vadd.xlane.f32.xlu0 %v8772_v51  ;;  %v31458_v51 = vand.u32 4294901760, %v27465_v24 }
 0x984   :  { %v9354_v52 = vand.u32 4294901760, %v9353_v11 }
 0x985   :  { %v9842_v33 = vsub.f32 %v27465_v24, %v31458_v51 }
 0x986   :  { %v9355_v56 = vsub.f32 %v9353_v11, %v9354_v52 }
 0x988   :  { %v9356_v14 = vand.u32 4294901760, %v9355_v56 }
 0x98d   :  { %v25347_v53 = vpop.eup %25346 }
 0x98e   :  { %v8775_v45 = vsel %vm3257_vm7, %v25347_v53, 0.0 }
 0x98f   :  { %8776 = vadd.xlane.f32.xlu0 %v8775_v45  ;;  %v27489_v45 = vsub.f32 %v2347_v61, %v27470_v36 }
 0x9a5   :  { %8786 = vrot.lane.b32.xlu0 %v27158_v0, %s25603_s4 }
 0xa0c   :  { %v8774_v40 = vpop.xlane.xlu0 %8773 }
 0xa0d   :  { %25348 = vrcp.f32 %v8774_v40  ;;  %v31456_v40 = vand.u32 4294901760, %v27474_v10 }
 0xa18   :  { %v8777_v9 = vpop.xlane.xlu0 %8776 }
 0xa19   :  { %25350 = vrcp.f32 %v8777_v9  ;;  %v31455_v9 = vand.u32 4294901760, %v27477_v41 }
 0xa1a   :  { %v25349_v1 = vpop.eup %25348 }
 0xa1b   :  { %v8779_v43 = vmul.f32 %v25349_v1, %v25345_v21  ;;  %v31460_v21 = vand.u32 4294901760, %v27462_v39  ;;  %v31454_v1 = vand.u32 4294901760, %v27480_v59 }
 0xa1c   :  { %v8787_v18 = vpop.permute.xlu0 %8786 }
 0xa1d   :  { %8783 = vst.msk [vmem:[#allocation14 + $0x30] sm:$0xff] %vm3257_vm7, %v8779_v43  ;;  %v8790_v29 = vsel %vm3257_vm7, %v8779_v43, 0  ;;  %v8823_v58 = vand.u32 4294901760, %v8787_v18  ;;  %v27496_v43 = vsub.f32 %v2331_v47, %v27482_v57 }
 0xa1e   :  { %v8858_v4 = vand.u32 4294901760, %v8790_v29 }
 0xa1f   :  { %v8900_v37 = vsub.f32 %v8787_v18, %v8823_v58  ;;  %24344 = vmatpush3.msra.mxu0 %v8823_v58  ;;  %v9954_v18 = vsub.f32 %v27462_v39, %v31460_v21 }
 0xa20   :  { %24353 = vmatprep.subr.mxu0 %v31661_v19  ;;  %v8859_v0 = vsub.f32 %v8790_v29, %v8858_v4 }
 0xa21   :  { %v8901_v26 = vand.u32 4294901760, %v8900_v37 }
 0xa22   :  { %v8860_v13 = vand.u32 4294901760, %v8859_v0 }
 0xa23   :  { %v8902_v12 = vsub.f32 %v8900_v37, %v8901_v26 }
 0xa24   :  { %v8861_v35 = vsub.f32 %v8859_v0, %v8860_v13 }
 0xa25   :  { %v8903_v31 = vand.u32 4294901760, %v8902_v12  ;;  %v2345_v12 = vld [vmem:[%s31420_s5 + $0xd0] sm:$0xff] }
 0xa26   :  { %v25351_v54 = vpop.eup %25350  ;;  %v8862_v34 = vand.u32 4294901760, %v8861_v35  ;;  %v9843_v35 = vand.u32 4294901760, %v9842_v33  ;;  %v27554_v27 = vand.u32 4294901760, %v2345_v12 }
 0xa27   :  { %v8781_v2 = vmul.f32 %v25351_v54, %v25347_v53  ;;  %24349 = vmatpush3.msra.mxu1 %v8903_v31  ;;  %v31457_v53 = vand.u32 4294901760, %v27468_v48 }
 0xa28   :  { %24346 = vmatmul.mubr.f32.vlgmr.msra.gmra.mxu0 %v8862_v34  ;;  %24351 = vmatmul.mubr.f32.vlgmr.msra.gmra.mxu1 %v8858_v4  ;;  %v2329_v34 = vld [vmem:[%s31420_s5 + $0x50] sm:$0xff] }
 0xa29   :  { %8784 = vst.msk [vmem:[#allocation14 + $0x38] sm:$0xff] %vm3257_vm7, %v8781_v2  ;;  %v9243_v46 = vsel %vm3257_vm7, %v8781_v2, 0  ;;  %24354 = vmatpush3.msra.mxu0 %v8900_v37  ;;  %24358 = vmatprep.subr.mxu1 %v31661_v19  ;;  %v9961_v29 = vsub.f32 %v27468_v48, %v31457_v53  ;;  %v9968_v37 = vsub.f32 %v27477_v41, %v31455_v9  ;;  %v2344_v2 = vld [vmem:[%s31420_s5 + $0xc8] sm:$0xff]  ;;  %v27559_v55 = vand.u32 4294901760, %v2329_v34 }
 0xa2a   :  { %v9311_v20 = vand.u32 4294901760, %v9243_v46  ;;  %24359 = vmatpush3.msra.mxu1 %v8823_v58  ;;  %24355 = vmatprep.mubr.msk.f32.mxu0 %vm25601_vm1, %v31661_v19  ;;  %v27561_v16 = vand.u32 4294901760, %v2344_v2 }
 0xa2b   :  { %24360 = vmatprep.mubr.msk.f32.mxu1 %vm25601_vm1, %v31661_v19  ;;  %24363 = vmatprep.subr.mxu0 %v31661_v19  ;;  %v9962_v31 = vand.u32 4294901760, %v9961_v29  ;;  %v27578_v29 = vsub.f32 %v2329_v34, %v27559_v55 }
 0xa2c   :  { %24368 = vmatprep.subr.mxu1 %v31661_v19  ;;  %24356 = vmatmul.mubr.f32.vlgmr.msra.gmra.mxu0 %v8859_v0  ;;  %v9312_v32 = vsub.f32 %v9243_v46, %v9311_v20  ;;  %v31451_v0 = vand.u32 4294901760, %v27496_v43 }
 0xa2d   :  { %24361 = vmatmul.mubr.f32.vlgmr.msra.gmra.mxu1 %v8860_v13  ;;  %24364 = vmatpush3.msra.mxu0 %v8901_v26  ;;  %v2346_v26 = vld [vmem:[%s31420_s5 + $0xd8] sm:$0xff] }
 0xa2e   :  { %24369 = vmatpush3.msra.mxu1 %v8823_v58  ;;  %24365 = vmatprep.mubr.msk.f32.mxu0 %vm25601_vm1, %v31661_v19  ;;  %v9313_v15 = vand.u32 4294901760, %v9312_v32  ;;  %v31452_v58 = vand.u32 4294901760, %v27489_v45  ;;  %v2330_v13 = vld [vmem:[%s31420_s5 + $0x58] sm:$0xff] }
 0xa2f   :  { %24370 = vmatprep.mubr.msk.f32.mxu1 %vm25601_vm1, %v31661_v19  ;;  %24373 = vmatprep.subr.mxu0 %v31661_v19 }
 0xa30   :  { %24378 = vmatprep.subr.mxu1 %v31661_v19  ;;  %24366 = vmatmul.mubr.f32.vlgmr.msra.gmra.mxu0 %v8858_v4  ;;  %v9314_v23 = vsub.f32 %v9312_v32, %v9313_v15  ;;  %v9975_v54 = vsub.f32 %v27489_v45, %v31452_v58  ;;  %v2324_v58 = vld [vmem:[%s31420_s5 + $0x28] sm:$0xff] }
 0xa31   :  { %24371 = vmatmul.mubr.f32.vlgmr.msra.gmra.mxu1 %v8858_v4  ;;  %24374 = vmatpush3.msra.mxu0 %v9276_v30  ;;  %v9849_v4 = vsub.f32 %v27474_v10, %v31456_v40  ;;  %v27667_v21 = vand.u32 4294901760, %v2324_v58 }
 0xa32   :  { %24379 = vmatpush3.msra.mxu1 %v9356_v14  ;;  %24375 = vmatprep.mubr.msk.f32.mxu0 %vm25601_vm1, %v31661_v19  ;;  %v9315_v5 = vand.u32 4294901760, %v9314_v23  ;;  %v9976_v14 = vand.u32 4294901760, %v9975_v54  ;;  %v27550_v23 = vand.u32 4294901760, %v2346_v26 }
 0xa33   :  { %24380 = vmatprep.mubr.msk.f32.mxu1 %vm25601_vm1, %v31661_v19  ;;  %24383 = vmatprep.subr.mxu0 %v31661_v19  ;;  %v9850_v46 = vand.u32 4294901760, %v9849_v4  ;;  %v27581_v4 = vsub.f32 %v2344_v2, %v27561_v16 }
 0xa34   :  { %24388 = vmatprep.subr.mxu1 %v31661_v19  ;;  %24376 = vmatmul.mubr.f32.vlgmr.msra.gmra.mxu0 %v9315_v5  ;;  %v27552_v5 = vand.u32 4294901760, %v2330_v13  ;;  %v27566_v61 = vsub.f32 %v2346_v26, %v27550_v23 }
 0xa35   :  { %24381 = vmatmul.mubr.f32.vlgmr.msra.gmra.mxu1 %v9311_v20  ;;  %24384 = vmatpush3.msra.mxu0 %v9353_v11  ;;  %v9955_v11 = vand.u32 4294901760, %v9954_v18  ;;  %v27572_v18 = vsub.f32 %v2345_v12, %v27554_v27 }
 0xa36   :  { %24389 = vmatpush3.msra.mxu1 %v9276_v30  ;;  %24385 = vmatprep.mubr.msk.f32.mxu0 %vm25601_vm1, %v31661_v19  ;;  %v27569_v47 = vsub.f32 %v2330_v13, %v27552_v5  ;;  %v31450_v26 = vand.u32 4294901760, %v27566_v61 }
 0xa37   :  { %24390 = vmatprep.mubr.msk.f32.mxu1 %vm25601_vm1, %v31661_v19  ;;  %24393 = vmatprep.subr.mxu0 %v31661_v19  ;;  %v31447_v12 = vand.u32 4294901760, %v27572_v18 }
 0xa38   :  { %24398 = vmatprep.subr.mxu1 %v31661_v19  ;;  %24386 = vmatmul.mubr.f32.vlgmr.msra.gmra.mxu0 %v9312_v32  ;;  %v9863_v32 = vsub.f32 %v27496_v43, %v31451_v0  ;;  %v31448_v13 = vand.u32 4294901760, %v27569_v47  ;;  %v9982_v2 = vsub.f32 %v27566_v61, %v31450_v26  ;;  %v2325_v26 = vld [vmem:[%s31420_s5 + $0x30] sm:$0xff]  ;;  %v2340_v0 = vld [vmem:[%s31420_s5 + $0xa8] sm:$0xff] }
 0xa39   :  { %24391 = vmatmul.mubr.f32.vlgmr.msra.gmra.mxu1 %v9313_v15  ;;  %24394 = vmatpush3.msra.mxu0 %v9354_v52  ;;  %v2328_v52 = vld [vmem:[%s31420_s5 + $0x48] sm:$0xff]  ;;  %v2343_v15 = vld [vmem:[%s31420_s5 + $0xc0] sm:$0xff] }
 0xa3a   :  { %24399 = vmatpush3.msra.mxu1 %v9276_v30  ;;  %24395 = vmatprep.mubr.msk.f32.mxu0 %vm25601_vm1, %v31661_v19  ;;  %v9856_v30 = vsub.f32 %v27480_v59, %v31454_v1  ;;  %v9864_v3 = vand.u32 4294901760, %v9863_v32  ;;  %v27563_v17 = vand.u32 4294901760, %v2328_v52  ;;  %v27574_v33 = vand.u32 4294901760, %v2343_v15  ;;  %v2339_v1 = vld [vmem:[%s31420_s5 + $0xa0] sm:$0xff] }
 0xa3b   :  { %24400 = vmatprep.mubr.msk.f32.mxu1 %vm25601_vm1, %v31661_v19  ;;  %23059 = vmatprep.subr.mxu0 %v27434_v63  ;;  %v27678_v19 = vand.u32 4294901760, %v2339_v1 }
 0xa3c   :  { %24396 = vmatmul.mubr.f32.vlgmr.msra.gmra.mxu0 %v9311_v20  ;;  %v9857_v56 = vand.u32 4294901760, %v9856_v30  ;;  %23097 = vmatprep.subr.mxu1 %v9955_v11  ;;  %v27586_v30 = vand.u32 4294901760, %v2327_v6  ;;  %v27593_v11 = vsub.f32 %v2343_v15, %v27574_v33 }
 0xa3d   :  { %24401 = vmatmul.mubr.f32.vlgmr.msra.gmra.mxu1 %v9311_v20  ;;  %23060 = vmatpush3.msra.mxu0 %v27436_v28  ;;  %v9969_v20 = vand.u32 4294901760, %v9968_v37  ;;  %v27584_v37 = vsub.f32 %v2328_v52, %v27563_v17  ;;  %v9870_v52 = vsub.f32 %v27569_v47, %v31448_v13 }
 0xa3e   :  { %23061 = vmatprep.subr.mxu0 %v27438_v25  ;;  %23098 = vmatpush3.msra.mxu1 %v9843_v35  ;;  %31668 = vst [vmem:[#allocation24_spill] sm:$0xff] %v27593_v11  ;;  %v31445_v35 = vand.u32 4294901760, %v27578_v29  ;;  %v27600_v34 = vsub.f32 %v2327_v6, %v27586_v30  ;;  %v2342_v6 = vld [vmem:[%s31420_s5 + $0xb8] sm:$0xff] }
 0xa3f   :  { %23062 = vmatpush3.msra.mxu0 %v27449_v7  ;;  %23099 = vmatprep.subr.mxu1 %v9962_v31  ;;  %v31446_v31 = vand.u32 4294901760, %v27581_v4  ;;  %v31449_v54 = vand.u32 4294901760, %v27584_v37  ;;  %v27654_v40 = vand.u32 4294901760, %v2342_v6 }
 0xa40   :  { %23063 = vmatprep.subr.mxu0 %v27451_v60  ;;  %23100 = vmatpush3.msra.mxu1 %v9850_v46  ;;  %31669 = vst [vmem:[#allocation25_spill] sm:$0xff] %v27600_v34  ;;  %v9989_v46 = vsub.f32 %v27572_v18, %v31447_v12  ;;  %v9871_v12 = vand.u32 4294901760, %v9870_v52 }
 0xa41   :  { %23064 = vmatpush3.msra.mxu0 %v27453_v22  ;;  %23101 = vmatprep.subr.mxu1 %v9969_v20  ;;  %v31453_v20 = vand.u32 4294901760, %v27593_v11  ;;  %v9996_v32 = vsub.f32 %v27581_v4, %v31446_v31  ;;  %v9884_v15 = vsub.f32 %v27584_v37, %v31449_v54  ;;  %v9983_v31 = vand.u32 4294901760, %v9982_v2 }
 0xa42   :  { %23065 = vmatprep.subr.mxu0 %v27470_v36  ;;  %23102 = vmatpush3.msra.mxu1 %v9857_v56  ;;  %v9877_v56 = vsub.f32 %v27578_v29, %v31445_v35  ;;  %v2341_v35 = vld [vmem:[%s31420_s5 + $0xb0] sm:$0xff]  ;;  %v9990_v13 = vand.u32 4294901760, %v9989_v46 }
 0xa43   :  { %23066 = vmatpush3.msra.mxu0 %v27482_v57  ;;  %23103 = vmatprep.subr.mxu1 %v9976_v14  ;;  %v31459_v14 = vand.u32 4294901760, %v27600_v34  ;;  %v10003_v54 = vsub.f32 %v27593_v11, %v31453_v20  ;;  %v9997_v52 = vand.u32 4294901760, %v9996_v32  ;;  %v9885_v46 = vand.u32 4294901760, %v9884_v15 }
 0xa44   :  { %23067 = vmatprep.subr.mxu0 %v27550_v23  ;;  %23104 = vmatpush3.msra.mxu1 %v9864_v3  ;;  %v2326_v3 = vld [vmem:[%s31420_s5 + $0x38] sm:$0xff]  ;;  %v9878_v2 = vand.u32 4294901760, %v9877_v56  ;;  %v27658_v51 = vand.u32 4294901760, %v2341_v35  ;;  %v2323_v56 = vld [vmem:[%s31420_s5 + $0x20] sm:$0xff]  ;;  %v27663_v15 = vand.u32 4294901760, %v2325_v26 }
 0xa45   :  { %23068 = vmatpush3.msra.mxu0 %v27552_v5  ;;  %v9891_v20 = vsub.f32 %v27600_v34, %v31459_v14  ;;  %23105 = vmatprep.subr.mxu1 %v9983_v31  ;;  %v10004_v9 = vand.u32 4294901760, %v10003_v54  ;;  %v27656_v53 = vand.u32 4294901760, %v2326_v3  ;;  %v27665_v14 = vand.u32 4294901760, %v2340_v0 }
 0xa46   :  { %23069 = vmatprep.subr.mxu0 %v27554_v27  ;;  %23106 = vmatpush3.msra.mxu1 %v9871_v12  ;;  %v27670_v31 = vsub.f32 %v2342_v6, %v27654_v40  ;;  %v27676_v49 = vsub.f32 %v2341_v35, %v27658_v51  ;;  %v27682_v12 = vsub.f32 %v2325_v26, %v27663_v15  ;;  %v27690_v6 = vand.u32 4294901760, %v2323_v56 }
 0xa47   :  { %23070 = vmatpush3.msra.mxu0 %v27559_v55  ;;  %v9892_v32 = vand.u32 4294901760, %v9891_v20  ;;  %23107 = vmatprep.subr.mxu1 %v9990_v13  ;;  %v27673_v54 = vsub.f32 %v2326_v3, %v27656_v53  ;;  %v27685_v20 = vsub.f32 %v2340_v0, %v27665_v14  ;;  %v27688_v13 = vsub.f32 %v2324_v58, %v27667_v21 }
 0xa48   :  { %23071 = vmatprep.subr.mxu0 %v27561_v16  ;;  %31670 = vst [vmem:[#allocation27_spill] sm:$0xff] %v27670_v31  ;;  %31672 = vst [vmem:[#allocation29_spill] sm:$0xff] %v27676_v49  ;;  %23108 = vmatpush3.msra.mxu1 %v9878_v2  ;;  %v31466_v35 = vand.u32 4294901760, %v27670_v31  ;;  %v31472_v2 = vand.u32 4294901760, %v27676_v49  ;;  %v27697_v26 = vsub.f32 %v2339_v1, %v27678_v19  ;;  %v31473_v58 = vand.u32 4294901760, %v27682_v12 }
 0xa49   :  { %23072 = vmatpush3.msra.mxu0 %v27563_v17  ;;  %31671 = vst [vmem:[#allocation28_spill] sm:$0xff] %v27673_v54  ;;  %31673 = vst [vmem:[#allocation30_spill] sm:$0xff] %v27682_v12  ;;  %23109 = vmatprep.subr.mxu1 %v9997_v52  ;;  %v31469_v3 = vand.u32 4294901760, %v27673_v54  ;;  %v27704_v52 = vsub.f32 %v2323_v56, %v27690_v6  ;;  %v31678_v56 = vand.u32 4294901760, %v27685_v20 }
 0xa4a   :  { %23073 = vmatprep.subr.mxu0 %v27574_v33  ;;  %31674 = vst [vmem:[#allocation31_spill] sm:$0xff] %v27685_v20  ;;  %31675 = vst [vmem:[#allocation32_spill] sm:$0xff] %v27688_v13  ;;  %23110 = vmatpush3.msra.mxu1 %v9885_v46  ;;  %v10010_v1 = vsub.f32 %v27670_v31, %v31466_v35  ;;  %v10017_v0 = vsub.f32 %v27676_v49, %v31472_v2  ;;  %v31679_v31 = vand.u32 4294901760, %v27688_v13  ;;  %v2338_v2 = vld [vmem:[%s31420_s5 + $0x98] sm:$0xff] }
 0xa4b   :  { %23074 = vmatpush3.msra.mxu0 %v27586_v30  ;;  %31676 = vst [vmem:[#allocation33_spill] sm:$0xff] %v27697_v26  ;;  %31677 = vst [vmem:[#allocation34_spill] sm:$0xff] %v27704_v52  ;;  %23111 = vmatprep.subr.mxu1 %v10004_v9  ;;  %v9898_v46 = vsub.f32 %v27673_v54, %v31469_v3  ;;  %v9905_v9 = vsub.f32 %v27682_v12, %v31473_v58  ;;  %v31484_v54 = vand.u32 4294901760, %v27704_v52 }
 0xa4c   :  { %23075 = vmatprep.subr.mxu0 %v27654_v40  ;;  %23112 = vmatpush3.msra.mxu1 %v9892_v32  ;;  %v10024_v35 = vsub.f32 %v27685_v20, %v31678_v56  ;;  %v9912_v3 = vsub.f32 %v27688_v13, %v31679_v31  ;;  %v2322_v32 = vld [vmem:[%s31420_s5 + $0x18] sm:$0xff]  ;;  %v10011_v58 = vand.u32 4294901760, %v10010_v1  ;;  %v10018_v12 = vand.u32 4294901760, %v10017_v0 }
 0xa4d   :  { %23076 = vmatpush3.msra.mxu0 %v27656_v53  ;;  %v9899_v34 = vand.u32 4294901760, %v9898_v46  ;;  %v31680_v56 = vand.u32 4294901760, %v27697_v26  ;;  %v9906_v31 = vand.u32 4294901760, %v9905_v9  ;;  %v9919_v13 = vsub.f32 %v27704_v52, %v31484_v54 }
 0xa4e   :  { %23077 = vmatprep.subr.mxu0 %v27658_v51  ;;  %23113 = vmatprep.subr.mxu1 %v10011_v58  ;;  %v10025_v49 = vand.u32 4294901760, %v10024_v35  ;;  %v27743_v11 = vand.u32 4294901760, %v2338_v2  ;;  %v27745_v1 = vand.u32 4294901760, %v2322_v32  ;;  %v9913_v0 = vand.u32 4294901760, %v9912_v3  ;;  %v2321_v58 = vld [vmem:[%s31420_s5 + $0x10] sm:$0xff] }
 0xa4f   :  { %23078 = vmatpush3.msra.mxu0 %v27663_v15  ;;  %v10031_v20 = vsub.f32 %v27697_v26, %v31680_v56  ;;  %23114 = vmatpush3.msra.mxu1 %v9899_v34  ;;  %v9920_v54 = vand.u32 4294901760, %v9919_v13 }
 0xa50   :  { %23079 = vmatprep.subr.mxu0 %v27665_v14  ;;  %31681 = vst [vmem:[#allocation35_spill] sm:$0xff] %v27743_v11  ;;  %31682 = vst [vmem:[#allocation36_spill] sm:$0xff] %v27745_v1  ;;  %23115 = vmatprep.subr.mxu1 %v10018_v12  ;;  %v27748_v56 = vsub.f32 %v2338_v2, %v27743_v11  ;;  %v27751_v9 = vsub.f32 %v2322_v32, %v27745_v1  ;;  %v27771_v32 = vand.u32 4294901760, %v2321_v58 }
 0xa51   :  { %23080 = vmatpush3.msra.mxu0 %v27667_v21  ;;  %v10032_v46 = vand.u32 4294901760, %v10031_v20  ;;  %23116 = vmatpush3.msra.mxu1 %v9906_v31 }
 0xa52   :  { %23081 = vmatprep.subr.mxu0 %v27678_v19  ;;  %31683 = vst [vmem:[#allocation37_spill] sm:$0xff] %v27748_v56  ;;  %31684 = vst [vmem:[#allocation38_spill] sm:$0xff] %v27751_v9  ;;  %23117 = vmatprep.subr.mxu1 %v10025_v49  ;;  %v31486_v35 = vand.u32 4294901760, %v27748_v56  ;;  %v31485_v34 = vand.u32 4294901760, %v27751_v9  ;;  %v2337_v49 = vld [vmem:[%s31420_s5 + $0x90] sm:$0xff] }
 0xa53   :  { %23082 = vmatpush3.msra.mxu0 %v27690_v6  ;;  %23118 = vmatpush3.msra.mxu1 %v9913_v0  ;;  %v27766_v2 = vand.u32 4294901760, %v2337_v49  ;;  %31686 = vst [vmem:[#allocation40_spill] sm:$0xff] %v27771_v32 }
 0xa54   :  { %23083 = vmatprep.subr.mxu0 %v27743_v11  ;;  %23119 = vmatprep.subr.mxu1 %v10032_v46  ;;  %v10038_v12 = vsub.f32 %v27748_v56, %v31486_v35  ;;  %v9926_v20 = vsub.f32 %v27751_v9, %v31485_v34  ;;  %v2320_v46 = vld [vmem:[%s31420_s5 + $0x8] sm:$0xff] }
 0xa55   :  { %23084 = vmatpush3.msra.mxu0 %v27745_v1  ;;  %23120 = vmatpush3.msra.mxu1 %v9920_v54  ;;  %31685 = vst [vmem:[#allocation39_spill] sm:$0xff] %v27766_v2  ;;  %v2336_v54 = vld [vmem:[%s31420_s5 + $0x88] sm:$0xff]  ;;  %v27777_v31 = vsub.f32 %v2337_v49, %v27766_v2 }
 0xa56   :  { %v10039_v3 = vand.u32 4294901760, %v10038_v12  ;;  %v9927_v13 = vand.u32 4294901760, %v9926_v20  ;;  %v27779_v0 = vand.u32 4294901760, %v2336_v54  ;;  %23085 = vmatprep.subr.mxu0 %v27766_v2  ;;  %v27786_v12 = vsub.f32 %v2321_v58, %v27771_v32  ;;  %v2319_v58 = vld [vmem:[%s31420_s5] sm:$0xff] }
 0xa57   :  { %31687 = vst [vmem:[#allocation41_spill] sm:$0xff] %v27777_v31  ;;  %v27788_v20 = vand.u32 4294901760, %v2320_v46  ;;  %23086 = vmatpush3.msra.mxu0 %v27771_v32  ;;  %v27808_v56 = vand.u32 4294901760, %v2319_v58 }
 0xa58   :  { %23121 = vmatprep.subr.mxu1 %v10039_v3  ;;  %31688 = vst [vmem:[#allocation42_spill] sm:$0xff] %v27779_v0  ;;  %31689 = vst [vmem:[#allocation43_spill] sm:$0xff] %v27786_v12  ;;  %v2335_v3 = vld [vmem:[%s31420_s5 + $0x80] sm:$0xff]  ;;  %v27796_v49 = vsub.f32 %v2336_v54, %v27779_v0  ;;  %23087 = vmatprep.subr.mxu0 %v27779_v0  ;;  %v31508_v35 = vand.u32 4294901760, %v27786_v12 }
 0xa59   :  { %23122 = vmatpush3.msra.mxu1 %v9927_v13  ;;  %31690 = vst [vmem:[#allocation44_spill] sm:$0xff] %v27788_v20  ;;  %v31501_v13 = vand.u32 4294901760, %v27777_v31  ;;  %v27798_v34 = vand.u32 4294901760, %v2335_v3  ;;  %v27806_v9 = vsub.f32 %v2320_v46, %v27788_v20  ;;  %31694 = vst [vmem:[#allocation48_spill] sm:$0xff] %v27808_v56  ;;  %23088 = vmatpush3.msra.mxu0 %v27788_v20 }
 0xa5a   :  { %31691 = vst [vmem:[#allocation45_spill] sm:$0xff] %v27796_v49  ;;  %v31515_v52 = vand.u32 4294901760, %v27796_v49  ;;  %v9933_v46 = vsub.f32 %v27786_v12, %v31508_v35  ;;  %v27824_v32 = vsub.f32 %v2319_v58, %v27808_v56 }
 0xa5b   :  { %31692 = vst [vmem:[#allocation46_spill] sm:$0xff] %v27798_v34  ;;  %31693 = vst [vmem:[#allocation47_spill] sm:$0xff] %v27806_v9  ;;  %v10045_v54 = vsub.f32 %v27777_v31, %v31501_v13  ;;  %v27816_v26 = vsub.f32 %v2335_v3, %v27798_v34  ;;  %23089 = vmatprep.subr.mxu0 %v27798_v34  ;;  %v31519_v0 = vand.u32 4294901760, %v27806_v9 }
 0xa5c   :  { %31695 = vst [vmem:[#allocation49_spill] sm:$0xff] %v27824_v32  ;;  %23090 = vmatpush3.msra.mxu0 %v27808_v56  ;;  %v10052_v3 = vsub.f32 %v27796_v49, %v31515_v52  ;;  %v9934_v2 = vand.u32 4294901760, %v9933_v46  ;;  %v31525_v58 = vand.u32 4294901760, %v27824_v32 }
 0xa5d   :  { %v10046_v31 = vand.u32 4294901760, %v10045_v54  ;;  %v31524_v34 = vand.u32 4294901760, %v27816_v26  ;;  %23135 = vmatprep.subr.mxu0 %v27462_v39  ;;  %v9940_v35 = vsub.f32 %v27806_v9, %v31519_v0 }
 0xa5e   :  { %v10053_v1 = vand.u32 4294901760, %v10052_v3  ;;  %v9947_v46 = vsub.f32 %v27824_v32, %v31525_v58 }
 0xa5f   :  { %23123 = vmatprep.subr.mxu1 %v10046_v31  ;;  %v10059_v54 = vsub.f32 %v27816_v26, %v31524_v34  ;;  %v9941_v49 = vand.u32 4294901760, %v9940_v35 }
 0xa60   :  { %23124 = vmatpush3.msra.mxu1 %v9934_v2 }
 0xa61   :  { %23125 = vmatprep.subr.mxu1 %v10053_v1  ;;  %v10060_v0 = vand.u32 4294901760, %v10059_v54 }
 0xa62   :  { %23126 = vmatpush3.msra.mxu1 %v9941_v49 }
 0xa63   :  { %23127 = vmatprep.subr.mxu1 %v10060_v0 }
 0xae8   :  { %v8864_v20 = vpop.f32.mrf.mxu0  ;;  %v8940_v13 = vpop.f32.mrf.mxu1 }
 0xae9   :  { %v8941_v52 = vadd.f32 %v8940_v13, %v8864_v20 }
 0xaea   :  { %v24347_v12 = vpop.f32.mrf.mxu0  ;;  %v24352_v56 = vpop.f32.mrf.mxu1 }
 0xaeb   :  { %v9948_v56 = vand.u32 4294901760, %v9947_v46 }
 0xaec   :  { %v9014_v39 = vpop.f32.mrf.mxu0 }
 0xaed   :  { %v9015_v9 = vadd.f32 %v9014_v39, %v8941_v52  ;;  %v9088_v11 = vpop.f32.mrf.mxu1  ;;  %23128 = vmatpush3.msra.mxu1 %v9948_v56 }
 0xaee   :  { %v24357_v31 = vpop.f32.mrf.mxu0  ;;  %23173 = vmatprep.subr.mxu1 %v27434_v63 }
 0xaef   :  { %v9089_v12 = vadd.f32 %v9088_v11, %v9015_v9  ;;  %v24362_v3 = vpop.f32.mrf.mxu1 }
 0xaf0   :  { %v9162_v34 = vpop.f32.mrf.mxu0 }
 0xaf1   :  { %v9163_v35 = vadd.f32 %v9162_v34, %v9089_v12  ;;  %v9234_v2 = vpop.f32.mrf.mxu1 }
 0xaf2   :  { %v24367_v20 = vpop.f32.mrf.mxu0 }
 0xaf3   :  { %v9235_v13 = vadd.f32 %v9234_v2, %v9163_v35  ;;  %v24372_v58 = vpop.f32.mrf.mxu1 }
 0xaf4   :  { %v9317_v32 = vpop.f32.mrf.mxu0 }
 0xaf5   :  { %v9393_v1 = vpop.f32.mrf.mxu1  ;;  %9701 = vrot.lane.b32.xlu1 %v9235_v13, %s25603_s4 }
 0xaf6   :  { %v24377_v39 = vpop.f32.mrf.mxu0  ;;  %v9394_v52 = vadd.f32 %v9393_v1, %v9317_v32 }
 0xaf7   :  { %v24382_v49 = vpop.f32.mrf.mxu1 }
 0xaf8   :  { %v9467_v54 = vpop.f32.mrf.mxu0 }
 0xaf9   :  { %v9468_v0 = vadd.f32 %v9467_v54, %v9394_v52  ;;  %v9541_v11 = vpop.f32.mrf.mxu1  ;;  %9693 = vrot.lane.b32.xlu1 %v27221_v8, %s25603_s4 }
 0xafa   :  { %v24387_v9 = vpop.f32.mrf.mxu0 }
 0xafb   :  { %v9542_v46 = vadd.f32 %v9541_v11, %v9468_v0  ;;  %v24392_v34 = vpop.f32.mrf.mxu1 }
 0xafc   :  { %v9615_v56 = vpop.f32.mrf.mxu0 }
 0xafd   :  { %v9616_v31 = vadd.f32 %v9615_v56, %v9542_v46  ;;  %v9687_v12 = vpop.f32.mrf.mxu1  ;;  %9695 = vrot.lane.b32.xlu1 %v27223_v50, %s25603_s4 }
 0xafe   :  { %v24397_v58 = vpop.f32.mrf.mxu0 }
 0xaff   :  { %v9688_v3 = vadd.f32 %v9687_v12, %v9616_v31  ;;  %v24402_v35 = vpop.f32.mrf.mxu1 }
 0xb01   :  { %9703 = vrot.lane.b32.xlu0 %v9688_v3, %s25603_s4 }
 0xb67   :  { %v9702_v32 = vpop.permute.xlu1 %9701 }
 0xb68   :  { %v9709_v2 = vsel %vm220_vm0, %v27375_v44, %v9702_v32 }
 0xb69   :  { %v27851_v20 = vand.u32 4294901760, %v9709_v2 }
 0xb6b   :  { %v9808_v8 = vsub.f32 %v9709_v2, %v27851_v20  ;;  %10063 = vmatprep.mubr.f32.mxu1 %v27851_v20  ;;  %v9694_v13 = vpop.permute.xlu1 %9693 }
 0xb6c   :  { %v9707_v1 = vsel %vm220_vm0, %v27011_v38, %v9694_v13  ;;  %v31699_v13 = vld [vmem:[#allocation24_spill] sm:$0xff] }
 0xb6d   :  { %v27857_v50 = vand.u32 4294901760, %v9707_v1  ;;  %v9809_v39 = vand.u32 4294901760, %v9808_v8 }
 0xb6f   :  { %31696 = vst [vmem:[#allocation50_spill] sm:$0xff] %v27857_v50  ;;  %v27860_v52 = vsub.f32 %v9707_v1, %v27857_v50  ;;  %10065 = vmatmul.mubr.f32.vlgmr.msra.gmra.mxu1 %v27857_v50  ;;  %v9696_v49 = vpop.permute.xlu1 %9695  ;;  %v9810_v44 = vsub.f32 %v9808_v8, %v9809_v39  ;;  %v31700_v1 = vld [vmem:[#allocation25_spill] sm:$0xff]  ;;  %v31719_v50 = vld [vmem:[#allocation38_spill] sm:$0xff] }
 0xb70   :  { %23174 = vmatpush3.msra.mxu1 %v27436_v28  ;;  %v9708_v54 = vsel %vm220_vm0, %v27013_v42, %v9696_v49  ;;  %v31703_v49 = vld [vmem:[#allocation28_spill] sm:$0xff] }
 0xb71   :  { %v31529_v0 = vand.u32 4294901760, %v27860_v52  ;;  %v27867_v11 = vand.u32 4294901760, %v9708_v54  ;;  %23175 = vmatprep.subr.mxu1 %v27438_v25  ;;  %v9811_v38 = vand.u32 4294901760, %v9810_v44  ;;  %v31704_v44 = vld [vmem:[#allocation36_spill] sm:$0xff] }
 0xb72   :  { %23176 = vmatpush3.msra.mxu1 %v27449_v7 }
 0xb73   :  { %31697 = vst [vmem:[#allocation51_spill] sm:$0xff] %v27867_v11  ;;  %v9816_v9 = vsub.f32 %v27860_v52, %v31529_v0  ;;  %23177 = vmatprep.subr.mxu1 %v27451_v60  ;;  %9812 = vmatprep.mubr.f32.mxu0 %v9811_v38  ;;  %v9704_v46 = vpop.permute.xlu0 %9703  ;;  %v27879_v56 = vsub.f32 %v9708_v54, %v27867_v11  ;;  %v31705_v54 = vld [vmem:[#allocation29_spill] sm:$0xff]  ;;  %v31706_v38 = vld [vmem:[#allocation39_spill] sm:$0xff]  ;;  %v31716_v0 = vld [vmem:[#allocation48_spill] sm:$0xff] }
 0xb74   :  { %23178 = vmatpush3.msra.mxu1 %v27453_v22  ;;  %v9710_v42 = vsel %vm220_vm0, %v27377_v62, %v9704_v46  ;;  %v31708_v46 = vld [vmem:[#allocation40_spill] sm:$0xff] }
 0xb75   :  { %v9817_v34 = vand.u32 4294901760, %v9816_v9  ;;  %v27881_v31 = vand.u32 4294901760, %v9710_v42  ;;  %23179 = vmatprep.subr.mxu1 %v27470_v36  ;;  %v31528_v62 = vand.u32 4294901760, %v27879_v56  ;;  %v31707_v9 = vld [vmem:[#allocation30_spill] sm:$0xff] }
 0xb76   :  { %23180 = vmatpush3.msra.mxu1 %v27482_v57 }
 0xb77   :  { %31698 = vst [vmem:[#allocation52_spill] sm:$0xff] %v27881_v31  ;;  %v27886_v12 = vsub.f32 %v9710_v42, %v27881_v31  ;;  %23181 = vmatprep.subr.mxu1 %v27550_v23  ;;  %9818 = vmatmul.mubr.f32.vlgmr.msra.gmra.mxu0 %v9817_v34  ;;  %v9831_v35 = vsub.f32 %v27879_v56, %v31528_v62  ;;  %v31709_v42 = vld [vmem:[#allocation31_spill] sm:$0xff]  ;;  %v31710_v34 = vld [vmem:[#allocation42_spill] sm:$0xff] }
 0xb78   :  { %10070 = vmatprep.mubr.f32.mxu1 %v27881_v31  ;;  %23136 = vmatpush3.msra.mxu0 %v27465_v24  ;;  %v31715_v62 = vld [vmem:[#allocation34_spill] sm:$0xff]  ;;  %v31718_v31 = vand.u32 4294901760, %v27860_v52 }
 0xb79   :  { %23182 = vmatpush3.msra.mxu1 %v27552_v5  ;;  %23137 = vmatprep.subr.mxu0 %v27468_v48  ;;  %v9824_v58 = vand.u32 4294901760, %v27886_v12  ;;  %v9832_v2 = vand.u32 4294901760, %v9831_v35  ;;  %v31712_v35 = vld [vmem:[#allocation44_spill] sm:$0xff] }
 0xb7a   :  { %10072 = vmatmul.mubr.f32.gmra.mxu1 %v27867_v11  ;;  %23183 = vmatprep.subr.mxu1 %v27554_v27  ;;  %v31717_v11 = vld [vmem:[#allocation37_spill] sm:$0xff] }
 0xb7b   :  { %23138 = vmatpush3.msra.mxu0 %v27474_v10  ;;  %23184 = vmatpush3.msra.mxu1 %v27559_v55  ;;  %v9825_v3 = vsub.f32 %v27886_v12, %v9824_v58 }
 0xb7c   :  { %10323 = vmatprep.mubr.f32.mxu1 %v9809_v39  ;;  %23139 = vmatprep.subr.mxu0 %v27477_v41  ;;  %v31701_v39 = vld [vmem:[#allocation27_spill] sm:$0xff] }
 0xb7d   :  { %23185 = vmatprep.subr.mxu1 %v27561_v16  ;;  %23140 = vmatpush3.msra.mxu0 %v27480_v59  ;;  %v9826_v32 = vand.u32 4294901760, %v9825_v3  ;;  %v31711_v3 = vld [vmem:[#allocation32_spill] sm:$0xff] }
 0xb7e   :  { %23186 = vmatpush3.msra.mxu1 %v27563_v17  ;;  %23141 = vmatprep.subr.mxu0 %v27489_v45 }
 0xb7f   :  { %23187 = vmatprep.subr.mxu1 %v27574_v33  ;;  %23142 = vmatpush3.msra.mxu0 %v27496_v43 }
 0xb80   :  { %23188 = vmatpush3.msra.mxu1 %v27586_v30  ;;  %23143 = vmatprep.subr.mxu0 %v27566_v61 }
 0xb81   :  { %23189 = vmatprep.subr.mxu1 %v27654_v40  ;;  %9827 = vmatprep.mubr.f32.mxu0 %v9826_v32  ;;  %v31713_v32 = vld [vmem:[#allocation33_spill] sm:$0xff] }
 0xb82   :  { %23144 = vmatpush3.msra.mxu0 %v27569_v47  ;;  %23190 = vmatpush3.msra.mxu1 %v27656_v53 }
 0xb83   :  { %9833 = vmatmul.mubr.f32.gmra.mxu0 %v9832_v2  ;;  %23145 = vmatprep.subr.mxu0 %v27572_v18  ;;  %v31714_v2 = vld [vmem:[#allocation46_spill] sm:$0xff] }
 0xb84   :  { %23191 = vmatprep.subr.mxu1 %v27658_v51  ;;  %23146 = vmatpush3.msra.mxu0 %v27578_v29 }
 0xb85   :  { %10207 = vmatprep.mubr.f32.mxu0 %v9808_v8  ;;  %23192 = vmatpush3.msra.mxu1 %v27663_v15  ;;  %v31702_v8 = vld [vmem:[#allocation35_spill] sm:$0xff] }
 0xb86   :  { %23147 = vmatprep.subr.mxu0 %v27581_v4  ;;  %23193 = vmatprep.subr.mxu1 %v27665_v14 }
 0xb87   :  { %23148 = vmatpush3.msra.mxu0 %v27584_v37  ;;  %23194 = vmatpush3.msra.mxu1 %v27667_v21 }
 0xb88   :  { %23149 = vmatprep.subr.mxu0 %v31699_v13  ;;  %23195 = vmatprep.subr.mxu1 %v27678_v19 }
 0xb89   :  { %23150 = vmatpush3.msra.mxu0 %v31700_v1  ;;  %23196 = vmatpush3.msra.mxu1 %v27690_v6 }
 0xb8a   :  { %23151 = vmatprep.subr.mxu0 %v31701_v39  ;;  %23197 = vmatprep.subr.mxu1 %v31702_v8 }
 0xb8b   :  { %23152 = vmatpush3.msra.mxu0 %v31703_v49  ;;  %23198 = vmatpush3.msra.mxu1 %v31704_v44 }
 0xb8c   :  { %23153 = vmatprep.subr.mxu0 %v31705_v54  ;;  %23199 = vmatprep.subr.mxu1 %v31706_v38 }
 0xb8d   :  { %23154 = vmatpush3.msra.mxu0 %v31707_v9  ;;  %23200 = vmatpush3.msra.mxu1 %v31708_v46 }
 0xb8e   :  { %23155 = vmatprep.subr.mxu0 %v31709_v42  ;;  %23201 = vmatprep.subr.mxu1 %v31710_v34 }
 0xb8f   :  { %23156 = vmatpush3.msra.mxu0 %v31711_v3  ;;  %23202 = vmatpush3.msra.mxu1 %v31712_v35  ;;  %v31720_v35 = vld [vmem:[#allocation41_spill] sm:$0xff] }
 0xb90   :  { %23157 = vmatprep.subr.mxu0 %v31713_v32  ;;  %23203 = vmatprep.subr.mxu1 %v31714_v2  ;;  %v31721_v2 = vld [vmem:[#allocation43_spill] sm:$0xff] }
 0xb91   :  { %23158 = vmatpush3.msra.mxu0 %v31715_v62  ;;  %23204 = vmatpush3.msra.mxu1 %v31716_v0  ;;  %v31722_v0 = vld [vmem:[#allocation45_spill] sm:$0xff] }
 0xb92   :  { %23159 = vmatprep.subr.mxu0 %v31717_v11  ;;  %10327 = vmatmul.mubr.f32.vlgmr.msra.gmra.mxu1 %v31718_v31  ;;  %v31723_v11 = vand.u32 4294901760, %v27879_v56 }
 0xb93   :  { %23249 = vmatprep.subr.mxu1 %v27434_v63  ;;  %23160 = vmatpush3.msra.mxu0 %v31719_v50  ;;  %v31724_v63 = vld [vmem:[#allocation47_spill] sm:$0xff] }
 0xb94   :  { %10334 = vmatprep.mubr.f32.mxu1 %v9824_v58  ;;  %23250 = vmatpush3.msra.mxu1 %v27436_v28  ;;  %v31725_v28 = vld [vmem:[#allocation49_spill] sm:$0xff] }
 0xb95   :  { %23161 = vmatprep.subr.mxu0 %v31720_v35  ;;  %23251 = vmatprep.subr.mxu1 %v27438_v25  ;;  %v31726_v25 = vld [vmem:[#allocation23_spill] sm:$0xff]  ;;  %v31766_v31 = vand.u32 4294901760, %v31725_v28 }
 0xb96   :  { %23162 = vmatpush3.msra.mxu0 %v31721_v2  ;;  %23252 = vmatpush3.msra.mxu1 %v27449_v7  ;;  %v31727_v7 = vand.u32 4294901760, %v31726_v25  ;;  %v25397_v25 = vld [vmem:[#allocation2 + $0x8] sm:$0xff] }
 0xb97   :  { %23163 = vmatprep.subr.mxu0 %v31722_v0  ;;  %10338 = vmatmul.mubr.f32.gmra.mxu1 %v31723_v11  ;;  %v31763_v11 = vand.u32 4294901760, %v31724_v63 }
 0xb98   :  { %23253 = vmatprep.subr.mxu1 %v27451_v60  ;;  %23164 = vmatpush3.msra.mxu0 %v31724_v63  ;;  %v31728_v60 = vand.u32 4294901760, %v27465_v24  ;;  %v31732_v24 = vand.u32 4294901760, %v27480_v59  ;;  %v31736_v59 = vand.u32 4294901760, %v27569_v47  ;;  %v31751_v47 = vld [vmem:[#allocation46_spill] sm:$0xff] }
 0xb99   :  { %23254 = vmatpush3.msra.mxu1 %v27453_v22  ;;  %10615 = vmatprep.mubr.f32.mxu1 %v27851_v20  ;;  %v31729_v22 = vand.u32 4294901760, %v27468_v48  ;;  %v31733_v48 = vand.u32 4294901760, %v27489_v45  ;;  %v31737_v45 = vand.u32 4294901760, %v27572_v18  ;;  %v31752_v18 = vand.u32 4294901760, %v31715_v62 }
 0xb9a   :  { %23165 = vmatprep.subr.mxu0 %v27816_v26  ;;  %23255 = vmatprep.subr.mxu1 %v27470_v36  ;;  %v31730_v36 = vand.u32 4294901760, %v27474_v10  ;;  %v31734_v10 = vand.u32 4294901760, %v27496_v43  ;;  %v31738_v43 = vand.u32 4294901760, %v27578_v29  ;;  %v31754_v29 = vld [vmem:[#allocation37_spill] sm:$0xff] }
 0xb9b   :  { %23166 = vmatpush3.msra.mxu0 %v31725_v28  ;;  %23256 = vmatpush3.msra.mxu1 %v27482_v57  ;;  %v31731_v57 = vand.u32 4294901760, %v27477_v41  ;;  %v31735_v41 = vand.u32 4294901760, %v27566_v61  ;;  %v31750_v61 = vand.u32 4294901760, %v31713_v32 }
 0xb9c   :  { %10210 = vmatmul.mubr.f32.vlgmr.msra.gmra.mxu0 %v27860_v52  ;;  %23211 = vmatprep.subr.mxu0 %v31727_v7  ;;  %v31762_v52 = vld [vmem:[#allocation51_spill] sm:$0xff] }
 0xb9d   :  { %23257 = vmatprep.subr.mxu1 %v27550_v23  ;;  %10216 = vmatprep.mubr.f32.mxu0 %v27886_v12  ;;  %v31739_v23 = vand.u32 4294901760, %v27581_v4  ;;  %v31755_v4 = vand.u32 4294901760, %v31754_v29 }
 0xb9e   :  { %23212 = vmatpush3.msra.mxu0 %v31728_v60  ;;  %23258 = vmatpush3.msra.mxu1 %v27552_v5  ;;  %v31743_v5 = vand.u32 4294901760, %v31701_v39 }
 0xb9f   :  { %23213 = vmatprep.subr.mxu0 %v31729_v22  ;;  %23259 = vmatprep.subr.mxu1 %v27554_v27  ;;  %v31744_v27 = vand.u32 4294901760, %v31703_v49 }
 0xba0   :  { %23214 = vmatpush3.msra.mxu0 %v31730_v36  ;;  %23260 = vmatpush3.msra.mxu1 %v27559_v55  ;;  %v31747_v55 = vand.u32 4294901760, %v31709_v42 }
 0xba1   :  { %10219 = vmatmul.mubr.f32.gmra.mxu0 %v27879_v56  ;;  %23215 = vmatprep.subr.mxu0 %v31731_v57  ;;  %v31764_v56 = vmov 0.0  }
 0xba2   :  { %23261 = vmatprep.subr.mxu1 %v27561_v16  ;;  %23216 = vmatpush3.msra.mxu0 %v31732_v24  ;;  %v31748_v16 = vand.u32 4294901760, %v31711_v3 }
 0xba3   :  { %10504 = vmatprep.mubr.f32.mxu0 %v27851_v20  ;;  %23262 = vmatpush3.msra.mxu1 %v27563_v17  ;;  %v31749_v17 = vld [vmem:[#allocation44_spill] sm:$0xff]  ;;  %v31761_v20 = vand.u32 4294901760, %v31722_v0 }
 0xba4   :  { %23217 = vmatprep.subr.mxu0 %v31733_v48  ;;  %23263 = vmatprep.subr.mxu1 %v27574_v33  ;;  %v31753_v33 = vld [vmem:[#allocation48_spill] sm:$0xff] }
 0xba5   :  { %23218 = vmatpush3.msra.mxu0 %v31734_v10  ;;  %23264 = vmatpush3.msra.mxu1 %v27586_v30  ;;  %v31757_v30 = vand.u32 4294901760, %v31719_v50  ;;  %v31765_v50 = vand.u32 4294901760, %v27816_v26 }
 0xba6   :  { %23219 = vmatprep.subr.mxu0 %v31735_v41  ;;  %23265 = vmatprep.subr.mxu1 %v27654_v40  ;;  %v31740_v40 = vand.u32 4294901760, %v27584_v37  ;;  %v31756_v37 = vld [vmem:[#allocation50_spill] sm:$0xff] }
 0xba7   :  { %23220 = vmatpush3.msra.mxu0 %v31736_v59  ;;  %23266 = vmatpush3.msra.mxu1 %v27656_v53  ;;  %v31741_v53 = vand.u32 4294901760, %v31699_v13 }
 0xba8   :  { %23221 = vmatprep.subr.mxu0 %v31737_v45  ;;  %23267 = vmatprep.subr.mxu1 %v27658_v51  ;;  %v31742_v51 = vand.u32 4294901760, %v31700_v1 }
 0xba9   :  { %23222 = vmatpush3.msra.mxu0 %v31738_v43  ;;  %23268 = vmatpush3.msra.mxu1 %v27663_v15  ;;  %v31759_v15 = vand.u32 4294901760, %v31720_v35 }
 0xbaa   :  { %23223 = vmatprep.subr.mxu0 %v31739_v23  ;;  %23269 = vmatprep.subr.mxu1 %v27665_v14  ;;  %v31758_v14 = vld [vmem:[#allocation52_spill] sm:$0xff] }
 0xbab   :  { %23224 = vmatpush3.msra.mxu0 %v31740_v40  ;;  %23270 = vmatpush3.msra.mxu1 %v27667_v21  ;;  %v31745_v21 = vand.u32 4294901760, %v31705_v54 }
 0xbac   :  { %23225 = vmatprep.subr.mxu0 %v31741_v53  ;;  %23271 = vmatprep.subr.mxu1 %v27678_v19  ;;  %v31746_v19 = vand.u32 4294901760, %v31707_v9 }
 0xbad   :  { %23226 = vmatpush3.msra.mxu0 %v31742_v51  ;;  %23272 = vmatpush3.msra.mxu1 %v27690_v6  ;;  %v31760_v6 = vand.u32 4294901760, %v31721_v2 }
 0xbae   :  { %23227 = vmatprep.subr.mxu0 %v31743_v5  ;;  %23273 = vmatprep.subr.mxu1 %v31702_v8 }
 0xbaf   :  { %23228 = vmatpush3.msra.mxu0 %v31744_v27  ;;  %23274 = vmatpush3.msra.mxu1 %v31704_v44 }
 0xbb0   :  { %23229 = vmatprep.subr.mxu0 %v31745_v21  ;;  %23275 = vmatprep.subr.mxu1 %v31706_v38 }
 0xbb1   :  { %23230 = vmatpush3.msra.mxu0 %v31746_v19  ;;  %23276 = vmatpush3.msra.mxu1 %v31708_v46 }
 0xbb2   :  { %23231 = vmatprep.subr.mxu0 %v31747_v55  ;;  %23277 = vmatprep.subr.mxu1 %v31710_v34  ;;  %v25396_v34 = vld [vmem:[#allocation2] sm:$0xff] }
 0xbb3   :  { %23232 = vmatpush3.msra.mxu0 %v31748_v16  ;;  %23278 = vmatpush3.msra.mxu1 %v31749_v17 }
 0xbb4   :  { %23233 = vmatprep.subr.mxu0 %v31750_v61  ;;  %23279 = vmatprep.subr.mxu1 %v31751_v47 }
 0xbb5   :  { %23234 = vmatpush3.msra.mxu0 %v31752_v18  ;;  %23280 = vmatpush3.msra.mxu1 %v31753_v33 }
 0xbb6   :  { %23235 = vmatprep.subr.mxu0 %v31755_v4  ;;  %10617 = vmatmul.mubr.f32.vlgmr.msra.gmra.mxu1 %v31756_v37 }
 0xbb7   :  { %23236 = vmatpush3.msra.mxu0 %v31757_v30  ;;  %10622 = vmatprep.mubr.f32.mxu1 %v31758_v14 }
 0xbb8   :  { %23237 = vmatprep.subr.mxu0 %v31759_v15 }
 0xbb9   :  { %23238 = vmatpush3.msra.mxu0 %v31760_v6 }
 0xbba   :  { %23239 = vmatprep.subr.mxu0 %v31761_v20  ;;  %10624 = vmatmul.mubr.f32.gmra.mxu1 %v31762_v52 }
 0xbbb   :  { %23240 = vmatpush3.msra.mxu0 %v31763_v11  ;;  %10925 = vmatprep.mubr.f32.mxu1 %v31764_v56 }
 0xbbc   :  { %23241 = vmatprep.subr.mxu0 %v31765_v50 }
 0xbbd   :  { %23242 = vmatpush3.msra.mxu0 %v31766_v31  ;;  %v10671_v31 = vld [vmem:[%s31421_s6 + $0x78] sm:$0xff] }
 0xbbe   :  { %10506 = vmatmul.mubr.f32.vlgmr.msra.gmra.mxu0 %v31756_v37 }
 0xbbf   :  { %10511 = vmatprep.mubr.f32.mxu0 %v31758_v14 }
 0xbc2   :  { %10513 = vmatmul.mubr.f32.gmra.mxu0 %v31762_v52 }
 0xbc3   :  { %10758 = vmatprep.mubr.f32.mxu0 %v31764_v56 }
 0xc2f   :  { %v23129_v0 = vpop.f32.mrf.mxu1 }
 0xc31   :  { %v23130_v12 = vpop.f32.mrf.mxu1 }
 0xc32   :  { %v23131_v2 = vadd.f32 %v23130_v12, %v23129_v0  ;;  %v28079_v0 = vand.u32 4294901760, %v10671_v31  ;;  %v10670_v12 = vld [vmem:[%s31421_s6 + $0x70] sm:$0xff] }
 0xc34   :  { %10695 = vmatprep.subr.mxu0 %v28079_v0 }
 0xc37   :  { %v23091_v62 = vpop.f32.mrf.mxu0 }
 0xc39   :  { %v23092_v13 = vpop.f32.mrf.mxu0 }
 0xc3a   :  { %v23132_v58 = vpop.f32.mrf.mxu1  ;;  %v23093_v9 = vadd.f32 %v23092_v13, %v23091_v62  ;;  %v28084_v62 = vand.u32 4294901760, %v10670_v12  ;;  %v28090_v13 = vsub.f32 %v10671_v31, %v28079_v0 }
 0xc3c   :  { %v23133_v1 = vpop.f32.mrf.mxu1  ;;  %v9820_v3 = vadd.f32 %v25396_v34, %v23093_v9  ;;  %10697 = vmatpush1.msra.mxu0 %v28084_v62  ;;  %v10666_v9 = vld [vmem:[%s31421_s6 + $0x50] sm:$0xff] }
 0xc3d   :  { %v23134_v36 = vadd.f32 %v23133_v1, %v23132_v58  ;;  %v10669_v58 = vld [vmem:[%s31421_s6 + $0x68] sm:$0xff]  ;;  %v28121_v34 = vand.u32 4294901760, %v10666_v9 }
 0xc3e   :  { %v10067_v60 = vadd.f32 %v23131_v2, %v9820_v3  ;;  %v28092_v1 = vand.u32 4294901760, %v10669_v58  ;;  %v10665_v3 = vld [vmem:[%s31421_s6 + $0x48] sm:$0xff] }
 0xc40   :  { %10699 = vmatprep.subr.mxu0 %v28092_v1 }
 0xc43   :  { %v23094_v39 = vpop.f32.mrf.mxu0 }
 0xc45   :  { %v23095_v8 = vpop.f32.mrf.mxu0 }
 0xc46   :  { %v23096_v35 = vadd.f32 %v23095_v8, %v23094_v39  ;;  %v10668_v39 = vld [vmem:[%s31421_s6 + $0x60] sm:$0xff] }
 0xc47   :  { %v28101_v8 = vand.u32 4294901760, %v10668_v39 }
 0xc48   :  { %v9835_v7 = vadd.f32 %v25397_v25, %v23096_v35 }
 0xc49   :  { %10701 = vmatpush1.msra.mxu0 %v28101_v8 }
 0xc4a   :  { %v10074_v41 = vadd.f32 %v23134_v36, %v9835_v7  ;;  %v10663_v36 = vld [vmem:[%s31421_s6 + $0x38] sm:$0xff] }
 0xc52   :  { %v23205_v26 = vpop.f32.mrf.mxu1 }
 0xc54   :  { %v23206_v49 = vpop.f32.mrf.mxu1 }
 0xc55   :  { %v23207_v10 = vadd.f32 %v23206_v49, %v23205_v26  ;;  %v28099_v26 = vsub.f32 %v10670_v12, %v28084_v62  ;;  %v10667_v49 = vld [vmem:[%s31421_s6 + $0x58] sm:$0xff] }
 0xc57   :  { %v23208_v54 = vpop.f32.mrf.mxu1 }
 0xc59   :  { %v23209_v46 = vpop.f32.mrf.mxu1 }
 0xc5a   :  { %v23210_v51 = vadd.f32 %v23209_v46, %v23208_v54  ;;  %v28109_v54 = vsub.f32 %v10669_v58, %v28092_v1  ;;  %v10805_v46 = vand.u32 4294901760, %v28099_v26  ;;  %v10656_v58 = vld [vmem:[%s31421_s6] sm:$0xff] }
 0xc5c   :  { %v23167_v44 = vpop.f32.mrf.mxu0  ;;  %v10806_v25 = vsub.f32 %v28099_v26, %v10805_v46 }
 0xc5e   :  { %v23168_v38 = vpop.f32.mrf.mxu0 }
 0xc5f   :  { %v23169_v63 = vadd.f32 %v23168_v38, %v23167_v44  ;;  %v10799_v44 = vand.u32 4294901760, %v28090_v13  ;;  %v28111_v38 = vand.u32 4294901760, %v10667_v49 }
 0xc61   :  { %v23170_v42 = vpop.f32.mrf.mxu0  ;;  %v10212_v57 = vadd.f32 %v23169_v63, %v10067_v60  ;;  %v10800_v35 = vsub.f32 %v28090_v13, %v10799_v44  ;;  %v28132_v2 = vsub.f32 %v10667_v49, %v28111_v38  ;;  %v28134_v63 = vand.u32 4294901760, %v10665_v3  ;;  %10703 = vmatprep.subr.mxu0 %v28111_v38 }
 0xc62   :  { %v28145_v60 = vsub.f32 %v10666_v9, %v28121_v34  ;;  %10705 = vmatpush1.msra.mxu0 %v28121_v34 }
 0xc63   :  { %v23171_v28 = vpop.f32.mrf.mxu0  ;;  %v10329_v23 = vadd.f32 %v23207_v10, %v10212_v57  ;;  %v10801_v57 = vand.u32 4294901760, %v10800_v35  ;;  %v28158_v10 = vsub.f32 %v10665_v3, %v28134_v63  ;;  %10707 = vmatprep.subr.mxu0 %v28134_v63 }
 0xc64   :  { %v23172_v24 = vadd.f32 %v23171_v28, %v23170_v42  ;;  %v28119_v42 = vsub.f32 %v10668_v39, %v28101_v8  ;;  %v10664_v28 = vld [vmem:[%s31421_s6 + $0x40] sm:$0xff] }
 0xc65   :  { %10802 = vmatprep.subr.mxu1 %v10801_v57 }
 0xc66   :  { %v10221_v43 = vadd.f32 %v23172_v24, %v10074_v41  ;;  %v10817_v7 = vand.u32 4294901760, %v28119_v42  ;;  %v10662_v41 = vld [vmem:[%s31421_s6 + $0x30] sm:$0xff] }
 0xc68   :  { %v10340_v55 = vadd.f32 %v23210_v51, %v10221_v43  ;;  %v10829_v43 = vand.u32 4294901760, %v28145_v60 }
 0xc76   :  { %v23281_v32 = vpop.f32.mrf.mxu1 }
 0xc78   :  { %v23282_v22 = vpop.f32.mrf.mxu1 }
 0xc79   :  { %v23283_v5 = vadd.f32 %v23282_v22, %v23281_v32  ;;  %v10811_v32 = vand.u32 4294901760, %v28109_v54  ;;  %v28147_v22 = vand.u32 4294901760, %v10664_v28 }
 0xc7a   :  { %v23284_v59 = vpop.f32.mrf.mxu1 }
 0xc7b   :  { %v10812_v24 = vsub.f32 %v28109_v54, %v10811_v32  ;;  %10709 = vmatpush1.msra.mxu0 %v28147_v22 }
 0xc7c   :  { %v23285_v21 = vpop.f32.mrf.mxu1 }
 0xc7d   :  { %v23286_v61 = vadd.f32 %v23285_v21, %v23284_v59  ;;  %v10807_v59 = vand.u32 4294901760, %v10806_v25  ;;  %v10660_v21 = vld [vmem:[%s31421_s6 + $0x20] sm:$0xff] }
 0xc7e   :  { %v23243_v48 = vpop.f32.mrf.mxu0 }
 0xc7f   :  { %10808 = vmatpush1.msra.mxu1 %v10807_v59  ;;  %v28251_v59 = vand.u32 4294901760, %v10656_v58 }
 0xc80   :  { %v23244_v45 = vpop.f32.mrf.mxu0 }
 0xc81   :  { %v23245_v40 = vadd.f32 %v23244_v45, %v23243_v48  ;;  %v10823_v48 = vand.u32 4294901760, %v28132_v2  ;;  %v10818_v45 = vsub.f32 %v28119_v42, %v10817_v7 }
 0xc82   :  { %v23246_v53 = vpop.f32.mrf.mxu0 }
 0xc83   :  { %v10508_v27 = vadd.f32 %v23245_v40, %v10329_v23  ;;  %v28169_v23 = vsub.f32 %v10664_v28, %v28147_v22  ;;  %v10661_v40 = vld [vmem:[%s31421_s6 + $0x28] sm:$0xff]  ;;  %v10824_v51 = vsub.f32 %v28132_v2, %v10823_v48 }
 0xc84   :  { %v23247_v19 = vpop.f32.mrf.mxu0 }
 0xc85   :  { %v23248_v16 = vadd.f32 %v23247_v19, %v23246_v53  ;;  %v10619_v17 = vadd.f32 %v23283_v5, %v10508_v27  ;;  %v10813_v53 = vand.u32 4294901760, %v10812_v24  ;;  %v10835_v5 = vand.u32 4294901760, %v28158_v10 }
 0xc86   :  { %v28179_v27 = vand.u32 4294901760, %v10663_v36  ;;  %v10819_v19 = vand.u32 4294901760, %v10818_v45 }
 0xc87   :  { %v10515_v47 = vadd.f32 %v23248_v16, %v10340_v55  ;;  %v10629_v18 = vsel %vm220_vm0, %v10619_v17, 0.0  ;;  %v10830_v55 = vsub.f32 %v28145_v60, %v10829_v43  ;;  %v10841_v16 = vand.u32 4294901760, %v28169_v23  ;;  %10814 = vmatprep.subr.mxu1 %v10813_v53 }
 0xc88   :  { %10630 = vadd.xlane.f32.xlu0 %v10629_v18  ;;  %v10836_v18 = vsub.f32 %v28158_v10, %v10835_v5  ;;  %10711 = vmatprep.subr.mxu0 %v28179_v27 }
 0xc89   :  { %v10626_v33 = vadd.f32 %v23286_v61, %v10515_v47  ;;  %v10659_v61 = vld [vmem:[%s31421_s6 + $0x18] sm:$0xff]  ;;  %v10825_v47 = vand.u32 4294901760, %v10824_v51  ;;  %10820 = vmatpush1.msra.mxu1 %v10819_v19 }
 0xc8a   :  { %v28221_v12 = vand.u32 4294901760, %v10659_v61 }
 0xc8b   :  { %v10632_v29 = vsel %vm220_vm0, %v10626_v33, 0.0  ;;  %10826 = vmatprep.subr.mxu1 %v10825_v47 }
 0xc8c   :  { %10633 = vadd.xlane.f32.xlu1 %v10632_v29  ;;  %v28199_v29 = vand.u32 4294901760, %v10661_v40  ;;  %v28239_v25 = vsub.f32 %v10659_v61, %v28221_v12  ;;  %v28267_v61 = vsub.f32 %v10656_v58, %v28251_v59 }
 0xc8e   :  { %v28219_v31 = vsub.f32 %v10661_v40, %v28199_v29  ;;  %v10871_v53 = vand.u32 4294901760, %v28239_v25 }
 0xc90   :  { %v10859_v28 = vand.u32 4294901760, %v28219_v31 }
 0xc92   :  { %v10860_v40 = vsub.f32 %v28219_v31, %v10859_v28 }
 0xc94   :  { %v10861_v47 = vand.u32 4294901760, %v10860_v40 }
 0xd11   :  { %v10631_v4 = vpop.xlane.xlu0 %10630 }
 0xd12   :  { %v10636_v37 = vmul.f32 0.015625, %v10631_v4  ;;  %v10658_v4 = vld [vmem:[%s31421_s6 + $0x10] sm:$0xff] }
 0xd13   :  { %v28231_v3 = vand.u32 4294901760, %v10658_v4 }
 0xd14   :  { %v28066_v30 = vsub.f32 %v10619_v17, %v10636_v37  ;;  %v28188_v17 = vand.u32 4294901760, %v10662_v41  ;;  %v10831_v37 = vand.u32 4294901760, %v10830_v55 }
 0xd15   :  { %v10634_v14 = vpop.xlane.xlu1 %10633 }
 0xd16   :  { %v10637_v15 = vmul.f32 0.015625, %v10634_v14  ;;  %v10640_v6 = vmul.f32 %v28066_v30, %v28066_v30  ;;  %v10842_v14 = vsub.f32 %v28169_v23, %v10841_v16  ;;  %10713 = vmatpush1.msra.mxu0 %v28188_v17  ;;  %10832 = vmatpush1.msra.mxu1 %v10831_v37 }
 0xd17   :  { %10715 = vmatprep.subr.mxu0 %v28199_v29 }
 0xd18   :  { %v28070_v20 = vsub.f32 %v10626_v33, %v10637_v15  ;;  %v10642_v52 = vsel %vm220_vm0, %v10640_v6, 0.0  ;;  %v28197_v33 = vsub.f32 %v10663_v36, %v28179_v27  ;;  %v28209_v15 = vsub.f32 %v10662_v41, %v28188_v17 }
 0xd19   :  { %10643 = vadd.xlane.f32.xlu0 %v10642_v52  ;;  %v28211_v6 = vand.u32 4294901760, %v10660_v21  ;;  %v10657_v52 = vld [vmem:[%s31421_s6 + $0x8] sm:$0xff]  ;;  %v10843_v39 = vand.u32 4294901760, %v10842_v14  ;;  %v28249_v41 = vsub.f32 %v10658_v4, %v28231_v3 }
 0xd1a   :  { %v10641_v11 = vmul.f32 %v28070_v20, %v28070_v20  ;;  %v10853_v49 = vand.u32 4294901760, %v28209_v15  ;;  %v28241_v36 = vand.u32 4294901760, %v10657_v52 }
 0xd1b   :  { %v28229_v9 = vsub.f32 %v10660_v21, %v28211_v6  ;;  %10717 = vmatpush1.msra.mxu0 %v28211_v6  ;;  %v10877_v55 = vand.u32 4294901760, %v28249_v41 }
 0xd1c   :  { %v10645_v50 = vsel %vm220_vm0, %v10641_v11, 0.0  ;;  %v10837_v11 = vand.u32 4294901760, %v10836_v18  ;;  %10719 = vmatprep.subr.mxu0 %v28221_v12  ;;  %v10854_v57 = vsub.f32 %v28209_v15, %v10853_v49  ;;  %v28259_v51 = vsub.f32 %v10657_v52, %v28241_v36 }
 0xd1d   :  { %10646 = vadd.xlane.f32.xlu0 %v10645_v50  ;;  %v10847_v50 = vand.u32 4294901760, %v28197_v33  ;;  %v10865_v24 = vand.u32 4294901760, %v28229_v9  ;;  %10721 = vmatpush1.msra.mxu0 %v28231_v3  ;;  %v10872_v18 = vsub.f32 %v28239_v25, %v10871_v53  ;;  %v10878_v14 = vsub.f32 %v28249_v41, %v10877_v55 }
 0xd1e   :  { %10838 = vmatprep.subr.mxu1 %v10837_v11  ;;  %10723 = vmatprep.subr.mxu0 %v28241_v36  ;;  %v10855_v21 = vand.u32 4294901760, %v10854_v57  ;;  %v31536_v4 = vand.u32 4294901760, %v28259_v51  ;;  %v10889_v52 = vand.u32 4294901760, %v28267_v61 }
 0xd1f   :  { %v10848_v35 = vsub.f32 %v28197_v33, %v10847_v50  ;;  %10844 = vmatpush1.msra.mxu1 %v10843_v39  ;;  %v10866_v19 = vsub.f32 %v28229_v9, %v10865_v24  ;;  %10725 = vmatpush1.msra.mxu0 %v28251_v59  ;;  %v10873_v11 = vand.u32 4294901760, %v10872_v18  ;;  %v10879_v39 = vand.u32 4294901760, %v10878_v14 }
 0xd20   :  { %10958 = vmatprep.subr.mxu0 %v28090_v13  ;;  %v10884_v58 = vsub.f32 %v28259_v51, %v31536_v4  ;;  %v11394_v13 = vld [vmem:[%s31422_s7 + $0x80] sm:$0xff] }
 0xd21   :  { %v10849_v45 = vand.u32 4294901760, %v10848_v35  ;;  %v10867_v37 = vand.u32 4294901760, %v10866_v19  ;;  %v10890_v35 = vsub.f32 %v28267_v61, %v10889_v52 }
 0xd22   :  { %v10885_v57 = vand.u32 4294901760, %v10884_v58 }
 0xd23   :  { %10850 = vmatprep.subr.mxu1 %v10849_v45  ;;  %v10891_v45 = vand.u32 4294901760, %v10890_v35 }
 0xd24   :  { %10856 = vmatpush1.msra.mxu1 %v10855_v21 }
 0xd25   :  { %10862 = vmatprep.subr.mxu1 %v10861_v47 }
 0xd26   :  { %10868 = vmatpush1.msra.mxu1 %v10867_v37 }
 0xd27   :  { %10874 = vmatprep.subr.mxu1 %v10873_v11 }
 0xd28   :  { %10880 = vmatpush1.msra.mxu1 %v10879_v39 }
 0xd29   :  { %10886 = vmatprep.subr.mxu1 %v10885_v57 }
 0xd2a   :  { %10892 = vmatpush1.msra.mxu1 %v10891_v45 }
 0xd2b   :  { %11070 = vmatprep.subr.mxu1 %v28079_v0 }
 0xda2   :  { %v10644_v40 = vpop.xlane.xlu0 %10643 }
 0xda3   :  { %v10648_v21 = vmul.f32 0.015625, %v10644_v40 }
 0xda5   :  { %v10650_v19 = vadd.f32 1e-05, %v10648_v21 }
 0xda6   :  { %v10647_v47 = vpop.xlane.xlu0 %10646 }
 0xda7   :  { %25352 = vrsqrt.f32 %v10650_v19  ;;  %v10649_v18 = vmul.f32 0.015625, %v10647_v47 }
 0xda9   :  { %v10651_v37 = vadd.f32 1e-05, %v10649_v18 }
 0xdab   :  { %25354 = vrsqrt.f32 %v10651_v37 }
 0xdb4   :  { %v25353_v14 = vpop.eup %25352 }
 0xdb5   :  { %v28287_v4 = vmul.f32 %v25353_v14, %v28066_v30  ;;  %v11407_v14 = vld [vmem:[%s31422_s7 + $0xe8] sm:$0xff] }
 0xdb7   :  { %31767 = vst [vmem:[#allocation24_spill] sm:$0xff] %v28287_v4  ;;  %v10673_v11 = vsel %vm220_vm0, %v28287_v4, 0 }
 0xdb8   :  { %v25355_v58 = vpop.eup %25354  ;;  %v28291_v39 = vand.u32 4294901760, %v10673_v11 }
 0xdb9   :  { %v28294_v35 = vmul.f32 %v25355_v58, %v28070_v20  ;;  %v11403_v58 = vld [vmem:[%s31422_s7 + $0xc8] sm:$0xff] }
 0xdba   :  { %10927 = vmatmul.mubr.f32.vlgmr.msra.gmra.mxu1 %v28291_v39  ;;  %v28298_v57 = vsub.f32 %v10673_v11, %v28291_v39  ;;  %v11406_v11 = vld [vmem:[%s31422_s7 + $0xe0] sm:$0xff] }
 0xdbb   :  { %31768 = vst [vmem:[#allocation25_spill] sm:$0xff] %v28294_v35  ;;  %11072 = vmatpush1.msra.mxu1 %v28084_v62  ;;  %10932 = vmatprep.mubr.f32.mxu1 %v31764_v56  ;;  %v10676_v30 = vsel %vm220_vm0, %v28294_v35, 0 }
 0xdbc   :  { %11074 = vmatprep.subr.mxu1 %v28092_v1  ;;  %v28305_v45 = vand.u32 4294901760, %v10676_v30  ;;  %v10761_v40 = vand.u32 4294901760, %v28298_v57 }
 0xdbd   :  { %11076 = vmatpush1.msra.mxu1 %v28101_v8 }
 0xdbe   :  { %11078 = vmatprep.subr.mxu1 %v28111_v38  ;;  %v28311_v20 = vsub.f32 %v10676_v30, %v28305_v45  ;;  %10934 = vmatmul.mubr.f32.gmra.mxu1 %v28305_v45  ;;  %v10762_v21 = vsub.f32 %v28298_v57, %v10761_v40  ;;  %v28353_v30 = vand.u32 4294901760, %v11407_v14 }
 0xdbf   :  { %11080 = vmatpush1.msra.mxu1 %v28121_v34  ;;  %11133 = vmatprep.mubr.f32.mxu1 %v31764_v56 }
 0xdc0   :  { %11082 = vmatprep.subr.mxu1 %v28134_v63  ;;  %v10763_v19 = vand.u32 4294901760, %v10762_v21  ;;  %v10772_v47 = vand.u32 4294901760, %v28311_v20  ;;  %v11399_v21 = vld [vmem:[%s31422_s7 + $0xa8] sm:$0xff] }
 0xdc1   :  { %11084 = vmatpush1.msra.mxu1 %v28147_v22 }
 0xdc2   :  { %11086 = vmatprep.subr.mxu1 %v28179_v27  ;;  %10764 = vmatmul.mubr.f32.vlgmr.msra.gmra.mxu0 %v10763_v19  ;;  %v10773_v18 = vsub.f32 %v28311_v20, %v10772_v47  ;;  %v11398_v19 = vld [vmem:[%s31422_s7 + $0xa0] sm:$0xff] }
 0xdc3   :  { %10961 = vmatpush1.msra.mxu0 %v28099_v26  ;;  %11088 = vmatpush1.msra.mxu1 %v28188_v17  ;;  %v11391_v26 = vld [vmem:[%s31422_s7 + $0x68] sm:$0xff] }
 0xdc4   :  { %10964 = vmatprep.subr.mxu0 %v28109_v54  ;;  %11090 = vmatprep.subr.mxu1 %v28199_v29  ;;  %v10774_v37 = vand.u32 4294901760, %v10773_v18  ;;  %v11395_v18 = vld [vmem:[%s31422_s7 + $0x88] sm:$0xff] }
 0xdc5   :  { %10967 = vmatpush1.msra.mxu0 %v28119_v42  ;;  %11092 = vmatpush1.msra.mxu1 %v28211_v6 }
 0xdc6   :  { %10769 = vmatprep.mubr.f32.mxu0 %v31764_v56  ;;  %10970 = vmatprep.subr.mxu0 %v28132_v2 }
 0xdc7   :  { %11094 = vmatprep.subr.mxu1 %v28221_v12  ;;  %10775 = vmatmul.mubr.f32.gmra.mxu0 %v10774_v37  ;;  %v11387_v37 = vld [vmem:[%s31422_s7 + $0x48] sm:$0xff] }
 0xdc8   :  { %10973 = vmatpush1.msra.mxu0 %v28145_v60  ;;  %11096 = vmatpush1.msra.mxu1 %v28231_v3 }
 0xdc9   :  { %10976 = vmatprep.subr.mxu0 %v28158_v10  ;;  %11098 = vmatprep.subr.mxu1 %v28241_v36 }
 0xdca   :  { %10979 = vmatpush1.msra.mxu0 %v28169_v23  ;;  %11100 = vmatpush1.msra.mxu1 %v28251_v59 }
 0xdcb   :  { %10982 = vmatprep.subr.mxu0 %v28197_v33  ;;  %11137 = vmatmul.mubr.f32.vlgmr.msra.gmra.mxu1 %v10761_v40  ;;  %v28359_v40 = vand.u32 4294901760, %v11403_v58 }
 0xdcc   :  { %11296 = vmatprep.subr.mxu1 %v28079_v0  ;;  %10985 = vmatpush1.msra.mxu0 %v28209_v15  ;;  %v28357_v0 = vand.u32 4294901760, %v11406_v11 }
 0xdcd   :  { %11298 = vmatpush1.msra.mxu1 %v28084_v62  ;;  %10988 = vmatprep.subr.mxu0 %v28219_v31  ;;  %v11402_v62 = vld [vmem:[%s31422_s7 + $0xc0] sm:$0xff] }
 0xdce   :  { %11300 = vmatprep.subr.mxu1 %v28092_v1  ;;  %10991 = vmatpush1.msra.mxu0 %v28229_v9  ;;  %v28370_v1 = vsub.f32 %v11407_v14, %v28353_v30  ;;  %v11386_v14 = vld [vmem:[%s31422_s7 + $0x40] sm:$0xff] }
 0xdcf   :  { %11142 = vmatprep.mubr.f32.mxu1 %v31764_v56  ;;  %11302 = vmatpush1.msra.mxu1 %v28101_v8  ;;  %v28372_v8 = vand.u32 4294901760, %v11402_v62 }
 0xdd0   :  { %10994 = vmatprep.subr.mxu0 %v28239_v25  ;;  %11146 = vmatmul.mubr.f32.gmra.mxu1 %v10772_v47  ;;  %v28393_v47 = vand.u32 4294901760, %v11399_v21 }
 0xdd1   :  { %11304 = vmatprep.subr.mxu1 %v28111_v38  ;;  %10997 = vmatpush1.msra.mxu0 %v28249_v41  ;;  %v28383_v38 = vsub.f32 %v11406_v11, %v28357_v0  ;;  %v11383_v11 = vld [vmem:[%s31422_s7 + $0x28] sm:$0xff] }
 0xdd2   :  { %11306 = vmatpush1.msra.mxu1 %v28121_v34  ;;  %11000 = vmatprep.subr.mxu0 %v28259_v51  ;;  %v28386_v34 = vsub.f32 %v11403_v58, %v28359_v40  ;;  %v28429_v54 = vsub.f32 %v11399_v21, %v28393_v47  ;;  %v127_v21 = vld [vmem:[#allocation5] sm:$0xff] }
 0xdd3   :  { %11308 = vmatprep.subr.mxu1 %v28134_v63  ;;  %11003 = vmatpush1.msra.mxu0 %v28267_v61  ;;  %v28395_v63 = vand.u32 4294901760, %v11398_v19 }
 0xdd4   :  { %11036 = vmatprep.mubr.f32.mxu0 %v31764_v56  ;;  %11310 = vmatpush1.msra.mxu1 %v28147_v22  ;;  %v11565_v22 = vand.u32 4294901760, %v28370_v1  ;;  %v11589_v58 = vand.u32 4294901760, %v28429_v54 }
 0xdd5   :  { %11039 = vmatmul.mubr.f32.vlgmr.msra.gmra.mxu0 %v28298_v57  ;;  %11171 = vmatprep.subr.mxu0 %v10799_v44  ;;  %v28405_v57 = vsub.f32 %v11402_v62, %v28372_v8  ;;  %v11571_v44 = vand.u32 4294901760, %v28383_v38  ;;  %v11379_v62 = vld [vmem:[%s31422_s7 + $0x8] sm:$0xff] }
 0xdd6   :  { %11312 = vmatprep.subr.mxu1 %v28179_v27  ;;  %11175 = vmatpush1.msra.mxu0 %v10805_v46  ;;  %v11577_v27 = vand.u32 4294901760, %v28386_v34  ;;  %v28420_v46 = vand.u32 4294901760, %v11395_v18  ;;  %v11566_v42 = vsub.f32 %v28370_v1, %v11565_v22  ;;  %v11590_v15 = vsub.f32 %v28429_v54, %v11589_v58 }
 0xdd7   :  { %11314 = vmatpush1.msra.mxu1 %v28188_v17  ;;  %11179 = vmatprep.subr.mxu0 %v10811_v32  ;;  %v11390_v17 = vld [vmem:[%s31422_s7 + $0x60] sm:$0xff]  ;;  %v28432_v32 = vsub.f32 %v11398_v19, %v28395_v63  ;;  %v11572_v2 = vsub.f32 %v28383_v38, %v11571_v44  ;;  %v28497_v19 = vand.u32 4294901760, %v11383_v11 }
 0xdd8   :  { %11316 = vmatprep.subr.mxu1 %v28199_v29  ;;  %11044 = vmatprep.mubr.f32.mxu0 %v31764_v56  ;;  %v28434_v29 = vand.u32 4294901760, %v11394_v13  ;;  %v28469_v60 = vsub.f32 %v11395_v18, %v28420_v46  ;;  %v11567_v23 = vand.u32 4294901760, %v11566_v42 }
 0xdd9   :  { %11183 = vmatpush1.msra.mxu0 %v10817_v7  ;;  %11318 = vmatpush1.msra.mxu1 %v28211_v6  ;;  %v31537_v7 = vand.u32 4294901760, %v28405_v57  ;;  %v28446_v6 = vand.u32 4294901760, %v11391_v26  ;;  %v11573_v18 = vand.u32 4294901760, %v11572_v2 }
 0xdda   :  { %11047 = vmatmul.mubr.f32.gmra.mxu0 %v28311_v20  ;;  %11187 = vmatprep.subr.mxu0 %v10823_v48  ;;  %v11578_v48 = vsub.f32 %v28386_v34, %v11577_v27  ;;  %v28460_v20 = vand.u32 4294901760, %v11390_v17  ;;  %v28482_v10 = vsub.f32 %v11394_v13, %v28434_v29  ;;  %v11601_v33 = vand.u32 4294901760, %v28469_v60 }
 0xddb   :  { %11320 = vmatprep.subr.mxu1 %v28221_v12  ;;  %11191 = vmatpush1.msra.mxu0 %v10829_v43  ;;  %v28471_v43 = vand.u32 4294901760, %v11387_v37  ;;  %v11382_v12 = vld [vmem:[%s31422_s7 + $0x20] sm:$0xff] }
 0xddc   :  { %11322 = vmatpush1.msra.mxu1 %v28231_v3  ;;  %11195 = vmatprep.subr.mxu0 %v10835_v5  ;;  %v31538_v3 = vand.u32 4294901760, %v28432_v32  ;;  %v28484_v5 = vand.u32 4294901760, %v11386_v14  ;;  %v11579_v13 = vand.u32 4294901760, %v11578_v48  ;;  %v28505_v42 = vand.u32 4294901760, %v11382_v12 }
 0xddd   :  { %11324 = vmatprep.subr.mxu1 %v28241_v36  ;;  %11199 = vmatpush1.msra.mxu0 %v10841_v16  ;;  %v11584_v16 = vsub.f32 %v28405_v57, %v31537_v7  ;;  %v28495_v36 = vsub.f32 %v11391_v26, %v28446_v6  ;;  %v11378_v7 = vld [vmem:[%s31422_s7] sm:$0xff]  ;;  %v28517_v26 = vand.u32 4294901760, %v11379_v62  ;;  %v28537_v48 = vsub.f32 %v11383_v11, %v28497_v19 }
 0xdde   :  { %11326 = vmatpush1.msra.mxu1 %v28251_v59  ;;  %11359 = vmatprep.mubr.f32.mxu1 %v31764_v56  ;;  %v28503_v59 = vsub.f32 %v11390_v17, %v28460_v20  ;;  %v11411_v17 = vsel %vm220_vm0, %v127_v21, 0  ;;  %v28531_v2 = vsub.f32 %v11386_v14, %v28484_v5  ;;  %v28539_v21 = vand.u32 4294901760, %v11378_v7 }
 0xddf   :  { %11203 = vmatprep.subr.mxu0 %v10847_v50  ;;  %11361 = vmatmul.mubr.f32.vlgmr.msra.gmra.mxu1 %v28291_v39  ;;  %v28515_v50 = vsub.f32 %v11387_v37, %v28471_v43  ;;  %v11607_v37 = vand.u32 4294901760, %v28482_v10  ;;  %v11585_v31 = vand.u32 4294901760, %v11584_v16  ;;  %v28548_v9 = vand.u32 4294901760, %v11411_v17 }
 0xde0   :  { %11207 = vmatpush1.msra.mxu0 %v10853_v49  ;;  %11366 = vmatprep.mubr.f32.mxu1 %v31764_v56  ;;  %v11596_v49 = vsub.f32 %v28432_v32, %v31538_v3  ;;  %v31540_v14 = vand.u32 4294901760, %v28503_v59  ;;  %v28546_v3 = vsub.f32 %v11382_v12, %v28505_v42  ;;  %v11602_v11 = vsub.f32 %v28469_v60, %v11601_v33 }
 0xde1   :  { %11211 = vmatprep.subr.mxu0 %v10859_v28  ;;  %11264 = vmatprep.mubr.f32.mxu0 %v31764_v56  ;;  %v11613_v28 = vand.u32 4294901760, %v28495_v36  ;;  %v31539_v25 = vand.u32 4294901760, %v28515_v50  ;;  %v11591_v12 = vand.u32 4294901760, %v11590_v15  ;;  %v11608_v41 = vsub.f32 %v28482_v10, %v11607_v37 }
 0xde2   :  { %11215 = vmatpush1.msra.mxu0 %v10865_v24  ;;  %11568 = vmatprep.subr.mxu1 %v11567_v23  ;;  %v128_v24 = vld [vmem:[#allocation5 + $0x8] sm:$0xff]  ;;  %v31769_v23 = vand.u32 4294901760, %v28259_v51  ;;  %v11597_v16 = vand.u32 4294901760, %v11596_v49  ;;  %v31542_v51 = vand.u32 4294901760, %v28537_v48  ;;  %v11620_v61 = vsub.f32 %v28503_v59, %v31540_v14 }
 0xde3   :  { %11219 = vmatprep.subr.mxu0 %v10871_v53  ;;  %11368 = vmatmul.mubr.f32.gmra.mxu1 %v28305_v45  ;;  %v28557_v53 = vsub.f32 %v11379_v62, %v28517_v26  ;;  %v11614_v62 = vsub.f32 %v28495_v36, %v11613_v28  ;;  %v28582_v15 = vsub.f32 %v11411_v17, %v28548_v9 }
 0xde4   :  { %11223 = vmatpush1.msra.mxu0 %v10877_v55  ;;  %11574 = vmatpush1.msra.mxu1 %v11573_v18  ;;  %v31541_v55 = vand.u32 4294901760, %v28531_v2  ;;  %v28572_v18 = vsub.f32 %v11378_v7, %v28539_v21  ;;  %v11603_v7 = vand.u32 4294901760, %v11602_v11 }
 0xde5   :  { %11227 = vmatprep.subr.mxu0 %v31769_v23  ;;  %11580 = vmatprep.subr.mxu1 %v11579_v13  ;;  %v11414_v13 = vsel %vm220_vm0, %v128_v24, 0  ;;  %v11649_v49 = vand.u32 4294901760, %v28557_v53  ;;  %v129_v23 = vld [vmem:[#allocation5 + $0x10] sm:$0xff]  ;;  %v11615_v11 = vand.u32 4294901760, %v11614_v62 }
 0xde6   :  { %11231 = vmatpush1.msra.mxu0 %v10889_v52  ;;  %11586 = vmatpush1.msra.mxu1 %v11585_v31  ;;  %v31543_v52 = vand.u32 4294901760, %v28546_v3  ;;  %v11609_v31 = vand.u32 4294901760, %v11608_v41  ;;  %v11632_v17 = vsub.f32 %v28531_v2, %v31541_v55  ;;  %v28594_v24 = vand.u32 4294901760, %v11414_v13 }
 0xde7   :  { %11266 = vmatmul.mubr.f32.vlgmr.msra.gmra.mxu0 %v28291_v39  ;;  %11439 = vmatprep.subr.mxu0 %v28353_v30  ;;  %v11626_v39 = vsub.f32 %v28515_v50, %v31539_v25  ;;  %v11638_v25 = vsub.f32 %v28537_v48, %v31542_v51  ;;  %v11655_v14 = vand.u32 4294901760, %v28572_v18  ;;  %v28607_v55 = vand.u32 4294901760, %v28582_v15 }
 0xde8   :  { %11441 = vmatpush1.msra.mxu0 %v28357_v0  ;;  %11271 = vmatprep.mubr.f32.mxu0 %v31764_v56  ;;  %v11644_v41 = vsub.f32 %v28546_v3, %v31543_v52  ;;  %v11650_v62 = vsub.f32 %v28557_v53, %v11649_v49  ;;  %v28616_v51 = vsub.f32 %v11414_v13, %v28594_v24 }
 0xde9   :  { %11443 = vmatprep.subr.mxu0 %v28359_v40  ;;  %11592 = vmatprep.subr.mxu1 %v11591_v12  ;;  %v11621_v12 = vand.u32 4294901760, %v11620_v61  ;;  %v11633_v61 = vand.u32 4294901760, %v11632_v17  ;;  %v11639_v52 = vand.u32 4294901760, %v11638_v25  ;;  %v130_v17 = vld [vmem:[#allocation5 + $0x18] sm:$0xff] }
 0xdea   :  { %11445 = vmatpush1.msra.mxu0 %v28372_v8  ;;  %11598 = vmatpush1.msra.mxu1 %v11597_v16  ;;  %v11627_v16 = vand.u32 4294901760, %v11626_v39  ;;  %v11645_v39 = vand.u32 4294901760, %v11644_v41  ;;  %v11651_v13 = vand.u32 4294901760, %v11650_v62  ;;  %v28630_v25 = vand.u32 4294901760, %v28616_v51 }
 0xdeb   :  { %11273 = vmatmul.mubr.f32.gmra.mxu0 %v28305_v45  ;;  %11447 = vmatprep.subr.mxu0 %v28393_v47  ;;  %v11417_v45 = vsel %vm220_vm0, %v129_v23, 0  ;;  %v11506_v23 = vsub.f32 %v28582_v15, %v28607_v55 }
 0xdec   :  { %11449 = vmatpush1.msra.mxu0 %v28395_v63  ;;  %11604 = vmatprep.subr.mxu1 %v11603_v7  ;;  %v11656_v7 = vsub.f32 %v28572_v18, %v11655_v14 }
 0xded   :  { %11451 = vmatprep.subr.mxu0 %v28420_v46  ;;  %11610 = vmatpush1.msra.mxu1 %v11609_v31  ;;  %v28625_v31 = vand.u32 4294901760, %v11417_v45  ;;  %v28635_v41 = vand.u32 4294901760, %v11506_v23 }
 0xdee   :  { %11453 = vmatpush1.msra.mxu0 %v28434_v29  ;;  %11616 = vmatprep.subr.mxu1 %v11615_v11  ;;  %v11657_v11 = vand.u32 4294901760, %v11656_v7 }
 0xdef   :  { %11455 = vmatprep.subr.mxu0 %v28446_v6  ;;  %11622 = vmatpush1.msra.mxu1 %v11621_v12  ;;  %v11420_v12 = vsel %vm220_vm0, %v130_v17, 0 }
 0xdf0   :  { %11457 = vmatpush1.msra.mxu0 %v28460_v20  ;;  %11628 = vmatprep.subr.mxu1 %v11627_v16  ;;  %v28638_v16 = vsub.f32 %v11417_v45, %v28625_v31  ;;  %v28645_v62 = vand.u32 4294901760, %v11420_v12 }
 0xdf1   :  { %11459 = vmatprep.subr.mxu0 %v28471_v43  ;;  %11634 = vmatpush1.msra.mxu1 %v11633_v61 }
 0xdf2   :  { %11461 = vmatpush1.msra.mxu0 %v28484_v5  ;;  %11640 = vmatprep.subr.mxu1 %v11639_v52  ;;  %v11517_v52 = vsub.f32 %v28616_v51, %v28630_v25  ;;  %v28651_v45 = vand.u32 4294901760, %v28638_v16  ;;  %v28660_v7 = vsub.f32 %v11420_v12, %v28645_v62  ;;  %v11409_v12 = vld [vmem:[%s31422_s7 + $0xf8] sm:$0xff] }
 0xdf3   :  { %11463 = vmatprep.subr.mxu0 %v28497_v19  ;;  %11646 = vmatpush1.msra.mxu1 %v11645_v39 }
 0xdf4   :  { %11465 = vmatpush1.msra.mxu0 %v28505_v42  ;;  %11652 = vmatprep.subr.mxu1 %v11651_v13  ;;  %v28657_v61 = vand.u32 4294901760, %v11517_v52  ;;  %v11528_v39 = vsub.f32 %v28638_v16, %v28651_v45  ;;  %v28673_v23 = vand.u32 4294901760, %v28660_v7 }
 0xdf5   :  { %11467 = vmatprep.subr.mxu0 %v28517_v26  ;;  %11502 = vmatprep.mubr.f32.mxu0 %v31764_v56 }
 0xdf6   :  { %11469 = vmatpush1.msra.mxu0 %v28539_v21  ;;  %11658 = vmatpush1.msra.mxu1 %v11657_v11  ;;  %v28679_v17 = vand.u32 4294901760, %v11528_v39  ;;  %v11539_v13 = vsub.f32 %v28660_v7, %v28673_v23  ;;  %v11389_v39 = vld [vmem:[%s31422_s7 + $0x58] sm:$0xff] }
 0xdf7   :  { %11691 = vmatprep.mubr.f32.mxu1 %v31764_v56  ;;  %11508 = vmatmul.mubr.f32.vlgmr.msra.gmra.mxu0 %v28635_v41 }
 0xdf8   :  { %11693 = vmatmul.mubr.f32.vlgmr.msra.gmra.mxu1 %v28548_v9  ;;  %11738 = vmatprep.subr.mxu0 %v28370_v1  ;;  %v28695_v11 = vand.u32 4294901760, %v11539_v13  ;;  %v11405_v1 = vld [vmem:[%s31422_s7 + $0xd8] sm:$0xff]  ;;  %v11388_v13 = vld [vmem:[%s31422_s7 + $0x50] sm:$0xff] }
 0xdf9   :  { %11866 = vmatprep.subr.mxu1 %v28353_v30  ;;  %11741 = vmatpush1.msra.mxu0 %v28383_v38 }
 0xdfa   :  { %11868 = vmatpush1.msra.mxu1 %v28357_v0  ;;  %11744 = vmatprep.subr.mxu0 %v28386_v34  ;;  %v28757_v34 = vand.u32 4294901760, %v11405_v1 }
 0xdfb   :  { %11870 = vmatprep.subr.mxu1 %v28359_v40  ;;  %11513 = vmatprep.mubr.f32.mxu0 %v31764_v56 }
 0xdfc   :  { %11698 = vmatprep.mubr.f32.mxu1 %v31764_v56  ;;  %11747 = vmatpush1.msra.mxu0 %v28405_v57 }
 0xdfd   :  { %11872 = vmatpush1.msra.mxu1 %v28372_v8  ;;  %11519 = vmatmul.mubr.f32.gmra.mxu0 %v28657_v61 }
 0xdfe   :  { %11700 = vmatmul.mubr.f32.gmra.mxu1 %v28594_v24  ;;  %11750 = vmatprep.subr.mxu0 %v28429_v54 }
 0xdff   :  { %11874 = vmatprep.subr.mxu1 %v28393_v47  ;;  %11753 = vmatpush1.msra.mxu0 %v28432_v32 }
 0xe00   :  { %11876 = vmatpush1.msra.mxu1 %v28395_v63  ;;  %11756 = vmatprep.subr.mxu0 %v28469_v60  ;;  %v31774_v60 = vand.u32 4294901760, %v28531_v2 }
 0xe01   :  { %11878 = vmatprep.subr.mxu1 %v28420_v46  ;;  %11524 = vmatprep.mubr.f32.mxu0 %v31764_v56 }
 0xe02   :  { %11705 = vmatprep.mubr.f32.mxu1 %v31764_v56  ;;  %11759 = vmatpush1.msra.mxu0 %v28482_v10  ;;  %v11396_v10 = vld [vmem:[%s31422_s7 + $0x90] sm:$0xff] }
 0xe03   :  { %11880 = vmatpush1.msra.mxu1 %v28434_v29  ;;  %11530 = vmatmul.mubr.f32.gmra.mxu0 %v28679_v17  ;;  %v28836_v52 = vand.u32 4294901760, %v11396_v10 }
 0xe04   :  { %11707 = vmatmul.mubr.f32.gmra.mxu1 %v28625_v31  ;;  %11762 = vmatprep.subr.mxu0 %v28495_v36 }
 0xe05   :  { %11882 = vmatprep.subr.mxu1 %v28446_v6  ;;  %11765 = vmatpush1.msra.mxu0 %v28503_v59 }
 0xe06   :  { %11884 = vmatpush1.msra.mxu1 %v28460_v20  ;;  %11768 = vmatprep.subr.mxu0 %v28515_v50 }
 0xe07   :  { %11886 = vmatprep.subr.mxu1 %v28471_v43  ;;  %11535 = vmatprep.mubr.f32.mxu0 %v31764_v56 }
 0xe08   :  { %11712 = vmatprep.mubr.f32.mxu1 %v31764_v56  ;;  %11771 = vmatpush1.msra.mxu0 %v28531_v2  ;;  %v11392_v2 = vld [vmem:[%s31422_s7 + $0x70] sm:$0xff] }
 0xe09   :  { %11888 = vmatpush1.msra.mxu1 %v28484_v5  ;;  %11541 = vmatmul.mubr.f32.gmra.mxu0 %v28695_v11 }
 0xe0a   :  { %11714 = vmatmul.mubr.f32.gmra.mxu1 %v28645_v62  ;;  %11774 = vmatprep.subr.mxu0 %v28537_v48 }
 0xe0b   :  { %11890 = vmatprep.subr.mxu1 %v28497_v19  ;;  %11777 = vmatpush1.msra.mxu0 %v28546_v3 }
 0xe0c   :  { %11892 = vmatpush1.msra.mxu1 %v28505_v42  ;;  %11780 = vmatprep.subr.mxu0 %v28557_v53 }
 0xe0d   :  { %11894 = vmatprep.subr.mxu1 %v28517_v26  ;;  %11783 = vmatpush1.msra.mxu0 %v28572_v18 }
 0xe0e   :  { %11816 = vmatprep.mubr.f32.mxu0 %v31764_v56  ;;  %11896 = vmatpush1.msra.mxu1 %v28539_v21 }
 0xe0f   :  { %11929 = vmatprep.mubr.f32.mxu1 %v31764_v56  ;;  %11819 = vmatmul.mubr.f32.vlgmr.msra.gmra.mxu0 %v28582_v15 }
 0xe10   :  { %11933 = vmatmul.mubr.f32.vlgmr.msra.gmra.mxu1 %v28607_v55  ;;  %11985 = vmatprep.subr.mxu0 %v11565_v22 }
 0xe11   :  { %12124 = vmatprep.subr.mxu1 %v28353_v30  ;;  %11989 = vmatpush1.msra.mxu0 %v11571_v44  ;;  %v31770_v30 = vand.u32 4294901760, %v28405_v57  ;;  %v11401_v57 = vld [vmem:[%s31422_s7 + $0xb8] sm:$0xff]  ;;  %v31772_v44 = vand.u32 4294901760, %v28503_v59 }
 0xe12   :  { %12126 = vmatpush1.msra.mxu1 %v28357_v0  ;;  %11993 = vmatprep.subr.mxu0 %v11577_v27  ;;  %v11408_v0 = vld [vmem:[%s31422_s7 + $0xf0] sm:$0xff]  ;;  %v28783_v27 = vsub.f32 %v11405_v1, %v28757_v34  ;;  %v11393_v59 = vld [vmem:[%s31422_s7 + $0x78] sm:$0xff] }
 0xe13   :  { %12128 = vmatprep.subr.mxu1 %v28359_v40  ;;  %11824 = vmatprep.mubr.f32.mxu0 %v31764_v56  ;;  %v28742_v40 = vand.u32 4294901760, %v11409_v12  ;;  %v28753_v38 = vand.u32 4294901760, %v11408_v0 }
 0xe14   :  { %11938 = vmatprep.mubr.f32.mxu1 %v31764_v56  ;;  %11997 = vmatpush1.msra.mxu0 %v31770_v30  ;;  %v28872_v30 = vand.u32 4294901760, %v11389_v39 }
 0xe15   :  { %12130 = vmatpush1.msra.mxu1 %v28372_v8  ;;  %11827 = vmatmul.mubr.f32.gmra.mxu0 %v28616_v51  ;;  %v31771_v8 = vand.u32 4294901760, %v28432_v32  ;;  %v28774_v22 = vsub.f32 %v11408_v0, %v28753_v38  ;;  %v11384_v0 = vld [vmem:[%s31422_s7 + $0x30] sm:$0xff] }
 0xe16   :  { %11942 = vmatmul.mubr.f32.gmra.mxu1 %v28630_v25  ;;  %12001 = vmatprep.subr.mxu0 %v11589_v58 }
 0xe17   :  { %12132 = vmatprep.subr.mxu1 %v28393_v47  ;;  %12005 = vmatpush1.msra.mxu0 %v31771_v8  ;;  %v28763_v47 = vsub.f32 %v11409_v12, %v28742_v40  ;;  %v31547_v58 = vand.u32 4294901760, %v28774_v22  ;;  %v11385_v12 = vld [vmem:[%s31422_s7 + $0x38] sm:$0xff]  ;;  %v28883_v8 = vand.u32 4294901760, %v11388_v13 }
 0xe18   :  { %12134 = vmatpush1.msra.mxu1 %v28395_v63  ;;  %12009 = vmatprep.subr.mxu0 %v11601_v33  ;;  %v11404_v63 = vld [vmem:[%s31422_s7 + $0xd0] sm:$0xff]  ;;  %v31775_v33 = vand.u32 4294901760, %v28537_v48 }
 0xe19   :  { %12136 = vmatprep.subr.mxu1 %v28420_v46  ;;  %11832 = vmatprep.mubr.f32.mxu0 %v31764_v56  ;;  %v31773_v46 = vand.u32 4294901760, %v28515_v50  ;;  %v31548_v54 = vand.u32 4294901760, %v28763_v47  ;;  %v28789_v32 = vand.u32 4294901760, %v11404_v63 }
 0xe1a   :  { %11947 = vmatprep.mubr.f32.mxu1 %v31764_v56  ;;  %12013 = vmatpush1.msra.mxu0 %v11607_v37 }
 0xe1b   :  { %12138 = vmatpush1.msra.mxu1 %v28434_v29  ;;  %11835 = vmatmul.mubr.f32.gmra.mxu0 %v28638_v16  ;;  %v11400_v29 = vld [vmem:[%s31422_s7 + $0xb0] sm:$0xff]  ;;  %v12360_v50 = vsub.f32 %v28763_v47, %v31548_v54 }
 0xe1c   :  { %11951 = vmatmul.mubr.f32.gmra.mxu1 %v28651_v45  ;;  %12017 = vmatprep.subr.mxu0 %v11613_v28  ;;  %v28811_v36 = vand.u32 4294901760, %v11400_v29  ;;  %v31776_v28 = vand.u32 4294901760, %v28546_v3  ;;  %v28847_v3 = vand.u32 4294901760, %v11393_v59 }
 0xe1d   :  { %12140 = vmatprep.subr.mxu1 %v28446_v6  ;;  %12021 = vmatpush1.msra.mxu0 %v31772_v44  ;;  %v28796_v6 = vand.u32 4294901760, %v11401_v57 }
 0xe1e   :  { %12142 = vmatpush1.msra.mxu1 %v28460_v20  ;;  %12025 = vmatprep.subr.mxu0 %v31773_v46  ;;  %v11397_v20 = vld [vmem:[%s31422_s7 + $0x98] sm:$0xff]  ;;  %v28859_v53 = vsub.f32 %v11400_v29, %v28811_v36  ;;  %v28891_v44 = vsub.f32 %v11393_v59, %v28847_v3  ;;  %v28893_v46 = vand.u32 4294901760, %v11385_v12  ;;  %v11380_v29 = vld [vmem:[%s31422_s7 + $0x10] sm:$0xff] }
 0xe1f   :  { %12144 = vmatprep.subr.mxu1 %v28471_v43  ;;  %11840 = vmatprep.mubr.f32.mxu0 %v31764_v56  ;;  %v31545_v43 = vand.u32 4294901760, %v28783_v27  ;;  %v28825_v37 = vand.u32 4294901760, %v11397_v20  ;;  %v28834_v48 = vsub.f32 %v11401_v57, %v28796_v6 }
 0xe20   :  { %11956 = vmatprep.mubr.f32.mxu1 %v31764_v56  ;;  %12029 = vmatpush1.msra.mxu0 %v31774_v60  ;;  %v31549_v60 = vand.u32 4294901760, %v28859_v53 }
 0xe21   :  { %12146 = vmatpush1.msra.mxu1 %v28484_v5  ;;  %11843 = vmatmul.mubr.f32.gmra.mxu0 %v28660_v7  ;;  %v28823_v5 = vsub.f32 %v11404_v63, %v28789_v32  ;;  %v28870_v18 = vsub.f32 %v11397_v20, %v28825_v37  ;;  %v31546_v1 = vand.u32 4294901760, %v28834_v48  ;;  %v11381_v63 = vld [vmem:[%s31422_s7 + $0x18] sm:$0xff] }
 0xe22   :  { %11960 = vmatmul.mubr.f32.gmra.mxu1 %v28673_v23  ;;  %12033 = vmatprep.subr.mxu0 %v31775_v33  ;;  %v28904_v33 = vand.u32 4294901760, %v11384_v0 }
 0xe23   :  { %12148 = vmatprep.subr.mxu1 %v28497_v19  ;;  %12037 = vmatpush1.msra.mxu0 %v31776_v28  ;;  %v12366_v19 = vsub.f32 %v28774_v22, %v31547_v58  ;;  %v28912_v28 = vsub.f32 %v11389_v39, %v28872_v30 }
 0xe24   :  { %12150 = vmatpush1.msra.mxu1 %v28505_v42  ;;  %12041 = vmatprep.subr.mxu0 %v11649_v49  ;;  %v12372_v42 = vsub.f32 %v28783_v27, %v31545_v43  ;;  %v28861_v49 = vand.u32 4294901760, %v11392_v2  ;;  %v28931_v43 = vsub.f32 %v11385_v12, %v28893_v46  ;;  %v28940_v58 = vsub.f32 %v11384_v0, %v28904_v33 }
 0xe25   :  { %12152 = vmatprep.subr.mxu1 %v28517_v26  ;;  %12045 = vmatpush1.msra.mxu0 %v11655_v14  ;;  %v12361_v26 = vand.u32 4294901760, %v12360_v50  ;;  %v31544_v14 = vand.u32 4294901760, %v28823_v5  ;;  %v12367_v57 = vand.u32 4294901760, %v12366_v19  ;;  %v31550_v50 = vand.u32 4294901760, %v28870_v18 }
 0xe26   :  { %12078 = vmatprep.mubr.f32.mxu0 %v31764_v56  ;;  %12154 = vmatpush1.msra.mxu1 %v28539_v21  ;;  %v28881_v21 = vsub.f32 %v11396_v10, %v28836_v52  ;;  %v12373_v20 = vand.u32 4294901760, %v12372_v42  ;;  %v28902_v10 = vsub.f32 %v11392_v2, %v28861_v49  ;;  %v28914_v19 = vand.u32 4294901760, %v11381_v63 }
 0xe27   :  { %12187 = vmatprep.mubr.f32.mxu1 %v31764_v56  ;;  %12080 = vmatmul.mubr.f32.vlgmr.msra.gmra.mxu0 %v28548_v9  ;;  %v12378_v59 = vsub.f32 %v28823_v5, %v31544_v14  ;;  %v12384_v2 = vsub.f32 %v28834_v48, %v31546_v1  ;;  %v28925_v14 = vand.u32 4294901760, %v11380_v29  ;;  %v12396_v12 = vsub.f32 %v28870_v18, %v31550_v50 }
 0xe28   :  { %12189 = vmatmul.mubr.f32.vlgmr.msra.gmra.mxu1 %v28548_v9  ;;  %12085 = vmatprep.mubr.f32.mxu0 %v31764_v56  ;;  %v28948_v42 = vsub.f32 %v11381_v63, %v28914_v19  ;;  %v31777_v0 = vand.u32 4294901760, %v28881_v21  ;;  %v31778_v63 = vand.u32 4294901760, %v28891_v44  ;;  %v31780_v35 = vand.u32 4294901760, %v28912_v28 }
 0xe29   :  { %12194 = vmatprep.mubr.f32.mxu1 %v31764_v56  ;;  %12233 = vmatprep.subr.mxu0 %v28742_v40  ;;  %v12379_v54 = vand.u32 4294901760, %v12378_v59  ;;  %v28956_v59 = vsub.f32 %v11380_v29, %v28925_v14  ;;  %v12397_v39 = vand.u32 4294901760, %v12396_v12  ;;  %v31782_v12 = vand.u32 4294901760, %v28931_v43 }
 0xe2a   :  { %12235 = vmatpush1.msra.mxu0 %v28753_v38  ;;  %12362 = vmatprep.subr.mxu1 %v12361_v26  ;;  %v28923_v26 = vsub.f32 %v11388_v13, %v28883_v8  ;;  %v12390_v13 = vsub.f32 %v28859_v53, %v31549_v60  ;;  %v12385_v60 = vand.u32 4294901760, %v12384_v2  ;;  %v12408_v50 = vsub.f32 %v28891_v44, %v31778_v63 }
 0xe2b   :  { %12087 = vmatmul.mubr.f32.gmra.mxu0 %v28594_v24  ;;  %12237 = vmatprep.subr.mxu0 %v28757_v34  ;;  %v12420_v63 = vsub.f32 %v28912_v28, %v31780_v35  ;;  %v12432_v35 = vsub.f32 %v28931_v43, %v31782_v12  ;;  %v31784_v1 = vand.u32 4294901760, %v28948_v42 }
 0xe2c   :  { %12196 = vmatmul.mubr.f32.gmra.mxu1 %v28594_v24  ;;  %12092 = vmatprep.mubr.f32.mxu0 %v31764_v56  ;;  %v12391_v2 = vand.u32 4294901760, %v12390_v13  ;;  %v31781_v4 = vand.u32 4294901760, %v28923_v26 }
 0xe2d   :  { %12201 = vmatprep.mubr.f32.mxu1 %v31764_v56  ;;  %12239 = vmatpush1.msra.mxu0 %v28789_v32 }
 0xe2e   :  { %12368 = vmatpush1.msra.mxu1 %v12367_v57  ;;  %12241 = vmatprep.subr.mxu0 %v28796_v6  ;;  %v12402_v57 = vsub.f32 %v28881_v21, %v31777_v0  ;;  %v31779_v0 = vand.u32 4294901760, %v28902_v10 }
 0xe2f   :  { %12094 = vmatmul.mubr.f32.gmra.mxu0 %v28625_v31  ;;  %12374 = vmatprep.subr.mxu1 %v12373_v20 }
 0xe30   :  { %12203 = vmatmul.mubr.f32.gmra.mxu1 %v28625_v31  ;;  %12099 = vmatprep.mubr.f32.mxu0 %v31764_v56  ;;  %v12414_v29 = vsub.f32 %v28902_v10, %v31779_v0  ;;  %v12403_v13 = vand.u32 4294901760, %v12402_v57  ;;  %v12426_v0 = vsub.f32 %v28923_v26, %v31781_v4  ;;  %v31783_v57 = vand.u32 4294901760, %v28940_v58 }
 0xe31   :  { %12208 = vmatprep.mubr.f32.mxu1 %v31764_v56  ;;  %12243 = vmatpush1.msra.mxu0 %v28811_v36  ;;  %v12421_v4 = vand.u32 4294901760, %v12420_v63 }
 0xe32   :  { %12380 = vmatpush1.msra.mxu1 %v12379_v54  ;;  %12245 = vmatprep.subr.mxu0 %v28825_v37  ;;  %v12409_v54 = vand.u32 4294901760, %v12408_v50  ;;  %v12438_v20 = vsub.f32 %v28940_v58, %v31783_v57  ;;  %v12444_v50 = vsub.f32 %v28948_v42, %v31784_v1  ;;  %v12427_v12 = vand.u32 4294901760, %v12426_v0 }
 0xe33   :  { %12101 = vmatmul.mubr.f32.gmra.mxu0 %v28645_v62  ;;  %12386 = vmatprep.subr.mxu1 %v12385_v60  ;;  %v12415_v60 = vand.u32 4294901760, %v12414_v29  ;;  %v12433_v57 = vand.u32 4294901760, %v12432_v35 }
 0xe34   :  { %12210 = vmatmul.mubr.f32.gmra.mxu1 %v28645_v62  ;;  %12247 = vmatpush1.msra.mxu0 %v28836_v52  ;;  %v12445_v1 = vand.u32 4294901760, %v12444_v50 }
 0xe35   :  { %12392 = vmatpush1.msra.mxu1 %v12391_v2  ;;  %12249 = vmatprep.subr.mxu0 %v28847_v3  ;;  %v31785_v2 = vand.u32 4294901760, %v28956_v59 }
 0xe36   :  { %12398 = vmatprep.subr.mxu1 %v12397_v39  ;;  %12251 = vmatpush1.msra.mxu0 %v28861_v49  ;;  %v12439_v39 = vand.u32 4294901760, %v12438_v20 }
 0xe37   :  { %12404 = vmatpush1.msra.mxu1 %v12403_v13  ;;  %12253 = vmatprep.subr.mxu0 %v28872_v30  ;;  %v12450_v29 = vsub.f32 %v28956_v59, %v31785_v2 }
 0xe38   :  { %12410 = vmatprep.subr.mxu1 %v12409_v54  ;;  %12255 = vmatpush1.msra.mxu0 %v28883_v8 }
 0xe39   :  { %12416 = vmatpush1.msra.mxu1 %v12415_v60  ;;  %12257 = vmatprep.subr.mxu0 %v28893_v46  ;;  %v12451_v63 = vand.u32 4294901760, %v12450_v29 }
 0xe3a   :  { %12422 = vmatprep.subr.mxu1 %v12421_v4  ;;  %12259 = vmatpush1.msra.mxu0 %v28904_v33 }
 0xe3b   :  { %12428 = vmatpush1.msra.mxu1 %v12427_v12  ;;  %12261 = vmatprep.subr.mxu0 %v28914_v19 }
 0xe3c   :  { %12434 = vmatprep.subr.mxu1 %v12433_v57  ;;  %12263 = vmatpush1.msra.mxu0 %v28925_v14 }
 0xe3d   :  { %12296 = vmatprep.mubr.f32.mxu0 %v31764_v56  ;;  %12440 = vmatpush1.msra.mxu1 %v12439_v39 }
 0xe3e   :  { %12302 = vmatmul.mubr.f32.vlgmr.msra.gmra.mxu0 %v28635_v41  ;;  %12446 = vmatprep.subr.mxu1 %v12445_v1  ;;  %v31786_v41 = vand.u32 4294901760, %v28763_v47 }
 0xe3f   :  { %12532 = vmatprep.subr.mxu0 %v28763_v47  ;;  %12452 = vmatpush1.msra.mxu1 %v12451_v63  ;;  %v31798_v47 = vand.u32 4294901760, %v28931_v43 }
 0xe40   :  { %12485 = vmatprep.mubr.f32.mxu1 %v31764_v56  ;;  %12535 = vmatpush1.msra.mxu0 %v28774_v22 }
 0xe41   :  { %12487 = vmatmul.mubr.f32.vlgmr.msra.gmra.mxu1 %v28548_v9  ;;  %12538 = vmatprep.subr.mxu0 %v28783_v27 }
 0xe42   :  { %12660 = vmatprep.subr.mxu1 %v28742_v40  ;;  %12307 = vmatprep.mubr.f32.mxu0 %v31764_v56 }
 0xe43   :  { %12541 = vmatpush1.msra.mxu0 %v28823_v5  ;;  %12662 = vmatpush1.msra.mxu1 %v28753_v38 }
 0xe44   :  { %12313 = vmatmul.mubr.f32.gmra.mxu0 %v28657_v61  ;;  %12544 = vmatprep.subr.mxu0 %v28834_v48  ;;  %v31787_v61 = vand.u32 4294901760, %v28774_v22  ;;  %v31800_v22 = vand.u32 4294901760, %v28948_v42 }
 0xe45   :  { %12664 = vmatprep.subr.mxu1 %v28757_v34  ;;  %12492 = vmatprep.mubr.f32.mxu1 %v31764_v56 }
 0xe46   :  { %12547 = vmatpush1.msra.mxu0 %v28859_v53  ;;  %12666 = vmatpush1.msra.mxu1 %v28789_v32 }
 0xe47   :  { %12494 = vmatmul.mubr.f32.gmra.mxu1 %v28594_v24  ;;  %12550 = vmatprep.subr.mxu0 %v28870_v18 }
 0xe48   :  { %12668 = vmatprep.subr.mxu1 %v28796_v6  ;;  %12318 = vmatprep.mubr.f32.mxu0 %v31764_v56 }
 0xe49   :  { %12553 = vmatpush1.msra.mxu0 %v28881_v21  ;;  %12670 = vmatpush1.msra.mxu1 %v28811_v36 }
 0xe4a   :  { %12324 = vmatmul.mubr.f32.gmra.mxu0 %v28679_v17  ;;  %12556 = vmatprep.subr.mxu0 %v28891_v44  ;;  %v31788_v17 = vand.u32 4294901760, %v28783_v27 }
 0xe4b   :  { %12672 = vmatprep.subr.mxu1 %v28825_v37  ;;  %12499 = vmatprep.mubr.f32.mxu1 %v31764_v56 }
 0xe4c   :  { %12559 = vmatpush1.msra.mxu0 %v28902_v10  ;;  %12674 = vmatpush1.msra.mxu1 %v28836_v52 }
 0xe4d   :  { %12501 = vmatmul.mubr.f32.gmra.mxu1 %v28625_v31  ;;  %12562 = vmatprep.subr.mxu0 %v28912_v28 }
 0xe4e   :  { %12676 = vmatprep.subr.mxu1 %v28847_v3  ;;  %12329 = vmatprep.mubr.f32.mxu0 %v31764_v56 }
 0xe4f   :  { %12565 = vmatpush1.msra.mxu0 %v28923_v26  ;;  %12678 = vmatpush1.msra.mxu1 %v28861_v49 }
 0xe50   :  { %12335 = vmatmul.mubr.f32.gmra.mxu0 %v28695_v11  ;;  %12568 = vmatprep.subr.mxu0 %v28931_v43  ;;  %v31790_v11 = vand.u32 4294901760, %v28834_v48 }
 0xe51   :  { %12680 = vmatprep.subr.mxu1 %v28872_v30  ;;  %12506 = vmatprep.mubr.f32.mxu1 %v31764_v56 }
 0xe52   :  { %12571 = vmatpush1.msra.mxu0 %v28940_v58  ;;  %12682 = vmatpush1.msra.mxu1 %v28883_v8 }
 0xe53   :  { %12508 = vmatmul.mubr.f32.gmra.mxu1 %v28645_v62  ;;  %12574 = vmatprep.subr.mxu0 %v28948_v42 }
 0xe54   :  { %12684 = vmatprep.subr.mxu1 %v28893_v46  ;;  %12577 = vmatpush1.msra.mxu0 %v28956_v59 }
 0xe55   :  { %12610 = vmatprep.mubr.f32.mxu0 %v31764_v56  ;;  %12686 = vmatpush1.msra.mxu1 %v28904_v33 }
 0xe56   :  { %12613 = vmatmul.mubr.f32.vlgmr.msra.gmra.mxu0 %v28582_v15  ;;  %12688 = vmatprep.subr.mxu1 %v28914_v19  ;;  %v31789_v15 = vand.u32 4294901760, %v28823_v5 }
 0xe57   :  { %12779 = vmatprep.subr.mxu0 %v31786_v41  ;;  %12690 = vmatpush1.msra.mxu1 %v28925_v14 }
 0xe58   :  { %12723 = vmatprep.mubr.f32.mxu1 %v31764_v56  ;;  %12783 = vmatpush1.msra.mxu0 %v31787_v61 }
 0xe59   :  { %12727 = vmatmul.mubr.f32.vlgmr.msra.gmra.mxu1 %v28607_v55  ;;  %12787 = vmatprep.subr.mxu0 %v31788_v17  ;;  %v31791_v55 = vand.u32 4294901760, %v28859_v53 }
 0xe5a   :  { %12918 = vmatprep.subr.mxu1 %v28742_v40  ;;  %12618 = vmatprep.mubr.f32.mxu0 %v31764_v56  ;;  %v31792_v40 = vand.u32 4294901760, %v28870_v18 }
 0xe5b   :  { %12791 = vmatpush1.msra.mxu0 %v31789_v15  ;;  %12920 = vmatpush1.msra.mxu1 %v28753_v38  ;;  %v31794_v38 = vand.u32 4294901760, %v28891_v44 }
 0xe5c   :  { %12621 = vmatmul.mubr.f32.gmra.mxu0 %v28616_v51  ;;  %12795 = vmatprep.subr.mxu0 %v31790_v11  ;;  %v31793_v51 = vand.u32 4294901760, %v28881_v21 }
 0xe5d   :  { %12922 = vmatprep.subr.mxu1 %v28757_v34  ;;  %12732 = vmatprep.mubr.f32.mxu1 %v31764_v56  ;;  %v31796_v34 = vand.u32 4294901760, %v28912_v28 }
 0xe5e   :  { %12799 = vmatpush1.msra.mxu0 %v31791_v55  ;;  %12924 = vmatpush1.msra.mxu1 %v28789_v32 }
 0xe5f   :  { %12736 = vmatmul.mubr.f32.gmra.mxu1 %v28630_v25  ;;  %12803 = vmatprep.subr.mxu0 %v31792_v40  ;;  %v31795_v25 = vand.u32 4294901760, %v28902_v10 }
 0xe60   :  { %12926 = vmatprep.subr.mxu1 %v28796_v6  ;;  %12626 = vmatprep.mubr.f32.mxu0 %v31764_v56 }
 0xe61   :  { %12807 = vmatpush1.msra.mxu0 %v31793_v51  ;;  %12928 = vmatpush1.msra.mxu1 %v28811_v36 }
 0xe62   :  { %12629 = vmatmul.mubr.f32.gmra.mxu0 %v28638_v16  ;;  %12811 = vmatprep.subr.mxu0 %v31794_v38  ;;  %v31797_v16 = vand.u32 4294901760, %v28923_v26 }
 0xe63   :  { %12930 = vmatprep.subr.mxu1 %v28825_v37  ;;  %12741 = vmatprep.mubr.f32.mxu1 %v31764_v56 }
 0xe64   :  { %12815 = vmatpush1.msra.mxu0 %v31795_v25  ;;  %12932 = vmatpush1.msra.mxu1 %v28836_v52 }
 0xe65   :  { %12745 = vmatmul.mubr.f32.gmra.mxu1 %v28651_v45  ;;  %12819 = vmatprep.subr.mxu0 %v31796_v34  ;;  %v31799_v45 = vand.u32 4294901760, %v28940_v58 }
 0xe66   :  { %12934 = vmatprep.subr.mxu1 %v28847_v3  ;;  %12634 = vmatprep.mubr.f32.mxu0 %v31764_v56 }
 0xe67   :  { %12823 = vmatpush1.msra.mxu0 %v31797_v16  ;;  %12936 = vmatpush1.msra.mxu1 %v28861_v49 }
 0xe68   :  { %12637 = vmatmul.mubr.f32.gmra.mxu0 %v28660_v7  ;;  %12827 = vmatprep.subr.mxu0 %v31798_v47  ;;  %v31801_v7 = vmov %v31785_v2 }
 0xe69   :  { %12938 = vmatprep.subr.mxu1 %v28872_v30  ;;  %12750 = vmatprep.mubr.f32.mxu1 %v31764_v56 }
 0xe6a   :  { %12831 = vmatpush1.msra.mxu0 %v31799_v45  ;;  %12940 = vmatpush1.msra.mxu1 %v28883_v8 }
 0xe6b   :  { %12754 = vmatmul.mubr.f32.gmra.mxu1 %v28673_v23  ;;  %12835 = vmatprep.subr.mxu0 %v31800_v22 }
 0xe6c   :  { %12942 = vmatprep.subr.mxu1 %v28893_v46  ;;  %12839 = vmatpush1.msra.mxu0 %v31801_v7 }
 0xe6d   :  { %12872 = vmatprep.mubr.f32.mxu0 %v31764_v56  ;;  %12944 = vmatpush1.msra.mxu1 %v28904_v33 }
 0xe6e   :  { %12874 = vmatmul.mubr.f32.vlgmr.msra.gmra.mxu0 %v28548_v9  ;;  %12946 = vmatprep.subr.mxu1 %v28914_v19 }
 0xe6f   :  { %12948 = vmatpush1.msra.mxu1 %v28925_v14  ;;  %12981 = vmatprep.mubr.f32.mxu1 %v31764_v56 }
 0xe70   :  { %12983 = vmatmul.mubr.f32.vlgmr.msra.gmra.mxu1 %v28548_v9  ;;  %12879 = vmatprep.mubr.f32.mxu0 %v31764_v56 }
 0xe71   :  { %12988 = vmatprep.mubr.f32.mxu1 %v31764_v56  ;;  %24403 = vmatprep.subr.mxu0 %v31764_v56 }
 0xe72   :  { %12881 = vmatmul.mubr.f32.gmra.mxu0 %v28594_v24  ;;  %24410 = vmatprep.subr.mxu1 %v31764_v56 }
 0xe73   :  { %12886 = vmatprep.mubr.f32.mxu0 %v31764_v56 }
 0xe74   :  { %12990 = vmatmul.mubr.f32.gmra.mxu1 %v28594_v24 }
 0xe75   :  { %12995 = vmatprep.mubr.f32.mxu1 %v31764_v56 }
 0xe76   :  { %12888 = vmatmul.mubr.f32.gmra.mxu0 %v28625_v31 }
 0xe77   :  { %12893 = vmatprep.mubr.f32.mxu0 %v31764_v56 }
 0xe78   :  { %12997 = vmatmul.mubr.f32.gmra.mxu1 %v28625_v31 }
 0xe79   :  { %13002 = vmatprep.mubr.f32.mxu1 %v31764_v56 }
 0xe7a   :  { %12895 = vmatmul.mubr.f32.gmra.mxu0 %v28645_v62  ;;  %v10928_v9 = vpop.f32.mrf.mxu1 }
 0xe7b   :  { %24407 = vmatprep.mubr.msk.f32.mxu0 %vm25601_vm1, %v31764_v56 }
 0xe7c   :  { %13004 = vmatmul.mubr.f32.gmra.mxu1 %v28645_v62  ;;  %v29136_v23 = vpop.f32.mrf.mxu1 }
 0xe7d   :  { %24414 = vmatprep.mubr.msk.f32.mxu1 %vm25601_vm1, %v31764_v56 }
 0xe7e   :  { %v10935_v32 = vpop.f32.mrf.mxu1 }
 0xe80   :  { %v29140_v58 = vpop.f32.mrf.mxu1 }
 0xe82   :  { %v10765_v24 = vpop.f32.mrf.mxu0 }
 0xe83   :  { %v10929_v1 = vadd.f32 %v10928_v9, %v10765_v24 }
 0xe84   :  { %v29138_v27 = vpop.f32.mrf.mxu0 }
 0xe87   :  { %v10776_v31 = vpop.f32.mrf.mxu0 }
 0xe88   :  { %v10936_v6 = vadd.f32 %v10935_v32, %v10776_v31 }
 0xe89   :  { %v29142_v43 = vpop.f32.mrf.mxu0 }
 0xe8b   :  { %v11138_v36 = vpop.f32.mrf.mxu1 }
 0xe8d   :  { %v29146_v62 = vpop.f32.mrf.mxu1 }
 0xe90   :  { %v11147_v3 = vpop.f32.mrf.mxu1 }
 0xe92   :  { %v29152_v14 = vpop.f32.mrf.mxu1 }
 0xe95   :  { %v11040_v5 = vpop.f32.mrf.mxu0 }
 0xe96   :  { %v11041_v61 = vadd.f32 %v11040_v5, %v10929_v1 }
 0xe97   :  { %v29144_v37 = vpop.f32.mrf.mxu0 }
 0xe98   :  { %v11139_v11 = vadd.f32 %v11138_v36, %v11041_v61 }
 0xe9a   :  { %v11048_v48 = vpop.f32.mrf.mxu0 }
 0xe9b   :  { %v11049_v52 = vadd.f32 %v11048_v48, %v10936_v6 }
 0xe9c   :  { %v29150_v49 = vpop.f32.mrf.mxu0 }
 0xe9d   :  { %v29148_v53 = vadd.f32 %v11147_v3, %v11049_v52 }
 0xe9f   :  { %v11362_v30 = vpop.f32.mrf.mxu1 }
 0xea1   :  { %v29156_v8 = vpop.f32.mrf.mxu1 }
 0xea3   :  { %v29160_v46 = vpop.f32.mrf.mxu1 }
 0xea5   :  { %v29164_v33 = vpop.f32.mrf.mxu1 }
 0xea6   :  { %31803 = vst [vmem:[#allocation35_spill] sm:$0xff] %v29164_v33 }
 0xea7   :  { %v11267_v18 = vpop.f32.mrf.mxu0 }
 0xea8   :  { %v11268_v51 = vadd.f32 %v11267_v18, %v11139_v11 }
 0xea9   :  { %v29154_v21 = vpop.f32.mrf.mxu0 }
 0xeaa   :  { %v11363_v34 = vadd.f32 %v11362_v30, %v11268_v51 }
 0xeab   :  { %v29158_v44 = vpop.f32.mrf.mxu0 }
 0xeac   :  { %v29196_v22 = vmul.f32 0.125, %v11363_v34 }
 0xead   :  { %v29162_v10 = vpop.f32.mrf.mxu0 }
 0xeae   :  { %31802 = vst [vmem:[#allocation27_spill] sm:$0xff] %v29162_v10  ;;  %v13043_v36 = vsel %vm220_vm0, %v29196_v22, 0 }
 0xeaf   :  { %v29204_v3 = vand.u32 4294901760, %v13043_v36 }
 0xeb7   :  { %v11509_v28 = vpop.f32.mrf.mxu0 }
 0xeb8   :  { %v11694_v19 = vpop.f32.mrf.mxu1 }
 0xeb9   :  { %v29166_v42 = vpop.f32.mrf.mxu0  ;;  %v11695_v45 = vadd.f32 %v11694_v19, %v11509_v28 }
 0xeba   :  { %v29168_v26 = vpop.f32.mrf.mxu1 }
 0xebd   :  { %v11520_v59 = vpop.f32.mrf.mxu0 }
 0xebe   :  { %v11701_v20 = vpop.f32.mrf.mxu1 }
 0xebf   :  { %v29170_v13 = vpop.f32.mrf.mxu0  ;;  %v11702_v31 = vadd.f32 %v11701_v20, %v11520_v59  ;;  %v29213_v20 = vsub.f32 %v13043_v36, %v29204_v3 }
 0xec0   :  { %v29172_v0 = vpop.f32.mrf.mxu1 }
 0xec3   :  { %v29174_v54 = vpop.f32.mrf.mxu0 }
 0xec4   :  { %v11708_v35 = vpop.f32.mrf.mxu1 }
 0xec5   :  { %v29176_v60 = vpop.f32.mrf.mxu0 }
 0xec6   :  { %v29178_v4 = vpop.f32.mrf.mxu1 }
 0xec9   :  { %v11542_v50 = vpop.f32.mrf.mxu0 }
 0xeca   :  { %v11715_v12 = vpop.f32.mrf.mxu1 }
 0xecb   :  { %v29180_v2 = vpop.f32.mrf.mxu0  ;;  %v11716_v34 = vadd.f32 %v11715_v12, %v11542_v50  ;;  %v11709_v12 = vadd.f32 %v11708_v35, %v29174_v54 }
 0xecc   :  { %v29182_v29 = vpop.f32.mrf.mxu1 }
 0xecf   :  { %v11820_v57 = vpop.f32.mrf.mxu0 }
 0xed0   :  { %v11934_v39 = vpop.f32.mrf.mxu1  ;;  %v11821_v9 = vadd.f32 %v11820_v57, %v11695_v45 }
 0xed1   :  { %v29184_v63 = vpop.f32.mrf.mxu0 }
 0xed2   :  { %v29186_v41 = vpop.f32.mrf.mxu1  ;;  %v11935_v5 = vadd.f32 %v11934_v39, %v11821_v9 }
 0xed5   :  { %v11828_v17 = vpop.f32.mrf.mxu0 }
 0xed6   :  { %v11943_v15 = vpop.f32.mrf.mxu1  ;;  %v11829_v48 = vadd.f32 %v11828_v17, %v11702_v31  ;;  %v13120_v31 = vand.u32 4294901760, %v29213_v20 }
 0xed7   :  { %v29188_v55 = vpop.f32.mrf.mxu0 }
 0xed8   :  { %v29190_v40 = vpop.f32.mrf.mxu1  ;;  %v11944_v19 = vadd.f32 %v11943_v15, %v11829_v48 }
 0xedb   :  { %v11836_v38 = vpop.f32.mrf.mxu0 }
 0xedc   :  { %v11952_v25 = vpop.f32.mrf.mxu1 }
 0xedd   :  { %v29192_v16 = vpop.f32.mrf.mxu0 }
 0xede   :  { %31804 = vst [vmem:[#allocation28_spill] sm:$0xff] %v29192_v16  ;;  %v29194_v47 = vpop.f32.mrf.mxu1 }
 0xedf   :  { %31805 = vst [vmem:[#allocation36_spill] sm:$0xff] %v29194_v47 }
 0xee1   :  { %v11844_v7 = vpop.f32.mrf.mxu0 }
 0xee2   :  { %v11961_v24 = vpop.f32.mrf.mxu1 }
 0xee3   :  { %v29198_v32 = vpop.f32.mrf.mxu0 }
 0xee4   :  { %v29200_v6 = vpop.f32.mrf.mxu1 }
 0xee5   :  { %31806 = vst [vmem:[#allocation29_spill] sm:$0xff] %v29200_v6 }
 0xee7   :  { %v12081_v52 = vpop.f32.mrf.mxu0 }
 0xee8   :  { %v12082_v18 = vadd.f32 %v12081_v52, %v11935_v5  ;;  %v12190_v30 = vpop.f32.mrf.mxu1  ;;  %v11845_v5 = vadd.f32 %v11844_v7, %v11716_v34  ;;  %v11275_v52 = vadd.f32 %v29158_v44, %v29148_v53  ;;  %v13121_v53 = vsub.f32 %v29213_v20, %v13120_v31 }
 0xee9   :  { %v29206_v28 = vpop.f32.mrf.mxu0  ;;  %v11837_v44 = vadd.f32 %v11836_v38, %v11709_v12 }
 0xeea   :  { %v29208_v57 = vadd.f32 %v12190_v30, %v12082_v18  ;;  %v29210_v1 = vpop.f32.mrf.mxu1 }
 0xeeb   :  { %v12088_v59 = vpop.f32.mrf.mxu0 }
 0xeec   :  { %v13046_v39 = vsel %vm220_vm0, %v29208_v57, 0  ;;  %v12089_v61 = vadd.f32 %v12088_v59, %v11944_v19  ;;  %v12197_v17 = vpop.f32.mrf.mxu1 }
 0xeed   :  { %v29217_v11 = vand.u32 4294901760, %v13046_v39  ;;  %v29219_v51 = vpop.f32.mrf.mxu0 }
 0xeee   :  { %v29221_v45 = vadd.f32 %v12197_v17, %v12089_v61  ;;  %v29223_v15 = vpop.f32.mrf.mxu1  ;;  %v11370_v61 = vadd.f32 %v29160_v46, %v11275_v52 }
 0xeef   :  { %v12095_v9 = vpop.f32.mrf.mxu0  ;;  %v29231_v18 = vsub.f32 %v13046_v39, %v29217_v11  ;;  %v11962_v39 = vadd.f32 %v11961_v24, %v11845_v5 }
 0xef0   :  { %v13049_v36 = vsel %vm220_vm0, %v29221_v45, 0  ;;  %v12204_v48 = vpop.f32.mrf.mxu1  ;;  %v29250_v33 = vmul.f32 0.125, %v11370_v61 }
 0xef1   :  { %v29233_v30 = vand.u32 4294901760, %v13049_v36  ;;  %v29235_v50 = vpop.f32.mrf.mxu0  ;;  %v13166_v17 = vand.u32 4294901760, %v29231_v18 }
 0xef2   :  { %31807 = vst [vmem:[#allocation39_spill] sm:$0xff] %v29235_v50  ;;  %v29239_v7 = vpop.f32.mrf.mxu1  ;;  %v11953_v50 = vadd.f32 %v11952_v25, %v11837_v44  ;;  %v13511_v25 = vsel %vm220_vm0, %v29250_v33, 0 }
 0xef3   :  { %v13158_v19 = vsub.f32 %v13049_v36, %v29233_v30  ;;  %v12102_v59 = vpop.f32.mrf.mxu0  ;;  %31808 = vst [vmem:[#allocation30_spill] sm:$0xff] %v29239_v7  ;;  %24404 = vmatpush3.xpose.msra.mxu0 %v29233_v30  ;;  %v13122_v7 = vand.u32 4294901760, %v13121_v53  ;;  %v13167_v24 = vsub.f32 %v29231_v18, %v13166_v17 }
 0xef4   :  { %24405 = vmatprep.subr.mxu0 %v31764_v56  ;;  %v12103_v35 = vadd.f32 %v12102_v59, %v11962_v39  ;;  %v12211_v34 = vpop.f32.mrf.mxu1  ;;  %v12096_v5 = vadd.f32 %v12095_v9, %v11953_v50 }
 0xef5   :  { %v13159_v54 = vand.u32 4294901760, %v13158_v19  ;;  %v29255_v46 = vpop.f32.mrf.mxu0  ;;  %v13168_v52 = vand.u32 4294901760, %v13167_v24 }
 0xef6   :  { %v29253_v12 = vadd.f32 %v12211_v34, %v12103_v35  ;;  %31809 = vst [vmem:[#allocation40_spill] sm:$0xff] %v29255_v46  ;;  %v29263_v59 = vadd.f32 %v12204_v48, %v12096_v5 }
 0xef7   :  { %24406 = vmatpush3.xpose.msra.mxu0 %v29217_v11  ;;  %v13160_v36 = vsub.f32 %v13158_v19, %v13159_v54 }
 0xef8   :  { %24417 = vmatprep.subr.mxu0 %v31764_v56  ;;  %v13517_v9 = vsel %vm220_vm0, %v29253_v12, 0  ;;  %v13514_v39 = vsel %vm220_vm0, %v29263_v59, 0 }
 0xef9   :  { %v13161_v38 = vand.u32 4294901760, %v13160_v36  ;;  %v29278_v48 = vand.u32 4294901760, %v13517_v9  ;;  %v29296_v34 = vand.u32 4294901760, %v13514_v39 }
 0xefa   :  { %24408 = vmatmul.mubr.f32.vlgmr.msra.gmra.mxu0 %v13122_v7  ;;  %v29272_v7 = vand.u32 4294901760, %v13511_v25 }
 0xefb   :  { %24411 = vmatpush3.xpose.msra.mxu1 %v13161_v38  ;;  %24418 = vmatpush3.xpose.msra.mxu0 %v13158_v19  ;;  %v29269_v19 = vpop.f32.mrf.mxu1  ;;  %v13626_v36 = vsub.f32 %v13517_v9, %v29278_v48  ;;  %v13633_v5 = vsub.f32 %v13514_v39, %v29296_v34 }
 0xefc   :  { %24412 = vmatprep.subr.mxu1 %v31764_v56  ;;  %24419 = vmatprep.subr.mxu0 %v31764_v56  ;;  %31810 = vst [vmem:[#allocation31_spill] sm:$0xff] %v29269_v19  ;;  %v29290_v61 = vsub.f32 %v13511_v25, %v29272_v7 }
 0xefd   :  { %24421 = vmatprep.mubr.msk.f32.mxu0 %vm25601_vm1, %v31764_v56  ;;  %v13627_v25 = vand.u32 4294901760, %v13626_v36 }
 0xefe   :  { %v29267_v50 = vpop.f32.mrf.mxu0  ;;  %v31553_v24 = vand.u32 4294901760, %v29290_v61 }
 0xeff   :  { %24413 = vmatpush3.xpose.msra.mxu1 %v13168_v52  ;;  %24420 = vmatpush3.xpose.msra.mxu0 %v29231_v18 }
 0xf00   :  { %24424 = vmatprep.subr.mxu1 %v31764_v56  ;;  %24431 = vmatprep.subr.mxu0 %v31764_v56  ;;  %v29276_v53 = vpop.f32.mrf.mxu0 }
 0xf01   :  { %31811 = vst [vmem:[#allocation42_spill] sm:$0xff] %v29276_v53  ;;  %v29280_v44 = vpop.f32.mrf.mxu1 }
 0xf02   :  { %24415 = vmatmul.mubr.f32.vlgmr.msra.gmra.mxu1 %v29204_v3  ;;  %24422 = vmatmul.mubr.f32.vlgmr.msra.gmra.mxu0 %v29213_v20  ;;  %v13628_v20 = vsub.f32 %v13626_v36, %v13627_v25 }
 0xf03   :  { %24425 = vmatpush3.xpose.msra.mxu1 %v29233_v30  ;;  %24432 = vmatpush3.xpose.msra.mxu0 %v13159_v54  ;;  %v29287_v18 = vpop.f32.mrf.mxu1 }
 0xf04   :  { %31812 = vst [vmem:[#allocation32_spill] sm:$0xff] %v29287_v18  ;;  %24426 = vmatprep.subr.mxu1 %v31764_v56  ;;  %24433 = vmatprep.subr.mxu0 %v31764_v56  ;;  %v29294_v35 = vpop.f32.mrf.mxu0  ;;  %v13634_v18 = vand.u32 4294901760, %v13633_v5 }
 0xf05   :  { %24428 = vmatprep.mubr.msk.f32.mxu1 %vm25601_vm1, %v31764_v56  ;;  %24435 = vmatprep.mubr.msk.f32.mxu0 %vm25601_vm1, %v31764_v56 }
 0xf06   :  { %v29303_v54 = vpop.f32.mrf.mxu0 }
 0xf07   :  { %31813 = vst [vmem:[#allocation33_spill] sm:$0xff] %v29303_v54  ;;  %24427 = vmatpush3.xpose.msra.mxu1 %v29217_v11  ;;  %24434 = vmatpush3.xpose.msra.mxu0 %v13166_v17  ;;  %v29306_v38 = vpop.f32.mrf.mxu1  ;;  %v13589_v17 = vsub.f32 %v29290_v61, %v31553_v24  ;;  %v13635_v54 = vsub.f32 %v13633_v5, %v13634_v18 }
 0xf08   :  { %24438 = vmatprep.subr.mxu1 %v31764_v56  ;;  %24445 = vmatprep.subr.mxu0 %v31764_v56 }
 0xf09   :  { %v29312_v52 = vpop.f32.mrf.mxu1  ;;  %v13590_v53 = vand.u32 4294901760, %v13589_v17  ;;  %v13636_v17 = vand.u32 4294901760, %v13635_v54 }
 0xf0a   :  { %31814 = vst [vmem:[#allocation34_spill] sm:$0xff] %v29312_v52  ;;  %24429 = vmatmul.mubr.f32.vlgmr.msra.gmra.mxu1 %v13120_v31  ;;  %24436 = vmatmul.mubr.f32.vlgmr.msra.gmra.mxu0 %v29204_v3  ;;  %v12325_v9 = vpop.f32.mrf.mxu0  ;;  %v13629_v52 = vand.u32 4294901760, %v13628_v20 }
 0xf0b   :  { %24439 = vmatpush3.xpose.msra.mxu1 %v29233_v30  ;;  %24446 = vmatpush3.xpose.msra.mxu0 %v29278_v48 }
 0xf0c   :  { %24440 = vmatprep.subr.mxu1 %v31764_v56  ;;  %24447 = vmatprep.subr.mxu0 %v31764_v56  ;;  %v29324_v39 = vpop.f32.mrf.mxu0 }
 0xf0d   :  { %31815 = vst [vmem:[#allocation38_spill] sm:$0xff] %v29324_v39  ;;  %24442 = vmatprep.mubr.msk.f32.mxu1 %vm25601_vm1, %v31764_v56  ;;  %24449 = vmatprep.mubr.msk.f32.mxu0 %vm25601_vm1, %v31764_v56  ;;  %v12502_v31 = vpop.f32.mrf.mxu1 }
 0xf0e   :  { %v12503_v30 = vadd.f32 %v12502_v31, %v12325_v9  ;;  %v31823_v31 = vand.u32 4294901760, %v29290_v61 }
 0xf0f   :  { %24441 = vmatpush3.xpose.msra.mxu1 %v29217_v11  ;;  %24448 = vmatpush3.xpose.msra.mxu0 %v29296_v34  ;;  %v29332_v24 = vpop.f32.mrf.mxu1 }
 0xf10   :  { %31816 = vst [vmem:[#allocation41_spill] sm:$0xff] %v29332_v24  ;;  %24452 = vmatprep.subr.mxu1 %v31764_v56  ;;  %24459 = vmatprep.subr.mxu0 %v31764_v56  ;;  %v12336_v39 = vpop.f32.mrf.mxu0 }
 0xf12   :  { %24443 = vmatmul.mubr.f32.vlgmr.msra.gmra.mxu1 %v29204_v3  ;;  %24450 = vmatmul.mubr.f32.vlgmr.msra.gmra.mxu0 %v13590_v53  ;;  %v29337_v19 = vpop.f32.mrf.mxu0 }
 0xf13   :  { %31817 = vst [vmem:[#allocation43_spill] sm:$0xff] %v29337_v19  ;;  %24453 = vmatpush3.xpose.msra.mxu1 %v13629_v52  ;;  %24460 = vmatpush3.xpose.msra.mxu0 %v13626_v36  ;;  %v12509_v11 = vpop.f32.mrf.mxu1 }
 0xf14   :  { %24454 = vmatprep.subr.mxu1 %v31764_v56  ;;  %24461 = vmatprep.subr.mxu0 %v31764_v56  ;;  %v12510_v9 = vadd.f32 %v12509_v11, %v12336_v39 }
 0xf15   :  { %24456 = vmatprep.mubr.msk.f32.mxu1 %vm25601_vm1, %v31764_v56  ;;  %24463 = vmatprep.mubr.msk.f32.mxu0 %vm25601_vm1, %v31764_v56  ;;  %v29345_v20 = vpop.f32.mrf.mxu1 }
 0xf16   :  { %31818 = vst [vmem:[#allocation45_spill] sm:$0xff] %v29345_v20  ;;  %v12614_v3 = vpop.f32.mrf.mxu0 }
 0xf17   :  { %24455 = vmatpush3.xpose.msra.mxu1 %v13636_v17  ;;  %24462 = vmatpush3.xpose.msra.mxu0 %v13633_v5 }
 0xf18   :  { %24466 = vmatprep.subr.mxu1 %v31764_v56  ;;  %24473 = vmatprep.subr.mxu0 %v31764_v56  ;;  %v29349_v53 = vpop.f32.mrf.mxu0 }
 0xf19   :  { %31819 = vst [vmem:[#allocation47_spill] sm:$0xff] %v29349_v53  ;;  %v12728_v36 = vpop.f32.mrf.mxu1 }
 0xf1a   :  { %24457 = vmatmul.mubr.f32.vlgmr.msra.gmra.mxu1 %v29272_v7  ;;  %24464 = vmatmul.mubr.f32.vlgmr.msra.gmra.mxu0 %v29290_v61 }
 0xf1b   :  { %24467 = vmatpush3.xpose.msra.mxu1 %v29278_v48  ;;  %24474 = vmatpush3.xpose.msra.mxu0 %v13627_v25  ;;  %v29354_v54 = vpop.f32.mrf.mxu1 }
 0xf1c   :  { %31820 = vst [vmem:[#allocation49_spill] sm:$0xff] %v29354_v54  ;;  %24468 = vmatprep.subr.mxu1 %v31764_v56  ;;  %24475 = vmatprep.subr.mxu0 %v31764_v56  ;;  %v12622_v5 = vpop.f32.mrf.mxu0 }
 0xf1d   :  { %24470 = vmatprep.mubr.msk.f32.mxu1 %vm25601_vm1, %v31764_v56  ;;  %24477 = vmatprep.mubr.msk.f32.mxu0 %vm25601_vm1, %v31764_v56 }
 0xf1e   :  { %v29362_v52 = vpop.f32.mrf.mxu0 }
 0xf1f   :  { %31821 = vst [vmem:[#allocation23_spill] sm:$0xff] %v29362_v52  ;;  %24469 = vmatpush3.xpose.msra.mxu1 %v29296_v34  ;;  %24476 = vmatpush3.xpose.msra.mxu0 %v13634_v18  ;;  %v12737_v39 = vpop.f32.mrf.mxu1  ;;  %v12489_v18 = vadd.f32 %v29280_v44, %v29267_v50 }
 0xf20   :  { %24480 = vmatprep.subr.mxu1 %v31764_v56  ;;  %24487 = vmatprep.subr.mxu0 %v31764_v56 }
 0xf21   :  { %v29367_v25 = vpop.f32.mrf.mxu1  ;;  %v12615_v20 = vadd.f32 %v12614_v3, %v12489_v18 }
 0xf22   :  { %31822 = vst [vmem:[#allocation44_spill] sm:$0xff] %v29367_v25  ;;  %24471 = vmatmul.mubr.f32.vlgmr.msra.gmra.mxu1 %v31823_v31  ;;  %24478 = vmatmul.mubr.f32.vlgmr.msra.gmra.mxu0 %v29272_v7  ;;  %v12630_v11 = vpop.f32.mrf.mxu0  ;;  %v31837_v25 = vmov 0  }
 0xf23   :  { %24481 = vmatpush3.xpose.msra.mxu1 %v29278_v48  ;;  %24484 = vmatprep.mubr.msk.f32.mxu1 %vm25601_vm1, %v31764_v56  ;;  %v12631_v17 = vadd.f32 %v12630_v11, %v12503_v30  ;;  %v12496_v48 = vadd.f32 %v29306_v38, %v29294_v35  ;;  %v12729_v30 = vadd.f32 %v12728_v36, %v12615_v20 }
 0xf24   :  { %24482 = vmatprep.subr.mxu1 %v31764_v56  ;;  %v29378_v24 = vpop.f32.mrf.mxu0  ;;  %24491 = vmatprep.mubr.msk.f32.mxu0 %vm25601_vm1, %v31764_v56 }
 0xf25   :  { %31824 = vst [vmem:[#allocation46_spill] sm:$0xff] %v29378_v24  ;;  %v12746_v61 = vpop.f32.mrf.mxu1  ;;  %v12623_v11 = vadd.f32 %v12622_v5, %v12496_v48 }
 0xf26   :  { %v12747_v31 = vadd.f32 %v12746_v61, %v12631_v17 }
 0xf27   :  { %24483 = vmatpush3.xpose.msra.mxu1 %v29296_v34  ;;  %v29385_v19 = vpop.f32.mrf.mxu1  ;;  %v12738_v38 = vadd.f32 %v12737_v39, %v12623_v11 }
 0xf28   :  { %31825 = vst [vmem:[#allocation48_spill] sm:$0xff] %v29385_v19  ;;  %v12638_v54 = vpop.f32.mrf.mxu0  ;;  %24494 = vmatprep.subr.mxu1 %v31764_v56 }
 0xf29   :  { %v12639_v50 = vadd.f32 %v12638_v54, %v12510_v9 }
 0xf2a   :  { %24485 = vmatmul.mubr.f32.vlgmr.msra.gmra.mxu1 %v29272_v7  ;;  %v29389_v44 = vpop.f32.mrf.mxu0 }
 0xf2b   :  { %31826 = vst [vmem:[#allocation37_spill] sm:$0xff] %v29389_v44  ;;  %v12755_v24 = vpop.f32.mrf.mxu1  ;;  %24498 = vmatprep.mubr.msk.f32.mxu1 %vm25601_vm1, %v31764_v56 }
 0xf2c   :  { %v12756_v34 = vadd.f32 %v12755_v24, %v12639_v50 }
 0xf2d   :  { %v29393_v17 = vpop.f32.mrf.mxu1 }
 0xf2e   :  { %31827 = vst [vmem:[#allocation50_spill] sm:$0xff] %v29393_v17  ;;  %v12875_v35 = vpop.f32.mrf.mxu0 }
 0xf2f   :  { %v12876_v3 = vadd.f32 %v12875_v35, %v12729_v30 }
 0xf30   :  { %v29395_v18 = vpop.f32.mrf.mxu0  ;;  %v12984_v61 = vpop.f32.mrf.mxu1 }
 0xf31   :  { %31828 = vst [vmem:[#allocation52_spill] sm:$0xff] %v29395_v18  ;;  %v29397_v9 = vadd.f32 %v12984_v61, %v12876_v3 }
 0xf32   :  { %v12882_v7 = vpop.f32.mrf.mxu0  ;;  %v29399_v54 = vpop.f32.mrf.mxu1 }
 0xf33   :  { %31829 = vst [vmem:[#allocation51_spill] sm:$0xff] %v29399_v54  ;;  %v29402_v20 = vand.u32 4294901760, %v29397_v9  ;;  %v12883_v36 = vadd.f32 %v12882_v7, %v12738_v38 }
 0xf34   :  { %v12991_v5 = vpop.f32.mrf.mxu1  ;;  %v29404_v48 = vpop.f32.mrf.mxu0 }
 0xf35   :  { %31830 = vst [vmem:[#allocation53_spill] sm:$0xff] %v29404_v48  ;;  %v29408_v24 = vsub.f32 %v29397_v9, %v29402_v20  ;;  %v29410_v39 = vadd.f32 %v12991_v5, %v12883_v36  ;;  %v140_v48 = vld [vmem:[#allocation8] sm:$0x1] }
 0xf36   :  { %v12889_v50 = vpop.f32.mrf.mxu0  ;;  %v29412_v30 = vpop.f32.mrf.mxu1  ;;  %vm142_vm10 = vcmp.gt.f32.partialorder %v140_v48, 0.5 }
 0xf37   :  { %31831 = vst [vmem:[#allocation54_spill] sm:$0xff] %v29412_v30  ;;  %v29415_v11 = vand.u32 4294901760, %v29410_v39  ;;  %v12890_v35 = vadd.f32 %v12889_v50, %v12747_v31 }
 0xf38   :  { %v29418_v61 = vpop.f32.mrf.mxu0  ;;  %v12998_v38 = vpop.f32.mrf.mxu1 }
 0xf39   :  { %31832 = vst [vmem:[#allocation55_spill] sm:$0xff] %v29418_v61  ;;  %v29422_v7 = vsub.f32 %v29410_v39, %v29415_v11  ;;  %v29424_v19 = vadd.f32 %v12998_v38, %v12890_v35  ;;  %24488 = vmatpush3.msra.mxu0 %v29415_v11  ;;  %v31834_v61 = vand.u32 4294901760, %v29408_v24 }
 0xf3a   :  { %v12896_v36 = vpop.f32.mrf.mxu0  ;;  %v29427_v5 = vpop.f32.mrf.mxu1  ;;  %24489 = vmatprep.subr.mxu0 %v31764_v56 }
 0xf3b   :  { %31833 = vst [vmem:[#allocation56_spill] sm:$0xff] %v29427_v5  ;;  %v31554_v31 = vand.u32 4294901760, %v29422_v7  ;;  %v12897_v50 = vadd.f32 %v12896_v36, %v12756_v34  ;;  %24490 = vmatpush3.msra.mxu0 %v29402_v20  ;;  %v14124_v17 = vsub.f32 %v29408_v24, %v31834_v61 }
 0xf3c   :  { %v13005_v3 = vpop.f32.mrf.mxu1  ;;  %24501 = vmatprep.subr.mxu0 %v31764_v56  ;;  %v29443_v34 = vpop.f32.mrf.mxu0 }
 0xf3d   :  { %v29436_v35 = vadd.f32 %v13005_v3, %v12897_v50  ;;  %v14117_v38 = vsub.f32 %v29422_v7, %v31554_v31  ;;  %v14125_v44 = vand.u32 4294901760, %v14124_v17  ;;  %31835 = vst [vmem:[#allocation57_spill] sm:$0xff] %v29443_v34  ;;  %v31838_v34 = vld [vmem:[#allocation26_spill] sm:$0xff] }
 0xf3e   :  { %v29445_v54 = vpop.f32.mrf.mxu1 }
 0xf3f   :  { %v14118_v5 = vand.u32 4294901760, %v14117_v38  ;;  %31836 = vst [vmem:[#allocation58_spill] sm:$0xff] %v29445_v54 }
 0xf41   :  { %24495 = vmatpush3.msra.mxu1 %v14118_v5 }
 0xf42   :  { %24496 = vmatprep.subr.mxu1 %v31764_v56 }
 0xf43   :  { %24497 = vmatpush3.msra.mxu1 %v14125_v44  ;;  %v160_v44 = vsel %vm142_vm10, 1, %v31837_v25 }
 0xf44   :  { %24508 = vmatprep.subr.mxu1 %v31764_v56  ;;  %v165_v46 = vrot.slane %v160_v44, %v31838_v34 }
 0xf46   :  { %vm29449_vm11 = vcmp.eq.s32.totalorder %v165_v46, 1 }
 0xfba   :  { %v13124_v36 = vpop.f32.mrf.mxu0 }
 0xfbc   :  { %v24409_v61 = vpop.f32.mrf.mxu0 }
 0xfc2   :  { %v13205_v3 = vpop.f32.mrf.mxu1  ;;  %v13281_v50 = vpop.f32.mrf.mxu0 }
 0xfc3   :  { %v13206_v31 = vadd.f32 %v13205_v3, %v13124_v36 }
 0xfc4   :  { %v24416_v30 = vpop.f32.mrf.mxu1  ;;  %v24423_v18 = vpop.f32.mrf.mxu0 }
 0xfc5   :  { %v13282_v38 = vadd.f32 %v13281_v50, %v13206_v31  ;;  %v141_v50 = vld [vmem:[#allocation8 + $0x1] sm:$0x1] }
 0xfc6   :  { %vm143_vm13 = vcmp.gt.f32.partialorder %v141_v50, 0.5 }
 0xfca   :  { %v13356_v17 = vpop.f32.mrf.mxu1  ;;  %v13433_v5 = vpop.f32.mrf.mxu0 }
 0xfcb   :  { %v13357_v47 = vadd.f32 %v13356_v17, %v13282_v38 }
 0xfcc   :  { %v24430_v53 = vpop.f32.mrf.mxu1  ;;  %v24437_v52 = vpop.f32.mrf.mxu0 }
 0xfcd   :  { %v13434_v61 = vadd.f32 %v13433_v5, %v13357_v47 }
 0xfd2   :  { %v13506_v10 = vpop.f32.mrf.mxu1  ;;  %v13592_v54 = vpop.f32.mrf.mxu0 }
 0xfd3   :  { %v13507_v18 = vadd.f32 %v13506_v10, %v13434_v61  ;;  %v161_v10 = vsel %vm143_vm13, 1, %v31837_v25 }
 0xfd4   :  { %v24444_v48 = vpop.f32.mrf.mxu1  ;;  %v24451_v30 = vpop.f32.mrf.mxu0 }
 0xfd5   :  { %v13978_v31 = vsel %vm29449_vm11, -1e+09, %v13507_v18  ;;  %v169_v18 = vrot.slane %v161_v10, %v31838_v34 }
 0xfd6   :  { %v13981_v53 = vsel %vm13980_vm12, %v13978_v31, -inf }
 0xfd7   :  { %13982 = vmax.xlane.f32.xlu0 %v13981_v53  ;;  %vm29458_vm14 = vcmp.eq.s32.totalorder %v169_v18, 1 }
 0xfda   :  { %v13673_v52 = vpop.f32.mrf.mxu1  ;;  %v13749_v36 = vpop.f32.mrf.mxu0 }
 0xfdb   :  { %v13674_v17 = vadd.f32 %v13673_v52, %v13592_v54 }
 0xfdc   :  { %v24458_v3 = vpop.f32.mrf.mxu1  ;;  %v24465_v47 = vpop.f32.mrf.mxu0 }
 0xfdd   :  { %v13750_v38 = vadd.f32 %v13749_v36, %v13674_v17 }
 0xfe2   :  { %v13824_v46 = vpop.f32.mrf.mxu1  ;;  %v13901_v5 = vpop.f32.mrf.mxu0 }
 0xfe3   :  { %v13825_v48 = vadd.f32 %v13824_v46, %v13750_v38 }
 0xfe4   :  { %v24472_v44 = vpop.f32.mrf.mxu1  ;;  %v24479_v61 = vpop.f32.mrf.mxu0 }
 0xfe5   :  { %v13902_v30 = vadd.f32 %v13901_v5, %v13825_v48 }
 0xfea   :  { %v13974_v16 = vpop.f32.mrf.mxu1 }
 0xfeb   :  { %v13975_v3 = vadd.f32 %v13974_v16, %v13902_v30 }
 0xfec   :  { %v24486_v47 = vpop.f32.mrf.mxu1 }
 0xfed   :  { %v13979_v54 = vsel %vm29458_vm14, -1e+09, %v13975_v3 }
 0xfee   :  { %v13984_v52 = vsel %vm13980_vm12, %v13979_v54, -inf }
 0xfef   :  { %13985 = vmax.xlane.f32.xlu1 %v13984_v52 }
0x1060   :  { %v13983_v25 = vpop.xlane.xlu0 %13982 }
0x1061   :  { %v13987_v36 = vsub.f32 %v13978_v31, %v13983_v25  ;;  %v29483_v31 = vand.u32 4294901760, %v29436_v35 }
0x1063   :  { %v13989_v50 = vmul.f32 1.442695, %v13987_v36 }
0x1065   :  { %25356 = vpow2.f32 %v13989_v50 }
0x1072   :  { %v25357_v17 = vpop.eup %25356 }
0x1073   :  { %v13993_v34 = vsel %vm13980_vm12, %v25357_v17, 0.0 }
0x1074   :  { %13994 = vadd.xlane.f32.xlu0 %v13993_v34 }
0x1078   :  { %v13986_v46 = vpop.xlane.xlu1 %13985 }
0x1079   :  { %v13988_v5 = vsub.f32 %v13979_v54, %v13986_v46  ;;  %v31843_v46 = vand.u32 4294901760, %v29422_v7 }
0x107b   :  { %v13991_v38 = vmul.f32 1.442695, %v13988_v5 }
0x107d   :  { %25358 = vpow2.f32 %v13991_v38  ;;  %v31844_v38 = vand.u32 4294901760, %v29408_v24 }
0x108a   :  { %v29466_v16 = vpop.eup %25358  ;;  %14933 = vrot.lane.b32.xlu0 %v29221_v45, %s25603_s4 }
0x108b   :  { %v13996_v10 = vsel %vm13980_vm12, %v29466_v16, 0.0 }
0x108c   :  { %13997 = vadd.xlane.f32.xlu1 %v13996_v10 }
0x108e   :  { %15402 = vrot.lane.b32.xlu0 %v29263_v59, %s25603_s4  ;;  %v29486_v59 = vand.u32 4294901760, %v29424_v19 }
0x109d   :  { %14931 = vrot.lane.b32.xlu1 %v29208_v57, %s25603_s4  ;;  %v29490_v57 = vsub.f32 %v29436_v35, %v29483_v31 }
0x109f   :  { %v14578_v48 = vand.u32 4294901760, %v29490_v57 }
0x10a1   :  { %14929 = vrot.lane.b32.xlu1 %v29196_v22, %s25603_s4  ;;  %v14579_v52 = vsub.f32 %v29490_v57, %v14578_v48 }
0x10a3   :  { %v14580_v50 = vand.u32 4294901760, %v14579_v52 }
0x10a5   :  { %15404 = vrot.lane.b32.xlu1 %v29253_v12, %s25603_s4 }
0x10a9   :  { %15400 = vrot.lane.b32.xlu1 %v29250_v33, %s25603_s4  ;;  %v29496_v33 = vsub.f32 %v29424_v19, %v29486_v59 }
0x10ab   :  { %v14585_v30 = vand.u32 4294901760, %v29496_v33 }
0x10ad   :  { %v14586_v36 = vsub.f32 %v29496_v33, %v14585_v30 }
0x10fd   :  { %v13995_v45 = vpop.xlane.xlu0 %13994 }
0x10fe   :  { %25360 = vrcp.f32 %v13995_v45 }
0x110b   :  { %v25361_v44 = vpop.eup %25360 }
0x110c   :  { %v14000_v61 = vmul.f32 %v25361_v44, %v25357_v17  ;;  %v14587_v17 = vand.u32 4294901760, %v14586_v36 }
0x110e   :  { %14003 = vst.msk [vmem:[#allocation16] sm:$0xff] %vm13980_vm12, %v14000_v61  ;;  %v14006_v22 = vsel %vm13980_vm12, %v14000_v61, 0 }
0x110f   :  { %v14075_v12 = vand.u32 4294901760, %v14006_v22 }
0x1111   :  { %v14076_v18 = vsub.f32 %v14006_v22, %v14075_v12  ;;  %24499 = vmatmul.mubr.f32.vlgmr.msra.gmra.mxu1 %v14075_v12 }
0x1112   :  { %24509 = vmatpush3.msra.mxu1 %v29415_v11  ;;  %24512 = vmatprep.mubr.msk.f32.mxu1 %vm25601_vm1, %v31764_v56 }
0x1113   :  { %24510 = vmatprep.subr.mxu1 %v31764_v56  ;;  %v14077_v3 = vand.u32 4294901760, %v14076_v18 }
0x1114   :  { %24511 = vmatpush3.msra.mxu1 %v29402_v20 }
0x1115   :  { %24522 = vmatprep.subr.mxu1 %v31764_v56  ;;  %24513 = vmatmul.mubr.f32.vlgmr.msra.gmra.mxu1 %v14077_v3  ;;  %v13998_v47 = vpop.xlane.xlu1 %13997  ;;  %v14078_v54 = vsub.f32 %v14076_v18, %v14077_v3 }
0x1116   :  { %24523 = vmatpush3.msra.mxu1 %v29415_v11  ;;  %25362 = vrcp.f32 %v13998_v47  ;;  %24526 = vmatprep.mubr.msk.f32.mxu1 %vm25601_vm1, %v31764_v56  ;;  %v14934_v11 = vpop.permute.xlu0 %14933 }
0x1117   :  { %24524 = vmatprep.subr.mxu1 %v31764_v56  ;;  %v14079_v25 = vand.u32 4294901760, %v14078_v54 }
0x1118   :  { %24525 = vmatpush3.msra.mxu1 %v29402_v20  ;;  %v14939_v20 = vsel %vm220_vm0, %v14934_v11, 0 }
0x1119   :  { %24536 = vmatprep.subr.mxu1 %v31764_v56  ;;  %24492 = vmatmul.mubr.f32.vlgmr.msra.gmra.mxu0 %v14079_v25  ;;  %v14932_v34 = vpop.permute.xlu1 %14931  ;;  %v29533_v5 = vand.u32 4294901760, %v14939_v20 }
0x111a   :  { %24502 = vmatpush3.msra.mxu0 %v29422_v7  ;;  %24527 = vmatmul.mubr.f32.vlgmr.msra.gmra.mxu1 %v14075_v12  ;;  %v14937_v10 = vsel %vm220_vm0, %v14932_v34, 0 }
0x111b   :  { %24537 = vmatpush3.msra.mxu1 %v14580_v50  ;;  %24503 = vmatprep.subr.mxu0 %v31764_v56  ;;  %v29548_v44 = vand.u32 4294901760, %v14937_v10 }
0x111c   :  { %24538 = vmatprep.subr.mxu1 %v31764_v56  ;;  %24504 = vmatpush3.msra.mxu0 %v29408_v24  ;;  %v29546_v24 = vsub.f32 %v14939_v20, %v29533_v5 }
0x111d   :  { %24539 = vmatpush3.msra.mxu1 %v14587_v17  ;;  %24505 = vmatprep.mubr.msk.f32.mxu0 %vm25601_vm1, %v31764_v56  ;;  %v14930_v3 = vpop.permute.xlu1 %14929 }
0x111e   :  { %24515 = vmatprep.subr.mxu0 %v31764_v56  ;;  %24506 = vmatmul.mubr.f32.vlgmr.msra.gmra.mxu0 %v14076_v18  ;;  %v14935_v36 = vsel %vm220_vm0, %v14930_v3, 0 }
0x111f   :  { %24516 = vmatpush3.msra.mxu0 %v31843_v46  ;;  %24519 = vmatprep.mubr.msk.f32.mxu0 %vm25601_vm1, %v31764_v56  ;;  %v29577_v20 = vand.u32 4294901760, %v14935_v36 }
0x1120   :  { %24517 = vmatprep.subr.mxu0 %v31764_v56  ;;  %24540 = vmatprep.mubr.msk.f32.mxu1 %vm25601_vm1, %v31764_v56 }
0x1121   :  { %24518 = vmatpush3.msra.mxu0 %v31844_v38  ;;  %24550 = vmatprep.subr.mxu1 %v31764_v56  ;;  %v15009_v34 = vsub.f32 %v14935_v36, %v29577_v20  ;;  %v15403_v38 = vpop.permute.xlu0 %15402 }
0x1122   :  { %24529 = vmatprep.subr.mxu0 %v31764_v56  ;;  %24520 = vmatmul.mubr.f32.vlgmr.msra.gmra.mxu0 %v14075_v12  ;;  %v15049_v12 = vand.u32 4294901760, %v29546_v24 }
0x1123   :  { %v25363_v7 = vpop.eup %25362  ;;  %24530 = vmatpush3.msra.mxu0 %v29483_v31  ;;  %24533 = vmatprep.mubr.msk.f32.mxu0 %vm25601_vm1, %v31764_v56 }
0x1124   :  { %v14002_v45 = vmul.f32 %v25363_v7, %v29466_v16  ;;  %24531 = vmatprep.subr.mxu0 %v31764_v56  ;;  %v29556_v16 = vsub.f32 %v14937_v10, %v29548_v44  ;;  %v15050_v54 = vsub.f32 %v29546_v24, %v15049_v12  ;;  %v15010_v10 = vand.u32 4294901760, %v15009_v34 }
0x1125   :  { %24532 = vmatpush3.msra.mxu0 %v29486_v59 }
0x1126   :  { %14004 = vst.msk [vmem:[#allocation16 + $0x8] sm:$0xff] %vm13980_vm12, %v14002_v45  ;;  %v14468_v61 = vsel %vm13980_vm12, %v14002_v45, 0  ;;  %24543 = vmatprep.subr.mxu0 %v31764_v56  ;;  %v15056_v52 = vand.u32 4294901760, %v29556_v16  ;;  %v15051_v11 = vand.u32 4294901760, %v15050_v54  ;;  %v15408_v45 = vsel %vm220_vm0, %v15403_v38, 0 }
0x1127   :  { %v14537_v22 = vand.u32 4294901760, %v14468_v61 }
0x1128   :  { %v15057_v17 = vsub.f32 %v29556_v16, %v15056_v52 }
0x1129   :  { %v14538_v18 = vsub.f32 %v14468_v61, %v14537_v22  ;;  %24541 = vmatmul.mubr.f32.vlgmr.msra.gmra.mxu1 %v14537_v22 }
0x112a   :  { %24551 = vmatpush3.msra.mxu1 %v29483_v31  ;;  %24554 = vmatprep.mubr.msk.f32.mxu1 %vm25601_vm1, %v31764_v56 }
0x112b   :  { %24552 = vmatprep.subr.mxu1 %v31764_v56  ;;  %v14539_v47 = vand.u32 4294901760, %v14538_v18 }
0x112c   :  { %24553 = vmatpush3.msra.mxu1 %v29486_v59 }
0x112d   :  { %24564 = vmatprep.subr.mxu1 %v31764_v56  ;;  %24555 = vmatmul.mubr.f32.vlgmr.msra.gmra.mxu1 %v14539_v47  ;;  %v14540_v25 = vsub.f32 %v14538_v18, %v14539_v47 }
0x112e   :  { %24565 = vmatpush3.msra.mxu1 %v29483_v31  ;;  %24568 = vmatprep.mubr.msk.f32.mxu1 %vm25601_vm1, %v31764_v56  ;;  %v15405_v31 = vpop.permute.xlu1 %15404 }
0x112f   :  { %24566 = vmatprep.subr.mxu1 %v31764_v56  ;;  %v14541_v50 = vand.u32 4294901760, %v14540_v25  ;;  %v15410_v46 = vsel %vm220_vm0, %v15405_v31, 0 }
0x1130   :  { %24567 = vmatpush3.msra.mxu1 %v29486_v59  ;;  %v15058_v59 = vand.u32 4294901760, %v15057_v17  ;;  %v29596_v7 = vand.u32 4294901760, %v15410_v46 }
0x1131   :  { %24578 = vmatprep.subr.mxu1 %v31764_v56  ;;  %24534 = vmatmul.mubr.f32.vlgmr.msra.gmra.mxu0 %v14541_v50 }
0x1132   :  { %24544 = vmatpush3.msra.mxu0 %v29490_v57  ;;  %24569 = vmatmul.mubr.f32.vlgmr.msra.gmra.mxu1 %v14537_v22  ;;  %v29607_v57 = vand.u32 4294901760, %v15408_v45 }
0x1133   :  { %24579 = vmatpush3.xpose.msra.mxu1 %v15051_v11  ;;  %24545 = vmatprep.subr.mxu0 %v31764_v56 }
0x1134   :  { %24546 = vmatpush3.msra.mxu0 %v29496_v33  ;;  %24547 = vmatprep.mubr.msk.f32.mxu0 %vm25601_vm1, %v31764_v56  ;;  %v29610_v33 = vsub.f32 %v15410_v46, %v29596_v7 }
0x1135   :  { %24557 = vmatprep.subr.mxu0 %v31764_v56  ;;  %24580 = vmatprep.subr.mxu1 %v31764_v56 }
0x1136   :  { %24548 = vmatmul.mubr.f32.vlgmr.msra.gmra.mxu0 %v14538_v18  ;;  %24582 = vmatprep.mubr.msk.f32.mxu1 %vm25601_vm1, %v31764_v56  ;;  %v15401_v18 = vpop.permute.xlu1 %15400 }
0x1137   :  { %24558 = vmatpush3.msra.mxu0 %v14578_v48  ;;  %24581 = vmatpush3.xpose.msra.mxu1 %v15058_v59  ;;  %v15011_v48 = vsub.f32 %v15009_v34, %v15010_v10  ;;  %v15406_v54 = vsel %vm220_vm0, %v15401_v18, 0 }
0x1138   :  { %24559 = vmatprep.subr.mxu0 %v31764_v56  ;;  %24561 = vmatprep.mubr.msk.f32.mxu0 %vm25601_vm1, %v31764_v56  ;;  %v15479_v36 = vand.u32 4294901760, %v15406_v54 }
0x1139   :  { %24560 = vmatpush3.msra.mxu0 %v14585_v30  ;;  %24592 = vmatprep.subr.mxu1 %v31764_v56  ;;  %v29621_v30 = vsub.f32 %v15408_v45, %v29607_v57  ;;  %v15012_v61 = vand.u32 4294901760, %v15011_v48 }
0x113a   :  { %24571 = vmatprep.subr.mxu0 %v31764_v56  ;;  %24583 = vmatmul.mubr.f32.vlgmr.msra.gmra.mxu1 %v29577_v20  ;;  %v15480_v50 = vsub.f32 %v15406_v54, %v15479_v36 }
0x113b   :  { %24562 = vmatmul.mubr.f32.vlgmr.msra.gmra.mxu0 %v14537_v22  ;;  %24593 = vmatpush3.xpose.msra.mxu1 %v29533_v5  ;;  %v15520_v22 = vand.u32 4294901760, %v29610_v33  ;;  %v15527_v3 = vand.u32 4294901760, %v29621_v30 }
0x113c   :  { %24572 = vmatpush3.xpose.msra.mxu0 %v29533_v5  ;;  %24594 = vmatprep.subr.mxu1 %v31764_v56 }
0x113d   :  { %24573 = vmatprep.subr.mxu0 %v31764_v56  ;;  %24575 = vmatprep.mubr.msk.f32.mxu0 %vm25601_vm1, %v31764_v56  ;;  %v15521_v47 = vsub.f32 %v29610_v33, %v15520_v22 }
0x113e   :  { %24596 = vmatprep.mubr.msk.f32.mxu1 %vm25601_vm1, %v31764_v56 }
0x113f   :  { %24595 = vmatpush3.xpose.msra.mxu1 %v29548_v44  ;;  %v15522_v25 = vand.u32 4294901760, %v15521_v47 }
0x1140   :  { %24574 = vmatpush3.xpose.msra.mxu0 %v29548_v44  ;;  %24606 = vmatprep.subr.mxu1 %v31764_v56 }
0x1141   :  { %24585 = vmatprep.subr.mxu0 %v31764_v56 }
0x1142   :  { %24597 = vmatmul.mubr.f32.vlgmr.msra.gmra.mxu1 %v15010_v10 }
0x1143   :  { %24576 = vmatmul.mubr.f32.vlgmr.msra.gmra.mxu0 %v15012_v61  ;;  %24607 = vmatpush3.xpose.msra.mxu1 %v29533_v5  ;;  %v15528_v5 = vsub.f32 %v29621_v30, %v15527_v3 }
0x1144   :  { %24586 = vmatpush3.xpose.msra.mxu0 %v29546_v24  ;;  %24608 = vmatprep.subr.mxu1 %v31764_v56  ;;  %v15481_v24 = vand.u32 4294901760, %v15480_v50 }
0x1145   :  { %24587 = vmatprep.subr.mxu0 %v31764_v56  ;;  %24589 = vmatprep.mubr.msk.f32.mxu0 %vm25601_vm1, %v31764_v56 }
0x1146   :  { %24610 = vmatprep.mubr.msk.f32.mxu1 %vm25601_vm1, %v31764_v56 }
0x1147   :  { %24609 = vmatpush3.xpose.msra.mxu1 %v29548_v44  ;;  %v15529_v44 = vand.u32 4294901760, %v15528_v5 }
0x1148   :  { %24588 = vmatpush3.xpose.msra.mxu0 %v29556_v16  ;;  %24620 = vmatprep.subr.mxu1 %v31764_v56 }
0x1149   :  { %24599 = vmatprep.subr.mxu0 %v31764_v56 }
0x114a   :  { %24611 = vmatmul.mubr.f32.vlgmr.msra.gmra.mxu1 %v29577_v20 }
0x114b   :  { %24590 = vmatmul.mubr.f32.vlgmr.msra.gmra.mxu0 %v15009_v34  ;;  %24621 = vmatpush3.xpose.msra.mxu1 %v15522_v25 }
0x114c   :  { %24600 = vmatpush3.xpose.msra.mxu0 %v15049_v12  ;;  %24622 = vmatprep.subr.mxu1 %v31764_v56  ;;  %v15482_v12 = vsub.f32 %v15480_v50, %v15481_v24 }
0x114d   :  { %24601 = vmatprep.subr.mxu0 %v31764_v56  ;;  %24603 = vmatprep.mubr.msk.f32.mxu0 %vm25601_vm1, %v31764_v56 }
0x114e   :  { %24624 = vmatprep.mubr.msk.f32.mxu1 %vm25601_vm1, %v31764_v56  ;;  %v15483_v16 = vand.u32 4294901760, %v15482_v12 }
0x114f   :  { %24623 = vmatpush3.xpose.msra.mxu1 %v15529_v44 }
0x1150   :  { %24602 = vmatpush3.xpose.msra.mxu0 %v15056_v52  ;;  %24634 = vmatprep.subr.mxu1 %v31764_v56 }
0x1151   :  { %24613 = vmatprep.subr.mxu0 %v31764_v56 }
0x1152   :  { %24625 = vmatmul.mubr.f32.vlgmr.msra.gmra.mxu1 %v15479_v36 }
0x1153   :  { %24604 = vmatmul.mubr.f32.vlgmr.msra.gmra.mxu0 %v29577_v20  ;;  %24635 = vmatpush3.xpose.msra.mxu1 %v29596_v7 }
0x1154   :  { %24614 = vmatpush3.xpose.msra.mxu0 %v29596_v7  ;;  %24636 = vmatprep.subr.mxu1 %v31764_v56 }
0x1155   :  { %24615 = vmatprep.subr.mxu0 %v31764_v56  ;;  %24617 = vmatprep.mubr.msk.f32.mxu0 %vm25601_vm1, %v31764_v56 }
0x1156   :  { %24638 = vmatprep.mubr.msk.f32.mxu1 %vm25601_vm1, %v31764_v56 }
0x1157   :  { %24637 = vmatpush3.xpose.msra.mxu1 %v29607_v57 }
0x1158   :  { %24616 = vmatpush3.xpose.msra.mxu0 %v29607_v57  ;;  %24648 = vmatprep.subr.mxu1 %v31764_v56 }
0x1159   :  { %24627 = vmatprep.subr.mxu0 %v31764_v56 }
0x115a   :  { %24639 = vmatmul.mubr.f32.vlgmr.msra.gmra.mxu1 %v15481_v24 }
0x115b   :  { %24618 = vmatmul.mubr.f32.vlgmr.msra.gmra.mxu0 %v15483_v16  ;;  %24649 = vmatpush3.xpose.msra.mxu1 %v29596_v7 }
0x115c   :  { %24628 = vmatpush3.xpose.msra.mxu0 %v29610_v33  ;;  %24650 = vmatprep.subr.mxu1 %v31764_v56 }
0x115d   :  { %24629 = vmatprep.subr.mxu0 %v31764_v56  ;;  %24631 = vmatprep.mubr.msk.f32.mxu0 %vm25601_vm1, %v31764_v56 }
0x115e   :  { %24652 = vmatprep.mubr.msk.f32.mxu1 %vm25601_vm1, %v31764_v56 }
0x115f   :  { %24651 = vmatpush3.xpose.msra.mxu1 %v29607_v57 }
0x1160   :  { %24630 = vmatpush3.xpose.msra.mxu0 %v29621_v30  ;;  %24662 = vmatprep.subr.mxu1 %v31764_v56 }
0x1161   :  { %24641 = vmatprep.subr.mxu0 %v31764_v56 }
0x1162   :  { %24653 = vmatmul.mubr.f32.vlgmr.msra.gmra.mxu1 %v15479_v36 }
0x1163   :  { %24632 = vmatmul.mubr.f32.vlgmr.msra.gmra.mxu0 %v15480_v50  ;;  %24666 = vmatprep.mubr.msk.f32.mxu1 %vm25601_vm1, %v31764_v56 }
0x1164   :  { %24642 = vmatpush3.xpose.msra.mxu0 %v15520_v22  ;;  %24645 = vmatprep.mubr.msk.f32.mxu0 %vm25601_vm1, %v31764_v56 }
0x1165   :  { %24643 = vmatprep.subr.mxu0 %v31764_v56 }
0x1168   :  { %24644 = vmatpush3.xpose.msra.mxu0 %v15527_v3 }
0x1169   :  { %24655 = vmatprep.subr.mxu0 %v31764_v56 }
0x116b   :  { %24646 = vmatmul.mubr.f32.vlgmr.msra.gmra.mxu0 %v15479_v36 }
0x116c   :  { %24659 = vmatprep.mubr.msk.f32.mxu0 %vm25601_vm1, %v31764_v56 }
0x11d1   :  { %v14162_v52 = vpop.f32.mrf.mxu1 }
0x11d3   :  { %v24500_v11 = vpop.f32.mrf.mxu1 }
0x11d5   :  { %v14313_v17 = vpop.f32.mrf.mxu1 }
0x11d7   :  { %v24514_v20 = vpop.f32.mrf.mxu1 }
0x11d9   :  { %v14081_v31 = vpop.f32.mrf.mxu0 }
0x11da   :  { %v14163_v59 = vadd.f32 %v14162_v52, %v14081_v31  ;;  %v14463_v34 = vpop.f32.mrf.mxu1 }
0x11db   :  { %v24493_v46 = vpop.f32.mrf.mxu0 }
0x11dc   :  { %v24528_v38 = vpop.f32.mrf.mxu1 }
0x11de   :  { %v14238_v10 = vpop.f32.mrf.mxu0 }
0x11df   :  { %v14239_v7 = vadd.f32 %v14238_v10, %v14163_v59 }
0x11e0   :  { %v24507_v45 = vpop.f32.mrf.mxu0 }
0x11e1   :  { %v14314_v57 = vadd.f32 %v14313_v17, %v14239_v7 }
0x11e2   :  { %v14390_v48 = vpop.f32.mrf.mxu0 }
0x11e3   :  { %v14391_v33 = vadd.f32 %v14390_v48, %v14314_v57 }
0x11e4   :  { %v24521_v30 = vpop.f32.mrf.mxu0 }
0x11e5   :  { %v29691_v61 = vadd.f32 %v14463_v34, %v14391_v33 }
0x11e9   :  { %v14624_v22 = vpop.f32.mrf.mxu1 }
0x11eb   :  { %v24542_v18 = vpop.f32.mrf.mxu1 }
0x11ed   :  { %v14775_v3 = vpop.f32.mrf.mxu1 }
0x11ef   :  { %v24556_v47 = vpop.f32.mrf.mxu1 }
0x11f1   :  { %v14543_v54 = vpop.f32.mrf.mxu0 }
0x11f2   :  { %v14625_v5 = vadd.f32 %v14624_v22, %v14543_v54  ;;  %v14925_v25 = vpop.f32.mrf.mxu1 }
0x11f3   :  { %v24535_v36 = vpop.f32.mrf.mxu0 }
0x11f4   :  { %v24570_v44 = vpop.f32.mrf.mxu1 }
0x11f6   :  { %v14700_v50 = vpop.f32.mrf.mxu0 }
0x11f7   :  { %v14701_v24 = vadd.f32 %v14700_v50, %v14625_v5 }
0x11f8   :  { %v24549_v12 = vpop.f32.mrf.mxu0 }
0x11f9   :  { %v14776_v16 = vadd.f32 %v14775_v3, %v14701_v24 }
0x11fa   :  { %v15095_v52 = vpop.f32.mrf.mxu1 }
0x11fb   :  { %v14852_v11 = vpop.f32.mrf.mxu0 }
0x11fc   :  { %v14853_v17 = vadd.f32 %v14852_v11, %v14776_v16  ;;  %v24584_v20 = vpop.f32.mrf.mxu1 }
0x11fd   :  { %v24563_v31 = vpop.f32.mrf.mxu0 }
0x11fe   :  { %v29693_v59 = vadd.f32 %v14925_v25, %v14853_v17 }
0x1202   :  { %v15246_v34 = vpop.f32.mrf.mxu1 }
0x1203   :  { %v15014_v46 = vpop.f32.mrf.mxu0 }
0x1204   :  { %v24598_v38 = vpop.f32.mrf.mxu1  ;;  %v15096_v57 = vadd.f32 %v15095_v52, %v15014_v46 }
0x1205   :  { %v24577_v10 = vpop.f32.mrf.mxu0 }
0x120a   :  { %v15396_v7 = vpop.f32.mrf.mxu1 }
0x120b   :  { %v15171_v45 = vpop.f32.mrf.mxu0 }
0x120c   :  { %v24612_v48 = vpop.f32.mrf.mxu1  ;;  %v15172_v30 = vadd.f32 %v15171_v45, %v15096_v57 }
0x120d   :  { %v24591_v33 = vpop.f32.mrf.mxu0 }
0x120e   :  { %v15247_v22 = vadd.f32 %v15246_v34, %v15172_v30 }
0x1212   :  { %v15566_v18 = vpop.f32.mrf.mxu1 }
0x1213   :  { %v15323_v3 = vpop.f32.mrf.mxu0 }
0x1214   :  { %v15324_v47 = vadd.f32 %v15323_v3, %v15247_v22  ;;  %v24626_v54 = vpop.f32.mrf.mxu1 }
0x1215   :  { %v24605_v5 = vpop.f32.mrf.mxu0 }
0x1216   :  { %v15397_v36 = vadd.f32 %v15396_v7, %v15324_v47 }
0x1218   :  { %v15871_v25 = vsel %vm29449_vm11, -1e+09, %v15397_v36 }
0x1219   :  { %v15873_v44 = vsel %vm13980_vm12, %v15871_v25, -inf }
0x121a   :  { %15874 = vmax.xlane.f32.xlu0 %v15873_v44  ;;  %v15717_v50 = vpop.f32.mrf.mxu1 }
0x121b   :  { %v15485_v24 = vpop.f32.mrf.mxu0 }
0x121c   :  { %v24640_v12 = vpop.f32.mrf.mxu1  ;;  %v15567_v17 = vadd.f32 %v15566_v18, %v15485_v24 }
0x121d   :  { %v24619_v16 = vpop.f32.mrf.mxu0 }
0x1222   :  { %v15867_v52 = vpop.f32.mrf.mxu1 }
0x1223   :  { %v15642_v11 = vpop.f32.mrf.mxu0 }
0x1224   :  { %v24654_v20 = vpop.f32.mrf.mxu1  ;;  %v15643_v34 = vadd.f32 %v15642_v11, %v15567_v17 }
0x1225   :  { %v24633_v31 = vpop.f32.mrf.mxu0 }
0x1226   :  { %v15718_v46 = vadd.f32 %v15717_v50, %v15643_v34 }
0x122b   :  { %v15794_v38 = vpop.f32.mrf.mxu0 }
0x122c   :  { %v15795_v10 = vadd.f32 %v15794_v38, %v15718_v46  ;;  %v10931_v46 = vadd.f32 %v29136_v23, %v29138_v27 }
0x122d   :  { %v24647_v7 = vpop.f32.mrf.mxu0 }
0x122e   :  { %v15868_v45 = vadd.f32 %v15867_v52, %v15795_v10  ;;  %v11704_v7 = vadd.f32 %v29172_v0, %v29170_v13 }
0x1230   :  { %v15872_v57 = vsel %vm29458_vm14, -1e+09, %v15868_v45 }
0x1231   :  { %v15876_v48 = vsel %vm13980_vm12, %v15872_v57, -inf }
0x1232   :  { %15877 = vmax.xlane.f32.xlu1 %v15876_v48 }
0x1243   :  { %15900 = vrot.lane.b32.xlu1 %v29397_v9, %s25603_s4 }
0x1247   :  { %16372 = vrot.lane.b32.xlu1 %v29436_v35, %s25603_s4 }
0x124b   :  { %16370 = vrot.lane.b32.xlu1 %v29424_v19, %s25603_s4 }
0x12a3   :  { %v15875_v33 = vpop.xlane.xlu0 %15874 }
0x12a4   :  { %v15879_v30 = vsub.f32 %v15871_v25, %v15875_v33  ;;  %v11831_v33 = vadd.f32 %v29188_v55, %v11704_v7 }
0x12a6   :  { %v15881_v22 = vmul.f32 1.442695, %v15879_v30 }
0x12a8   :  { %25364 = vpow2.f32 %v15881_v22 }
0x12b5   :  { %v25365_v18 = vpop.eup %25364 }
0x12b6   :  { %v15885_v3 = vsel %vm13980_vm12, %v25365_v18, 0.0 }
0x12b7   :  { %15886 = vadd.xlane.f32.xlu0 %v15885_v3 }
0x12bb   :  { %v15878_v47 = vpop.xlane.xlu1 %15877 }
0x12bc   :  { %v15880_v54 = vsub.f32 %v15872_v57, %v15878_v47  ;;  %v11043_v57 = vadd.f32 %v29144_v37, %v10931_v46  ;;  %v11697_v37 = vadd.f32 %v29168_v26, %v29166_v42  ;;  %v11946_v47 = vadd.f32 %v29190_v40, %v11831_v33  ;;  %v31847_v33 = vld [vmem:[#allocation27_spill] sm:$0xff] }
0x12be   :  { %v15883_v5 = vmul.f32 1.442695, %v15880_v54  ;;  %v11141_v13 = vadd.f32 %v29146_v62, %v11043_v57  ;;  %v11823_v3 = vadd.f32 %v29184_v63, %v11697_v37  ;;  %v31846_v57 = vld [vmem:[#allocation29_spill] sm:$0xff]  ;;  %v31849_v37 = vld [vmem:[#allocation36_spill] sm:$0xff] }
0x12bf   :  { %v15901_v24 = vpop.permute.xlu1 %15900 }
0x12c0   :  { %25366 = vpow2.f32 %v15883_v5  ;;  %v29718_v16 = vand.u32 4294901760, %v15901_v24  ;;  %v11270_v54 = vadd.f32 %v29154_v21, %v11141_v13  ;;  %v12091_v5 = vadd.f32 %v29219_v51, %v11946_v47 }
0x12c1   :  { %v11937_v40 = vadd.f32 %v29186_v41, %v11823_v3  ;;  %v31850_v3 = vld [vmem:[#allocation35_spill] sm:$0xff] }
0x12c2   :  { %v11365_v51 = vadd.f32 %v29156_v8, %v11270_v54  ;;  %v31851_v54 = vld [vmem:[#allocation39_spill] sm:$0xff] }
0x12c3   :  { %v16373_v17 = vpop.permute.xlu1 %16372 }
0x12c4   :  { %v29738_v27 = vand.u32 4294901760, %v16373_v17 }
0x12c6   :  { %v29754_v26 = vsub.f32 %v16373_v17, %v29738_v27 }
0x12c7   :  { %v16371_v30 = vpop.permute.xlu1 %16370 }
0x12c8   :  { %v29746_v0 = vand.u32 4294901760, %v16371_v30 }
0x12ca   :  { %v29760_v63 = vsub.f32 %v16371_v30, %v29746_v0 }
0x12cc   :  { %v16494_v8 = vand.u32 4294901760, %v29760_v63 }
0x12cd   :  { %v25367_v36 = vpop.eup %25366 }
0x12ce   :  { %v15888_v9 = vsel %vm13980_vm12, %v25367_v36, 0.0 }
0x12cf   :  { %15889 = vadd.xlane.f32.xlu0 %v15888_v9  ;;  %v16487_v9 = vand.u32 4294901760, %v29754_v26 }
0x12e5   :  { %15902 = vrot.lane.b32.xlu0 %v29410_v39, %s25603_s4  ;;  %v16023_v39 = vsub.f32 %v15901_v24, %v29718_v16 }
0x12e7   :  { %v16024_v38 = vand.u32 4294901760, %v16023_v39 }
0x12e9   :  { %v16025_v23 = vsub.f32 %v16023_v39, %v16024_v38 }
0x12eb   :  { %v16026_v42 = vand.u32 4294901760, %v16025_v23  ;;  %v31848_v23 = vld [vmem:[#allocation40_spill] sm:$0xff] }
0x1340   :  { %v15887_v19 = vpop.xlane.xlu0 %15886 }
0x1341   :  { %25368 = vrcp.f32 %v15887_v19  ;;  %v12084_v19 = vadd.f32 %v29206_v28, %v11937_v40 }
0x134e   :  { %v25369_v35 = vpop.eup %25368 }
0x134f   :  { %v15892_v25 = vmul.f32 %v25369_v35, %v25365_v18  ;;  %v29776_v35 = vadd.f32 %v29223_v15, %v12091_v5  ;;  %v16488_v15 = vsub.f32 %v29754_v26, %v16487_v9 }
0x1351   :  { %15896 = vst.msk [vmem:[#allocation16 + $0x10] sm:$0xff] %vm13980_vm12, %v15892_v25  ;;  %v15907_v44 = vsel %vm13980_vm12, %v15892_v25, 0  ;;  %v29795_v25 = vmul.f32 0.125, %v11365_v51  ;;  %v16845_v24 = vsel %vm220_vm0, %v29776_v35, 0 }
0x1352   :  { %v29713_v50 = vand.u32 4294901760, %v15907_v44 }
0x1353   :  { %v16839_v17 = vsel %vm220_vm0, %v29795_v25, 0 }
0x1354   :  { %v29716_v12 = vsub.f32 %v15907_v44, %v29713_v50  ;;  %v29798_v44 = vadd.f32 %v29210_v1, %v12084_v19 }
0x1356   :  { %v15978_v11 = vand.u32 4294901760, %v29716_v12 }
0x1358   :  { %v15890_v52 = vpop.xlane.xlu0 %15889  ;;  %v15979_v31 = vsub.f32 %v29716_v12, %v15978_v11 }
0x1359   :  { %25370 = vrcp.f32 %v15890_v52 }
0x135a   :  { %v15980_v45 = vand.u32 4294901760, %v15979_v31 }
0x135c   :  { %v15903_v20 = vpop.permute.xlu0 %15902 }
0x135d   :  { %v29725_v34 = vand.u32 4294901760, %v15903_v20 }
0x135f   :  { %v16016_v10 = vsub.f32 %v15903_v20, %v29725_v34  ;;  %24656 = vmatpush3.msra.mxu0 %v29725_v34  ;;  %v16842_v20 = vsel %vm220_vm0, %v29798_v44, 0 }
0x1360   :  { %24657 = vmatprep.subr.mxu0 %v31764_v56 }
0x1361   :  { %v16017_v48 = vand.u32 4294901760, %v16016_v10  ;;  %24658 = vmatpush3.msra.mxu0 %v29718_v16 }
0x1362   :  { %24660 = vmatmul.mubr.f32.vlgmr.msra.gmra.mxu0 %v15980_v45  ;;  %24669 = vmatprep.subr.mxu0 %v31764_v56 }
0x1363   :  { %v16018_v22 = vsub.f32 %v16016_v10, %v16017_v48  ;;  %24670 = vmatpush3.msra.mxu0 %v16016_v10  ;;  %24673 = vmatprep.mubr.msk.f32.mxu0 %vm25601_vm1, %v31764_v56 }
0x1364   :  { %24671 = vmatprep.subr.mxu0 %v31764_v56 }
0x1365   :  { %v16019_v55 = vand.u32 4294901760, %v16018_v22  ;;  %24672 = vmatpush3.msra.mxu0 %v16023_v39  ;;  %v16495_v39 = vsub.f32 %v29760_v63, %v16494_v8 }
0x1366   :  { %v25371_v18 = vpop.eup %25370  ;;  %24674 = vmatmul.mubr.f32.vlgmr.msra.gmra.mxu0 %v29716_v12  ;;  %24683 = vmatprep.subr.mxu0 %v31764_v56  ;;  %v29815_v12 = vand.u32 4294901760, %v16845_v24 }
0x1367   :  { %v15894_v62 = vmul.f32 %v25371_v18, %v25367_v36  ;;  %24663 = vmatpush3.msra.mxu1 %v16019_v55  ;;  %24684 = vmatpush3.msra.mxu0 %v16017_v48  ;;  %v16496_v31 = vand.u32 4294901760, %v16495_v39  ;;  %v31856_v39 = vld [vmem:[#allocation42_spill] sm:$0xff] }
0x1368   :  { %24664 = vmatprep.subr.mxu1 %v31764_v56  ;;  %24685 = vmatprep.subr.mxu0 %v31764_v56  ;;  %v29832_v46 = vsub.f32 %v16845_v24, %v29815_v12  ;;  %v31855_v24 = vld [vmem:[#allocation34_spill] sm:$0xff] }
0x1369   :  { %15897 = vst.msk [vmem:[#allocation16 + $0x18] sm:$0xff] %vm13980_vm12, %v15894_v62  ;;  %v16377_v21 = vsel %vm13980_vm12, %v15894_v62, 0  ;;  %24665 = vmatpush3.msra.mxu1 %v16026_v42  ;;  %24686 = vmatpush3.msra.mxu0 %v16024_v38  ;;  %v11718_v38 = vadd.f32 %v29182_v29, %v29180_v2 }
0x136a   :  { %v29765_v36 = vand.u32 4294901760, %v16377_v21  ;;  %24687 = vmatprep.mubr.msk.f32.mxu0 %vm25601_vm1, %v31764_v56  ;;  %24667 = vmatmul.mubr.f32.vlgmr.msra.gmra.mxu1 %v29713_v50  ;;  %v16955_v2 = vand.u32 4294901760, %v29832_v46 }
0x136b   :  { %24676 = vmatprep.subr.mxu1 %v31764_v56  ;;  %24688 = vmatmul.mubr.f32.vlgmr.msra.gmra.mxu0 %v29713_v50  ;;  %v11847_v7 = vadd.f32 %v29198_v32, %v11718_v38  ;;  %v31845_v32 = vld [vmem:[#allocation28_spill] sm:$0xff] }
0x136c   :  { %24697 = vmatprep.subr.mxu0 %v31764_v56  ;;  %24677 = vmatpush3.msra.mxu1 %v29725_v34  ;;  %v29781_v41 = vsub.f32 %v16377_v21, %v29765_v36  ;;  %v31853_v21 = vld [vmem:[#allocation30_spill] sm:$0xff] }
0x136d   :  { %24698 = vmatpush3.msra.mxu0 %v29738_v27  ;;  %24678 = vmatprep.subr.mxu1 %v31764_v56  ;;  %v11964_v48 = vadd.f32 %v31846_v57, %v11847_v7 }
0x136e   :  { %24699 = vmatprep.subr.mxu0 %v31764_v56  ;;  %24679 = vmatpush3.msra.mxu1 %v29718_v16  ;;  %v16448_v28 = vand.u32 4294901760, %v29781_v41 }
0x136f   :  { %24680 = vmatprep.mubr.msk.f32.mxu1 %vm25601_vm1, %v31764_v56  ;;  %24700 = vmatpush3.msra.mxu0 %v29746_v0  ;;  %v12105_v22 = vadd.f32 %v31848_v23, %v11964_v48 }
0x1370   :  { %24681 = vmatmul.mubr.f32.vlgmr.msra.gmra.mxu1 %v15978_v11  ;;  %24690 = vmatprep.subr.mxu1 %v31764_v56  ;;  %v16449_v52 = vsub.f32 %v29781_v41, %v16448_v28  ;;  %v16489_v11 = vand.u32 4294901760, %v16488_v15  ;;  %v31854_v15 = vld [vmem:[#allocation33_spill] sm:$0xff] }
0x1371   :  { %24691 = vmatpush3.msra.mxu1 %v29725_v34  ;;  %24694 = vmatprep.mubr.msk.f32.mxu1 %vm25601_vm1, %v31764_v56  ;;  %v29829_v34 = vand.u32 4294901760, %v16842_v20 }
0x1372   :  { %24692 = vmatprep.subr.mxu1 %v31764_v56  ;;  %24701 = vmatprep.mubr.msk.f32.mxu0 %vm25601_vm1, %v31764_v56  ;;  %v16450_v1 = vand.u32 4294901760, %v16449_v52  ;;  %v12498_v52 = vadd.f32 %v31855_v24, %v31854_v15 }
0x1373   :  { %24693 = vmatpush3.msra.mxu1 %v29718_v16  ;;  %24711 = vmatprep.subr.mxu0 %v31764_v56  ;;  %v29827_v16 = vand.u32 4294901760, %v16839_v17 }
0x1374   :  { %24695 = vmatmul.mubr.f32.vlgmr.msra.gmra.mxu1 %v29713_v50  ;;  %24704 = vmatprep.subr.mxu1 %v31764_v56  ;;  %v10938_v50 = vadd.f32 %v29140_v58, %v29142_v43  ;;  %v29853_v43 = vsub.f32 %v16842_v20, %v29829_v34 }
0x1375   :  { %24705 = vmatpush3.msra.mxu1 %v16489_v11  ;;  %24702 = vmatmul.mubr.f32.vlgmr.msra.gmra.mxu0 %v16450_v1  ;;  %v29850_v58 = vsub.f32 %v16839_v17, %v29827_v16  ;;  %v31857_v1 = vld [vmem:[#allocation32_spill] sm:$0xff] }
0x1376   :  { %24706 = vmatprep.subr.mxu1 %v31764_v56  ;;  %24712 = vmatpush3.msra.mxu0 %v29754_v26  ;;  %v11051_v10 = vadd.f32 %v29150_v49, %v10938_v50  ;;  %v11711_v49 = vadd.f32 %v29178_v4, %v29176_v60  ;;  %v16962_v4 = vand.u32 4294901760, %v29853_v43  ;;  %v31852_v26 = vld [vmem:[#allocation31_spill] sm:$0xff]  ;;  %v12491_v11 = vadd.f32 %v31857_v1, %v31856_v39 }
0x1377   :  { %24707 = vmatpush3.msra.mxu1 %v16496_v31  ;;  %24708 = vmatprep.mubr.msk.f32.mxu1 %vm25601_vm1, %v31764_v56  ;;  %v16916_v60 = vand.u32 4294901760, %v29850_v58  ;;  %v29900_v62 = vadd.f32 %v31852_v26, %v12105_v22  ;;  %v31858_v50 = vld [vmem:[#allocation23_spill] sm:$0xff] }
0x1378   :  { %24713 = vmatprep.subr.mxu0 %v31764_v56  ;;  %24709 = vmatmul.mubr.f32.vlgmr.msra.gmra.mxu1 %v29765_v36  ;;  %v11150_v29 = vadd.f32 %v29152_v14, %v11051_v10  ;;  %v11839_v45 = vadd.f32 %v31845_v32, %v11711_v49  ;;  %v16956_v14 = vsub.f32 %v29832_v46, %v16955_v2  ;;  %v31860_v49 = vld [vmem:[#allocation44_spill] sm:$0xff]  ;;  %v31861_v32 = vld [vmem:[#allocation49_spill] sm:$0xff]  ;;  %v31865_v22 = vld [vmem:[#allocation51_spill] sm:$0xff] }
0x1379   :  { %24714 = vmatpush3.msra.mxu0 %v29760_v63  ;;  %24718 = vmatprep.subr.mxu1 %v31764_v56  ;;  %v16917_v55 = vsub.f32 %v29850_v58, %v16916_v60  ;;  %v16963_v18 = vsub.f32 %v29853_v43, %v16962_v4  ;;  %v12625_v38 = vadd.f32 %v31858_v50, %v12498_v52 }
0x137a   :  { %24715 = vmatprep.mubr.msk.f32.mxu0 %vm25601_vm1, %v31764_v56  ;;  %24719 = vmatpush3.msra.mxu1 %v29738_v27  ;;  %v11277_v30 = vadd.f32 %v31847_v33, %v11150_v29  ;;  %v11955_v13 = vadd.f32 %v31849_v37, %v11839_v45 }
0x137b   :  { %24725 = vmatprep.subr.mxu0 %v31764_v56  ;;  %24716 = vmatmul.mubr.f32.vlgmr.msra.gmra.mxu0 %v29781_v41  ;;  %v16964_v5 = vand.u32 4294901760, %v16963_v18  ;;  %v12740_v29 = vadd.f32 %v31860_v49, %v12625_v38 }
0x137c   :  { %24720 = vmatprep.subr.mxu1 %v31764_v56  ;;  %24726 = vmatpush3.msra.mxu0 %v16487_v9  ;;  %v11372_v47 = vadd.f32 %v31850_v3, %v11277_v30  ;;  %v12098_v42 = vadd.f32 %v31851_v54, %v11955_v13 }
0x137d   :  { %24721 = vmatpush3.msra.mxu1 %v29746_v0  ;;  %24722 = vmatprep.mubr.msk.f32.mxu1 %vm25601_vm1, %v31764_v56 }
0x137e   :  { %24727 = vmatprep.subr.mxu0 %v31764_v56  ;;  %24723 = vmatmul.mubr.f32.vlgmr.msra.gmra.mxu1 %v16448_v28  ;;  %v29910_v63 = vmul.f32 0.125, %v11372_v47  ;;  %v29913_v40 = vadd.f32 %v31853_v21, %v12098_v42 }
0x137f   :  { %24728 = vmatpush3.msra.mxu0 %v16494_v8  ;;  %24732 = vmatprep.subr.mxu1 %v31764_v56 }
0x1380   :  { %24729 = vmatprep.mubr.msk.f32.mxu0 %vm25601_vm1, %v31764_v56  ;;  %24733 = vmatpush3.msra.mxu1 %v29738_v27  ;;  %v16957_v27 = vand.u32 4294901760, %v16956_v14  ;;  %v17307_v9 = vsel %vm220_vm0, %v29910_v63, 0  ;;  %v17310_v19 = vsel %vm220_vm0, %v29913_v40, 0 }
0x1381   :  { %24739 = vmatprep.subr.mxu0 %v31764_v56  ;;  %24730 = vmatmul.mubr.f32.vlgmr.msra.gmra.mxu0 %v29765_v36  ;;  %v29936_v41 = vand.u32 4294901760, %v17307_v9  ;;  %v29938_v8 = vand.u32 4294901760, %v17310_v19 }
0x1382   :  { %24734 = vmatprep.subr.mxu1 %v31764_v56  ;;  %24740 = vmatpush3.xpose.msra.mxu0 %v29815_v12 }
0x1383   :  { %24735 = vmatpush3.msra.mxu1 %v29746_v0  ;;  %24736 = vmatprep.mubr.msk.f32.mxu1 %vm25601_vm1, %v31764_v56  ;;  %v16918_v0 = vand.u32 4294901760, %v16917_v55  ;;  %v17383_v17 = vsub.f32 %v17307_v9, %v29936_v41  ;;  %v29955_v20 = vsub.f32 %v17310_v19, %v29938_v8 }
0x1384   :  { %24737 = vmatmul.mubr.f32.vlgmr.msra.gmra.mxu1 %v29765_v36  ;;  %24746 = vmatprep.subr.mxu1 %v31764_v56  ;;  %v17313_v36 = vsel %vm220_vm0, %v29900_v62, 0 }
0x1385   :  { %24741 = vmatprep.subr.mxu0 %v31764_v56  ;;  %24747 = vmatpush3.xpose.msra.mxu1 %v16957_v27  ;;  %v29921_v51 = vand.u32 4294901760, %v17313_v36  ;;  %v17384_v7 = vand.u32 4294901760, %v17383_v17 }
0x1386   :  { %24742 = vmatpush3.xpose.msra.mxu0 %v29829_v34  ;;  %24743 = vmatprep.mubr.msk.f32.mxu0 %vm25601_vm1, %v31764_v56 }
0x1387   :  { %24748 = vmatprep.subr.mxu1 %v31764_v56  ;;  %24753 = vmatprep.subr.mxu0 %v31764_v56  ;;  %v29941_v28 = vsub.f32 %v17313_v36, %v29921_v51 }
0x1388   :  { %24750 = vmatprep.mubr.msk.f32.mxu1 %vm25601_vm1, %v31764_v56 }
0x1389   :  { %24744 = vmatmul.mubr.f32.vlgmr.msra.gmra.mxu0 %v16918_v0  ;;  %24749 = vmatpush3.xpose.msra.mxu1 %v16964_v5  ;;  %v17423_v31 = vand.u32 4294901760, %v29941_v28 }
0x138a   :  { %24754 = vmatpush3.xpose.msra.mxu0 %v29832_v46  ;;  %24760 = vmatprep.subr.mxu1 %v31764_v56  ;;  %v31859_v46 = vld [vmem:[#allocation47_spill] sm:$0xff] }
0x138b   :  { %24755 = vmatprep.subr.mxu0 %v31764_v56  ;;  %24757 = vmatprep.mubr.msk.f32.mxu0 %vm25601_vm1, %v31764_v56  ;;  %v12617_v10 = vadd.f32 %v31859_v46, %v12491_v11 }
0x138c   :  { %24751 = vmatmul.mubr.f32.vlgmr.msra.gmra.mxu1 %v29827_v16 }
0x138d   :  { %24761 = vmatpush3.xpose.msra.mxu1 %v29815_v12  ;;  %24764 = vmatprep.mubr.msk.f32.mxu1 %vm25601_vm1, %v31764_v56  ;;  %v12731_v45 = vadd.f32 %v31861_v32, %v12617_v10 }
0x138e   :  { %24756 = vmatpush3.xpose.msra.mxu0 %v29853_v43  ;;  %24762 = vmatprep.subr.mxu1 %v31764_v56  ;;  %v31862_v43 = vld [vmem:[#allocation53_spill] sm:$0xff] }
0x138f   :  { %24767 = vmatprep.subr.mxu0 %v31764_v56  ;;  %v12885_v57 = vadd.f32 %v31862_v43, %v12740_v29 }
0x1391   :  { %24758 = vmatmul.mubr.f32.vlgmr.msra.gmra.mxu0 %v29850_v58  ;;  %24763 = vmatpush3.xpose.msra.mxu1 %v29829_v34  ;;  %v17424_v58 = vsub.f32 %v29941_v28, %v17423_v31 }
0x1392   :  { %24768 = vmatpush3.xpose.msra.mxu0 %v16955_v2  ;;  %24774 = vmatprep.subr.mxu1 %v31764_v56  ;;  %v17430_v2 = vand.u32 4294901760, %v29955_v20 }
0x1393   :  { %24769 = vmatprep.subr.mxu0 %v31764_v56  ;;  %24771 = vmatprep.mubr.msk.f32.mxu0 %vm25601_vm1, %v31764_v56  ;;  %v17425_v48 = vand.u32 4294901760, %v17424_v58 }
0x1394   :  { %24765 = vmatmul.mubr.f32.vlgmr.msra.gmra.mxu1 %v16916_v60  ;;  %v17431_v60 = vsub.f32 %v29955_v20, %v17430_v2 }
0x1395   :  { %24775 = vmatpush3.xpose.msra.mxu1 %v29815_v12  ;;  %24778 = vmatprep.mubr.msk.f32.mxu1 %vm25601_vm1, %v31764_v56  ;;  %v17385_v12 = vsub.f32 %v17383_v17, %v17384_v7 }
0x1396   :  { %24770 = vmatpush3.xpose.msra.mxu0 %v16962_v4  ;;  %24776 = vmatprep.subr.mxu1 %v31764_v56  ;;  %v31863_v4 = vld [vmem:[#allocation52_spill] sm:$0xff]  ;;  %v17432_v23 = vand.u32 4294901760, %v17431_v60 }
0x1397   :  { %24781 = vmatprep.subr.mxu0 %v31764_v56  ;;  %v12878_v14 = vadd.f32 %v31863_v4, %v12731_v45  ;;  %v17386_v30 = vand.u32 4294901760, %v17385_v12 }
0x1399   :  { %24772 = vmatmul.mubr.f32.vlgmr.msra.gmra.mxu0 %v29827_v16  ;;  %24777 = vmatpush3.xpose.msra.mxu1 %v29829_v34  ;;  %v31864_v34 = vld [vmem:[#allocation54_spill] sm:$0xff]  ;;  %v29996_v37 = vadd.f32 %v31865_v22, %v12878_v14 }
0x139a   :  { %24782 = vmatpush3.xpose.msra.mxu0 %v29921_v51  ;;  %24788 = vmatprep.subr.mxu1 %v31764_v56  ;;  %v29992_v33 = vadd.f32 %v31864_v34, %v12885_v57 }
0x139b   :  { %24783 = vmatprep.subr.mxu0 %v31764_v56  ;;  %24785 = vmatprep.mubr.msk.f32.mxu0 %vm25601_vm1, %v31764_v56  ;;  %v30008_v13 = vand.u32 4294901760, %v29996_v37 }
0x139c   :  { %24779 = vmatmul.mubr.f32.vlgmr.msra.gmra.mxu1 %v29827_v16  ;;  %v30001_v16 = vand.u32 4294901760, %v29992_v33 }
0x139d   :  { %24789 = vmatpush3.xpose.msra.mxu1 %v17425_v48  ;;  %24792 = vmatprep.mubr.msk.f32.mxu1 %vm25601_vm1, %v31764_v56  ;;  %v30022_v27 = vsub.f32 %v29996_v37, %v30008_v13 }
0x139e   :  { %24784 = vmatpush3.xpose.msra.mxu0 %v29938_v8  ;;  %24790 = vmatprep.subr.mxu1 %v31764_v56  ;;  %v30017_v55 = vsub.f32 %v29992_v33, %v30001_v16 }
0x139f   :  { %24795 = vmatprep.subr.mxu0 %v31764_v56  ;;  %v17919_v3 = vand.u32 4294901760, %v30022_v27 }
0x13a0   :  { %v17912_v18 = vand.u32 4294901760, %v30017_v55 }
0x13a1   :  { %24786 = vmatmul.mubr.f32.vlgmr.msra.gmra.mxu0 %v17386_v30  ;;  %24791 = vmatpush3.xpose.msra.mxu1 %v17432_v23  ;;  %v17920_v54 = vsub.f32 %v30022_v27, %v17919_v3 }
0x13a2   :  { %24796 = vmatpush3.xpose.msra.mxu0 %v29941_v28  ;;  %24802 = vmatprep.subr.mxu1 %v31764_v56  ;;  %v17913_v47 = vsub.f32 %v30017_v55, %v17912_v18 }
0x13a3   :  { %24797 = vmatprep.subr.mxu0 %v31764_v56  ;;  %24799 = vmatprep.mubr.msk.f32.mxu0 %vm25601_vm1, %v31764_v56  ;;  %v17921_v26 = vand.u32 4294901760, %v17920_v54 }
0x13a4   :  { %24793 = vmatmul.mubr.f32.vlgmr.msra.gmra.mxu1 %v29936_v41  ;;  %v17914_v42 = vand.u32 4294901760, %v17913_v47 }
0x13a5   :  { %24803 = vmatpush3.xpose.msra.mxu1 %v29921_v51  ;;  %24806 = vmatprep.mubr.msk.f32.mxu1 %vm25601_vm1, %v31764_v56 }
0x13a6   :  { %24798 = vmatpush3.xpose.msra.mxu0 %v29955_v20  ;;  %24804 = vmatprep.subr.mxu1 %v31764_v56 }
0x13a7   :  { %24809 = vmatprep.subr.mxu0 %v31764_v56 }
0x13a9   :  { %24800 = vmatmul.mubr.f32.vlgmr.msra.gmra.mxu0 %v17383_v17  ;;  %24805 = vmatpush3.xpose.msra.mxu1 %v29938_v8 }
0x13aa   :  { %24810 = vmatpush3.xpose.msra.mxu0 %v17423_v31  ;;  %24816 = vmatprep.subr.mxu1 %v31764_v56 }
0x13ab   :  { %24811 = vmatprep.subr.mxu0 %v31764_v56  ;;  %24813 = vmatprep.mubr.msk.f32.mxu0 %vm25601_vm1, %v31764_v56 }
0x13ac   :  { %24807 = vmatmul.mubr.f32.vlgmr.msra.gmra.mxu1 %v17384_v7 }
0x13ad   :  { %24817 = vmatpush3.xpose.msra.mxu1 %v29921_v51  ;;  %24820 = vmatprep.mubr.msk.f32.mxu1 %vm25601_vm1, %v31764_v56 }
0x13ae   :  { %24812 = vmatpush3.xpose.msra.mxu0 %v17430_v2  ;;  %24818 = vmatprep.subr.mxu1 %v31764_v56 }
0x13af   :  { %24823 = vmatprep.subr.mxu0 %v31764_v56 }
0x13b1   :  { %24814 = vmatmul.mubr.f32.vlgmr.msra.gmra.mxu0 %v29936_v41  ;;  %24819 = vmatpush3.xpose.msra.mxu1 %v29938_v8 }
0x13b2   :  { %24824 = vmatpush3.msra.mxu0 %v30001_v16  ;;  %24830 = vmatprep.subr.mxu1 %v31764_v56 }
0x13b3   :  { %24825 = vmatprep.subr.mxu0 %v31764_v56  ;;  %24827 = vmatprep.mubr.msk.f32.mxu0 %vm25601_vm1, %v31764_v56 }
0x13b4   :  { %24821 = vmatmul.mubr.f32.vlgmr.msra.gmra.mxu1 %v29936_v41  ;;  %24826 = vmatpush3.msra.mxu0 %v30008_v13 }
0x13b5   :  { %24831 = vmatpush3.msra.mxu1 %v17914_v42  ;;  %24834 = vmatprep.mubr.msk.f32.mxu1 %vm25601_vm1, %v31764_v56 }
0x13b6   :  { %24832 = vmatprep.subr.mxu1 %v31764_v56  ;;  %24837 = vmatprep.subr.mxu0 %v31764_v56 }
0x13b7   :  { %24833 = vmatpush3.msra.mxu1 %v17921_v26 }
0x13b8   :  { %24844 = vmatprep.subr.mxu1 %v31764_v56 }
0x1422   :  { %v15982_v0 = vpop.f32.mrf.mxu0 }
0x1424   :  { %v24661_v5 = vpop.f32.mrf.mxu0 }
0x1426   :  { %v16139_v21 = vpop.f32.mrf.mxu0 }
0x1428   :  { %v24675_v36 = vpop.f32.mrf.mxu0 }
0x142a   :  { %v16063_v51 = vpop.f32.mrf.mxu1 }
0x142b   :  { %v16064_v9 = vadd.f32 %v16063_v51, %v15982_v0  ;;  %v16291_v19 = vpop.f32.mrf.mxu0 }
0x142c   :  { %v24668_v41 = vpop.f32.mrf.mxu1 }
0x142d   :  { %v24689_v8 = vpop.f32.mrf.mxu0  ;;  %v16140_v28 = vadd.f32 %v16139_v21, %v16064_v9 }
0x1430   :  { %v16214_v15 = vpop.f32.mrf.mxu1 }
0x1431   :  { %v16215_v24 = vadd.f32 %v16214_v15, %v16140_v28 }
0x1432   :  { %v24682_v52 = vpop.f32.mrf.mxu1 }
0x1433   :  { %v16292_v39 = vadd.f32 %v16291_v19, %v16215_v24 }
0x1434   :  { %v16364_v1 = vpop.f32.mrf.mxu1 }
0x1435   :  { %v30056_v11 = vadd.f32 %v16364_v1, %v16292_v39  ;;  %v16452_v17 = vpop.f32.mrf.mxu0 }
0x1436   :  { %v24696_v20 = vpop.f32.mrf.mxu1 }
0x1437   :  { %v24703_v31 = vpop.f32.mrf.mxu0 }
0x1438   :  { %v16533_v50 = vpop.f32.mrf.mxu1 }
0x1439   :  { %v16534_v38 = vadd.f32 %v16533_v50, %v16452_v17 }
0x143a   :  { %v24710_v46 = vpop.f32.mrf.mxu1 }
0x143b   :  { %v16609_v10 = vpop.f32.mrf.mxu0 }
0x143c   :  { %v16610_v7 = vadd.f32 %v16609_v10, %v16534_v38 }
0x143d   :  { %v24717_v2 = vpop.f32.mrf.mxu0 }
0x143e   :  { %v16684_v49 = vpop.f32.mrf.mxu1 }
0x143f   :  { %v16685_v29 = vadd.f32 %v16684_v49, %v16610_v7 }
0x1440   :  { %v24724_v58 = vpop.f32.mrf.mxu1 }
0x1441   :  { %v16761_v32 = vpop.f32.mrf.mxu0 }
0x1442   :  { %v16762_v45 = vadd.f32 %v16761_v32, %v16685_v29 }
0x1443   :  { %v24731_v12 = vpop.f32.mrf.mxu0 }
0x1444   :  { %v16834_v43 = vpop.f32.mrf.mxu1 }
0x1445   :  { %v30058_v57 = vadd.f32 %v16834_v43, %v16762_v45 }
0x1446   :  { %v24738_v48 = vpop.f32.mrf.mxu1 }
0x1449   :  { %v16920_v60 = vpop.f32.mrf.mxu0 }
0x144b   :  { %v24745_v4 = vpop.f32.mrf.mxu0 }
0x144c   :  { %v17001_v14 = vpop.f32.mrf.mxu1 }
0x144d   :  { %v17002_v23 = vadd.f32 %v17001_v14, %v16920_v60 }
0x144e   :  { %v24752_v34 = vpop.f32.mrf.mxu1 }
0x1451   :  { %v17077_v30 = vpop.f32.mrf.mxu0 }
0x1452   :  { %v17078_v47 = vadd.f32 %v17077_v30, %v17002_v23  ;;  %v31868_v30 = vld [vmem:[#allocation38_spill] sm:$0xff]  ;;  %v31869_v23 = vld [vmem:[#allocation41_spill] sm:$0xff] }
0x1453   :  { %v24759_v22 = vpop.f32.mrf.mxu0 }
0x1454   :  { %v17152_v54 = vpop.f32.mrf.mxu1  ;;  %v12505_v22 = vadd.f32 %v31869_v23, %v31868_v30 }
0x1455   :  { %v17153_v26 = vadd.f32 %v17152_v54, %v17078_v47  ;;  %v31870_v47 = vld [vmem:[#allocation37_spill] sm:$0xff] }
0x1456   :  { %v24766_v42 = vpop.f32.mrf.mxu1 }
0x1457   :  { %v31871_v42 = vld [vmem:[#allocation46_spill] sm:$0xff] }
0x1459   :  { %v17229_v0 = vpop.f32.mrf.mxu0 }
0x145a   :  { %v17230_v5 = vadd.f32 %v17229_v0, %v17153_v26  ;;  %v12633_v26 = vadd.f32 %v31871_v42, %v12505_v22  ;;  %v31872_v0 = vld [vmem:[#allocation50_spill] sm:$0xff] }
0x145b   :  { %v24773_v21 = vpop.f32.mrf.mxu0 }
0x145c   :  { %v17302_v36 = vpop.f32.mrf.mxu1 }
0x145d   :  { %v17303_v51 = vadd.f32 %v17302_v36, %v17230_v5  ;;  %v31873_v36 = vld [vmem:[#allocation48_spill] sm:$0xff] }
0x145e   :  { %v24780_v9 = vpop.f32.mrf.mxu1 }
0x145f   :  { %v17774_v19 = vsel %vm29449_vm11, -1e+09, %v17303_v51  ;;  %v12749_v51 = vadd.f32 %v31873_v36, %v12633_v26 }
0x1460   :  { %v17776_v41 = vsel %vm13980_vm12, %v17774_v19, -inf }
0x1461   :  { %17777 = vmax.xlane.f32.xlu0 %v17776_v41  ;;  %v17388_v8 = vpop.f32.mrf.mxu0  ;;  %v31876_v41 = vld [vmem:[#allocation58_spill] sm:$0xff] }
0x1463   :  { %v24787_v28 = vpop.f32.mrf.mxu0 }
0x1464   :  { %v17469_v15 = vpop.f32.mrf.mxu1  ;;  %v31877_v28 = vld [vmem:[#allocation56_spill] sm:$0xff] }
0x1465   :  { %v17470_v39 = vadd.f32 %v17469_v15, %v17388_v8 }
0x1466   :  { %v24794_v24 = vpop.f32.mrf.mxu1 }
0x1469   :  { %v17545_v52 = vpop.f32.mrf.mxu0 }
0x146a   :  { %v17546_v17 = vadd.f32 %v17545_v52, %v17470_v39 }
0x146b   :  { %v24801_v1 = vpop.f32.mrf.mxu0 }
0x146c   :  { %v17620_v20 = vpop.f32.mrf.mxu1 }
0x146d   :  { %v17621_v50 = vadd.f32 %v17620_v20, %v17546_v17 }
0x146e   :  { %v24808_v31 = vpop.f32.mrf.mxu1 }
0x1471   :  { %v17697_v38 = vpop.f32.mrf.mxu0 }
0x1472   :  { %v17698_v46 = vadd.f32 %v17697_v38, %v17621_v50 }
0x1473   :  { %v24815_v10 = vpop.f32.mrf.mxu0 }
0x1474   :  { %v17770_v7 = vpop.f32.mrf.mxu1 }
0x1475   :  { %v17771_v2 = vadd.f32 %v17770_v7, %v17698_v46 }
0x1476   :  { %v24822_v49 = vpop.f32.mrf.mxu1 }
0x1477   :  { %v17775_v29 = vsel %vm29458_vm14, -1e+09, %v17771_v2 }
0x1478   :  { %v17779_v58 = vsel %vm13980_vm12, %v17775_v29, -inf }
0x1479   :  { %17780 = vmax.xlane.f32.xlu1 %v17779_v58 }
0x148a   :  { %18727 = vrot.lane.b32.xlu1 %v29798_v44, %s25603_s4 }
0x148e   :  { %18725 = vrot.lane.b32.xlu1 %v29795_v25, %s25603_s4 }
0x1492   :  { %19200 = vrot.lane.b32.xlu1 %v29900_v62, %s25603_s4  ;;  %v31866_v62 = vld [vmem:[#allocation43_spill] sm:$0xff] }
0x1496   :  { %19196 = vrot.lane.b32.xlu1 %v29910_v63, %s25603_s4  ;;  %v31867_v63 = vld [vmem:[#allocation45_spill] sm:$0xff] }
0x1497   :  { %v12512_v34 = vadd.f32 %v31867_v63, %v31866_v62 }
0x1499   :  { %v12641_v54 = vadd.f32 %v31870_v47, %v12512_v34 }
0x149b   :  { %v12758_v5 = vadd.f32 %v31872_v0, %v12641_v54 }
0x14ea   :  { %v17778_v32 = vpop.xlane.xlu0 %17777 }
0x14eb   :  { %v17782_v45 = vsub.f32 %v17774_v19, %v17778_v32  ;;  %v31875_v19 = vld [vmem:[#allocation55_spill] sm:$0xff] }
0x14ed   :  { %v17784_v12 = vmul.f32 1.442695, %v17782_v45 }
0x14ef   :  { %25372 = vpow2.f32 %v17784_v12 }
0x14fc   :  { %v25373_v43 = vpop.eup %25372 }
0x14fd   :  { %v17788_v48 = vsel %vm13980_vm12, %v25373_v43, 0.0 }
0x14fe   :  { %17789 = vadd.xlane.f32.xlu0 %v17788_v48 }
0x1502   :  { %v17781_v60 = vpop.xlane.xlu1 %17780 }
0x1503   :  { %v17783_v4 = vsub.f32 %v17775_v29, %v17781_v60 }
0x1505   :  { %v17786_v44 = vmul.f32 1.442695, %v17783_v4 }
0x1507   :  { %25374 = vpow2.f32 %v17786_v44 }
0x1514   :  { %v30075_v14 = vpop.eup %25374 }
0x1515   :  { %v17791_v25 = vsel %vm13980_vm12, %v30075_v14, 0.0 }
0x1516   :  { %17792 = vadd.xlane.f32.xlu0 %v17791_v25 }
0x152c   :  { %18729 = vrot.lane.b32.xlu0 %v29776_v35, %s25603_s4  ;;  %v31874_v35 = vld [vmem:[#allocation57_spill] sm:$0xff] }
0x152d   :  { %v12899_v9 = vadd.f32 %v31874_v35, %v12758_v5 }
0x152f   :  { %v30094_v8 = vadd.f32 %v31876_v41, %v12899_v9 }
0x1530   :  { %19198 = vrot.lane.b32.xlu0 %v29913_v40, %s25603_s4  ;;  %v12892_v40 = vadd.f32 %v31875_v19, %v12749_v51 }
0x1531   :  { %v30100_v24 = vand.u32 4294901760, %v30094_v8 }
0x1532   :  { %v30097_v15 = vadd.f32 %v31877_v28, %v12892_v40 }
0x1533   :  { %v30107_v17 = vsub.f32 %v30094_v8, %v30100_v24 }
0x1534   :  { %v30103_v39 = vand.u32 4294901760, %v30097_v15 }
0x1535   :  { %v18374_v46 = vand.u32 4294901760, %v30107_v17 }
0x1536   :  { %v30113_v31 = vsub.f32 %v30097_v15, %v30103_v39 }
0x1537   :  { %v18375_v29 = vsub.f32 %v30107_v17, %v18374_v46 }
0x1538   :  { %v18381_v7 = vand.u32 4294901760, %v30113_v31 }
0x1539   :  { %v18376_v45 = vand.u32 4294901760, %v18375_v29 }
0x153a   :  { %v18382_v32 = vsub.f32 %v30113_v31, %v18381_v7 }
0x153c   :  { %v18383_v12 = vand.u32 4294901760, %v18382_v32 }
0x1587   :  { %v17790_v21 = vpop.xlane.xlu0 %17789 }
0x1588   :  { %25376 = vrcp.f32 %v17790_v21 }
0x1595   :  { %v25377_v52 = vpop.eup %25376 }
0x1596   :  { %v17795_v1 = vmul.f32 %v25377_v52, %v25373_v43  ;;  %v18728_v43 = vpop.permute.xlu1 %18727 }
0x1597   :  { %v18733_v60 = vsel %vm220_vm0, %v18728_v43, 0 }
0x1598   :  { %17799 = vst.msk [vmem:[#allocation16 + $0x20] sm:$0xff] %vm13980_vm12, %v17795_v1  ;;  %v17802_v20 = vsel %vm13980_vm12, %v17795_v1, 0  ;;  %v30162_v4 = vand.u32 4294901760, %v18733_v60 }
0x1599   :  { %v17871_v50 = vand.u32 4294901760, %v17802_v20 }
0x159a   :  { %v30172_v25 = vsub.f32 %v18733_v60, %v30162_v4  ;;  %v18726_v63 = vpop.permute.xlu1 %18725 }
0x159b   :  { %v17872_v38 = vsub.f32 %v17802_v20, %v17871_v50  ;;  %24835 = vmatmul.mubr.f32.vlgmr.msra.gmra.mxu1 %v17871_v50  ;;  %v18731_v47 = vsel %vm220_vm0, %v18726_v63, 0 }
0x159c   :  { %24845 = vmatpush3.msra.mxu1 %v30001_v16  ;;  %24848 = vmatprep.mubr.msk.f32.mxu1 %vm25601_vm1, %v31764_v56  ;;  %v18852_v30 = vand.u32 4294901760, %v30172_v25  ;;  %v30194_v26 = vand.u32 4294901760, %v18731_v47 }
0x159d   :  { %24846 = vmatprep.subr.mxu1 %v31764_v56  ;;  %v17873_v10 = vand.u32 4294901760, %v17872_v38 }
0x159e   :  { %24847 = vmatpush3.msra.mxu1 %v30008_v13  ;;  %v18853_v42 = vsub.f32 %v30172_v25, %v18852_v30  ;;  %v19201_v5 = vpop.permute.xlu1 %19200  ;;  %v18805_v36 = vsub.f32 %v18731_v47, %v30194_v26 }
0x159f   :  { %24858 = vmatprep.subr.mxu1 %v31764_v56  ;;  %24849 = vmatmul.mubr.f32.vlgmr.msra.gmra.mxu1 %v17873_v10  ;;  %v17793_v2 = vpop.xlane.xlu0 %17792  ;;  %v17874_v49 = vsub.f32 %v17872_v38, %v17873_v10  ;;  %v19206_v51 = vsel %vm220_vm0, %v19201_v5, 0 }
0x15a0   :  { %24859 = vmatpush3.msra.mxu1 %v30001_v16  ;;  %25378 = vrcp.f32 %v17793_v2  ;;  %24862 = vmatprep.mubr.msk.f32.mxu1 %vm25601_vm1, %v31764_v56  ;;  %v18854_v21 = vand.u32 4294901760, %v18853_v42  ;;  %v18806_v9 = vand.u32 4294901760, %v18805_v36  ;;  %v30213_v19 = vand.u32 4294901760, %v19206_v51 }
0x15a1   :  { %24860 = vmatprep.subr.mxu1 %v31764_v56  ;;  %v17875_v58 = vand.u32 4294901760, %v17874_v49 }
0x15a2   :  { %24861 = vmatpush3.msra.mxu1 %v30008_v13  ;;  %v18807_v41 = vsub.f32 %v18805_v36, %v18806_v9  ;;  %v30225_v28 = vsub.f32 %v19206_v51, %v30213_v19 }
0x15a3   :  { %24872 = vmatprep.subr.mxu1 %v31764_v56  ;;  %24828 = vmatmul.mubr.f32.vlgmr.msra.gmra.mxu0 %v17875_v58  ;;  %v18730_v16 = vpop.permute.xlu0 %18729 }
0x15a4   :  { %24838 = vmatpush3.msra.mxu0 %v30017_v55  ;;  %24863 = vmatmul.mubr.f32.vlgmr.msra.gmra.mxu1 %v17871_v50  ;;  %v18735_v13 = vsel %vm220_vm0, %v18730_v16, 0  ;;  %v18808_v52 = vand.u32 4294901760, %v18807_v41 }
0x15a5   :  { %24873 = vmatpush3.msra.mxu1 %v18376_v45  ;;  %24839 = vmatprep.subr.mxu0 %v31764_v56  ;;  %v30150_v48 = vand.u32 4294901760, %v18735_v13 }
0x15a6   :  { %24874 = vmatprep.subr.mxu1 %v31764_v56  ;;  %24840 = vmatpush3.msra.mxu0 %v30022_v27 }
0x15a7   :  { %24875 = vmatpush3.msra.mxu1 %v18383_v12  ;;  %24841 = vmatprep.mubr.msk.f32.mxu0 %vm25601_vm1, %v31764_v56  ;;  %v30165_v27 = vsub.f32 %v18735_v13, %v30150_v48  ;;  %v19199_v35 = vpop.permute.xlu0 %19198 }
0x15a8   :  { %24851 = vmatprep.subr.mxu0 %v31764_v56  ;;  %24842 = vmatmul.mubr.f32.vlgmr.msra.gmra.mxu0 %v17872_v38  ;;  %v19204_v40 = vsel %vm220_vm0, %v19199_v35, 0 }
0x15a9   :  { %24852 = vmatpush3.msra.mxu0 %v17912_v18  ;;  %24855 = vmatprep.mubr.msk.f32.mxu0 %vm25601_vm1, %v31764_v56 }
0x15aa   :  { %24853 = vmatprep.subr.mxu0 %v31764_v56  ;;  %24876 = vmatprep.mubr.msk.f32.mxu1 %vm25601_vm1, %v31764_v56 }
0x15ab   :  { %24854 = vmatpush3.msra.mxu0 %v17919_v3  ;;  %24886 = vmatprep.subr.mxu1 %v31764_v56 }
0x15ac   :  { %24865 = vmatprep.subr.mxu0 %v31764_v56  ;;  %24856 = vmatmul.mubr.f32.vlgmr.msra.gmra.mxu0 %v17871_v50 }
0x15ad   :  { %v25379_v55 = vpop.eup %25378  ;;  %24866 = vmatpush3.msra.mxu0 %v30100_v24  ;;  %24869 = vmatprep.mubr.msk.f32.mxu0 %vm25601_vm1, %v31764_v56 }
0x15ae   :  { %v17797_v18 = vmul.f32 %v25379_v55, %v30075_v14  ;;  %24867 = vmatprep.subr.mxu0 %v31764_v56  ;;  %v18845_v14 = vand.u32 4294901760, %v30165_v27 }
0x15af   :  { %24868 = vmatpush3.msra.mxu0 %v30103_v39 }
0x15b0   :  { %17800 = vst.msk [vmem:[#allocation16 + $0x28] sm:$0xff] %vm13980_vm12, %v17797_v18  ;;  %v18264_v3 = vsel %vm13980_vm12, %v17797_v18, 0  ;;  %24879 = vmatprep.subr.mxu0 %v31764_v56  ;;  %v18846_v23 = vsub.f32 %v30165_v27, %v18845_v14 }
0x15b1   :  { %v18333_v44 = vand.u32 4294901760, %v18264_v3 }
0x15b2   :  { %v18847_v0 = vand.u32 4294901760, %v18846_v23 }
0x15b3   :  { %v18334_v62 = vsub.f32 %v18264_v3, %v18333_v44  ;;  %24877 = vmatmul.mubr.f32.vlgmr.msra.gmra.mxu1 %v18333_v44 }
0x15b4   :  { %24887 = vmatpush3.msra.mxu1 %v30100_v24  ;;  %24890 = vmatprep.mubr.msk.f32.mxu1 %vm25601_vm1, %v31764_v56 }
0x15b5   :  { %24888 = vmatprep.subr.mxu1 %v31764_v56  ;;  %v18335_v34 = vand.u32 4294901760, %v18334_v62 }
0x15b6   :  { %24889 = vmatpush3.msra.mxu1 %v30103_v39 }
0x15b7   :  { %24900 = vmatprep.subr.mxu1 %v31764_v56  ;;  %24891 = vmatmul.mubr.f32.vlgmr.msra.gmra.mxu1 %v18335_v34  ;;  %v18336_v22 = vsub.f32 %v18334_v62, %v18335_v34 }
0x15b8   :  { %24901 = vmatpush3.msra.mxu1 %v30100_v24  ;;  %24904 = vmatprep.mubr.msk.f32.mxu1 %vm25601_vm1, %v31764_v56  ;;  %v30227_v24 = vand.u32 4294901760, %v19204_v40 }
0x15b9   :  { %24902 = vmatprep.subr.mxu1 %v31764_v56  ;;  %v18337_v54 = vand.u32 4294901760, %v18336_v22 }
0x15ba   :  { %24903 = vmatpush3.msra.mxu1 %v30103_v39  ;;  %v19316_v39 = vand.u32 4294901760, %v30225_v28  ;;  %v30239_v1 = vsub.f32 %v19204_v40, %v30227_v24 }
0x15bb   :  { %24914 = vmatprep.subr.mxu1 %v31764_v56  ;;  %24870 = vmatmul.mubr.f32.vlgmr.msra.gmra.mxu0 %v18337_v54 }
0x15bc   :  { %24880 = vmatpush3.msra.mxu0 %v30107_v17  ;;  %24905 = vmatmul.mubr.f32.vlgmr.msra.gmra.mxu1 %v18333_v44  ;;  %v19197_v17 = vpop.permute.xlu1 %19196  ;;  %v19317_v20 = vsub.f32 %v30225_v28, %v19316_v39 }
0x15bd   :  { %24915 = vmatpush3.xpose.msra.mxu1 %v18847_v0  ;;  %24881 = vmatprep.subr.mxu0 %v31764_v56  ;;  %v19202_v50 = vsel %vm220_vm0, %v19197_v17, 0 }
0x15be   :  { %24882 = vmatpush3.msra.mxu0 %v30113_v31  ;;  %24883 = vmatprep.mubr.msk.f32.mxu0 %vm25601_vm1, %v31764_v56  ;;  %v19323_v31 = vand.u32 4294901760, %v30239_v1  ;;  %v19318_v38 = vand.u32 4294901760, %v19317_v20 }
0x15bf   :  { %24893 = vmatprep.subr.mxu0 %v31764_v56  ;;  %24916 = vmatprep.subr.mxu1 %v31764_v56 }
0x15c0   :  { %24884 = vmatmul.mubr.f32.vlgmr.msra.gmra.mxu0 %v18334_v62  ;;  %24918 = vmatprep.mubr.msk.f32.mxu1 %vm25601_vm1, %v31764_v56  ;;  %v19324_v10 = vsub.f32 %v30239_v1, %v19323_v31 }
0x15c1   :  { %24894 = vmatpush3.msra.mxu0 %v18374_v46  ;;  %24917 = vmatpush3.xpose.msra.mxu1 %v18854_v21  ;;  %v19275_v46 = vand.u32 4294901760, %v19202_v50 }
0x15c2   :  { %24895 = vmatprep.subr.mxu0 %v31764_v56  ;;  %24897 = vmatprep.mubr.msk.f32.mxu0 %vm25601_vm1, %v31764_v56  ;;  %v19325_v2 = vand.u32 4294901760, %v19324_v10 }
0x15c3   :  { %24896 = vmatpush3.msra.mxu0 %v18381_v7  ;;  %24928 = vmatprep.subr.mxu1 %v31764_v56  ;;  %v19276_v7 = vsub.f32 %v19202_v50, %v19275_v46 }
0x15c4   :  { %24907 = vmatprep.subr.mxu0 %v31764_v56  ;;  %24919 = vmatmul.mubr.f32.vlgmr.msra.gmra.mxu1 %v30194_v26 }
0x15c5   :  { %24898 = vmatmul.mubr.f32.vlgmr.msra.gmra.mxu0 %v18333_v44  ;;  %24929 = vmatpush3.xpose.msra.mxu1 %v30150_v48  ;;  %v19277_v49 = vand.u32 4294901760, %v19276_v7 }
0x15c6   :  { %24908 = vmatpush3.xpose.msra.mxu0 %v30150_v48  ;;  %24930 = vmatprep.subr.mxu1 %v31764_v56 }
0x15c7   :  { %24909 = vmatprep.subr.mxu0 %v31764_v56  ;;  %24911 = vmatprep.mubr.msk.f32.mxu0 %vm25601_vm1, %v31764_v56  ;;  %v19278_v29 = vsub.f32 %v19276_v7, %v19277_v49 }
0x15c8   :  { %24932 = vmatprep.mubr.msk.f32.mxu1 %vm25601_vm1, %v31764_v56 }
0x15c9   :  { %24931 = vmatpush3.xpose.msra.mxu1 %v30162_v4  ;;  %v19279_v58 = vand.u32 4294901760, %v19278_v29 }
0x15ca   :  { %24910 = vmatpush3.xpose.msra.mxu0 %v30162_v4  ;;  %24942 = vmatprep.subr.mxu1 %v31764_v56 }
0x15cb   :  { %24921 = vmatprep.subr.mxu0 %v31764_v56 }
0x15cc   :  { %24933 = vmatmul.mubr.f32.vlgmr.msra.gmra.mxu1 %v18806_v9 }
0x15cd   :  { %24912 = vmatmul.mubr.f32.vlgmr.msra.gmra.mxu0 %v18808_v52  ;;  %24943 = vmatpush3.xpose.msra.mxu1 %v30150_v48 }
0x15ce   :  { %24922 = vmatpush3.xpose.msra.mxu0 %v30165_v27  ;;  %24944 = vmatprep.subr.mxu1 %v31764_v56 }
0x15cf   :  { %24923 = vmatprep.subr.mxu0 %v31764_v56  ;;  %24925 = vmatprep.mubr.msk.f32.mxu0 %vm25601_vm1, %v31764_v56 }
0x15d0   :  { %24946 = vmatprep.mubr.msk.f32.mxu1 %vm25601_vm1, %v31764_v56 }
0x15d1   :  { %24945 = vmatpush3.xpose.msra.mxu1 %v30162_v4 }
0x15d2   :  { %24924 = vmatpush3.xpose.msra.mxu0 %v30172_v25  ;;  %24956 = vmatprep.subr.mxu1 %v31764_v56 }
0x15d3   :  { %24935 = vmatprep.subr.mxu0 %v31764_v56 }
0x15d4   :  { %24947 = vmatmul.mubr.f32.vlgmr.msra.gmra.mxu1 %v30194_v26 }
0x15d5   :  { %24926 = vmatmul.mubr.f32.vlgmr.msra.gmra.mxu0 %v18805_v36  ;;  %24957 = vmatpush3.xpose.msra.mxu1 %v19318_v38 }
0x15d6   :  { %24936 = vmatpush3.xpose.msra.mxu0 %v18845_v14  ;;  %24958 = vmatprep.subr.mxu1 %v31764_v56 }
0x15d7   :  { %24937 = vmatprep.subr.mxu0 %v31764_v56  ;;  %24939 = vmatprep.mubr.msk.f32.mxu0 %vm25601_vm1, %v31764_v56 }
0x15d8   :  { %24960 = vmatprep.mubr.msk.f32.mxu1 %vm25601_vm1, %v31764_v56 }
0x15d9   :  { %24959 = vmatpush3.xpose.msra.mxu1 %v19325_v2 }
0x15da   :  { %24938 = vmatpush3.xpose.msra.mxu0 %v18852_v30  ;;  %24970 = vmatprep.subr.mxu1 %v31764_v56 }
0x15db   :  { %24949 = vmatprep.subr.mxu0 %v31764_v56 }
0x15dc   :  { %24961 = vmatmul.mubr.f32.vlgmr.msra.gmra.mxu1 %v19275_v46 }
0x15dd   :  { %24940 = vmatmul.mubr.f32.vlgmr.msra.gmra.mxu0 %v30194_v26  ;;  %24971 = vmatpush3.xpose.msra.mxu1 %v30213_v19 }
0x15de   :  { %24950 = vmatpush3.xpose.msra.mxu0 %v30213_v19  ;;  %24972 = vmatprep.subr.mxu1 %v31764_v56 }
0x15df   :  { %24951 = vmatprep.subr.mxu0 %v31764_v56  ;;  %24953 = vmatprep.mubr.msk.f32.mxu0 %vm25601_vm1, %v31764_v56 }
0x15e0   :  { %24974 = vmatprep.mubr.msk.f32.mxu1 %vm25601_vm1, %v31764_v56 }
0x15e1   :  { %24973 = vmatpush3.xpose.msra.mxu1 %v30227_v24 }
0x15e2   :  { %24952 = vmatpush3.xpose.msra.mxu0 %v30227_v24  ;;  %24984 = vmatprep.subr.mxu1 %v31764_v56 }
0x15e3   :  { %24963 = vmatprep.subr.mxu0 %v31764_v56 }
0x15e4   :  { %24975 = vmatmul.mubr.f32.vlgmr.msra.gmra.mxu1 %v19277_v49 }
0x15e5   :  { %24954 = vmatmul.mubr.f32.vlgmr.msra.gmra.mxu0 %v19279_v58  ;;  %24985 = vmatpush3.xpose.msra.mxu1 %v30213_v19 }
0x15e6   :  { %24964 = vmatpush3.xpose.msra.mxu0 %v30225_v28  ;;  %24986 = vmatprep.subr.mxu1 %v31764_v56 }
0x15e7   :  { %24965 = vmatprep.subr.mxu0 %v31764_v56  ;;  %24967 = vmatprep.mubr.msk.f32.mxu0 %vm25601_vm1, %v31764_v56 }
0x15e8   :  { %24988 = vmatprep.mubr.msk.f32.mxu1 %vm25601_vm1, %v31764_v56 }
0x15e9   :  { %24987 = vmatpush3.xpose.msra.mxu1 %v30227_v24 }
0x15ea   :  { %24966 = vmatpush3.xpose.msra.mxu0 %v30239_v1  ;;  %24998 = vmatprep.subr.mxu1 %v31764_v56 }
0x15eb   :  { %24977 = vmatprep.subr.mxu0 %v31764_v56 }
0x15ec   :  { %24989 = vmatmul.mubr.f32.vlgmr.msra.gmra.mxu1 %v19275_v46 }
0x15ed   :  { %24968 = vmatmul.mubr.f32.vlgmr.msra.gmra.mxu0 %v19276_v7  ;;  %25002 = vmatprep.mubr.msk.f32.mxu1 %vm25601_vm1, %v31764_v56 }
0x15ee   :  { %24978 = vmatpush3.xpose.msra.mxu0 %v19316_v39  ;;  %24981 = vmatprep.mubr.msk.f32.mxu0 %vm25601_vm1, %v31764_v56 }
0x15ef   :  { %24979 = vmatprep.subr.mxu0 %v31764_v56 }
0x15f2   :  { %24980 = vmatpush3.xpose.msra.mxu0 %v19323_v31 }
0x15f3   :  { %24991 = vmatprep.subr.mxu0 %v31764_v56 }
0x15f5   :  { %24982 = vmatmul.mubr.f32.vlgmr.msra.gmra.mxu0 %v19275_v46 }
0x15f6   :  { %24995 = vmatprep.mubr.msk.f32.mxu0 %vm25601_vm1, %v31764_v56 }
0x165b   :  { %v17958_v32 = vpop.f32.mrf.mxu1 }
0x165d   :  { %v24836_v45 = vpop.f32.mrf.mxu1 }
0x165f   :  { %v18109_v16 = vpop.f32.mrf.mxu1 }
0x1661   :  { %v24850_v12 = vpop.f32.mrf.mxu1 }
0x1663   :  { %v17877_v13 = vpop.f32.mrf.mxu0 }
0x1664   :  { %v17959_v43 = vadd.f32 %v17958_v32, %v17877_v13  ;;  %v18259_v48 = vpop.f32.mrf.mxu1 }
0x1665   :  { %v24829_v60 = vpop.f32.mrf.mxu0 }
0x1666   :  { %v24864_v55 = vpop.f32.mrf.mxu1 }
0x1668   :  { %v18034_v18 = vpop.f32.mrf.mxu0 }
0x1669   :  { %v18035_v4 = vadd.f32 %v18034_v18, %v17959_v43 }
0x166a   :  { %v24843_v27 = vpop.f32.mrf.mxu0 }
0x166b   :  { %v18110_v3 = vadd.f32 %v18109_v16, %v18035_v4 }
0x166c   :  { %v18186_v44 = vpop.f32.mrf.mxu0 }
0x166d   :  { %v18187_v25 = vadd.f32 %v18186_v44, %v18110_v3 }
0x166e   :  { %v24857_v14 = vpop.f32.mrf.mxu0 }
0x166f   :  { %v30308_v62 = vadd.f32 %v18259_v48, %v18187_v25 }
0x1673   :  { %v18420_v63 = vpop.f32.mrf.mxu1 }
0x1675   :  { %v24878_v34 = vpop.f32.mrf.mxu1 }
0x1677   :  { %v18571_v30 = vpop.f32.mrf.mxu1 }
0x1679   :  { %v24892_v23 = vpop.f32.mrf.mxu1 }
0x167b   :  { %v18339_v22 = vpop.f32.mrf.mxu0 }
0x167c   :  { %v18421_v47 = vadd.f32 %v18420_v63, %v18339_v22  ;;  %v18721_v54 = vpop.f32.mrf.mxu1 }
0x167d   :  { %v24871_v42 = vpop.f32.mrf.mxu0 }
0x167e   :  { %v24906_v26 = vpop.f32.mrf.mxu1 }
0x1680   :  { %v18496_v0 = vpop.f32.mrf.mxu0 }
0x1681   :  { %v18497_v5 = vadd.f32 %v18496_v0, %v18421_v47 }
0x1682   :  { %v24885_v21 = vpop.f32.mrf.mxu0 }
0x1683   :  { %v18572_v36 = vadd.f32 %v18571_v30, %v18497_v5 }
0x1684   :  { %v18891_v51 = vpop.f32.mrf.mxu1 }
0x1685   :  { %v18648_v35 = vpop.f32.mrf.mxu0 }
0x1686   :  { %v18649_v9 = vadd.f32 %v18648_v35, %v18572_v36  ;;  %v24920_v19 = vpop.f32.mrf.mxu1 }
0x1687   :  { %v24899_v40 = vpop.f32.mrf.mxu0 }
0x1688   :  { %v30310_v41 = vadd.f32 %v18721_v54, %v18649_v9 }
0x168c   :  { %v19042_v28 = vpop.f32.mrf.mxu1 }
0x168d   :  { %v18810_v24 = vpop.f32.mrf.mxu0 }
0x168e   :  { %v24934_v52 = vpop.f32.mrf.mxu1  ;;  %v18892_v20 = vadd.f32 %v18891_v51, %v18810_v24 }
0x168f   :  { %v24913_v39 = vpop.f32.mrf.mxu0 }
0x1694   :  { %v19192_v1 = vpop.f32.mrf.mxu1 }
0x1695   :  { %v18967_v17 = vpop.f32.mrf.mxu0 }
0x1696   :  { %v24948_v31 = vpop.f32.mrf.mxu1  ;;  %v18968_v38 = vadd.f32 %v18967_v17, %v18892_v20 }
0x1697   :  { %v24927_v50 = vpop.f32.mrf.mxu0 }
0x1698   :  { %v19043_v46 = vadd.f32 %v19042_v28, %v18968_v38 }
0x169c   :  { %v19362_v10 = vpop.f32.mrf.mxu1 }
0x169d   :  { %v19119_v7 = vpop.f32.mrf.mxu0 }
0x169e   :  { %v19120_v2 = vadd.f32 %v19119_v7, %v19043_v46  ;;  %v24962_v49 = vpop.f32.mrf.mxu1 }
0x169f   :  { %v24941_v29 = vpop.f32.mrf.mxu0 }
0x16a0   :  { %v19193_v58 = vadd.f32 %v19192_v1, %v19120_v2 }
0x16a2   :  { %v19667_v32 = vsel %vm29449_vm11, -1e+09, %v19193_v58 }
0x16a3   :  { %v19669_v45 = vsel %vm13980_vm12, %v19667_v32, -inf }
0x16a4   :  { %19670 = vmax.xlane.f32.xlu0 %v19669_v45  ;;  %v19513_v16 = vpop.f32.mrf.mxu1 }
0x16a5   :  { %v19281_v12 = vpop.f32.mrf.mxu0 }
0x16a6   :  { %v24976_v13 = vpop.f32.mrf.mxu1  ;;  %v19363_v55 = vadd.f32 %v19362_v10, %v19281_v12 }
0x16a7   :  { %v24955_v43 = vpop.f32.mrf.mxu0 }
0x16ac   :  { %v19663_v48 = vpop.f32.mrf.mxu1 }
0x16ad   :  { %v19438_v60 = vpop.f32.mrf.mxu0 }
0x16ae   :  { %v24990_v18 = vpop.f32.mrf.mxu1  ;;  %v19439_v27 = vadd.f32 %v19438_v60, %v19363_v55 }
0x16af   :  { %v24969_v4 = vpop.f32.mrf.mxu0 }
0x16b0   :  { %v19514_v3 = vadd.f32 %v19513_v16, %v19439_v27 }
0x16b5   :  { %v19590_v44 = vpop.f32.mrf.mxu0 }
0x16b6   :  { %v19591_v25 = vadd.f32 %v19590_v44, %v19514_v3  ;;  %v13041_v3 = vld [vmem:[%s31423_s8 + $0xf8] sm:$0xff] }
0x16b7   :  { %v24983_v14 = vpop.f32.mrf.mxu0  ;;  %v13025_v44 = vld [vmem:[%s31423_s8 + $0x78] sm:$0xff] }
0x16b8   :  { %v19664_v63 = vadd.f32 %v19663_v48, %v19591_v25  ;;  %v13040_v25 = vld [vmem:[%s31423_s8 + $0xf0] sm:$0xff]  ;;  %v30411_v14 = vand.u32 4294901760, %v13041_v3 }
0x16ba   :  { %v19668_v6 = vsel %vm29458_vm14, -1e+09, %v19664_v63  ;;  %v30413_v63 = vand.u32 4294901760, %v13025_v44 }
0x16bb   :  { %v19672_v34 = vsel %vm13980_vm12, %v19668_v6, -inf }
0x16bc   :  { %19673 = vmax.xlane.f32.xlu1 %v19672_v34  ;;  %v13039_v34 = vld [vmem:[%s31423_s8 + $0xe8] sm:$0xff] }
0x16cd   :  { %19696 = vrot.lane.b32.xlu1 %v29996_v37, %s25603_s4 }
0x16d1   :  { %20168 = vrot.lane.b32.xlu1 %v30094_v8, %s25603_s4 }
0x16d5   :  { %20166 = vrot.lane.b32.xlu1 %v30097_v15, %s25603_s4 }
0x16d9   :  { %20636 = vrot.lane.b32.xlu1 %v30056_v11, %s25603_s4 }
0x16dd   :  { %20638 = vrot.lane.b32.xlu1 %v30058_v57, %s25603_s4 }
0x172d   :  { %v19671_v53 = vpop.xlane.xlu0 %19670 }
0x172e   :  { %v19675_v30 = vsub.f32 %v19667_v32, %v19671_v53  ;;  %v13023_v53 = vld [vmem:[%s31423_s8 + $0x68] sm:$0xff] }
0x1730   :  { %v19677_v23 = vmul.f32 1.442695, %v19675_v30 }
0x1732   :  { %25380 = vpow2.f32 %v19677_v23  ;;  %v30428_v23 = vand.u32 4294901760, %v13039_v34 }
0x173f   :  { %v25381_v22 = vpop.eup %25380 }
0x1740   :  { %v19681_v47 = vsel %vm13980_vm12, %v25381_v22, 0.0 }
0x1741   :  { %19682 = vadd.xlane.f32.xlu0 %v19681_v47  ;;  %v13038_v47 = vld [vmem:[%s31423_s8 + $0xe0] sm:$0xff] }
0x1745   :  { %v19674_v37 = vpop.xlane.xlu1 %19673 }
0x1746   :  { %v19676_v54 = vsub.f32 %v19668_v6, %v19674_v37  ;;  %v30415_v6 = vand.u32 4294901760, %v13040_v25  ;;  %v13022_v37 = vld [vmem:[%s31423_s8 + $0x60] sm:$0xff] }
0x1748   :  { %v19679_v8 = vmul.f32 1.442695, %v19676_v54  ;;  %v30439_v54 = vsub.f32 %v13041_v3, %v30411_v14 }
0x1749   :  { %v19697_v21 = vpop.permute.xlu1 %19696 }
0x174a   :  { %25382 = vpow2.f32 %v19679_v8  ;;  %v30337_v51 = vand.u32 4294901760, %v19697_v21  ;;  %31878 = vst [vmem:[#allocation26_spill] sm:$0xff] %v30439_v54  ;;  %v30442_v8 = vsub.f32 %v13025_v44, %v30413_v63 }
0x174d   :  { %v20169_v19 = vpop.permute.xlu1 %20168 }
0x174e   :  { %v30343_v50 = vand.u32 4294901760, %v20169_v19 }
0x1750   :  { %v20282_v49 = vsub.f32 %v20169_v19, %v30343_v50 }
0x1751   :  { %v20167_v20 = vpop.permute.xlu1 %20166 }
0x1752   :  { %v30348_v46 = vand.u32 4294901760, %v20167_v20  ;;  %v20283_v16 = vand.u32 4294901760, %v20282_v49 }
0x1754   :  { %v20289_v58 = vsub.f32 %v20167_v20, %v30348_v46  ;;  %v20284_v48 = vsub.f32 %v20282_v49, %v20283_v16 }
0x1756   :  { %v20290_v13 = vand.u32 4294901760, %v20289_v58  ;;  %v20285_v4 = vand.u32 4294901760, %v20284_v48 }
0x1757   :  { %v25383_v42 = vpop.eup %25382 }
0x1758   :  { %v19684_v15 = vsel %vm13980_vm12, %v25383_v42, 0.0  ;;  %v20291_v55 = vsub.f32 %v20289_v58, %v20290_v13 }
0x1759   :  { %19685 = vadd.xlane.f32.xlu0 %v19684_v15  ;;  %v30447_v15 = vand.u32 4294901760, %v13038_v47 }
0x175a   :  { %v20292_v27 = vand.u32 4294901760, %v20291_v55 }
0x176f   :  { %19698 = vrot.lane.b32.xlu0 %v29992_v33, %s25603_s4  ;;  %v19819_v33 = vsub.f32 %v19697_v21, %v30337_v51  ;;  %v31569_v21 = vand.u32 4294901760, %v30442_v8 }
0x1771   :  { %v19820_v52 = vand.u32 4294901760, %v19819_v33 }
0x1773   :  { %v19821_v31 = vsub.f32 %v19819_v33, %v19820_v52 }
0x1775   :  { %v19822_v2 = vand.u32 4294901760, %v19821_v31  ;;  %v13037_v31 = vld [vmem:[%s31423_s8 + $0xd8] sm:$0xff] }
0x1776   :  { %v30527_v48 = vand.u32 4294901760, %v13037_v31 }
0x17ca   :  { %v19683_v11 = vpop.xlane.xlu0 %19682 }
0x17cb   :  { %25384 = vrcp.f32 %v19683_v11 }
0x17d8   :  { %v25385_v57 = vpop.eup %25384 }
0x17d9   :  { %v19688_v26 = vmul.f32 %v25385_v57, %v25381_v22  ;;  %v30430_v22 = vand.u32 4294901760, %v13023_v53  ;;  %v30454_v57 = vsub.f32 %v13039_v34, %v30428_v23 }
0x17db   :  { %19692 = vst.msk [vmem:[#allocation16 + $0x30] sm:$0xff] %vm13980_vm12, %v19688_v26  ;;  %v19703_v0 = vsel %vm13980_vm12, %v19688_v26, 0  ;;  %v30457_v26 = vsub.f32 %v13023_v53, %v30430_v22 }
0x17dc   :  { %v30334_v5 = vand.u32 4294901760, %v19703_v0 }
0x17de   :  { %v19773_v36 = vsub.f32 %v19703_v0, %v30334_v5  ;;  %v30459_v0 = vand.u32 4294901760, %v13022_v37 }
0x17e0   :  { %v19774_v9 = vand.u32 4294901760, %v19773_v36  ;;  %v30473_v19 = vsub.f32 %v13022_v37, %v30459_v0 }
0x17e2   :  { %v19686_v35 = vpop.xlane.xlu0 %19685  ;;  %v19775_v28 = vsub.f32 %v19773_v36, %v19774_v9  ;;  %v31562_v20 = vand.u32 4294901760, %v30473_v19 }
0x17e3   :  { %25386 = vrcp.f32 %v19686_v35 }
0x17e4   :  { %v19776_v1 = vand.u32 4294901760, %v19775_v28  ;;  %v20785_v28 = vsub.f32 %v30442_v8, %v31569_v21 }
0x17e6   :  { %v19699_v40 = vpop.permute.xlu0 %19698 }
0x17e7   :  { %v19734_v24 = vand.u32 4294901760, %v19699_v40 }
0x17e9   :  { %v19812_v39 = vsub.f32 %v19699_v40, %v19734_v24  ;;  %24992 = vmatpush3.msra.mxu0 %v19734_v24 }
0x17ea   :  { %24993 = vmatprep.subr.mxu0 %v31764_v56 }
0x17eb   :  { %v19813_v17 = vand.u32 4294901760, %v19812_v39  ;;  %24994 = vmatpush3.msra.mxu0 %v30337_v51 }
0x17ec   :  { %24996 = vmatmul.mubr.f32.vlgmr.msra.gmra.mxu0 %v19776_v1  ;;  %25005 = vmatprep.subr.mxu0 %v31764_v56 }
0x17ed   :  { %v19814_v38 = vsub.f32 %v19812_v39, %v19813_v17  ;;  %25006 = vmatpush3.msra.mxu0 %v19812_v39  ;;  %25009 = vmatprep.mubr.msk.f32.mxu0 %vm25601_vm1, %v31764_v56 }
0x17ee   :  { %25007 = vmatprep.subr.mxu0 %v31764_v56 }
0x17ef   :  { %v19815_v10 = vand.u32 4294901760, %v19814_v38  ;;  %25008 = vmatpush3.msra.mxu0 %v19819_v33  ;;  %v31564_v33 = vand.u32 4294901760, %v30457_v26  ;;  %v13036_v38 = vld [vmem:[%s31423_s8 + $0xd0] sm:$0xff] }
0x17f0   :  { %v25387_v7 = vpop.eup %25386  ;;  %25010 = vmatmul.mubr.f32.vlgmr.msra.gmra.mxu0 %v19773_v36  ;;  %25019 = vmatprep.subr.mxu0 %v31764_v56  ;;  %v30531_v55 = vand.u32 4294901760, %v13036_v38 }
0x17f1   :  { %v19690_v29 = vmul.f32 %v25387_v7, %v25383_v42  ;;  %24999 = vmatpush3.msra.mxu1 %v19815_v10  ;;  %25020 = vmatpush3.msra.mxu0 %v19813_v17  ;;  %v30445_v42 = vsub.f32 %v13040_v25, %v30415_v6  ;;  %v20799_v17 = vsub.f32 %v30457_v26, %v31564_v33  ;;  %v20786_v10 = vand.u32 4294901760, %v20785_v28 }
0x17f2   :  { %25000 = vmatprep.subr.mxu1 %v31764_v56  ;;  %25021 = vmatprep.subr.mxu0 %v31764_v56  ;;  %v30543_v25 = vsub.f32 %v13037_v31, %v30527_v48  ;;  %v30549_v34 = vsub.f32 %v13036_v38, %v30531_v55 }
0x17f3   :  { %19693 = vst.msk [vmem:[#allocation16 + $0x38] sm:$0xff] %vm13980_vm12, %v19690_v29  ;;  %v20173_v32 = vsel %vm13980_vm12, %v19690_v29, 0  ;;  %25001 = vmatpush3.msra.mxu1 %v19822_v2  ;;  %25022 = vmatpush3.msra.mxu0 %v19820_v52  ;;  %v31568_v36 = vand.u32 4294901760, %v30445_v42  ;;  %v13035_v29 = vld [vmem:[%s31423_s8 + $0xc8] sm:$0xff] }
0x17f4   :  { %v20242_v45 = vand.u32 4294901760, %v20173_v32  ;;  %25023 = vmatprep.mubr.msk.f32.mxu0 %vm25601_vm1, %v31764_v56  ;;  %25003 = vmatmul.mubr.f32.vlgmr.msra.gmra.mxu1 %v30334_v5  ;;  %v30538_v3 = vand.u32 4294901760, %v13035_v29 }
0x17f5   :  { %25012 = vmatprep.subr.mxu1 %v31764_v56  ;;  %25024 = vmatmul.mubr.f32.vlgmr.msra.gmra.mxu0 %v30334_v5 }
0x17f6   :  { %25033 = vmatprep.subr.mxu0 %v31764_v56  ;;  %25013 = vmatpush3.msra.mxu1 %v19734_v24  ;;  %v20243_v12 = vsub.f32 %v20173_v32, %v20242_v45  ;;  %v30558_v37 = vsub.f32 %v13035_v29, %v30538_v3 }
0x17f7   :  { %25034 = vmatpush3.msra.mxu0 %v30343_v50  ;;  %25014 = vmatprep.subr.mxu1 %v31764_v56 }
0x17f8   :  { %25035 = vmatprep.subr.mxu0 %v31764_v56  ;;  %25015 = vmatpush3.msra.mxu1 %v30337_v51  ;;  %v20244_v43 = vand.u32 4294901760, %v20243_v12 }
0x17f9   :  { %25016 = vmatprep.mubr.msk.f32.mxu1 %vm25601_vm1, %v31764_v56  ;;  %25036 = vmatpush3.msra.mxu0 %v30348_v46 }
0x17fa   :  { %25017 = vmatmul.mubr.f32.vlgmr.msra.gmra.mxu1 %v19774_v9  ;;  %25026 = vmatprep.subr.mxu1 %v31764_v56  ;;  %v20245_v60 = vsub.f32 %v20243_v12, %v20244_v43  ;;  %v31566_v9 = vand.u32 4294901760, %v30454_v57 }
0x17fb   :  { %25027 = vmatpush3.msra.mxu1 %v19734_v24  ;;  %25030 = vmatprep.mubr.msk.f32.mxu1 %vm25601_vm1, %v31764_v56  ;;  %v20904_v24 = vsub.f32 %v30445_v42, %v31568_v36 }
0x17fc   :  { %25028 = vmatprep.subr.mxu1 %v31764_v56  ;;  %25037 = vmatprep.mubr.msk.f32.mxu0 %vm25601_vm1, %v31764_v56  ;;  %v20246_v18 = vand.u32 4294901760, %v20245_v60  ;;  %v20911_v1 = vsub.f32 %v30454_v57, %v31566_v9 }
0x17fd   :  { %25029 = vmatpush3.msra.mxu1 %v30337_v51  ;;  %25047 = vmatprep.subr.mxu0 %v31764_v56  ;;  %v30466_v51 = vsub.f32 %v13038_v47, %v30447_v15  ;;  %v20905_v7 = vand.u32 4294901760, %v20904_v24  ;;  %v31561_v24 = vand.u32 4294901760, %v30543_v25 }
0x17fe   :  { %25031 = vmatmul.mubr.f32.vlgmr.msra.gmra.mxu1 %v30334_v5  ;;  %25040 = vmatprep.subr.mxu1 %v31764_v56  ;;  %v31570_v5 = vand.u32 4294901760, %v30439_v54 }
0x17ff   :  { %25041 = vmatpush3.msra.mxu1 %v20285_v4  ;;  %25038 = vmatmul.mubr.f32.vlgmr.msra.gmra.mxu0 %v20246_v18  ;;  %v31563_v52 = vand.u32 4294901760, %v30466_v51  ;;  %v13018_v18 = vld [vmem:[%s31423_s8 + $0x40] sm:$0xff] }
0x1800   :  { %25042 = vmatprep.subr.mxu1 %v31764_v56  ;;  %25048 = vmatpush3.msra.mxu0 %v20282_v49  ;;  %v20897_v40 = vsub.f32 %v30439_v54, %v31570_v5  ;;  %v13020_v49 = vld [vmem:[%s31423_s8 + $0x50] sm:$0xff]  ;;  %v30563_v28 = vand.u32 4294901760, %v13018_v18 }
0x1801   :  { %25043 = vmatpush3.msra.mxu1 %v20292_v27  ;;  %25044 = vmatprep.mubr.msk.f32.mxu1 %vm25601_vm1, %v31764_v56  ;;  %v20918_v2 = vsub.f32 %v30466_v51, %v31563_v52  ;;  %v30536_v27 = vand.u32 4294901760, %v13020_v49 }
0x1802   :  { %25049 = vmatprep.subr.mxu0 %v31764_v56  ;;  %25045 = vmatmul.mubr.f32.vlgmr.msra.gmra.mxu1 %v20242_v45 }
0x1803   :  { %25050 = vmatpush3.msra.mxu0 %v20289_v58  ;;  %25054 = vmatprep.subr.mxu1 %v31764_v56  ;;  %v13019_v58 = vld [vmem:[%s31423_s8 + $0x48] sm:$0xff]  ;;  %v30555_v47 = vsub.f32 %v13020_v49, %v30536_v27 }
0x1804   :  { %25051 = vmatprep.mubr.msk.f32.mxu0 %vm25601_vm1, %v31764_v56  ;;  %25055 = vmatpush3.msra.mxu1 %v30343_v50  ;;  %v30540_v44 = vand.u32 4294901760, %v13019_v58 }
0x1805   :  { %25061 = vmatprep.subr.mxu0 %v31764_v56  ;;  %25052 = vmatmul.mubr.f32.vlgmr.msra.gmra.mxu0 %v20243_v12  ;;  %v20806_v12 = vsub.f32 %v30473_v19, %v31562_v20  ;;  %v31557_v31 = vand.u32 4294901760, %v30555_v47 }
0x1806   :  { %25056 = vmatprep.subr.mxu1 %v31764_v56  ;;  %25062 = vmatpush3.msra.mxu0 %v20283_v16  ;;  %v20800_v16 = vand.u32 4294901760, %v20799_v17 }
0x1807   :  { %25057 = vmatpush3.msra.mxu1 %v30348_v46  ;;  %25058 = vmatprep.mubr.msk.f32.mxu1 %vm25601_vm1, %v31764_v56  ;;  %v20807_v4 = vand.u32 4294901760, %v20806_v12  ;;  %v20820_v29 = vsub.f32 %v30555_v47, %v31557_v31  ;;  %v13017_v12 = vld [vmem:[%s31423_s8 + $0x38] sm:$0xff]  ;;  %v13031_v31 = vld [vmem:[%s31423_s8 + $0xa8] sm:$0xff] }
0x1808   :  { %25063 = vmatprep.subr.mxu0 %v31764_v56  ;;  %25059 = vmatmul.mubr.f32.vlgmr.msra.gmra.mxu1 %v20244_v43  ;;  %v20919_v43 = vand.u32 4294901760, %v20918_v2  ;;  %v30633_v52 = vand.u32 4294901760, %v13017_v12 }
0x1809   :  { %25064 = vmatpush3.msra.mxu0 %v20290_v13  ;;  %25068 = vmatprep.subr.mxu1 %v31764_v56  ;;  %v13034_v13 = vld [vmem:[%s31423_s8 + $0xc0] sm:$0xff] }
0x180a   :  { %25065 = vmatprep.mubr.msk.f32.mxu0 %vm25601_vm1, %v31764_v56  ;;  %25069 = vmatpush3.msra.mxu1 %v30343_v50  ;;  %v13021_v50 = vld [vmem:[%s31423_s8 + $0x58] sm:$0xff]  ;;  %v30551_v53 = vand.u32 4294901760, %v13034_v13 }
0x180b   :  { %25066 = vmatmul.mubr.f32.vlgmr.msra.gmra.mxu0 %v20242_v45  ;;  %25070 = vmatprep.subr.mxu1 %v31764_v56  ;;  %v30529_v60 = vand.u32 4294901760, %v13021_v50 }
0x180c   :  { %25071 = vmatpush3.msra.mxu1 %v30348_v46  ;;  %25072 = vmatprep.mubr.msk.f32.mxu1 %vm25601_vm1, %v31764_v56  ;;  %v13024_v56 = vld [vmem:[%s31423_s8 + $0x70] sm:$0xff]  ;;  %v20898_v46 = vand.u32 4294901760, %v20897_v40  ;;  %v30561_v40 = vsub.f32 %v13019_v58, %v30540_v44  ;;  %v30570_v17 = vsub.f32 %v13034_v13, %v30551_v53 }
0x180d   :  { %25073 = vmatmul.mubr.f32.vlgmr.msra.gmra.mxu1 %v20242_v45  ;;  %v30426_v30 = vand.u32 4294901760, %v13024_v56  ;;  %23575 = vmatprep.subr.mxu0 %v30411_v14  ;;  %v20912_v45 = vand.u32 4294901760, %v20911_v1  ;;  %v31558_v1 = vand.u32 4294901760, %v30549_v34  ;;  %v13032_v13 = vld [vmem:[%s31423_s8 + $0xb0] sm:$0xff] }
0x180e   :  { %23576 = vmatpush3.msra.mxu0 %v30413_v63  ;;  %23613 = vmatprep.subr.mxu1 %v20898_v46  ;;  %31879 = vst [vmem:[#allocation28_spill] sm:$0xff] %v30570_v17  ;;  %v31555_v38 = vand.u32 4294901760, %v30561_v40  ;;  %v30577_v46 = vsub.f32 %v13018_v18, %v30563_v28  ;;  %v31559_v49 = vand.u32 4294901760, %v30570_v17  ;;  %v30635_v33 = vand.u32 4294901760, %v13032_v13 }
0x180f   :  { %v30451_v11 = vsub.f32 %v13024_v56, %v30426_v30  ;;  %23577 = vmatprep.subr.mxu0 %v30415_v6  ;;  %23614 = vmatpush3.msra.mxu1 %v20786_v10  ;;  %v30546_v56 = vsub.f32 %v13021_v50, %v30529_v60  ;;  %v31556_v50 = vand.u32 4294901760, %v30558_v37  ;;  %v20925_v10 = vsub.f32 %v30543_v25, %v31561_v24 }
0x1810   :  { %23578 = vmatpush3.msra.mxu0 %v30426_v30  ;;  %23615 = vmatprep.subr.mxu1 %v20905_v7  ;;  %31880 = vst [vmem:[#allocation29_spill] sm:$0xff] %v30577_v46  ;;  %v20932_v2 = vsub.f32 %v30549_v34, %v31558_v1  ;;  %v13015_v1 = vld [vmem:[%s31423_s8 + $0x28] sm:$0xff] }
0x1811   :  { %v31567_v35 = vand.u32 4294901760, %v30451_v11  ;;  %23579 = vmatprep.subr.mxu0 %v30428_v23  ;;  %v20939_v58 = vsub.f32 %v30558_v37, %v31556_v50  ;;  %v13016_v50 = vld [vmem:[%s31423_s8 + $0x30] sm:$0xff]  ;;  %v30644_v9 = vand.u32 4294901760, %v13015_v1 }
0x1812   :  { %23580 = vmatpush3.msra.mxu0 %v30430_v22 }
0x1813   :  { %v20792_v39 = vsub.f32 %v30451_v11, %v31567_v35  ;;  %23581 = vmatprep.subr.mxu0 %v30447_v15  ;;  %v30653_v35 = vsub.f32 %v13032_v13, %v30635_v33 }
0x1814   :  { %23582 = vmatpush3.msra.mxu0 %v30459_v0 }
0x1815   :  { %v20793_v32 = vand.u32 4294901760, %v20792_v39  ;;  %23583 = vmatprep.subr.mxu0 %v30527_v48  ;;  %v31560_v39 = vand.u32 4294901760, %v30546_v56  ;;  %31883 = vst [vmem:[#allocation36_spill] sm:$0xff] %v30653_v35 }
0x1816   :  { %23584 = vmatpush3.msra.mxu0 %v30529_v60 }
0x1817   :  { %23616 = vmatpush3.msra.mxu1 %v20793_v32  ;;  %23585 = vmatprep.subr.mxu0 %v30531_v55  ;;  %v20813_v7 = vsub.f32 %v30546_v56, %v31560_v39  ;;  %v20827_v32 = vsub.f32 %v30561_v40, %v31555_v38  ;;  %v20946_v38 = vsub.f32 %v30570_v17, %v31559_v49  ;;  %v13030_v39 = vld [vmem:[%s31423_s8 + $0xa0] sm:$0xff] }
0x1818   :  { %23617 = vmatprep.subr.mxu1 %v20912_v45  ;;  %23586 = vmatpush3.msra.mxu0 %v30536_v27  ;;  %v31565_v45 = vand.u32 4294901760, %v30577_v46  ;;  %v30655_v36 = vand.u32 4294901760, %v13030_v39 }
0x1819   :  { %23618 = vmatpush3.msra.mxu1 %v20800_v16  ;;  %23587 = vmatprep.subr.mxu0 %v30538_v3  ;;  %v13033_v16 = vld [vmem:[%s31423_s8 + $0xb8] sm:$0xff]  ;;  %v20814_v18 = vand.u32 4294901760, %v20813_v7  ;;  %v20940_v7 = vand.u32 4294901760, %v20939_v58  ;;  %v20947_v24 = vand.u32 4294901760, %v20946_v38 }
0x181a   :  { %23619 = vmatprep.subr.mxu1 %v20919_v43  ;;  %23588 = vmatpush3.msra.mxu0 %v30540_v44  ;;  %v20926_v43 = vand.u32 4294901760, %v20925_v10  ;;  %v20821_v10 = vand.u32 4294901760, %v20820_v29  ;;  %v20834_v49 = vsub.f32 %v30577_v46, %v31565_v45  ;;  %v30631_v20 = vand.u32 4294901760, %v13033_v16  ;;  %v13014_v29 = vld [vmem:[%s31423_s8 + $0x20] sm:$0xff]  ;;  %31884 = vst [vmem:[#allocation35_spill] sm:$0xff] %v30655_v36 }
0x181b   :  { %23620 = vmatpush3.msra.mxu1 %v20807_v4  ;;  %v20933_v4 = vand.u32 4294901760, %v20932_v2  ;;  %23589 = vmatprep.subr.mxu0 %v30551_v53  ;;  %v20828_v2 = vand.u32 4294901760, %v20827_v32  ;;  %v30640_v32 = vand.u32 4294901760, %v13016_v50  ;;  %v30642_v45 = vand.u32 4294901760, %v13031_v31 }
0x181c   :  { %23590 = vmatpush3.msra.mxu0 %v30563_v28  ;;  %23621 = vmatprep.subr.mxu1 %v20926_v43  ;;  %v20835_v58 = vand.u32 4294901760, %v20834_v49  ;;  %v30647_v38 = vsub.f32 %v13033_v16, %v30631_v20  ;;  %v30650_v43 = vsub.f32 %v13017_v12, %v30633_v52  ;;  %v30665_v16 = vsub.f32 %v13015_v1, %v30644_v9 }
0x181d   :  { %23622 = vmatpush3.msra.mxu1 %v20814_v18  ;;  %23591 = vmatprep.subr.mxu0 %v30631_v20  ;;  %v30659_v49 = vsub.f32 %v13016_v50, %v30640_v32  ;;  %v30662_v18 = vsub.f32 %v13031_v31, %v30642_v45  ;;  %v30674_v50 = vsub.f32 %v13030_v39, %v30655_v36 }
0x181e   :  { %23623 = vmatprep.subr.mxu1 %v20933_v4  ;;  %31881 = vst [vmem:[#allocation27_spill] sm:$0xff] %v30647_v38  ;;  %31882 = vst [vmem:[#allocation40_spill] sm:$0xff] %v30650_v43  ;;  %v30667_v4 = vand.u32 4294901760, %v13014_v29  ;;  %23592 = vmatpush3.msra.mxu0 %v30633_v52  ;;  %v31571_v12 = vand.u32 4294901760, %v30647_v38  ;;  %v31572_v13 = vand.u32 4294901760, %v30650_v43 }
0x181f   :  { %23624 = vmatpush3.msra.mxu1 %v20821_v10  ;;  %31885 = vst [vmem:[#allocation39_spill] sm:$0xff] %v30659_v49  ;;  %31886 = vst [vmem:[#allocation31_spill] sm:$0xff] %v30662_v18  ;;  %v31575_v10 = vand.u32 4294901760, %v30653_v35  ;;  %23593 = vmatprep.subr.mxu0 %v30635_v33  ;;  %v31576_v1 = vand.u32 4294901760, %v30659_v49  ;;  %v31577_v31 = vand.u32 4294901760, %v30662_v18 }
0x1820   :  { %31887 = vst [vmem:[#allocation30_spill] sm:$0xff] %v30665_v16  ;;  %23625 = vmatprep.subr.mxu1 %v20940_v7  ;;  %31888 = vst [vmem:[#allocation33_spill] sm:$0xff] %v30674_v50  ;;  %v30681_v7 = vsub.f32 %v13014_v29, %v30667_v4  ;;  %23594 = vmatpush3.msra.mxu0 %v30640_v32  ;;  %v20953_v39 = vsub.f32 %v30647_v38, %v31571_v12  ;;  %v31890_v12 = vand.u32 4294901760, %v30665_v16 }
0x1821   :  { %23626 = vmatpush3.msra.mxu1 %v20828_v2  ;;  %v20841_v2 = vsub.f32 %v30650_v43, %v31572_v13  ;;  %v20960_v5 = vsub.f32 %v30653_v35, %v31575_v10  ;;  %23595 = vmatprep.subr.mxu0 %v30642_v45  ;;  %v20967_v29 = vsub.f32 %v30662_v18, %v31577_v31  ;;  %v13029_v10 = vld [vmem:[%s31423_s8 + $0x98] sm:$0xff] }
0x1822   :  { %31889 = vst [vmem:[#allocation34_spill] sm:$0xff] %v30681_v7  ;;  %23627 = vmatprep.subr.mxu1 %v20947_v24  ;;  %v20848_v24 = vsub.f32 %v30659_v49, %v31576_v1  ;;  %v20855_v13 = vsub.f32 %v30665_v16, %v31890_v12  ;;  %v13028_v1 = vld [vmem:[%s31423_s8 + $0x90] sm:$0xff]  ;;  %23596 = vmatpush3.msra.mxu0 %v30644_v9  ;;  %v20954_v31 = vand.u32 4294901760, %v20953_v39  ;;  %v31891_v12 = vand.u32 4294901760, %v30674_v50  ;;  %v13027_v49 = vld [vmem:[%s31423_s8 + $0x88] sm:$0xff] }
0x1823   :  { %23628 = vmatpush3.msra.mxu1 %v20835_v58  ;;  %v13013_v58 = vld [vmem:[%s31423_s8 + $0x18] sm:$0xff]  ;;  %v20842_v21 = vand.u32 4294901760, %v20841_v2  ;;  %v20961_v18 = vand.u32 4294901760, %v20960_v5  ;;  %v13012_v16 = vld [vmem:[%s31423_s8 + $0x10] sm:$0xff]  ;;  %23597 = vmatprep.subr.mxu0 %v30655_v36  ;;  %v31892_v38 = vand.u32 4294901760, %v30681_v7  ;;  %v20968_v5 = vand.u32 4294901760, %v20967_v29 }
0x1824   :  { %v20974_v43 = vsub.f32 %v30674_v50, %v31891_v12  ;;  %v20849_v35 = vand.u32 4294901760, %v20848_v24  ;;  %23598 = vmatpush3.msra.mxu0 %v30667_v4  ;;  %23629 = vmatprep.subr.mxu1 %v20954_v31  ;;  %v30729_v2 = vand.u32 4294901760, %v13029_v10  ;;  %v30731_v12 = vand.u32 4294901760, %v13013_v58 }
0x1825   :  { %v20862_v39 = vsub.f32 %v30681_v7, %v31892_v38  ;;  %v30733_v50 = vand.u32 4294901760, %v13028_v1  ;;  %23630 = vmatpush3.msra.mxu1 %v20842_v21  ;;  %v20856_v46 = vand.u32 4294901760, %v20855_v13  ;;  %v30735_v17 = vand.u32 4294901760, %v13012_v16 }
0x1826   :  { %v30737_v36 = vand.u32 4294901760, %v13027_v49  ;;  %23631 = vmatprep.subr.mxu1 %v20961_v18  ;;  %v20975_v24 = vand.u32 4294901760, %v20974_v43  ;;  %v30740_v38 = vsub.f32 %v13029_v10, %v30729_v2  ;;  %v30743_v31 = vsub.f32 %v13013_v58, %v30731_v12  ;;  %23599 = vmatprep.subr.mxu0 %v30729_v2 }
0x1827   :  { %31893 = vst [vmem:[#allocation42_spill] sm:$0xff] %v30735_v17  ;;  %v30746_v29 = vsub.f32 %v13028_v1, %v30733_v50  ;;  %23632 = vmatpush3.msra.mxu1 %v20849_v35  ;;  %v20863_v21 = vand.u32 4294901760, %v20862_v39  ;;  %v30750_v13 = vsub.f32 %v13012_v16, %v30735_v17  ;;  %23600 = vmatpush3.msra.mxu0 %v30731_v12 }
0x1828   :  { %31894 = vst [vmem:[#allocation32_spill] sm:$0xff] %v30737_v36  ;;  %31895 = vst [vmem:[#allocation23_spill] sm:$0xff] %v30740_v38  ;;  %v30753_v7 = vsub.f32 %v13027_v49, %v30737_v36  ;;  %23633 = vmatprep.subr.mxu1 %v20968_v5  ;;  %v31598_v43 = vand.u32 4294901760, %v30740_v38  ;;  %v31601_v18 = vand.u32 4294901760, %v30743_v31  ;;  %23601 = vmatprep.subr.mxu0 %v30733_v50 }
0x1829   :  { %31896 = vst [vmem:[#allocation47_spill] sm:$0xff] %v30743_v31  ;;  %31897 = vst [vmem:[#allocation44_spill] sm:$0xff] %v30746_v29  ;;  %v31602_v10 = vand.u32 4294901760, %v30746_v29  ;;  %23634 = vmatpush3.msra.mxu1 %v20856_v46  ;;  %v31603_v35 = vand.u32 4294901760, %v30750_v13  ;;  %23602 = vmatpush3.msra.mxu0 %v30735_v17 }
0x182a   :  { %31898 = vst [vmem:[#allocation49_spill] sm:$0xff] %v30750_v13  ;;  %31899 = vst [vmem:[#allocation53_spill] sm:$0xff] %v30753_v7  ;;  %v31604_v16 = vand.u32 4294901760, %v30753_v7  ;;  %23635 = vmatprep.subr.mxu1 %v20975_v24  ;;  %v20981_v49 = vsub.f32 %v30740_v38, %v31598_v43  ;;  %v20869_v1 = vsub.f32 %v30743_v31, %v31601_v18  ;;  %23603 = vmatprep.subr.mxu0 %v30737_v36 }
0x182b   :  { %v20988_v58 = vsub.f32 %v30746_v29, %v31602_v10  ;;  %23636 = vmatpush3.msra.mxu1 %v20863_v21  ;;  %v20876_v46 = vsub.f32 %v30750_v13, %v31603_v35  ;;  %v13011_v21 = vld [vmem:[%s31423_s8 + $0x8] sm:$0xff] }
0x182c   :  { %v20995_v39 = vsub.f32 %v30753_v7, %v31604_v16  ;;  %v20982_v5 = vand.u32 4294901760, %v20981_v49  ;;  %v20870_v24 = vand.u32 4294901760, %v20869_v1  ;;  %v30782_v35 = vand.u32 4294901760, %v13011_v21  ;;  %v13026_v49 = vld [vmem:[%s31423_s8 + $0x80] sm:$0xff] }
0x182d   :  { %v20989_v43 = vand.u32 4294901760, %v20988_v58  ;;  %v20877_v38 = vand.u32 4294901760, %v20876_v46  ;;  %v30787_v58 = vand.u32 4294901760, %v13026_v49 }
0x182e   :  { %23637 = vmatprep.subr.mxu1 %v20982_v5  ;;  %v20996_v18 = vand.u32 4294901760, %v20995_v39  ;;  %31900 = vst [vmem:[#allocation52_spill] sm:$0xff] %v30782_v35  ;;  %23604 = vmatpush3.msra.mxu0 %v30782_v35 }
0x182f   :  { %23638 = vmatpush3.msra.mxu1 %v20870_v24  ;;  %31901 = vst [vmem:[#allocation54_spill] sm:$0xff] %v30787_v58  ;;  %v30799_v39 = vsub.f32 %v13026_v49, %v30787_v58  ;;  %23605 = vmatprep.subr.mxu0 %v30787_v58 }
0x1830   :  { %23639 = vmatprep.subr.mxu1 %v20989_v43  ;;  %v13010_v43 = vld [vmem:[%s31423_s8] sm:$0xff]  ;;  %s25604_s8 = smov [#allocation14]  }
0x1831   :  { %23640 = vmatpush3.msra.mxu1 %v20877_v38  ;;  %v30793_v38 = vsub.f32 %v13011_v21, %v30782_v35  ;;  %31904 = vst [vmem:[#allocation45_spill] sm:$0xff] %v30799_v39  ;;  %v31625_v21 = vand.u32 4294901760, %v30799_v39 }
0x1832   :  { %23641 = vmatprep.subr.mxu1 %v20996_v18  ;;  %v30795_v18 = vand.u32 4294901760, %v13010_v43 }
0x1833   :  { %31902 = vst [vmem:[#allocation51_spill] sm:$0xff] %v30793_v38  ;;  %v31620_v5 = vand.u32 4294901760, %v30793_v38  ;;  %v21002_v13 = vsub.f32 %v30799_v39, %v31625_v21 }
0x1834   :  { %31903 = vst [vmem:[#allocation43_spill] sm:$0xff] %v30795_v18  ;;  %v30804_v24 = vsub.f32 %v13010_v43, %v30795_v18  ;;  %23606 = vmatpush3.msra.mxu0 %v30795_v18 }
0x1835   :  { %23651 = vmatprep.subr.mxu0 %v30439_v54  ;;  %v20883_v16 = vsub.f32 %v30793_v38, %v31620_v5  ;;  %v21003_v54 = vand.u32 4294901760, %v21002_v13 }
0x1836   :  { %31905 = vst [vmem:[#allocation38_spill] sm:$0xff] %v30804_v24  ;;  %v31630_v49 = vand.u32 4294901760, %v30804_v24 }
0x1837   :  { %v20884_v31 = vand.u32 4294901760, %v20883_v16 }
0x1839   :  { %23642 = vmatpush3.msra.mxu1 %v20884_v31 }
0x183a   :  { %23643 = vmatprep.subr.mxu1 %v21003_v54 }
0x18ac   :  { %v19778_v10 = vpop.f32.mrf.mxu0 }
0x18ae   :  { %v24997_v1 = vpop.f32.mrf.mxu0 }
0x18b0   :  { %v19935_v46 = vpop.f32.mrf.mxu0 }
0x18b2   :  { %v25011_v1 = vpop.f32.mrf.mxu0 }
0x18b3   :  { %v20890_v1 = vsub.f32 %v30804_v24, %v31630_v49 }
0x18b4   :  { %v19859_v7 = vpop.f32.mrf.mxu1 }
0x18b5   :  { %v19860_v43 = vadd.f32 %v19859_v7, %v19778_v10  ;;  %v20087_v29 = vpop.f32.mrf.mxu0  ;;  %v20891_v5 = vand.u32 4294901760, %v20890_v1 }
0x18b6   :  { %v25004_v18 = vpop.f32.mrf.mxu1 }
0x18b7   :  { %v25025_v58 = vpop.f32.mrf.mxu0  ;;  %v19936_v35 = vadd.f32 %v19935_v46, %v19860_v43  ;;  %23644 = vmatpush3.msra.mxu1 %v20891_v5 }
0x18b8   :  { %23689 = vmatprep.subr.mxu1 %v30411_v14 }
0x18ba   :  { %v20010_v38 = vpop.f32.mrf.mxu1 }
0x18bb   :  { %v20011_v36 = vadd.f32 %v20010_v38, %v19936_v35 }
0x18bc   :  { %v25018_v21 = vpop.f32.mrf.mxu1 }
0x18bd   :  { %v20088_v7 = vadd.f32 %v20087_v29, %v20011_v36 }
0x18be   :  { %v20160_v10 = vpop.f32.mrf.mxu1 }
0x18bf   :  { %v20161_v16 = vadd.f32 %v20160_v10, %v20088_v7  ;;  %v20248_v39 = vpop.f32.mrf.mxu0 }
0x18c0   :  { %v25032_v17 = vpop.f32.mrf.mxu1 }
0x18c1   :  { %20644 = vrot.lane.b32.xlu0 %v20161_v16, %s25603_s4  ;;  %v25039_v18 = vpop.f32.mrf.mxu0  ;;  %v20637_v17 = vpop.permute.xlu1 %20636 }
0x18c2   :  { %v20329_v13 = vpop.f32.mrf.mxu1  ;;  %v20650_v7 = vsel %vm220_vm0, %v29691_v61, %v20637_v17 }
0x18c3   :  { %v20330_v58 = vadd.f32 %v20329_v13, %v20248_v39  ;;  %v30824_v39 = vand.u32 4294901760, %v20650_v7 }
0x18c4   :  { %v25046_v46 = vpop.f32.mrf.mxu1 }
0x18c5   :  { %v20405_v31 = vpop.f32.mrf.mxu0  ;;  %31906 = vst [vmem:[#allocation41_spill] sm:$0xff] %v30824_v39  ;;  %v30827_v10 = vsub.f32 %v20650_v7, %v30824_v39  ;;  %v20639_v13 = vpop.permute.xlu1 %20638 }
0x18c6   :  { %v20406_v43 = vadd.f32 %v20405_v31, %v20330_v58 }
0x18c7   :  { %v25053_v54 = vpop.f32.mrf.mxu0  ;;  %v31633_v18 = vand.u32 4294901760, %v30827_v10 }
0x18c8   :  { %v20480_v5 = vpop.f32.mrf.mxu1 }
0x18c9   :  { %v20481_v1 = vadd.f32 %v20480_v5, %v20406_v43  ;;  %v20759_v46 = vsub.f32 %v30827_v10, %v31633_v18  ;;  %v31924_v18 = vld [vmem:[#allocation43_spill] sm:$0xff] }
0x18ca   :  { %v25060_v49 = vpop.f32.mrf.mxu1 }
0x18cb   :  { %v20557_v24 = vpop.f32.mrf.mxu0  ;;  %v20760_v5 = vand.u32 4294901760, %v20759_v46  ;;  %v31912_v46 = vld [vmem:[#allocation27_spill] sm:$0xff] }
0x18cc   :  { %v20558_v35 = vadd.f32 %v20557_v24, %v20481_v1 }
0x18cd   :  { %v25067_v38 = vpop.f32.mrf.mxu0  ;;  %v20630_v36 = vpop.f32.mrf.mxu1 }
0x18ce   :  { %v20631_v29 = vadd.f32 %v20630_v36, %v20558_v35 }
0x18cf   :  { %v25074_v21 = vpop.f32.mrf.mxu1 }
0x18d0   :  { %20646 = vrot.lane.b32.xlu0 %v20631_v29, %s25603_s4  ;;  %s22833_s4 = sshll.u32 %s25604_s8, 4  ;;  %s22834_s4 = int_to_ptr.vmem [resolvable:$true] %s22833_s4 }
0x18d1   :  { %s25518_s14 = scalar_lea.vmem %s22834_s4, 1024  ;;  %p25523_p3 = scmp.lt.s32.totalorder %s22834_s4, %s22834_s4 }
0x18d2   :  { %p25519_p2 = scmp.ne.s32.totalorder %s22834_s4, %s25518_s14  ;;  %p25524_p4 = scmp.lt.s32.totalorder %s25518_s14, %s25518_s14 }
0x18d4   :  { %p25525_p5 = por %p25524_p4, %p25523_p3 }
0x18d6   :  { %p25526_p6 = pnand %p25525_p5, %p25519_p2 }
0x1933   :  { %v20645_v16 = vpop.permute.xlu0 %20644 }
0x1934   :  { %v20652_v49 = vsel %vm220_vm0, %v30308_v62, %v20645_v16  ;;  %v20651_v62 = vsel %vm220_vm0, %v29693_v59, %v20639_v13  ;;  %v31910_v13 = vld [vmem:[#allocation35_spill] sm:$0xff] }
0x1935   :  { %v30831_v24 = vand.u32 4294901760, %v20652_v49  ;;  %v30846_v43 = vand.u32 4294901760, %v20651_v62 }
0x1937   :  { %v20751_v58 = vsub.f32 %v20652_v49, %v30831_v24  ;;  %21006 = vmatprep.mubr.f32.mxu1 %v30831_v24  ;;  %31907 = vst [vmem:[#allocation37_spill] sm:$0xff] %v30846_v43  ;;  %v30853_v59 = vsub.f32 %v20651_v62, %v30846_v43  ;;  %v31909_v49 = vld [vmem:[#allocation28_spill] sm:$0xff] }
0x1938   :  { %21008 = vmatmul.mubr.f32.vlgmr.msra.gmra.mxu1 %v30824_v39  ;;  %v31913_v62 = vld [vmem:[#allocation40_spill] sm:$0xff]  ;;  %v31927_v39 = vld [vmem:[#allocation47_spill] sm:$0xff] }
0x1939   :  { %23690 = vmatpush3.msra.mxu1 %v30413_v63  ;;  %v20752_v61 = vand.u32 4294901760, %v20751_v58  ;;  %v20773_v36 = vand.u32 4294901760, %v30853_v59 }
0x193a   :  { %23691 = vmatprep.subr.mxu1 %v30415_v6 }
0x193b   :  { %23692 = vmatpush3.msra.mxu1 %v30426_v30  ;;  %v20753_v31 = vsub.f32 %v20751_v58, %v20752_v61  ;;  %v20774_v21 = vsub.f32 %v30853_v59, %v20773_v36 }
0x193c   :  { %23693 = vmatprep.subr.mxu1 %v30428_v23 }
0x193d   :  { %23694 = vmatpush3.msra.mxu1 %v30430_v22  ;;  %v20754_v54 = vand.u32 4294901760, %v20753_v31  ;;  %v20775_v16 = vand.u32 4294901760, %v20774_v21  ;;  %v31914_v31 = vld [vmem:[#allocation36_spill] sm:$0xff] }
0x193e   :  { %23695 = vmatprep.subr.mxu1 %v30447_v15  ;;  %v31920_v21 = vld [vmem:[#allocation52_spill] sm:$0xff] }
0x193f   :  { %23696 = vmatpush3.msra.mxu1 %v30459_v0  ;;  %20755 = vmatprep.mubr.f32.mxu0 %v20754_v54  ;;  %v31916_v54 = vld [vmem:[#allocation42_spill] sm:$0xff] }
0x1940   :  { %23697 = vmatprep.subr.mxu1 %v30527_v48  ;;  %20761 = vmatmul.mubr.f32.vlgmr.msra.gmra.mxu0 %v20760_v5  ;;  %v31917_v5 = vld [vmem:[#allocation31_spill] sm:$0xff] }
0x1941   :  { %23652 = vmatpush3.msra.mxu0 %v30442_v8  ;;  %23698 = vmatpush3.msra.mxu1 %v30529_v60 }
0x1942   :  { %v20647_v1 = vpop.permute.xlu0 %20646  ;;  %23653 = vmatprep.subr.mxu0 %v30445_v42  ;;  %23699 = vmatprep.subr.mxu1 %v30531_v55 }
0x1943   :  { %v20653_v35 = vsel %vm220_vm0, %v30310_v41, %v20647_v1  ;;  %23654 = vmatpush3.msra.mxu0 %v30451_v11  ;;  %23700 = vmatpush3.msra.mxu1 %v30536_v27  ;;  %v31918_v1 = vld [vmem:[#allocation32_spill] sm:$0xff] }
0x1944   :  { %v30863_v38 = vand.u32 4294901760, %v20653_v35  ;;  %23655 = vmatprep.subr.mxu0 %v30454_v57  ;;  %23701 = vmatprep.subr.mxu1 %v30538_v3 }
0x1945   :  { %23656 = vmatpush3.msra.mxu0 %v30457_v26  ;;  %23702 = vmatpush3.msra.mxu1 %v30540_v44 }
0x1946   :  { %31908 = vst [vmem:[#allocation46_spill] sm:$0xff] %v30863_v38  ;;  %v30871_v29 = vsub.f32 %v20653_v35, %v30863_v38  ;;  %21013 = vmatprep.mubr.f32.mxu1 %v30863_v38  ;;  %23657 = vmatprep.subr.mxu0 %v30466_v51  ;;  %v31919_v35 = vld [vmem:[#allocation30_spill] sm:$0xff]  ;;  %v31926_v38 = vand.u32 4294901760, %v30827_v10 }
0x1947   :  { %21015 = vmatmul.mubr.f32.gmra.mxu1 %v30846_v43  ;;  %23703 = vmatprep.subr.mxu1 %v30551_v53  ;;  %v31925_v43 = vld [vmem:[#allocation23_spill] sm:$0xff] }
0x1948   :  { %21266 = vmatprep.mubr.f32.mxu1 %v20752_v61  ;;  %23658 = vmatpush3.msra.mxu0 %v30473_v19  ;;  %v20767_v41 = vand.u32 4294901760, %v30871_v29  ;;  %v31911_v61 = vld [vmem:[#allocation29_spill] sm:$0xff] }
0x1949   :  { %23704 = vmatpush3.msra.mxu1 %v30563_v28  ;;  %23659 = vmatprep.subr.mxu0 %v30543_v25 }
0x194a   :  { %23705 = vmatprep.subr.mxu1 %v30631_v20  ;;  %23660 = vmatpush3.msra.mxu0 %v30546_v56  ;;  %v20768_v17 = vsub.f32 %v30871_v29, %v20767_v41 }
0x194b   :  { %23706 = vmatpush3.msra.mxu1 %v30633_v52  ;;  %23661 = vmatprep.subr.mxu0 %v30549_v34 }
0x194c   :  { %23707 = vmatprep.subr.mxu1 %v30635_v33  ;;  %23662 = vmatpush3.msra.mxu0 %v30555_v47  ;;  %v20769_v7 = vand.u32 4294901760, %v20768_v17  ;;  %v31921_v17 = vld [vmem:[#allocation33_spill] sm:$0xff] }
0x194d   :  { %23708 = vmatpush3.msra.mxu1 %v30640_v32  ;;  %23663 = vmatprep.subr.mxu0 %v30558_v37 }
0x194e   :  { %20770 = vmatprep.mubr.f32.mxu0 %v20769_v7  ;;  %23709 = vmatprep.subr.mxu1 %v30642_v45  ;;  %v31922_v7 = vld [vmem:[#allocation54_spill] sm:$0xff] }
0x194f   :  { %20776 = vmatmul.mubr.f32.gmra.mxu0 %v20775_v16  ;;  %23710 = vmatpush3.msra.mxu1 %v30644_v9  ;;  %v31923_v16 = vld [vmem:[#allocation34_spill] sm:$0xff] }
0x1950   :  { %23664 = vmatpush3.msra.mxu0 %v30561_v40  ;;  %21150 = vmatprep.mubr.f32.mxu0 %v20751_v58  ;;  %v31915_v58 = vld [vmem:[#allocation39_spill] sm:$0xff] }
0x1951   :  { %23665 = vmatprep.subr.mxu0 %v31909_v49  ;;  %23711 = vmatprep.subr.mxu1 %v31910_v13 }
0x1952   :  { %23666 = vmatpush3.msra.mxu0 %v31911_v61  ;;  %23712 = vmatpush3.msra.mxu1 %v30667_v4 }
0x1953   :  { %23667 = vmatprep.subr.mxu0 %v31912_v46  ;;  %23713 = vmatprep.subr.mxu1 %v30729_v2 }
0x1954   :  { %23668 = vmatpush3.msra.mxu0 %v31913_v62  ;;  %23714 = vmatpush3.msra.mxu1 %v30731_v12 }
0x1955   :  { %23669 = vmatprep.subr.mxu0 %v31914_v31  ;;  %23715 = vmatprep.subr.mxu1 %v30733_v50 }
0x1956   :  { %23670 = vmatpush3.msra.mxu0 %v31915_v58  ;;  %23716 = vmatpush3.msra.mxu1 %v31916_v54 }
0x1957   :  { %23671 = vmatprep.subr.mxu0 %v31917_v5  ;;  %23717 = vmatprep.subr.mxu1 %v31918_v1 }
0x1958   :  { %23672 = vmatpush3.msra.mxu0 %v31919_v35  ;;  %23718 = vmatpush3.msra.mxu1 %v31920_v21  ;;  %v31928_v21 = vld [vmem:[#allocation44_spill] sm:$0xff] }
0x1959   :  { %23673 = vmatprep.subr.mxu0 %v31921_v17  ;;  %23719 = vmatprep.subr.mxu1 %v31922_v7  ;;  %v31929_v7 = vld [vmem:[#allocation49_spill] sm:$0xff] }
0x195a   :  { %23674 = vmatpush3.msra.mxu0 %v31923_v16  ;;  %23720 = vmatpush3.msra.mxu1 %v31924_v18  ;;  %v31930_v18 = vld [vmem:[#allocation53_spill] sm:$0xff] }
0x195b   :  { %23675 = vmatprep.subr.mxu0 %v31925_v43  ;;  %21270 = vmatmul.mubr.f32.vlgmr.msra.gmra.mxu1 %v31926_v38  ;;  %v31931_v38 = vld [vmem:[#allocation51_spill] sm:$0xff] }
0x195c   :  { %23765 = vmatprep.subr.mxu1 %v30411_v14  ;;  %23676 = vmatpush3.msra.mxu0 %v31927_v39  ;;  %v31932_v14 = vld [vmem:[#allocation45_spill] sm:$0xff] }
0x195d   :  { %21277 = vmatprep.mubr.f32.mxu1 %v20767_v41  ;;  %23766 = vmatpush3.msra.mxu1 %v30413_v63  ;;  %v31933_v63 = vld [vmem:[#allocation38_spill] sm:$0xff] }
0x195e   :  { %23677 = vmatprep.subr.mxu0 %v31928_v21  ;;  %23767 = vmatprep.subr.mxu1 %v30415_v6  ;;  %v31934_v6 = vld [vmem:[#allocation26_spill] sm:$0xff] }
0x195f   :  { %23678 = vmatpush3.msra.mxu0 %v31929_v7  ;;  %23768 = vmatpush3.msra.mxu1 %v30426_v30  ;;  %v31935_v30 = vand.u32 4294901760, %v31934_v6 }
0x1960   :  { %23679 = vmatprep.subr.mxu0 %v31930_v18  ;;  %21281 = vmatmul.mubr.f32.gmra.mxu1 %v20773_v36 }
0x1961   :  { %23769 = vmatprep.subr.mxu1 %v30428_v23  ;;  %23680 = vmatpush3.msra.mxu0 %v31931_v38  ;;  %v31936_v23 = vand.u32 4294901760, %v30442_v8  ;;  %v31940_v8 = vand.u32 4294901760, %v30457_v26  ;;  %v31944_v26 = vand.u32 4294901760, %v30546_v56  ;;  %v31958_v56 = vand.u32 4294901760, %v31921_v17 }
0x1962   :  { %23770 = vmatpush3.msra.mxu1 %v30430_v22  ;;  %21558 = vmatprep.mubr.f32.mxu1 %v30831_v24  ;;  %v31937_v22 = vand.u32 4294901760, %v30445_v42  ;;  %v31941_v42 = vand.u32 4294901760, %v30466_v51  ;;  %v31945_v51 = vand.u32 4294901760, %v30549_v34  ;;  %v31959_v34 = vld [vmem:[#allocation54_spill] sm:$0xff] }
0x1963   :  { %23681 = vmatprep.subr.mxu0 %v31932_v14  ;;  %23771 = vmatprep.subr.mxu1 %v30447_v15  ;;  %v31938_v15 = vand.u32 4294901760, %v30451_v11  ;;  %v31942_v11 = vand.u32 4294901760, %v30473_v19  ;;  %v31946_v19 = vand.u32 4294901760, %v30555_v47  ;;  %v31961_v47 = vld [vmem:[#allocation43_spill] sm:$0xff] }
0x1964   :  { %23682 = vmatpush3.msra.mxu0 %v31933_v63  ;;  %23772 = vmatpush3.msra.mxu1 %v30459_v0  ;;  %v31939_v0 = vand.u32 4294901760, %v30454_v57  ;;  %v31943_v57 = vand.u32 4294901760, %v30543_v25  ;;  %v31957_v25 = vld [vmem:[#allocation52_spill] sm:$0xff] }
0x1965   :  { %21153 = vmatmul.mubr.f32.vlgmr.msra.gmra.mxu0 %v30827_v10  ;;  %23727 = vmatprep.subr.mxu0 %v31935_v30  ;;  %v31971_v10 = vand.u32 4294901760, %v31932_v14  ;;  %v31974_v14 = vld [vmem:[#allocation25_spill] sm:$0xff] }
0x1966   :  { %23773 = vmatprep.subr.mxu1 %v30527_v48  ;;  %21159 = vmatprep.mubr.f32.mxu0 %v30871_v29  ;;  %v31947_v48 = vand.u32 4294901760, %v30558_v37  ;;  %v31962_v37 = vand.u32 4294901760, %v31925_v43 }
0x1967   :  { %23728 = vmatpush3.msra.mxu0 %v31936_v23  ;;  %23774 = vmatpush3.msra.mxu1 %v30529_v60  ;;  %v31951_v60 = vand.u32 4294901760, %v31912_v46 }
0x1968   :  { %23729 = vmatprep.subr.mxu0 %v31937_v22  ;;  %23775 = vmatprep.subr.mxu1 %v30531_v55  ;;  %v31952_v55 = vand.u32 4294901760, %v31913_v62 }
0x1969   :  { %23730 = vmatpush3.msra.mxu0 %v31938_v15  ;;  %23776 = vmatpush3.msra.mxu1 %v30536_v27  ;;  %v31954_v27 = vand.u32 4294901760, %v31915_v58 }
0x196a   :  { %21162 = vmatmul.mubr.f32.gmra.mxu0 %v30853_v59  ;;  %23731 = vmatprep.subr.mxu0 %v31939_v0 }
0x196b   :  { %23777 = vmatprep.subr.mxu1 %v30538_v3  ;;  %23732 = vmatpush3.msra.mxu0 %v31940_v8  ;;  %v31955_v3 = vand.u32 4294901760, %v31917_v5 }
0x196c   :  { %21447 = vmatprep.mubr.f32.mxu0 %v30831_v24  ;;  %23778 = vmatpush3.msra.mxu1 %v30540_v44  ;;  %v31956_v44 = vand.u32 4294901760, %v31919_v35 }
0x196d   :  { %23733 = vmatprep.subr.mxu0 %v31941_v42  ;;  %23779 = vmatprep.subr.mxu1 %v30551_v53  ;;  %v31960_v53 = vand.u32 4294901760, %v31923_v16 }
0x196e   :  { %23734 = vmatpush3.msra.mxu0 %v31942_v11  ;;  %23780 = vmatpush3.msra.mxu1 %v30563_v28  ;;  %v31964_v28 = vand.u32 4294901760, %v31927_v39  ;;  %v31972_v39 = vand.u32 4294901760, %v31933_v63 }
0x196f   :  { %23735 = vmatprep.subr.mxu0 %v31943_v57  ;;  %23781 = vmatprep.subr.mxu1 %v30631_v20  ;;  %v31948_v20 = vand.u32 4294901760, %v30561_v40  ;;  %v31963_v40 = vld [vmem:[#allocation41_spill] sm:$0xff] }
0x1970   :  { %23736 = vmatpush3.msra.mxu0 %v31944_v26  ;;  %23782 = vmatpush3.msra.mxu1 %v30633_v52  ;;  %v31949_v52 = vand.u32 4294901760, %v31909_v49 }
0x1971   :  { %23737 = vmatprep.subr.mxu0 %v31945_v51  ;;  %23783 = vmatprep.subr.mxu1 %v30635_v33  ;;  %v31950_v33 = vand.u32 4294901760, %v31911_v61 }
0x1972   :  { %23738 = vmatpush3.msra.mxu0 %v31946_v19  ;;  %23784 = vmatpush3.msra.mxu1 %v30640_v32  ;;  %v31966_v32 = vand.u32 4294901760, %v31928_v21 }
0x1973   :  { %23739 = vmatprep.subr.mxu0 %v31947_v48  ;;  %23785 = vmatprep.subr.mxu1 %v30642_v45  ;;  %v31965_v45 = vld [vmem:[#allocation46_spill] sm:$0xff] }
0x1974   :  { %23740 = vmatpush3.msra.mxu0 %v31948_v20  ;;  %23786 = vmatpush3.msra.mxu1 %v30644_v9  ;;  %v31953_v9 = vand.u32 4294901760, %v31914_v31 }
0x1975   :  { %23741 = vmatprep.subr.mxu0 %v31949_v52  ;;  %23787 = vmatprep.subr.mxu1 %v31910_v13 }
0x1976   :  { %23742 = vmatpush3.msra.mxu0 %v31950_v33  ;;  %23788 = vmatpush3.msra.mxu1 %v30667_v4  ;;  %v31967_v4 = vand.u32 4294901760, %v31929_v7 }
0x1977   :  { %23743 = vmatprep.subr.mxu0 %v31951_v60  ;;  %23789 = vmatprep.subr.mxu1 %v30729_v2  ;;  %v31969_v2 = vld [vmem:[#allocation37_spill] sm:$0xff] }
0x1978   :  { %23744 = vmatpush3.msra.mxu0 %v31952_v55  ;;  %23790 = vmatpush3.msra.mxu1 %v30731_v12  ;;  %v31970_v12 = vand.u32 4294901760, %v31931_v38 }
0x1979   :  { %23745 = vmatprep.subr.mxu0 %v31953_v9  ;;  %23791 = vmatprep.subr.mxu1 %v30733_v50  ;;  %v31968_v50 = vand.u32 4294901760, %v31930_v18 }
0x197a   :  { %23746 = vmatpush3.msra.mxu0 %v31954_v27  ;;  %23792 = vmatpush3.msra.mxu1 %v31916_v54 }
0x197b   :  { %23747 = vmatprep.subr.mxu0 %v31955_v3  ;;  %23793 = vmatprep.subr.mxu1 %v31918_v1  ;;  %v31973_v1 = vld [vmem:[#allocation24_spill] sm:$0xff] }
0x197c   :  { %23748 = vmatpush3.msra.mxu0 %v31956_v44  ;;  %23794 = vmatpush3.msra.mxu1 %v31957_v25 }
0x197d   :  { %23749 = vmatprep.subr.mxu0 %v31958_v56  ;;  %23795 = vmatprep.subr.mxu1 %v31959_v34 }
0x197e   :  { %23750 = vmatpush3.msra.mxu0 %v31960_v53  ;;  %23796 = vmatpush3.msra.mxu1 %v31961_v47 }
0x197f   :  { %23751 = vmatprep.subr.mxu0 %v31962_v37  ;;  %21560 = vmatmul.mubr.f32.vlgmr.msra.gmra.mxu1 %v31963_v40 }
0x1980   :  { %23752 = vmatpush3.msra.mxu0 %v31964_v28  ;;  %21565 = vmatprep.mubr.f32.mxu1 %v31965_v45 }
0x1981   :  { %23753 = vmatprep.subr.mxu0 %v31966_v32 }
0x1982   :  { %23754 = vmatpush3.msra.mxu0 %v31967_v4 }
0x1983   :  { %23755 = vmatprep.subr.mxu0 %v31968_v50  ;;  %21567 = vmatmul.mubr.f32.gmra.mxu1 %v31969_v2 }
0x1984   :  { %23756 = vmatpush3.msra.mxu0 %v31970_v12 }
0x1985   :  { %23757 = vmatprep.subr.mxu0 %v31971_v10  ;;  %v21605_v10 = vld [vmem:[#allocation10 + $0x38] sm:$0xff] }
0x1986   :  { %23758 = vmatpush3.msra.mxu0 %v31972_v39  ;;  %v31045_v39 = vand.u32 4294901760, %v21605_v10 }
0x1987   :  { %21449 = vmatmul.mubr.f32.vlgmr.msra.gmra.mxu0 %v31963_v40 }
0x1988   :  { %21454 = vmatprep.mubr.f32.mxu0 %v31965_v45  ;;  %25075 = vmatprep.subr.mxu0 %v31045_v39 }
0x1989   :  { %25076 = vmatpush3.msra.mxu0 %v31045_v39 }
0x198b   :  { %21456 = vmatmul.mubr.f32.gmra.mxu0 %v31969_v2 }
0x19f8   :  { %v23645_v24 = vpop.f32.mrf.mxu1 }
0x19fa   :  { %v23646_v18 = vpop.f32.mrf.mxu1 }
0x19fb   :  { %v23647_v7 = vadd.f32 %v23646_v18, %v23645_v24  ;;  %v21604_v24 = vld [vmem:[#allocation10 + $0x30] sm:$0xff]  ;;  %v31048_v18 = vsub.f32 %v21605_v10, %v31045_v39 }
0x1a00   :  { %v23607_v43 = vpop.f32.mrf.mxu0 }
0x1a02   :  { %v23608_v36 = vpop.f32.mrf.mxu0 }
0x1a03   :  { %v23609_v58 = vadd.f32 %v23608_v36, %v23607_v43  ;;  %v31050_v43 = vand.u32 4294901760, %v21604_v24  ;;  %v31055_v36 = vand.u32 4294901760, %v31048_v18 }
0x1a05   :  { %v20763_v35 = vadd.f32 %v23609_v58, %v31973_v1  ;;  %25077 = vmatprep.subr.mxu0 %v31050_v43 }
0x1a06   :  { %25078 = vmatpush3.msra.mxu0 %v31050_v43 }
0x1a07   :  { %v23648_v59 = vpop.f32.mrf.mxu1  ;;  %v21010_v6 = vadd.f32 %v23647_v7, %v20763_v35 }
0x1a09   :  { %v23649_v29 = vpop.f32.mrf.mxu1 }
0x1a0a   :  { %v23650_v23 = vadd.f32 %v23649_v29, %v23648_v59  ;;  %v21603_v59 = vld [vmem:[#allocation10 + $0x28] sm:$0xff]  ;;  %v31058_v29 = vsub.f32 %v21604_v24, %v31050_v43 }
0x1a0f   :  { %v23610_v41 = vpop.f32.mrf.mxu0 }
0x1a11   :  { %v23611_v13 = vpop.f32.mrf.mxu0 }
0x1a12   :  { %v23612_v21 = vadd.f32 %v23611_v13, %v23610_v41  ;;  %v31060_v41 = vand.u32 4294901760, %v21603_v59  ;;  %v21725_v13 = vsub.f32 %v31048_v18, %v31055_v36 }
0x1a14   :  { %v20778_v63 = vadd.f32 %v23612_v21, %v31974_v14  ;;  %25079 = vmatprep.subr.mxu0 %v31060_v41  ;;  %v21726_v58 = vand.u32 4294901760, %v21725_v13  ;;  %v21600_v21 = vld [vmem:[#allocation10 + $0x10] sm:$0xff] }
0x1a15   :  { %25080 = vmatpush3.msra.mxu0 %v31060_v41 }
0x1a16   :  { %v21017_v42 = vadd.f32 %v23650_v23, %v20778_v63  ;;  %25094 = vmatprep.subr.mxu1 %v21726_v58  ;;  %v21599_v63 = vld [vmem:[#allocation10 + $0x8] sm:$0xff] }
0x1a17   :  { %25095 = vmatpush3.msra.mxu1 %v21726_v58  ;;  %v22198_v58 = vld [vmem:[#allocation11 + $0x20] sm:$0xff] }
0x1a1b   :  { %v23721_v49 = vpop.f32.mrf.mxu1 }
0x1a1d   :  { %v23722_v61 = vpop.f32.mrf.mxu1 }
0x1a1e   :  { %v23723_v8 = vadd.f32 %v23722_v61, %v23721_v49  ;;  %v21602_v49 = vld [vmem:[#allocation10 + $0x20] sm:$0xff]  ;;  %v31067_v61 = vand.u32 4294901760, %v31058_v29 }
0x1a20   :  { %v23724_v62 = vpop.f32.mrf.mxu1 }
0x1a22   :  { %v23725_v54 = vpop.f32.mrf.mxu1 }
0x1a23   :  { %v23726_v20 = vadd.f32 %v23725_v54, %v23724_v62  ;;  %v31072_v62 = vand.u32 4294901760, %v21602_v49  ;;  %v21732_v54 = vsub.f32 %v31058_v29, %v31067_v61 }
0x1a25   :  { %v23683_v46 = vpop.f32.mrf.mxu0  ;;  %v31082_v1 = vsub.f32 %v21602_v49, %v31072_v62  ;;  %25081 = vmatprep.subr.mxu0 %v31072_v62 }
0x1a26   :  { %25082 = vmatpush3.msra.mxu0 %v31072_v62 }
0x1a27   :  { %v23684_v31 = vpop.f32.mrf.mxu0 }
0x1a28   :  { %v23685_v16 = vadd.f32 %v23684_v31, %v23683_v46  ;;  %v31070_v46 = vsub.f32 %v21603_v59, %v31060_v41  ;;  %v21601_v31 = vld [vmem:[#allocation10 + $0x18] sm:$0xff] }
0x1a29   :  { %v31085_v35 = vand.u32 4294901760, %v21601_v31 }
0x1a2a   :  { %v23686_v5 = vpop.f32.mrf.mxu0  ;;  %v21155_v22 = vadd.f32 %v23685_v16, %v21010_v6  ;;  %v31091_v16 = vand.u32 4294901760, %v31082_v1 }
0x1a2b   :  { %v31096_v14 = vsub.f32 %v21601_v31, %v31085_v35  ;;  %25083 = vmatprep.subr.mxu0 %v31085_v35 }
0x1a2c   :  { %v23687_v38 = vpop.f32.mrf.mxu0  ;;  %v21272_v51 = vadd.f32 %v23723_v8, %v21155_v22  ;;  %v31104_v22 = vand.u32 4294901760, %v21599_v63  ;;  %25084 = vmatpush3.msra.mxu0 %v31085_v35 }
0x1a2d   :  { %v23688_v15 = vadd.f32 %v23687_v38, %v23686_v5  ;;  %v31079_v5 = vand.u32 4294901760, %v31070_v46  ;;  %v31093_v38 = vand.u32 4294901760, %v21600_v21 }
0x1a2f   :  { %v21164_v26 = vadd.f32 %v23688_v15, %v21017_v42  ;;  %v21739_v7 = vsub.f32 %v31070_v46, %v31079_v5  ;;  %v31102_v23 = vsub.f32 %v21600_v21, %v31093_v38  ;;  %v31108_v15 = vand.u32 4294901760, %v31096_v14  ;;  %25085 = vmatprep.subr.mxu0 %v31093_v38  ;;  %v22197_v21 = vld [vmem:[#allocation11 + $0x18] sm:$0xff] }
0x1a30   :  { %25086 = vmatpush3.msra.mxu0 %v31093_v38 }
0x1a31   :  { %v21283_v9 = vadd.f32 %v23726_v20, %v21164_v26  ;;  %v21740_v6 = vand.u32 4294901760, %v21739_v7  ;;  %v31112_v42 = vand.u32 4294901760, %v31102_v23  ;;  %v21753_v26 = vsub.f32 %v31096_v14, %v31108_v15  ;;  %25087 = vmatprep.subr.mxu0 %v31104_v22 }
0x1a32   :  { %25088 = vmatpush3.msra.mxu0 %v31104_v22 }
0x1a33   :  { %v21754_v20 = vand.u32 4294901760, %v21753_v26 }
0x1a3f   :  { %v23797_v17 = vpop.f32.mrf.mxu1 }
0x1a41   :  { %v23798_v30 = vpop.f32.mrf.mxu1 }
0x1a42   :  { %v23799_v52 = vadd.f32 %v23798_v30, %v23797_v17  ;;  %v21733_v17 = vand.u32 4294901760, %v21732_v54  ;;  %v21746_v30 = vsub.f32 %v31082_v1, %v31091_v16 }
0x1a43   :  { %v23800_v11 = vpop.f32.mrf.mxu1 }
0x1a44   :  { %25096 = vmatprep.subr.mxu1 %v21733_v17  ;;  %v21747_v8 = vand.u32 4294901760, %v21746_v30 }
0x1a45   :  { %v23801_v60 = vpop.f32.mrf.mxu1  ;;  %25097 = vmatpush3.msra.mxu1 %v21733_v17 }
0x1a46   :  { %v23802_v44 = vadd.f32 %v23801_v60, %v23800_v11  ;;  %25098 = vmatprep.subr.mxu1 %v21740_v6  ;;  %v31115_v11 = vsub.f32 %v21599_v63, %v31104_v22  ;;  %v22196_v63 = vld [vmem:[#allocation11 + $0x10] sm:$0xff] }
0x1a47   :  { %v23759_v0 = vpop.f32.mrf.mxu0  ;;  %25099 = vmatpush3.msra.mxu1 %v21740_v6 }
0x1a48   :  { %25100 = vmatprep.subr.mxu1 %v21747_v8 }
0x1a49   :  { %v23760_v57 = vpop.f32.mrf.mxu0  ;;  %25101 = vmatpush3.msra.mxu1 %v21747_v8 }
0x1a4a   :  { %v23761_v19 = vadd.f32 %v23760_v57, %v23759_v0  ;;  %v21598_v0 = vld [vmem:[#allocation10] sm:$0xff]  ;;  %25102 = vmatprep.subr.mxu1 %v21754_v20 }
0x1a4b   :  { %v23762_v48 = vpop.f32.mrf.mxu0  ;;  %v31117_v57 = vand.u32 4294901760, %v21598_v0  ;;  %25103 = vmatpush3.msra.mxu1 %v21754_v20 }
0x1a4c   :  { %v21451_v33 = vadd.f32 %v23761_v19, %v21272_v51  ;;  %v21760_v51 = vsub.f32 %v31102_v23, %v31112_v42  ;;  %v31126_v19 = vand.u32 4294901760, %v31115_v11 }
0x1a4d   :  { %v23763_v55 = vpop.f32.mrf.mxu0  ;;  %25089 = vmatprep.subr.mxu0 %v31117_v57 }
0x1a4e   :  { %v23764_v27 = vadd.f32 %v23763_v55, %v23762_v48  ;;  %v21562_v3 = vadd.f32 %v23799_v52, %v21451_v33  ;;  %v31129_v48 = vsub.f32 %v21598_v0, %v31117_v57  ;;  %v21761_v52 = vand.u32 4294901760, %v21760_v51  ;;  %25090 = vmatpush3.msra.mxu0 %v31117_v57  ;;  %v22195_v0 = vld [vmem:[#allocation11 + $0x8] sm:$0xff]  ;;  %v22194_v51 = vld [vmem:[#allocation11] sm:$0xff] }
0x1a4f   :  { %v21767_v33 = vsub.f32 %v31115_v11, %v31126_v19  ;;  %25113 = vmatprep.subr.mxu0 %v31048_v18 }
0x1a50   :  { %v21458_v25 = vadd.f32 %v23764_v27, %v21283_v9  ;;  %v21572_v56 = vsel %vm220_vm0, %v21562_v3, 0.0  ;;  %v31136_v60 = vand.u32 4294901760, %v31129_v48  ;;  %25104 = vmatprep.subr.mxu1 %v21761_v52 }
0x1a51   :  { %21573 = vadd.xlane.f32.xlu0 %v21572_v56  ;;  %v21768_v55 = vand.u32 4294901760, %v21767_v33  ;;  %25105 = vmatpush3.msra.mxu1 %v21761_v52  ;;  %v31293_v52 = vand.u32 4294901760, %v22194_v51 }
0x1a52   :  { %v21569_v34 = vadd.f32 %v23802_v44, %v21458_v25  ;;  %v21774_v9 = vsub.f32 %v31129_v48, %v31136_v60 }
0x1a53   :  { %25106 = vmatprep.subr.mxu1 %v21768_v55 }
0x1a54   :  { %v21575_v53 = vsel %vm220_vm0, %v21569_v34, 0.0  ;;  %v21775_v27 = vand.u32 4294901760, %v21774_v9  ;;  %25107 = vmatpush3.msra.mxu1 %v21768_v55  ;;  %v31305_v9 = vsub.f32 %v22194_v51, %v31293_v52 }
0x1a55   :  { %21576 = vadd.xlane.f32.xlu1 %v21575_v53 }
0x1a56   :  { %25108 = vmatprep.subr.mxu1 %v21775_v27 }
0x1a57   :  { %25109 = vmatpush3.msra.mxu1 %v21775_v27 }
0x1a58   :  { %25132 = vmatprep.subr.mxu1 %v31045_v39 }
0x1ada   :  { %v21574_v47 = vpop.xlane.xlu0 %21573 }
0x1adb   :  { %v21578_v37 = vmul.f32 0.015625, %v21574_v47 }
0x1add   :  { %v31035_v40 = vsub.f32 %v21562_v3, %v21578_v37 }
0x1ade   :  { %v21577_v28 = vpop.xlane.xlu1 %21576 }
0x1adf   :  { %v21579_v45 = vmul.f32 0.015625, %v21577_v28  ;;  %v21582_v32 = vmul.f32 %v31035_v40, %v31035_v40 }
0x1ae1   :  { %v31039_v4 = vsub.f32 %v21569_v34, %v21579_v45  ;;  %v21584_v50 = vsel %vm220_vm0, %v21582_v32, 0.0 }
0x1ae2   :  { %21585 = vadd.xlane.f32.xlu0 %v21584_v50 }
0x1ae3   :  { %v21583_v2 = vmul.f32 %v31039_v4, %v31039_v4 }
0x1ae5   :  { %v21587_v12 = vsel %vm220_vm0, %v21583_v2, 0.0 }
0x1ae6   :  { %21588 = vadd.xlane.f32.xlu0 %v21587_v12 }
0x1b6b   :  { %v21586_v3 = vpop.xlane.xlu0 %21585 }
0x1b6c   :  { %v21590_v44 = vmul.f32 0.015625, %v21586_v3 }
0x1b6e   :  { %v21592_v25 = vadd.f32 1e-05, %v21590_v44 }
0x1b6f   :  { %v21589_v56 = vpop.xlane.xlu0 %21588 }
0x1b70   :  { %25388 = vrsqrt.f32 %v21592_v25  ;;  %v21591_v34 = vmul.f32 0.015625, %v21589_v56  ;;  %v31312_v25 = vand.u32 4294901760, %v31305_v9 }
0x1b72   :  { %v21593_v53 = vadd.f32 1e-05, %v21591_v34  ;;  %v22370_v34 = vsub.f32 %v31305_v9, %v31312_v25 }
0x1b74   :  { %25390 = vrsqrt.f32 %v21593_v53  ;;  %v22371_v53 = vand.u32 4294901760, %v22370_v34 }
0x1b7d   :  { %v25389_v47 = vpop.eup %25388 }
0x1b7e   :  { %v31144_v37 = vmul.f32 %v25389_v47, %v31035_v40 }
0x1b80   :  { %v21607_v28 = vsel %vm220_vm0, %v31144_v37, 0 }
0x1b81   :  { %v25391_v45 = vpop.eup %25390  ;;  %v21685_v32 = vand.u32 4294901760, %v21607_v28 }
0x1b82   :  { %v31149_v50 = vmul.f32 %v25391_v45, %v31039_v4 }
0x1b83   :  { %25110 = vmatprep.mubr.f32.mxu1 %v21685_v32  ;;  %v21686_v2 = vsub.f32 %v21607_v28, %v21685_v32 }
0x1b84   :  { %v21610_v12 = vsel %vm220_vm0, %v31149_v50, 0 }
0x1b85   :  { %v31153_v10 = vand.u32 4294901760, %v21610_v12  ;;  %v21687_v24 = vand.u32 4294901760, %v21686_v2 }
0x1b87   :  { %25111 = vmatmul.mubr.f32.vlgmr.msra.gmra.mxu1 %v31153_v10  ;;  %v21688_v40 = vsub.f32 %v21686_v2, %v21687_v24  ;;  %v21696_v59 = vsub.f32 %v21610_v12, %v31153_v10 }
0x1b88   :  { %25133 = vmatpush3.msra.mxu1 %v31045_v39  ;;  %25148 = vmatprep.mubr.f32.mxu1 %v21687_v24 }
0x1b89   :  { %25134 = vmatprep.subr.mxu1 %v31050_v43  ;;  %v21689_v4 = vand.u32 4294901760, %v21688_v40  ;;  %v21697_v49 = vand.u32 4294901760, %v21696_v59 }
0x1b8a   :  { %25135 = vmatpush3.msra.mxu1 %v31050_v43 }
0x1b8b   :  { %25136 = vmatprep.subr.mxu1 %v31060_v41  ;;  %25091 = vmatprep.mubr.f32.mxu0 %v21689_v4  ;;  %v21698_v13 = vsub.f32 %v21696_v59, %v21697_v49 }
0x1b8c   :  { %25137 = vmatpush3.msra.mxu1 %v31060_v41 }
0x1b8d   :  { %25138 = vmatprep.subr.mxu1 %v31072_v62  ;;  %v21699_v31 = vand.u32 4294901760, %v21698_v13 }
0x1b8e   :  { %25139 = vmatpush3.msra.mxu1 %v31072_v62 }
0x1b8f   :  { %25140 = vmatprep.subr.mxu1 %v31085_v35  ;;  %25092 = vmatmul.mubr.f32.vlgmr.msra.gmra.mxu0 %v21699_v31 }
0x1b90   :  { %25114 = vmatpush3.msra.mxu0 %v31048_v18  ;;  %25141 = vmatpush3.msra.mxu1 %v31085_v35 }
0x1b91   :  { %25115 = vmatprep.subr.mxu0 %v31058_v29  ;;  %25129 = vmatprep.mubr.f32.mxu0 %v21686_v2 }
0x1b92   :  { %25142 = vmatprep.subr.mxu1 %v31093_v38  ;;  %25116 = vmatpush3.msra.mxu0 %v31058_v29 }
0x1b93   :  { %25143 = vmatpush3.msra.mxu1 %v31093_v38  ;;  %25117 = vmatprep.subr.mxu0 %v31070_v46 }
0x1b94   :  { %25144 = vmatprep.subr.mxu1 %v31104_v22  ;;  %25118 = vmatpush3.msra.mxu0 %v31070_v46 }
0x1b95   :  { %25145 = vmatpush3.msra.mxu1 %v31104_v22  ;;  %25119 = vmatprep.subr.mxu0 %v31082_v1 }
0x1b96   :  { %25146 = vmatprep.subr.mxu1 %v31117_v57  ;;  %25120 = vmatpush3.msra.mxu0 %v31082_v1 }
0x1b97   :  { %25147 = vmatpush3.msra.mxu1 %v31117_v57  ;;  %25121 = vmatprep.subr.mxu0 %v31096_v14 }
0x1b98   :  { %25149 = vmatmul.mubr.f32.vlgmr.msra.gmra.mxu1 %v21697_v49  ;;  %25170 = vmatprep.subr.mxu1 %v31045_v39 }
0x1b99   :  { %25122 = vmatpush3.msra.mxu0 %v31096_v14  ;;  %25171 = vmatpush3.msra.mxu1 %v31045_v39  ;;  %v22201_v39 = vld [vmem:[#allocation11 + $0x38] sm:$0xff]  ;;  %v31261_v14 = vand.u32 4294901760, %v22197_v21 }
0x1b9a   :  { %25186 = vmatprep.mubr.f32.mxu1 %v21685_v32  ;;  %25123 = vmatprep.subr.mxu0 %v31102_v23  ;;  %v31221_v18 = vand.u32 4294901760, %v22201_v39 }
0x1b9b   :  { %25172 = vmatprep.subr.mxu1 %v31050_v43  ;;  %25124 = vmatpush3.msra.mxu0 %v31102_v23 }
0x1b9c   :  { %25173 = vmatpush3.msra.mxu1 %v31050_v43  ;;  %25125 = vmatprep.subr.mxu0 %v31115_v11  ;;  %v22200_v43 = vld [vmem:[#allocation11 + $0x30] sm:$0xff] }
0x1b9d   :  { %25174 = vmatprep.subr.mxu1 %v31060_v41  ;;  %25126 = vmatpush3.msra.mxu0 %v31115_v11  ;;  %v31226_v29 = vand.u32 4294901760, %v22200_v43 }
0x1b9e   :  { %25175 = vmatpush3.msra.mxu1 %v31060_v41  ;;  %25127 = vmatprep.subr.mxu0 %v31129_v48  ;;  %v22199_v41 = vld [vmem:[#allocation11 + $0x28] sm:$0xff] }
0x1b9f   :  { %25176 = vmatprep.subr.mxu1 %v31072_v62  ;;  %25128 = vmatpush3.msra.mxu0 %v31129_v48  ;;  %v31234_v46 = vsub.f32 %v22200_v43, %v31226_v29 }
0x1ba0   :  { %25177 = vmatpush3.msra.mxu1 %v31072_v62  ;;  %25130 = vmatmul.mubr.f32.vlgmr.msra.gmra.mxu0 %v21696_v59  ;;  %v31236_v62 = vand.u32 4294901760, %v22199_v41 }
0x1ba1   :  { %25151 = vmatprep.subr.mxu0 %v31055_v36  ;;  %25178 = vmatprep.subr.mxu1 %v31085_v35 }
0x1ba2   :  { %25152 = vmatpush3.msra.mxu0 %v31055_v36  ;;  %25167 = vmatprep.mubr.f32.mxu0 %v21685_v32  ;;  %v31224_v36 = vsub.f32 %v22201_v39, %v31221_v18  ;;  %v31246_v1 = vsub.f32 %v22199_v41, %v31236_v62 }
0x1ba3   :  { %25179 = vmatpush3.msra.mxu1 %v31085_v35  ;;  %25153 = vmatprep.subr.mxu0 %v31067_v61  ;;  %v31248_v35 = vand.u32 4294901760, %v22198_v58 }
0x1ba4   :  { %25180 = vmatprep.subr.mxu1 %v31093_v38  ;;  %25154 = vmatpush3.msra.mxu0 %v31067_v61  ;;  %v31231_v61 = vand.u32 4294901760, %v31224_v36 }
0x1ba5   :  { %25181 = vmatpush3.msra.mxu1 %v31093_v38  ;;  %25155 = vmatprep.subr.mxu0 %v31079_v5  ;;  %v31258_v38 = vsub.f32 %v22198_v58, %v31248_v35 }
0x1ba6   :  { %25182 = vmatprep.subr.mxu1 %v31104_v22  ;;  %25156 = vmatpush3.msra.mxu0 %v31079_v5  ;;  %v22321_v54 = vsub.f32 %v31224_v36, %v31231_v61  ;;  %v31243_v5 = vand.u32 4294901760, %v31234_v46 }
0x1ba7   :  { %25183 = vmatpush3.msra.mxu1 %v31104_v22  ;;  %25157 = vmatprep.subr.mxu0 %v31091_v16  ;;  %v31267_v23 = vand.u32 4294901760, %v31258_v38  ;;  %v31269_v22 = vand.u32 4294901760, %v22196_v63 }
0x1ba8   :  { %25184 = vmatprep.subr.mxu1 %v31117_v57  ;;  %25158 = vmatpush3.msra.mxu0 %v31091_v16  ;;  %v22322_v17 = vand.u32 4294901760, %v22321_v54  ;;  %v22328_v7 = vsub.f32 %v31234_v46, %v31243_v5  ;;  %v31255_v16 = vand.u32 4294901760, %v31246_v1 }
0x1ba9   :  { %25185 = vmatpush3.msra.mxu1 %v31117_v57  ;;  %25159 = vmatprep.subr.mxu0 %v31108_v15  ;;  %v31278_v11 = vsub.f32 %v22196_v63, %v31269_v22  ;;  %v31280_v57 = vand.u32 4294901760, %v22195_v0 }
0x1baa   :  { %25187 = vmatmul.mubr.f32.vlgmr.msra.gmra.mxu1 %v31153_v10  ;;  %25160 = vmatpush3.msra.mxu0 %v31108_v15  ;;  %v22329_v6 = vand.u32 4294901760, %v22328_v7  ;;  %v22335_v30 = vsub.f32 %v31246_v1, %v31255_v16  ;;  %v31272_v15 = vsub.f32 %v22197_v21, %v31261_v14 }
0x1bab   :  { %25161 = vmatprep.subr.mxu0 %v31112_v42  ;;  %25208 = vmatprep.subr.mxu1 %v22322_v17  ;;  %v31288_v48 = vand.u32 4294901760, %v31278_v11  ;;  %v31291_v20 = vsub.f32 %v22195_v0, %v31280_v57 }
0x1bac   :  { %25162 = vmatpush3.msra.mxu0 %v31112_v42  ;;  %25209 = vmatpush3.msra.mxu1 %v22322_v17  ;;  %v22336_v8 = vand.u32 4294901760, %v22335_v30  ;;  %v22342_v42 = vsub.f32 %v31258_v38, %v31267_v23  ;;  %v31284_v26 = vand.u32 4294901760, %v31272_v15 }
0x1bad   :  { %25163 = vmatprep.subr.mxu0 %v31126_v19  ;;  %25210 = vmatprep.subr.mxu1 %v22329_v6  ;;  %v31302_v55 = vand.u32 4294901760, %v31291_v20 }
0x1bae   :  { %25164 = vmatpush3.msra.mxu0 %v31126_v19  ;;  %25211 = vmatpush3.msra.mxu1 %v22329_v6  ;;  %v22343_v19 = vand.u32 4294901760, %v22342_v42  ;;  %v22349_v33 = vsub.f32 %v31272_v15, %v31284_v26 }
0x1baf   :  { %25165 = vmatprep.subr.mxu0 %v31136_v60  ;;  %25212 = vmatprep.subr.mxu1 %v22336_v8  ;;  %v22363_v44 = vsub.f32 %v31291_v20, %v31302_v55 }
0x1bb0   :  { %25166 = vmatpush3.msra.mxu0 %v31136_v60  ;;  %25213 = vmatpush3.msra.mxu1 %v22336_v8  ;;  %v22356_v60 = vsub.f32 %v31278_v11, %v31288_v48  ;;  %v22350_v27 = vand.u32 4294901760, %v22349_v33 }
0x1bb1   :  { %25168 = vmatmul.mubr.f32.vlgmr.msra.gmra.mxu0 %v31153_v10  ;;  %25189 = vmatprep.subr.mxu0 %v31221_v18  ;;  %v22364_v56 = vand.u32 4294901760, %v22363_v44 }
0x1bb2   :  { %25190 = vmatpush3.msra.mxu0 %v31221_v18  ;;  %25214 = vmatprep.subr.mxu1 %v22343_v19  ;;  %v22357_v3 = vand.u32 4294901760, %v22356_v60 }
0x1bb3   :  { %25191 = vmatprep.subr.mxu0 %v31226_v29  ;;  %25215 = vmatpush3.msra.mxu1 %v22343_v19 }
0x1bb4   :  { %25192 = vmatpush3.msra.mxu0 %v31226_v29  ;;  %25216 = vmatprep.subr.mxu1 %v22350_v27 }
0x1bb5   :  { %25193 = vmatprep.subr.mxu0 %v31236_v62  ;;  %25217 = vmatpush3.msra.mxu1 %v22350_v27 }
0x1bb6   :  { %25194 = vmatpush3.msra.mxu0 %v31236_v62  ;;  %25218 = vmatprep.subr.mxu1 %v22357_v3 }
0x1bb7   :  { %25195 = vmatprep.subr.mxu0 %v31248_v35  ;;  %25219 = vmatpush3.msra.mxu1 %v22357_v3 }
0x1bb8   :  { %25196 = vmatpush3.msra.mxu0 %v31248_v35  ;;  %25220 = vmatprep.subr.mxu1 %v22364_v56 }
0x1bb9   :  { %25197 = vmatprep.subr.mxu0 %v31261_v14  ;;  %25221 = vmatpush3.msra.mxu1 %v22364_v56 }
0x1bba   :  { %25198 = vmatpush3.msra.mxu0 %v31261_v14  ;;  %25222 = vmatprep.subr.mxu1 %v22371_v53 }
0x1bbb   :  { %25199 = vmatprep.subr.mxu0 %v31269_v22  ;;  %25223 = vmatpush3.msra.mxu1 %v22371_v53 }
0x1bbc   :  { %25200 = vmatpush3.msra.mxu0 %v31269_v22  ;;  %25246 = vmatprep.subr.mxu1 %v31221_v18 }
0x1bbd   :  { %25201 = vmatprep.subr.mxu0 %v31280_v57 }
0x1bbe   :  { %25202 = vmatpush3.msra.mxu0 %v31280_v57 }
0x1bbf   :  { %25203 = vmatprep.subr.mxu0 %v31293_v52 }
0x1bc0   :  { %25204 = vmatpush3.msra.mxu0 %v31293_v52 }
0x1bc1   :  { %25227 = vmatprep.subr.mxu0 %v31224_v36 }
0x1c47   :  { %v25112_v28 = vpop.f32.mrf.mxu1 }
0x1c49   :  { %v21812_v2 = vpop.f32.mrf.mxu1 }
0x1c4f   :  { %v25093_v47 = vpop.f32.mrf.mxu0 }
0x1c50   :  { %v21819_v12 = vadd.f32 %v25112_v28, %v25093_v47 }
0x1c51   :  { %v21691_v45 = vpop.f32.mrf.mxu0 }
0x1c52   :  { %v21813_v40 = vadd.f32 %v21812_v2, %v21691_v45 }
0x1c58   :  { %v25150_v10 = vpop.f32.mrf.mxu1 }
0x1c5a   :  { %v21994_v49 = vpop.f32.mrf.mxu1 }
0x1c60   :  { %v25131_v32 = vpop.f32.mrf.mxu0 }
0x1c61   :  { %v21914_v59 = vadd.f32 %v25131_v32, %v21819_v12 }
0x1c62   :  { %v21906_v24 = vpop.f32.mrf.mxu0 }
0x1c63   :  { %v21907_v4 = vadd.f32 %v21906_v24, %v21813_v40  ;;  %v22003_v13 = vadd.f32 %v25150_v10, %v21914_v59 }
0x1c65   :  { %v21995_v41 = vadd.f32 %v21994_v49, %v21907_v4 }
0x1c6a   :  { %v25188_v31 = vpop.f32.mrf.mxu1 }
0x1c6c   :  { %v22182_v17 = vpop.f32.mrf.mxu1 }
0x1c71   :  { %v25169_v39 = vpop.f32.mrf.mxu0 }
0x1c72   :  { %v22104_v43 = vadd.f32 %v25169_v39, %v22003_v13 }
0x1c73   :  { %v22097_v58 = vpop.f32.mrf.mxu0 }
0x1c74   :  { %v22189_v54 = vadd.f32 %v25188_v31, %v22104_v43  ;;  %v22098_v21 = vadd.f32 %v22097_v58, %v21995_v41 }
0x1c76   :  { %v22193_v7 = vmax.f32 %v22189_v54, 0.0  ;;  %v22183_v63 = vadd.f32 %v22182_v17, %v22098_v21 }
0x1c78   :  { %v22206_v6 = vsel %vm220_vm0, %v22193_v7, 0  ;;  %v22192_v30 = vmax.f32 %v22183_v63, 0.0 }
0x1c79   :  { %v31320_v0 = vand.u32 4294901760, %v22206_v6 }
0x1c7a   :  { %v22203_v8 = vsel %vm220_vm0, %v22192_v30, 0 }
0x1c7b   :  { %v22292_v42 = vsub.f32 %v22206_v6, %v31320_v0  ;;  %v22281_v51 = vand.u32 4294901760, %v22203_v8 }
0x1c7d   :  { %v22293_v19 = vand.u32 4294901760, %v22292_v42  ;;  %v22282_v33 = vsub.f32 %v22203_v8, %v22281_v51  ;;  %25224 = vmatprep.mubr.f32.mxu1 %v22281_v51 }
0x1c7e   :  { %25225 = vmatmul.mubr.f32.vlgmr.msra.gmra.mxu1 %v31320_v0 }
0x1c7f   :  { %25247 = vmatpush3.msra.mxu1 %v31221_v18  ;;  %v22283_v60 = vand.u32 4294901760, %v22282_v33  ;;  %v22294_v27 = vsub.f32 %v22292_v42, %v22293_v19 }
0x1c80   :  { %25248 = vmatprep.subr.mxu1 %v31226_v29 }
0x1c81   :  { %25249 = vmatpush3.msra.mxu1 %v31226_v29  ;;  %25262 = vmatprep.mubr.f32.mxu1 %v22283_v60  ;;  %v22284_v3 = vsub.f32 %v22282_v33, %v22283_v60  ;;  %v22295_v56 = vand.u32 4294901760, %v22294_v27 }
0x1c82   :  { %25250 = vmatprep.subr.mxu1 %v31236_v62 }
0x1c83   :  { %25251 = vmatpush3.msra.mxu1 %v31236_v62  ;;  %v22285_v44 = vand.u32 4294901760, %v22284_v3 }
0x1c84   :  { %25252 = vmatprep.subr.mxu1 %v31248_v35 }
0x1c85   :  { %25253 = vmatpush3.msra.mxu1 %v31248_v35  ;;  %25205 = vmatprep.mubr.f32.mxu0 %v22285_v44 }
0x1c86   :  { %25254 = vmatprep.subr.mxu1 %v31261_v14  ;;  %25206 = vmatmul.mubr.f32.vlgmr.msra.gmra.mxu0 %v22295_v56 }
0x1c87   :  { %25228 = vmatpush3.msra.mxu0 %v31224_v36  ;;  %25255 = vmatpush3.msra.mxu1 %v31261_v14 }
0x1c88   :  { %25229 = vmatprep.subr.mxu0 %v31234_v46  ;;  %25243 = vmatprep.mubr.f32.mxu0 %v22282_v33 }
0x1c89   :  { %25256 = vmatprep.subr.mxu1 %v31269_v22  ;;  %25230 = vmatpush3.msra.mxu0 %v31234_v46 }
0x1c8a   :  { %25257 = vmatpush3.msra.mxu1 %v31269_v22  ;;  %25231 = vmatprep.subr.mxu0 %v31246_v1 }
0x1c8b   :  { %25258 = vmatprep.subr.mxu1 %v31280_v57  ;;  %25232 = vmatpush3.msra.mxu0 %v31246_v1 }
0x1c8c   :  { %25259 = vmatpush3.msra.mxu1 %v31280_v57  ;;  %25233 = vmatprep.subr.mxu0 %v31258_v38 }
0x1c8d   :  { %25260 = vmatprep.subr.mxu1 %v31293_v52  ;;  %25234 = vmatpush3.msra.mxu0 %v31258_v38 }
0x1c8e   :  { %25261 = vmatpush3.msra.mxu1 %v31293_v52  ;;  %25235 = vmatprep.subr.mxu0 %v31272_v15 }
0x1c8f   :  { %25263 = vmatmul.mubr.f32.vlgmr.msra.gmra.mxu1 %v22293_v19  ;;  %25284 = vmatprep.subr.mxu1 %v31221_v18 }
0x1c90   :  { %25236 = vmatpush3.msra.mxu0 %v31272_v15  ;;  %25285 = vmatpush3.msra.mxu1 %v31221_v18 }
0x1c91   :  { %25300 = vmatprep.mubr.f32.mxu1 %v22281_v51  ;;  %25237 = vmatprep.subr.mxu0 %v31278_v11 }
0x1c92   :  { %25286 = vmatprep.subr.mxu1 %v31226_v29  ;;  %25238 = vmatpush3.msra.mxu0 %v31278_v11 }
0x1c93   :  { %25287 = vmatpush3.msra.mxu1 %v31226_v29  ;;  %25239 = vmatprep.subr.mxu0 %v31291_v20 }
0x1c94   :  { %25288 = vmatprep.subr.mxu1 %v31236_v62  ;;  %25240 = vmatpush3.msra.mxu0 %v31291_v20 }
0x1c95   :  { %25289 = vmatpush3.msra.mxu1 %v31236_v62  ;;  %25241 = vmatprep.subr.mxu0 %v31305_v9 }
0x1c96   :  { %25290 = vmatprep.subr.mxu1 %v31248_v35  ;;  %25242 = vmatpush3.msra.mxu0 %v31305_v9 }
0x1c97   :  { %25291 = vmatpush3.msra.mxu1 %v31248_v35  ;;  %25244 = vmatmul.mubr.f32.vlgmr.msra.gmra.mxu0 %v22292_v42 }
0x1c98   :  { %25265 = vmatprep.subr.mxu0 %v31231_v61  ;;  %25292 = vmatprep.subr.mxu1 %v31261_v14 }
0x1c99   :  { %25266 = vmatpush3.msra.mxu0 %v31231_v61  ;;  %25281 = vmatprep.mubr.f32.mxu0 %v22281_v51 }
0x1c9a   :  { %25293 = vmatpush3.msra.mxu1 %v31261_v14  ;;  %25267 = vmatprep.subr.mxu0 %v31243_v5 }
0x1c9b   :  { %25294 = vmatprep.subr.mxu1 %v31269_v22  ;;  %25268 = vmatpush3.msra.mxu0 %v31243_v5 }
0x1c9c   :  { %25295 = vmatpush3.msra.mxu1 %v31269_v22  ;;  %25269 = vmatprep.subr.mxu0 %v31255_v16 }
0x1c9d   :  { %25296 = vmatprep.subr.mxu1 %v31280_v57  ;;  %25270 = vmatpush3.msra.mxu0 %v31255_v16 }
0x1c9e   :  { %25297 = vmatpush3.msra.mxu1 %v31280_v57  ;;  %25271 = vmatprep.subr.mxu0 %v31267_v23 }
0x1c9f   :  { %25298 = vmatprep.subr.mxu1 %v31293_v52  ;;  %25272 = vmatpush3.msra.mxu0 %v31267_v23 }
0x1ca0   :  { %25299 = vmatpush3.msra.mxu1 %v31293_v52  ;;  %25273 = vmatprep.subr.mxu0 %v31284_v26 }
0x1ca1   :  { %25301 = vmatmul.mubr.f32.vlgmr.msra.gmra.mxu1 %v31320_v0  ;;  %25274 = vmatpush3.msra.mxu0 %v31284_v26 }
0x1ca2   :  { %25275 = vmatprep.subr.mxu0 %v31288_v48 }
0x1ca3   :  { %25276 = vmatpush3.msra.mxu0 %v31288_v48 }
0x1ca4   :  { %25277 = vmatprep.subr.mxu0 %v31302_v55 }
0x1ca5   :  { %25278 = vmatpush3.msra.mxu0 %v31302_v55 }
0x1ca6   :  { %25279 = vmatprep.subr.mxu0 %v31312_v25 }
0x1ca7   :  { %25280 = vmatpush3.msra.mxu0 %v31312_v25 }
0x1ca8   :  { %25282 = vmatmul.mubr.f32.vlgmr.msra.gmra.mxu0 %v31320_v0 }
0x1d3e   :  { %v25226_v36 = vpop.f32.mrf.mxu1 }
0x1d40   :  { %v22408_v5 = vpop.f32.mrf.mxu1 }
0x1d46   :  { %v25207_v18 = vpop.f32.mrf.mxu0 }
0x1d47   :  { %v22298_v61 = vadd.f32 %v25207_v18, %v31149_v50 }
0x1d48   :  { %v22287_v29 = vpop.f32.mrf.mxu0 }
0x1d49   :  { %v22288_v62 = vadd.f32 %v22287_v29, %v31144_v37  ;;  %v22415_v1 = vadd.f32 %v25226_v36, %v22298_v61 }
0x1d4b   :  { %v22409_v14 = vadd.f32 %v22408_v5, %v22288_v62 }
0x1d4f   :  { %v25264_v35 = vpop.f32.mrf.mxu1 }
0x1d51   :  { %v22590_v22 = vpop.f32.mrf.mxu1 }
0x1d57   :  { %v25245_v46 = vpop.f32.mrf.mxu0 }
0x1d58   :  { %v22510_v38 = vadd.f32 %v25245_v46, %v22415_v1 }
0x1d59   :  { %v22502_v16 = vpop.f32.mrf.mxu0 }
0x1d5a   :  { %v22503_v23 = vadd.f32 %v22502_v16, %v22409_v14  ;;  %v22599_v15 = vadd.f32 %v25264_v35, %v22510_v38 }
0x1d5c   :  { %v22591_v48 = vadd.f32 %v22590_v22, %v22503_v23 }
0x1d61   :  { %v25302_v11 = vpop.f32.mrf.mxu1 }
0x1d63   :  { %v22778_v50 = vpop.f32.mrf.mxu1 }
0x1d68   :  { %v25283_v57 = vpop.f32.mrf.mxu0 }
0x1d69   :  { %v22700_v26 = vadd.f32 %v25283_v57, %v22599_v15 }
0x1d6a   :  { %v22693_v20 = vpop.f32.mrf.mxu0 }
0x1d6b   :  { %v22694_v52 = vadd.f32 %v22693_v20, %v22591_v48  ;;  %v22785_v55 = vadd.f32 %v25302_v11, %v22700_v26 }
0x1d6d   :  { %v22791_v9 = vsel %vm220_vm0, %v22785_v55, 0.0  ;;  %v22779_v37 = vadd.f32 %v22778_v50, %v22694_v52 }
0x1d6e   :  { %22792 = vadd.xlane.f32.xlu1 %v22791_v9 }
0x1d6f   :  { %v22788_v25 = vsel %vm220_vm0, %v22779_v37, 0.0 }
0x1d70   :  { %22789 = vadd.xlane.f32.xlu0 %v22788_v25 }
0x1df7   :  { %v22793_v34 = vpop.xlane.xlu1 %22792 }
0x1df8   :  { %v22795_v53 = vmul.f32 0.015625, %v22793_v34 }
0x1df9   :  { %v22790_v47 = vpop.xlane.xlu0 %22789 }
0x1dfa   :  { %v22797_v28 = vsub.f32 %v22785_v55, %v22795_v53  ;;  %v22794_v45 = vmul.f32 0.015625, %v22790_v47 }
0x1dfc   :  { %v22796_v32 = vsub.f32 %v22779_v37, %v22794_v45  ;;  %v22799_v2 = vmul.f32 %v22797_v28, %v22797_v28 }
0x1dfe   :  { %v22803_v12 = vsel %vm220_vm0, %v22799_v2, 0.0  ;;  %v22798_v10 = vmul.f32 %v22796_v32, %v22796_v32 }
0x1dff   :  { %22804 = vadd.xlane.f32.xlu1 %v22803_v12 }
0x1e00   :  { %v22800_v24 = vsel %vm220_vm0, %v22798_v10, 0.0 }
0x1e01   :  { %22801 = vadd.xlane.f32.xlu0 %v22800_v24 }
0x1e02   :  { %25529 = shalt.err (!%p25526_p6)
}
0x1e03   :  { %22839 = dma.vmem_to_hbm [thread:$0]  %s22834_s4, 1024, %s31427_s12, [#allocation15], %s25591_s28, %s25591_s28, %s25592_s29  }
0x1e04   :  { %s25605_s5 = smov [#allocation16]  }
0x1e05   :  { %s22845_s17 = sshll.u32 %s25605_s5, 4  ;;  %s22846_s17 = int_to_ptr.vmem [resolvable:$true] %s22845_s17 }
0x1e06   :  { %s25538_s0 = scalar_lea.vmem %s22846_s17, 1024  ;;  %p25543_p8 = scmp.lt.s32.totalorder %s22846_s17, %s22846_s17 }
0x1e07   :  { %p25539_p7 = scmp.ne.s32.totalorder %s22846_s17, %s25538_s0  ;;  %p25544_p9 = scmp.lt.s32.totalorder %s25538_s0, %s25538_s0 }
0x1e09   :  { %p25545_p10 = por %p25544_p9, %p25543_p8 }
0x1e0b   :  { %p25546_p11 = pnand %p25545_p10, %p25539_p7 }
0x1e0d   :  { %25549 = shalt.err (!%p25546_p11)
}
0x1e0e   :  { %22851 = dma.vmem_to_hbm [thread:$0]  %s22846_s17, 1024, %s31428_s13, [#allocation15], %s25591_s28, %s25591_s28, %s25592_s29  }
0x1e0f   :  { %s25606_s12 = smov [#allocation13]  }
0x1e10   :  { %s22821_s7 = sshll.u32 %s25606_s12, 4  ;;  %s22822_s7 = int_to_ptr.vmem [resolvable:$true] %s22821_s7 }
0x1e11   :  { %s25558_s13 = scalar_lea.vmem %s22822_s7, 256  ;;  %p25563_p13 = scmp.lt.s32.totalorder %s22822_s7, %s22822_s7 }
0x1e12   :  { %p25559_p12 = scmp.ne.s32.totalorder %s22822_s7, %s25558_s13  ;;  %p25564_p0 = scmp.lt.s32.totalorder %s25558_s13, %s25558_s13 }
0x1e14   :  { %p25565_p1 = por %p25564_p0, %p25563_p13 }
0x1e16   :  { %p25566_p2 = pnand %p25565_p1, %p25559_p12 }
0x1e88   :  { %v22805_v40 = vpop.xlane.xlu1 %22804 }
0x1e89   :  { %v22807_v59 = vmul.f32 0.015625, %v22805_v40 }
0x1e8a   :  { %v22802_v4 = vpop.xlane.xlu0 %22801 }
0x1e8b   :  { %v22809_v49 = vadd.f32 1e-05, %v22807_v59  ;;  %v22806_v13 = vmul.f32 0.015625, %v22802_v4 }
0x1e8d   :  { %25392 = vrsqrt.f32 %v22809_v49  ;;  %v22808_v31 = vadd.f32 1e-05, %v22806_v13 }
0x1e8f   :  { %25394 = vrsqrt.f32 %v22808_v31 }
0x1e9a   :  { %v25393_v39 = vpop.eup %25392 }
0x1e9b   :  { %v22813_v43 = vmul.f32 %v25393_v39, %v22797_v28 }
0x1e9c   :  { %v25395_v41 = vpop.eup %25394 }
0x1e9d   :  { %v22812_v58 = vmul.f32 %v25395_v41, %v22796_v32  ;;  %22815 = vst.msk [vmem:[#allocation13 + $0x8] sm:$0xff] %vm220_vm0, %v22813_v43 }
0x1e9f   :  { %22814 = vst.msk [vmem:[#allocation13] sm:$0xff] %vm220_vm0, %v22812_v58 }
0x1ea0   :  { %25569 = shalt.err (!%p25566_p2)
}
0x1ea1   :  { %22827 = dma.vmem_to_hbm [thread:$0]  %s22822_s7, 256, %s31426_s11, [#allocation4], %s25591_s28, %s25591_s28, %s25592_s29  }
0x1ea2   :  { %25586 = dma.done.wait [#allocation4], 256  }
0x1ea3   :  { %25587 = vsyncadd [#allocation4], 4294967040 }
0x1ea4   :  { %25588 = dma.done.wait [#allocation15], 2048  }
0x1ea5   :  { %25589 = vsyncadd [#allocation15], 4294965248 }
0x1ea6   :  { %22861 = vsyncpa [#allocation3], 1 }
0x1ea7   :  { %22862 = vsyncpa [#allocation6], 1 }
0x1ea8   :  { %22863 = vsyncpa [#allocation9], 1 }
0x1ea9   :  { %22864 = vsyncpa [#allocation12], 1 }
0x1eaa   :  { %22865 = vsyncpa [#allocation4], 1 }
0x1eab   :  { %22866 = vsyncpa [#allocation15], 1 }

</bundles_post_ra>
